<compile_context>
chip_gen: v7x
topology: tpu7x:2x2x1
jax: 0.10.0
libtpu: 0.0.40
codegen_flags: <defaults>
</compile_context>

<pallas_src>
import jax
import jax.numpy as jnp
from jax import lax
from jax.experimental import pallas as pl
from jax.experimental.pallas import tpu as pltpu

BN_EPS = 1e-5
CONV_TB = 8      # images per conv grid step (multiple of 8)
MLP_TM = 256     # rows per MLP grid step when the batch is large


# ----------------------------- Pallas kernels ------------------------------

def _conv_pool_kernel(p_ref, w_ref, b_ref, o_ref):
    """Fused conv (as matmul) + folded-BN bias + ReLU + 2x2 max-pool.

    p_ref: (4, M, K)  im2col patches; axis 0 = the 4 taps of each 2x2 pooling
                      window, rows ordered (image, pooled_oh, pooled_ow).
    w_ref: (K, C)     conv weight with BN scale folded in (rows = kh,kw,ci).
    b_ref: (1, C)     folded BN shift.
    o_ref: (M, C)     pooled + ReLU'd activations.
    """
    w = w_ref[...]
    b = b_ref[...]

    def tap(t):
        y = jnp.dot(p_ref[t], w, preferred_element_type=jnp.float32) + b
        # relu is monotonic => relu-then-pool == pool-then-relu (torch order).
        return jnp.maximum(y, 0.0)

    pooled = jnp.maximum(jnp.maximum(tap(0), tap(1)),
                         jnp.maximum(tap(2), tap(3)))
    o_ref[...] = pooled.astype(o_ref.dtype)


def fused_conv_pool(patches, w_eff, b_eff, *, rows_per_tile):
    four, R, K = patches.shape
    assert four == 4 and R % rows_per_tile == 0
    C = w_eff.shape[1]
    return pl.pallas_call(
        _conv_pool_kernel,
        out_shape=jax.ShapeDtypeStruct((R, C), jnp.float32),
        grid=(R // rows_per_tile,),
        in_specs=[
            pl.BlockSpec((4, rows_per_tile, K), lambda t: (0, t, 0)),
            pl.BlockSpec((K, C), lambda t: (0, 0)),
            pl.BlockSpec((1, C), lambda t: (0, 0)),
        ],
        out_specs=pl.BlockSpec((rows_per_tile, C), lambda t: (t, 0)),
        compiler_params=pltpu.CompilerParams(dimension_semantics=("parallel",)),
    )(patches, w_eff, b_eff)


def _mlp_kernel(x_ref, w1_ref, b1_ref, w2_ref, b2_ref, w3_ref, b3_ref, o_ref):
    h = jnp.dot(x_ref[...], w1_ref[...], preferred_element_type=jnp.float32) + b1_ref[...]
    h = jnp.maximum(h, 0.0)
    h = jnp.dot(h, w2_ref[...], preferred_element_type=jnp.float32) + b2_ref[...]
    h = jnp.maximum(h, 0.0)
    y = jnp.dot(h, w3_ref[...], preferred_element_type=jnp.float32) + b3_ref[...]
    o_ref[...] = y.astype(o_ref.dtype)


def mlp_classifier(x, w1, b1, w2, b2, w3, b3, *, rows_per_tile):
    B, D = x.shape
    assert B % rows_per_tile == 0
    N = w3.shape[1]                                   # 128 (padded; sliced outside)

    def full(a):
        return pl.BlockSpec(a.shape, lambda t: (0,) * a.ndim)

    return pl.pallas_call(
        _mlp_kernel,
        out_shape=jax.ShapeDtypeStruct((B, N), jnp.float32),
        grid=(B // rows_per_tile,),
        in_specs=[pl.BlockSpec((rows_per_tile, D), lambda t: (t, 0)),
                  full(w1), full(b1), full(w2), full(b2), full(w3), full(b3)],
        out_specs=pl.BlockSpec((rows_per_tile, N), lambda t: (t, 0)),
        compiler_params=pltpu.CompilerParams(dimension_semantics=("parallel",)),
    )(x, w1, b1, w2, b2, w3, b3)


# --------------------------------- Glue -------------------------------------

def im2col_pooled(x_nhwc, k):
    """NHWC -> pool-tap-major im2col patches.

    Returns (4, B*PH*PW, k*k*C): axis 0 = 2x2 pooling-window tap (p*2+q), rows
    ordered (b, pooled_oh, pooled_ow), cols ordered (kh, kw, ci) -- matching the
    folded conv weight layout."""
    B, H, W, C = x_nhwc.shape
    OH, OW = H - k + 1, W - k + 1
    PH, PW = OH // 2, OW // 2
    taps = [x_nhwc[:, kh:kh + OH, kw:kw + OW, :]
            for kh in range(k) for kw in range(k)]      # each (B, OH, OW, C)
    p = jnp.stack(taps, axis=3)                         # (B, OH, OW, k*k, C)
    p = p.reshape(B, PH, 2, PW, 2, k * k * C)           # oh=2i+pp, ow=2j+qq
    p = p.transpose(2, 4, 0, 1, 3, 5)                   # (pp, qq, B, PH, PW, K)
    return p.reshape(4, B * PH * PW, k * k * C), PH, PW


def fold_bn(w_oihw, gamma, beta, mean, var):
    """conv(bias=False) followed by eval-mode BN == conv with scaled weight + shift.

    Returns (k*k*Cin, Cout) weight with (kh, kw, ci) row order and (1, Cout) shift."""
    scale = gamma / jnp.sqrt(var + BN_EPS)              # (C_out,)
    shift = beta - mean * scale                         # (C_out,)
    c_out = w_oihw.shape[0]
    w_mat = jnp.transpose(w_oihw, (2, 3, 1, 0)).reshape(-1, c_out)
    return w_mat * scale[None, :], shift.reshape(1, c_out)


def lenet_forward(x, p):
    B = x.shape[0]
    # Pad batch to a tile-friendly size (zeros; padded rows sliced off at the end).
    if B >= MLP_TM:
        Bp = ((B + MLP_TM - 1) // MLP_TM) * MLP_TM
        mlp_rows = MLP_TM
    else:
        Bp = ((B + CONV_TB - 1) // CONV_TB) * CONV_TB
        mlp_rows = Bp

    # One-time weight prep: BN folded into conv weights; fc1 rows permuted so the
    # NHWC flatten of the last feature map equals torch's NCHW .view(-1, 400);
    # fc3 padded to 128 output lanes for a lane-dense final store.
    w1, b1 = fold_bn(p["conv1_w"], p["bn1_g"], p["bn1_b"], p["bn1_m"], p["bn1_v"])
    w2, b2 = fold_bn(p["conv2_w"], p["bn2_g"], p["bn2_b"], p["bn2_m"], p["bn2_v"])
    fc1_w = p["fc1_w"].reshape(120, 16, 5, 5).transpose(2, 3, 1, 0).reshape(400, 120)
    fc2_w = p["fc2_w"].T
    fc3_w = jnp.zeros((84, 128), jnp.float32).at[:, :10].set(p["fc3_w"].T)
    fc1_b = p["fc1_b"][None, :]
    fc2_b = p["fc2_b"][None, :]
    fc3_b = jnp.zeros((1, 128), jnp.float32).at[:, :10].set(p["fc3_b"][None, :])

    # --- feature block 1: conv(1->6, k=5, pad=2) + BN + ReLU + maxpool(2,2) ---
    xp = jnp.pad(x, ((0, Bp - B), (0, 0), (2, 2), (2, 2)))
    x_nhwc = xp.reshape(Bp, 32, 32, 1)                            # C_in == 1
    p1, ph1, pw1 = im2col_pooled(x_nhwc, 5)                       # (4, Bp*196, 25)
    y1 = fused_conv_pool(p1, w1, b1, rows_per_tile=CONV_TB * ph1 * pw1)
    y1 = y1.reshape(Bp, ph1, pw1, 6)                              # (Bp, 14, 14, 6)

    # --- feature block 2: conv(6->16, k=5, valid) + BN + ReLU + maxpool(2,2) ---
    p2, ph2, pw2 = im2col_pooled(y1, 5)                           # (4, Bp*25, 150)
    y2 = fused_conv_pool(p2, w2, b2, rows_per_tile=CONV_TB * ph2 * pw2)

    # --- classifier (flatten handled by the fc1 row permutation) ---
    flat = y2.reshape(Bp, ph2 * pw2 * 16)                         # (Bp, 400) NHWC order
    logits = mlp_classifier(flat, fc1_w, fc1_b, fc2_w, fc2_b, fc3_w, fc3_b,
                            rows_per_tile=mlp_rows)               # (Bp, 128)
    return logits[:B, :10]


# --------------------------- params & reference ------------------------------

def init_params(key):
    ks = jax.random.split(key, 8)
    return {
        "conv1_w": 0.10 * jax.random.normal(ks[0], (6, 1, 5, 5), jnp.float32),
        "conv2_w": 0.05 * jax.random.normal(ks[1], (16, 6, 5, 5), jnp.float32),
        # BatchNorm2d deterministic fresh init.
        "bn1_g": jnp.ones((6,), jnp.float32), "bn1_b": jnp.zeros((6,), jnp.float32),
        "bn1_m": jnp.zeros((6,), jnp.float32), "bn1_v": jnp.ones((6,), jnp.float32),
        "bn2_g": jnp.ones((16,), jnp.float32), "bn2_b": jnp.zeros((16,), jnp.float32),
        "bn2_m": jnp.zeros((16,), jnp.float32), "bn2_v": jnp.ones((16,), jnp.float32),
        "fc1_w": 0.05 * jax.random.normal(ks[2], (120, 400), jnp.float32),
        "fc1_b": 0.01 * jax.random.normal(ks[3], (120,), jnp.float32),
        "fc2_w": 0.05 * jax.random.normal(ks[4], (84, 120), jnp.float32),
        "fc2_b": 0.01 * jax.random.normal(ks[5], (84,), jnp.float32),
        "fc3_w": 0.05 * jax.random.normal(ks[6], (10, 84), jnp.float32),
        "fc3_b": 0.01 * jax.random.normal(ks[7], (10,), jnp.float32),
    }


def lenet_reference(x, p):
    """Pure-JAX reference (XLA conv) for correctness checking."""
    hp = lax.Precision.HIGHEST

    def bn(y, g, b, m, v):
        sc = (g / jnp.sqrt(v + BN_EPS))[None, :, None, None]
        return (y - m[None, :, None, None]) * sc + b[None, :, None, None]

    def pool(y):
        B, C, H, W = y.shape
        return y.reshape(B, C, H // 2, 2, W // 2, 2).max(axis=(3, 5))

    y = lax.conv_general_dilated(x, p["conv1_w"], (1, 1), ((2, 2), (2, 2)),
                                 dimension_numbers=("NCHW", "OIHW", "NCHW"),
                                 precision=hp)
    y = pool(jnp.maximum(bn(y, p["bn1_g"], p["bn1_b"], p["bn1_m"], p["bn1_v"]), 0.0))
    y = lax.conv_general_dilated(y, p["conv2_w"], (1, 1), ((0, 0), (0, 0)),
                                 dimension_numbers=("NCHW", "OIHW", "NCHW"),
                                 precision=hp)
    y = pool(jnp.maximum(bn(y, p["bn2_g"], p["bn2_b"], p["bn2_m"], p["bn2_v"]), 0.0))
    flat = y.reshape(x.shape[0], -1)
    h = jnp.maximum(jnp.dot(flat, p["fc1_w"].T, precision=hp) + p["fc1_b"], 0.0)
    h = jnp.maximum(jnp.dot(h, p["fc2_w"].T, precision=hp) + p["fc2_b"], 0.0)
    return jnp.dot(h, p["fc3_w"].T, precision=hp) + p["fc3_b"]


if __name__ == "__main__":
    B = 4
    x = jax.random.normal(jax.random.PRNGKey(0), (B, 1, 28, 28), jnp.float32)
    params = init_params(jax.random.PRNGKey(42))

    fwd = jax.jit(lenet_forward)
    out = jax.block_until_ready(fwd(x, params))
    assert out.shape == (B, 10), out.shape

    ref = lenet_reference(x, params)
    err = float(jnp.max(jnp.abs(out - ref)))
    assert err < 5e-3, f"max abs err vs reference: {err}"

    print("KERNEL_OK")
</pallas_src>

<mosaic_0001>
module attributes {stable_mosaic.version = 11 : i64} {
  func.func @_conv_pool_kernel(%arg0: i32, %arg1: memref<4x1568x25xf32, #tpu.memory_space<vmem>>, %arg2: memref<25x6xf32, #tpu.memory_space<vmem>>, %arg3: memref<1x6xf32, #tpu.memory_space<vmem>>, %arg4: memref<1568x6xf32, #tpu.memory_space<vmem>>) attributes {dimension_semantics = [#tpu.dimension_semantics<parallel>], iteration_bounds = array<i64: 1>, scalar_prefetch = 0 : i64, scratch_operands = 0 : i64, tpu.core_type = #tpu.core_type<tc>, window_params = [{transform_indices = @transform_0, window_bounds = array<i64: 4, 1568, 25>}, {pipeline_mode = #tpu.pipeline_mode<synchronous>, transform_indices = @transform_1, window_bounds = array<i64: 25, 6>}, {pipeline_mode = #tpu.pipeline_mode<synchronous>, transform_indices = @transform_2, window_bounds = array<i64: 1, 6>}, {transform_indices = @transform_3, window_bounds = array<i64: 1568, 6>}]} {
    %c0 = arith.constant 0 : index
    %c0_0 = arith.constant 0 : index
    %0 = vector.load %arg2[%c0, %c0_0] : memref<25x6xf32, #tpu.memory_space<vmem>>, vector<25x6xf32>
    %c0_1 = arith.constant 0 : index
    %c0_2 = arith.constant 0 : index
    %1 = vector.load %arg3[%c0_1, %c0_2] : memref<1x6xf32, #tpu.memory_space<vmem>>, vector<1x6xf32>
    %c0_3 = arith.constant 0 : index
    %c0_4 = arith.constant 0 : index
    %c0_5 = arith.constant 0 : index
    %2 = vector.load %arg1[%c0_3, %c0_4, %c0_5] : memref<4x1568x25xf32, #tpu.memory_space<vmem>>, vector<1x1568x25xf32>
    %3 = vector.shape_cast %2 : vector<1x1568x25xf32> to vector<1568x25xf32>
    %cst = arith.constant dense<0.000000e+00> : vector<1568x6xf32>
    %4 = tpu.matmul %3, %0, %cst {dimension_numbers = #tpu.dot_dimension_numbers<[1], [0], [0], [1], [0, 0, 1, 1], [], []>} : vector<1568x25xf32>, vector<25x6xf32>, vector<1568x6xf32> -> vector<1568x6xf32>
    %5 = vector.broadcast %1 : vector<1x6xf32> to vector<1568x6xf32>
    %6 = arith.addf %4, %5 : vector<1568x6xf32>
    %cst_6 = arith.constant 0.000000e+00 : f32
    %7 = vector.broadcast %cst_6 : f32 to vector<1568x6xf32>
    %8 = arith.maximumf %6, %7 : vector<1568x6xf32>
    %c1 = arith.constant 1 : index
    %c0_7 = arith.constant 0 : index
    %c0_8 = arith.constant 0 : index
    %9 = vector.load %arg1[%c1, %c0_7, %c0_8] : memref<4x1568x25xf32, #tpu.memory_space<vmem>>, vector<1x1568x25xf32>
    %10 = vector.shape_cast %9 : vector<1x1568x25xf32> to vector<1568x25xf32>
    %cst_9 = arith.constant dense<0.000000e+00> : vector<1568x6xf32>
    %11 = tpu.matmul %10, %0, %cst_9 {dimension_numbers = #tpu.dot_dimension_numbers<[1], [0], [0], [1], [0, 0, 1, 1], [], []>} : vector<1568x25xf32>, vector<25x6xf32>, vector<1568x6xf32> -> vector<1568x6xf32>
    %12 = vector.broadcast %1 : vector<1x6xf32> to vector<1568x6xf32>
    %13 = arith.addf %11, %12 : vector<1568x6xf32>
    %cst_10 = arith.constant 0.000000e+00 : f32
    %14 = vector.broadcast %cst_10 : f32 to vector<1568x6xf32>
    %15 = arith.maximumf %13, %14 : vector<1568x6xf32>
    %16 = arith.maximumf %8, %15 : vector<1568x6xf32>
    %c2 = arith.constant 2 : index
    %c0_11 = arith.constant 0 : index
    %c0_12 = arith.constant 0 : index
    %17 = vector.load %arg1[%c2, %c0_11, %c0_12] : memref<4x1568x25xf32, #tpu.memory_space<vmem>>, vector<1x1568x25xf32>
    %18 = vector.shape_cast %17 : vector<1x1568x25xf32> to vector<1568x25xf32>
    %cst_13 = arith.constant dense<0.000000e+00> : vector<1568x6xf32>
    %19 = tpu.matmul %18, %0, %cst_13 {dimension_numbers = #tpu.dot_dimension_numbers<[1], [0], [0], [1], [0, 0, 1, 1], [], []>} : vector<1568x25xf32>, vector<25x6xf32>, vector<1568x6xf32> -> vector<1568x6xf32>
    %20 = vector.broadcast %1 : vector<1x6xf32> to vector<1568x6xf32>
    %21 = arith.addf %19, %20 : vector<1568x6xf32>
    %cst_14 = arith.constant 0.000000e+00 : f32
    %22 = vector.broadcast %cst_14 : f32 to vector<1568x6xf32>
    %23 = arith.maximumf %21, %22 : vector<1568x6xf32>
    %c3 = arith.constant 3 : index
    %c0_15 = arith.constant 0 : index
    %c0_16 = arith.constant 0 : index
    %24 = vector.load %arg1[%c3, %c0_15, %c0_16] : memref<4x1568x25xf32, #tpu.memory_space<vmem>>, vector<1x1568x25xf32>
    %25 = vector.shape_cast %24 : vector<1x1568x25xf32> to vector<1568x25xf32>
    %cst_17 = arith.constant dense<0.000000e+00> : vector<1568x6xf32>
    %26 = tpu.matmul %25, %0, %cst_17 {dimension_numbers = #tpu.dot_dimension_numbers<[1], [0], [0], [1], [0, 0, 1, 1], [], []>} : vector<1568x25xf32>, vector<25x6xf32>, vector<1568x6xf32> -> vector<1568x6xf32>
    %27 = vector.broadcast %1 : vector<1x6xf32> to vector<1568x6xf32>
    %28 = arith.addf %26, %27 : vector<1568x6xf32>
    %cst_18 = arith.constant 0.000000e+00 : f32
    %29 = vector.broadcast %cst_18 : f32 to vector<1568x6xf32>
    %30 = arith.maximumf %28, %29 : vector<1568x6xf32>
    %31 = arith.maximumf %23, %30 : vector<1568x6xf32>
    %32 = arith.maximumf %16, %31 : vector<1568x6xf32>
    %c0_19 = arith.constant 0 : index
    %c0_20 = arith.constant 0 : index
    %33 = vector.load %arg4[%c0_19, %c0_20] : memref<1568x6xf32, #tpu.memory_space<vmem>>, vector<1568x6xf32>
    tpu.vector_store %arg4[%c0_19, %c0_20], %32 {strides = array<i32>} : memref<1568x6xf32, #tpu.memory_space<vmem>>, vector<1568x6xf32>,
    return
  }
  func.func @transform_0(%arg0: i32) -> (i32, i32, i32) {
    %c0_i32 = arith.constant 0 : i32
    %c0_i32_0 = arith.constant 0 : i32
    %c0_i32_1 = arith.constant 0 : i32
    return %c0_i32, %arg0, %c0_i32_0 : i32, i32, i32
  }
  func.func @transform_1(%arg0: i32) -> (i32, i32) {
    %c0_i32 = arith.constant 0 : i32
    %c0_i32_0 = arith.constant 0 : i32
    %c0_i32_1 = arith.constant 0 : i32
    return %c0_i32, %c0_i32_0 : i32, i32
  }
  func.func @transform_2(%arg0: i32) -> (i32, i32) {
    %c0_i32 = arith.constant 0 : i32
    %c0_i32_0 = arith.constant 0 : i32
    %c0_i32_1 = arith.constant 0 : i32
    return %c0_i32, %c0_i32_0 : i32, i32
  }
  func.func @transform_3(%arg0: i32) -> (i32, i32) {
    %c0_i32 = arith.constant 0 : i32
    %c0_i32_0 = arith.constant 0 : i32
    return %arg0, %c0_i32 : i32, i32
  }
}

module attributes {stable_mosaic.version = 11 : i64} {
  func.func @_conv_pool_kernel(%arg0: i32, %arg1: memref<4x200x150xf32, #tpu.memory_space<vmem>>, %arg2: memref<150x16xf32, #tpu.memory_space<vmem>>, %arg3: memref<1x16xf32, #tpu.memory_space<vmem>>, %arg4: memref<200x16xf32, #tpu.memory_space<vmem>>) attributes {dimension_semantics = [#tpu.dimension_semantics<parallel>], iteration_bounds = array<i64: 1>, scalar_prefetch = 0 : i64, scratch_operands = 0 : i64, tpu.core_type = #tpu.core_type<tc>, window_params = [{transform_indices = @transform_0, window_bounds = array<i64: 4, 200, 150>}, {pipeline_mode = #tpu.pipeline_mode<synchronous>, transform_indices = @transform_1, window_bounds = array<i64: 150, 16>}, {pipeline_mode = #tpu.pipeline_mode<synchronous>, transform_indices = @transform_2, window_bounds = array<i64: 1, 16>}, {transform_indices = @transform_3, window_bounds = array<i64: 200, 16>}]} {
    %c0 = arith.constant 0 : index
    %c0_0 = arith.constant 0 : index
    %0 = vector.load %arg2[%c0, %c0_0] : memref<150x16xf32, #tpu.memory_space<vmem>>, vector<150x16xf32>
    %c0_1 = arith.constant 0 : index
    %c0_2 = arith.constant 0 : index
    %1 = vector.load %arg3[%c0_1, %c0_2] : memref<1x16xf32, #tpu.memory_space<vmem>>, vector<1x16xf32>
    %c0_3 = arith.constant 0 : index
    %c0_4 = arith.constant 0 : index
    %c0_5 = arith.constant 0 : index
    %2 = vector.load %arg1[%c0_3, %c0_4, %c0_5] : memref<4x200x150xf32, #tpu.memory_space<vmem>>, vector<1x200x150xf32>
    %3 = vector.shape_cast %2 : vector<1x200x150xf32> to vector<200x150xf32>
    %cst = arith.constant dense<0.000000e+00> : vector<200x16xf32>
    %4 = tpu.matmul %3, %0, %cst {dimension_numbers = #tpu.dot_dimension_numbers<[1], [0], [0], [1], [0, 0, 1, 1], [], []>} : vector<200x150xf32>, vector<150x16xf32>, vector<200x16xf32> -> vector<200x16xf32>
    %5 = vector.broadcast %1 : vector<1x16xf32> to vector<200x16xf32>
    %6 = arith.addf %4, %5 : vector<200x16xf32>
    %cst_6 = arith.constant 0.000000e+00 : f32
    %7 = vector.broadcast %cst_6 : f32 to vector<200x16xf32>
    %8 = arith.maximumf %6, %7 : vector<200x16xf32>
    %c1 = arith.constant 1 : index
    %c0_7 = arith.constant 0 : index
    %c0_8 = arith.constant 0 : index
    %9 = vector.load %arg1[%c1, %c0_7, %c0_8] : memref<4x200x150xf32, #tpu.memory_space<vmem>>, vector<1x200x150xf32>
    %10 = vector.shape_cast %9 : vector<1x200x150xf32> to vector<200x150xf32>
    %cst_9 = arith.constant dense<0.000000e+00> : vector<200x16xf32>
    %11 = tpu.matmul %10, %0, %cst_9 {dimension_numbers = #tpu.dot_dimension_numbers<[1], [0], [0], [1], [0, 0, 1, 1], [], []>} : vector<200x150xf32>, vector<150x16xf32>, vector<200x16xf32> -> vector<200x16xf32>
    %12 = vector.broadcast %1 : vector<1x16xf32> to vector<200x16xf32>
    %13 = arith.addf %11, %12 : vector<200x16xf32>
    %cst_10 = arith.constant 0.000000e+00 : f32
    %14 = vector.broadcast %cst_10 : f32 to vector<200x16xf32>
    %15 = arith.maximumf %13, %14 : vector<200x16xf32>
    %16 = arith.maximumf %8, %15 : vector<200x16xf32>
    %c2 = arith.constant 2 : index
    %c0_11 = arith.constant 0 : index
    %c0_12 = arith.constant 0 : index
    %17 = vector.load %arg1[%c2, %c0_11, %c0_12] : memref<4x200x150xf32, #tpu.memory_space<vmem>>, vector<1x200x150xf32>
    %18 = vector.shape_cast %17 : vector<1x200x150xf32> to vector<200x150xf32>
    %cst_13 = arith.constant dense<0.000000e+00> : vector<200x16xf32>
    %19 = tpu.matmul %18, %0, %cst_13 {dimension_numbers = #tpu.dot_dimension_numbers<[1], [0], [0], [1], [0, 0, 1, 1], [], []>} : vector<200x150xf32>, vector<150x16xf32>, vector<200x16xf32> -> vector<200x16xf32>
    %20 = vector.broadcast %1 : vector<1x16xf32> to vector<200x16xf32>
    %21 = arith.addf %19, %20 : vector<200x16xf32>
    %cst_14 = arith.constant 0.000000e+00 : f32
    %22 = vector.broadcast %cst_14 : f32 to vector<200x16xf32>
    %23 = arith.maximumf %21, %22 : vector<200x16xf32>
    %c3 = arith.constant 3 : index
    %c0_15 = arith.constant 0 : index
    %c0_16 = arith.constant 0 : index
    %24 = vector.load %arg1[%c3, %c0_15, %c0_16] : memref<4x200x150xf32, #tpu.memory_space<vmem>>, vector<1x200x150xf32>
    %25 = vector.shape_cast %24 : vector<1x200x150xf32> to vector<200x150xf32>
    %cst_17 = arith.constant dense<0.000000e+00> : vector<200x16xf32>
    %26 = tpu.matmul %25, %0, %cst_17 {dimension_numbers = #tpu.dot_dimension_numbers<[1], [0], [0], [1], [0, 0, 1, 1], [], []>} : vector<200x150xf32>, vector<150x16xf32>, vector<200x16xf32> -> vector<200x16xf32>
    %27 = vector.broadcast %1 : vector<1x16xf32> to vector<200x16xf32>
    %28 = arith.addf %26, %27 : vector<200x16xf32>
    %cst_18 = arith.constant 0.000000e+00 : f32
    %29 = vector.broadcast %cst_18 : f32 to vector<200x16xf32>
    %30 = arith.maximumf %28, %29 : vector<200x16xf32>
    %31 = arith.maximumf %23, %30 : vector<200x16xf32>
    %32 = arith.maximumf %16, %31 : vector<200x16xf32>
    %c0_19 = arith.constant 0 : index
    %c0_20 = arith.constant 0 : index
    %33 = vector.load %arg4[%c0_19, %c0_20] : memref<200x16xf32, #tpu.memory_space<vmem>>, vector<200x16xf32>
    tpu.vector_store %arg4[%c0_19, %c0_20], %32 {strides = array<i32>} : memref<200x16xf32, #tpu.memory_space<vmem>>, vector<200x16xf32>,
    return
  }
  func.func @transform_0(%arg0: i32) -> (i32, i32, i32) {
    %c0_i32 = arith.constant 0 : i32
    %c0_i32_0 = arith.constant 0 : i32
    %c0_i32_1 = arith.constant 0 : i32
    return %c0_i32, %arg0, %c0_i32_0 : i32, i32, i32
  }
  func.func @transform_1(%arg0: i32) -> (i32, i32) {
    %c0_i32 = arith.constant 0 : i32
    %c0_i32_0 = arith.constant 0 : i32
    %c0_i32_1 = arith.constant 0 : i32
    return %c0_i32, %c0_i32_0 : i32, i32
  }
  func.func @transform_2(%arg0: i32) -> (i32, i32) {
    %c0_i32 = arith.constant 0 : i32
    %c0_i32_0 = arith.constant 0 : i32
    %c0_i32_1 = arith.constant 0 : i32
    return %c0_i32, %c0_i32_0 : i32, i32
  }
  func.func @transform_3(%arg0: i32) -> (i32, i32) {
    %c0_i32 = arith.constant 0 : i32
    %c0_i32_0 = arith.constant 0 : i32
    return %arg0, %c0_i32 : i32, i32
  }
}

module attributes {stable_mosaic.version = 11 : i64} {
  func.func @_mlp_kernel(%arg0: i32, %arg1: memref<8x400xf32, #tpu.memory_space<vmem>>, %arg2: memref<400x120xf32, #tpu.memory_space<vmem>>, %arg3: memref<1x120xf32, #tpu.memory_space<vmem>>, %arg4: memref<120x84xf32, #tpu.memory_space<vmem>>, %arg5: memref<1x84xf32, #tpu.memory_space<vmem>>, %arg6: memref<84x128xf32, #tpu.memory_space<vmem>>, %arg7: memref<1x128xf32, #tpu.memory_space<vmem>>, %arg8: memref<8x128xf32, #tpu.memory_space<vmem>>) attributes {dimension_semantics = [#tpu.dimension_semantics<parallel>], iteration_bounds = array<i64: 1>, scalar_prefetch = 0 : i64, scratch_operands = 0 : i64, tpu.core_type = #tpu.core_type<tc>, window_params = [{transform_indices = @transform_0, window_bounds = array<i64: 8, 400>}, {pipeline_mode = #tpu.pipeline_mode<synchronous>, transform_indices = @transform_1, window_bounds = array<i64: 400, 120>}, {pipeline_mode = #tpu.pipeline_mode<synchronous>, transform_indices = @transform_2, window_bounds = array<i64: 1, 120>}, {pipeline_mode = #tpu.pipeline_mode<synchronous>, transform_indices = @transform_3, window_bounds = array<i64: 120, 84>}, {pipeline_mode = #tpu.pipeline_mode<synchronous>, transform_indices = @transform_4, window_bounds = array<i64: 1, 84>}, {pipeline_mode = #tpu.pipeline_mode<synchronous>, transform_indices = @transform_5, window_bounds = array<i64: 84, 128>}, {pipeline_mode = #tpu.pipeline_mode<synchronous>, transform_indices = @transform_6, window_bounds = array<i64: 1, 128>}, {transform_indices = @transform_7, window_bounds = array<i64: 8, 128>}]} {
    %c0 = arith.constant 0 : index
    %c0_0 = arith.constant 0 : index
    %0 = vector.load %arg1[%c0, %c0_0] : memref<8x400xf32, #tpu.memory_space<vmem>>, vector<8x400xf32>
    %c0_1 = arith.constant 0 : index
    %c0_2 = arith.constant 0 : index
    %1 = vector.load %arg2[%c0_1, %c0_2] : memref<400x120xf32, #tpu.memory_space<vmem>>, vector<400x120xf32>
    %cst = arith.constant dense<0.000000e+00> : vector<8x120xf32>
    %2 = tpu.matmul %0, %1, %cst {dimension_numbers = #tpu.dot_dimension_numbers<[1], [0], [0], [1], [0, 0, 1, 1], [], []>} : vector<8x400xf32>, vector<400x120xf32>, vector<8x120xf32> -> vector<8x120xf32>
    %c0_3 = arith.constant 0 : index
    %c0_4 = arith.constant 0 : index
    %3 = vector.load %arg3[%c0_3, %c0_4] : memref<1x120xf32, #tpu.memory_space<vmem>>, vector<1x120xf32>
    %4 = vector.broadcast %3 : vector<1x120xf32> to vector<8x120xf32>
    %5 = arith.addf %2, %4 : vector<8x120xf32>
    %cst_5 = arith.constant 0.000000e+00 : f32
    %6 = vector.broadcast %cst_5 : f32 to vector<8x120xf32>
    %7 = arith.maximumf %5, %6 : vector<8x120xf32>
    %c0_6 = arith.constant 0 : index
    %c0_7 = arith.constant 0 : index
    %8 = vector.load %arg4[%c0_6, %c0_7] : memref<120x84xf32, #tpu.memory_space<vmem>>, vector<120x84xf32>
    %cst_8 = arith.constant dense<0.000000e+00> : vector<8x84xf32>
    %9 = tpu.matmul %7, %8, %cst_8 {dimension_numbers = #tpu.dot_dimension_numbers<[1], [0], [0], [1], [0, 0, 1, 1], [], []>} : vector<8x120xf32>, vector<120x84xf32>, vector<8x84xf32> -> vector<8x84xf32>
    %c0_9 = arith.constant 0 : index
    %c0_10 = arith.constant 0 : index
    %10 = vector.load %arg5[%c0_9, %c0_10] : memref<1x84xf32, #tpu.memory_space<vmem>>, vector<1x84xf32>
    %11 = vector.broadcast %10 : vector<1x84xf32> to vector<8x84xf32>
    %12 = arith.addf %9, %11 : vector<8x84xf32>
    %cst_11 = arith.constant 0.000000e+00 : f32
    %13 = vector.broadcast %cst_11 : f32 to vector<8x84xf32>
    %14 = arith.maximumf %12, %13 : vector<8x84xf32>
    %c0_12 = arith.constant 0 : index
    %c0_13 = arith.constant 0 : index
    %15 = vector.load %arg6[%c0_12, %c0_13] : memref<84x128xf32, #tpu.memory_space<vmem>>, vector<84x128xf32>
    %cst_14 = arith.constant dense<0.000000e+00> : vector<8x128xf32>
    %16 = tpu.matmul %14, %15, %cst_14 {dimension_numbers = #tpu.dot_dimension_numbers<[1], [0], [0], [1], [0, 0, 1, 1], [], []>} : vector<8x84xf32>, vector<84x128xf32>, vector<8x128xf32> -> vector<8x128xf32>
    %c0_15 = arith.constant 0 : index
    %c0_16 = arith.constant 0 : index
    %17 = vector.load %arg7[%c0_15, %c0_16] : memref<1x128xf32, #tpu.memory_space<vmem>>, vector<1x128xf32>
    %18 = vector.broadcast %17 : vector<1x128xf32> to vector<8x128xf32>
    %19 = arith.addf %16, %18 : vector<8x128xf32>
    %c0_17 = arith.constant 0 : index
    %c0_18 = arith.constant 0 : index
    %20 = vector.load %arg8[%c0_17, %c0_18] : memref<8x128xf32, #tpu.memory_space<vmem>>, vector<8x128xf32>
    tpu.vector_store %arg8[%c0_17, %c0_18], %19 {strides = array<i32>} : memref<8x128xf32, #tpu.memory_space<vmem>>, vector<8x128xf32>,
    return
  }
  func.func @transform_0(%arg0: i32) -> (i32, i32) {
    %c0_i32 = arith.constant 0 : i32
    %c0_i32_0 = arith.constant 0 : i32
    return %arg0, %c0_i32 : i32, i32
  }
  func.func @transform_1(%arg0: i32) -> (i32, i32) {
    %c0_i32 = arith.constant 0 : i32
    %c0_i32_0 = arith.constant 0 : i32
    %c0_i32_1 = arith.constant 0 : i32
    return %c0_i32, %c0_i32_0 : i32, i32
  }
  func.func @transform_2(%arg0: i32) -> (i32, i32) {
    %c0_i32 = arith.constant 0 : i32
    %c0_i32_0 = arith.constant 0 : i32
    %c0_i32_1 = arith.constant 0 : i32
    return %c0_i32, %c0_i32_0 : i32, i32
  }
  func.func @transform_3(%arg0: i32) -> (i32, i32) {
    %c0_i32 = arith.constant 0 : i32
    %c0_i32_0 = arith.constant 0 : i32
    %c0_i32_1 = arith.constant 0 : i32
    return %c0_i32, %c0_i32_0 : i32, i32
  }
  func.func @transform_4(%arg0: i32) -> (i32, i32) {
    %c0_i32 = arith.constant 0 : i32
    %c0_i32_0 = arith.constant 0 : i32
    %c0_i32_1 = arith.constant 0 : i32
    return %c0_i32, %c0_i32_0 : i32, i32
  }
  func.func @transform_5(%arg0: i32) -> (i32, i32) {
    %c0_i32 = arith.constant 0 : i32
    %c0_i32_0 = arith.constant 0 : i32
    %c0_i32_1 = arith.constant 0 : i32
    return %c0_i32, %c0_i32_0 : i32, i32
  }
  func.func @transform_6(%arg0: i32) -> (i32, i32) {
    %c0_i32 = arith.constant 0 : i32
    %c0_i32_0 = arith.constant 0 : i32
    %c0_i32_1 = arith.constant 0 : i32
    return %c0_i32, %c0_i32_0 : i32, i32
  }
  func.func @transform_7(%arg0: i32) -> (i32, i32) {
    %c0_i32 = arith.constant 0 : i32
    %c0_i32_0 = arith.constant 0 : i32
    return %arg0, %c0_i32 : i32, i32
  }
}

</mosaic_0001>

<bundles_post_ra>
// kernel: lenet_forward.3
= control target key start
LH: loop header
LB: loop body
LE: loop exit
PB: predicated region body
PF: predicated region fallthrough
CT: control target
= control target key end

     0   :  { %vm810_vm0 = vcmask 1040384   ;;  %vm221_vm1 = vcmask 203776   ;;  %vm12356_vm2 = vmmov 1   ;;  %vm8721_vm4 = vcmask 48128   ;;  %s17746_s1 = inlined_call_operand.vmem [shape: f32[25,6], index: 1, kind: input, shape index: {}]   ;;  %s17747_s0 = inlined_call_operand.vmem [shape: f32[4,1568,25], index: 0, kind: input, shape index: {}]   ;;  %s17748_s2 = inlined_call_operand.vmem [shape: f32[1,6], index: 2, kind: input, shape index: {}]   ;;  %s17749_s3 = inlined_call_operand.vmem [shape: f32[1568,6], index: 3, kind: output, shape index: {}]  }
   0x1   :  { %v14_v0 = vld [vmem:[%s17746_s1] sm:$0xff]  ;;  %v15_v1 = vld [vmem:[%s17746_s1 + $0x8] sm:$0xff]  ;;  %v16_v2 = vld [vmem:[%s17746_s1 + $0x10] sm:$0xff] }
   0x2   :  { %v12307_v3 = vpack.c.bf16 %v15_v1, %v14_v0  ;;  %v17_v4 = vld [vmem:[%s17746_s1 + $0x18] sm:$0x1]  ;;  %v19_v5 = vld [vmem:[%s17747_s0] sm:$0xff]  ;;  %vm12392_vm3 = vmpackc.low %vm810_vm0, %vm12356_vm2 }
   0x3   :  { %v12311_v6 = vpack.c.bf16 %v17_v4, %v16_v2  ;;  %11107 = vmatprep.mubr.msk.f32.mxu0 %vm221_vm1, %v19_v5  ;;  %v9120_v8 = vld [vmem:[%s17747_s0 + $0x620] sm:$0xff]  ;;  %v20_v9 = vld [vmem:[%s17747_s0 + $0x8] sm:$0xff]  ;;  %v21_v11 = vld [vmem:[%s17747_s0 + $0x10] sm:$0xff] }
   0x4   :  { %12308 = vmatprep.subr.bf16.mxu0 %v12307_v3  ;;  %12318 = vmatprep.subr.bf16.mxu1 %v12307_v3  ;;  %v9121_v10 = vld [vmem:[%s17747_s0 + $0x628] sm:$0xff]  ;;  %v9122_v12 = vld [vmem:[%s17747_s0 + $0x630] sm:$0xff]  ;;  %v22_v13 = vld [vmem:[%s17747_s0 + $0x18] sm:$0xff] }
   0x5   :  { %12310 = vmatpush3.bf16.msra.mxu0 %v12307_v3  ;;  %12320 = vmatpush3.bf16.msra.mxu1 %v12307_v3  ;;  %v9123_v14 = vld [vmem:[%s17747_s0 + $0x638] sm:$0xff]  ;;  %v23_v15 = vld [vmem:[%s17747_s0 + $0x20] sm:$0xff]  ;;  %v24_v17 = vld [vmem:[%s17747_s0 + $0x28] sm:$0xff] }
   0x6   :  { %12313 = vmatprep.subr.msk.bf16.mxu0 %vm12392_vm3, %v12311_v6  ;;  %12323 = vmatprep.subr.msk.bf16.mxu1 %vm12392_vm3, %v12311_v6  ;;  %v9124_v16 = vld [vmem:[%s17747_s0 + $0x640] sm:$0xff]  ;;  %v9125_v18 = vld [vmem:[%s17747_s0 + $0x648] sm:$0xff]  ;;  %v25_v19 = vld [vmem:[%s17747_s0 + $0x30] sm:$0xff] }
   0x7   :  { %11409 = vmatprep.mubr.msk.f32.mxu1 %vm221_vm1, %v9120_v8  ;;  %v9126_v20 = vld [vmem:[%s17747_s0 + $0x650] sm:$0xff]  ;;  %v26_v21 = vld [vmem:[%s17747_s0 + $0x38] sm:$0xff]  ;;  %v27_v23 = vld [vmem:[%s17747_s0 + $0x40] sm:$0xff] }
   0x8   :  { %v9127_v22 = vld [vmem:[%s17747_s0 + $0x658] sm:$0xff]  ;;  %v9128_v24 = vld [vmem:[%s17747_s0 + $0x660] sm:$0xff]  ;;  %v28_v25 = vld [vmem:[%s17747_s0 + $0x48] sm:$0xff] }
   0x9   :  { %12316 = vmatpush3.bf16.msk.msra.mxu0 %vm12392_vm3, %v12311_v6  ;;  %12326 = vmatpush3.bf16.msk.msra.mxu1 %vm12392_vm3, %v12311_v6  ;;  %v9129_v26 = vld [vmem:[%s17747_s0 + $0x668] sm:$0xff]  ;;  %v29_v27 = vld [vmem:[%s17747_s0 + $0x50] sm:$0xff]  ;;  %v30_v29 = vld [vmem:[%s17747_s0 + $0x58] sm:$0xff] }
   0xa   :  { %12328 = vmatprep.subr.bf16.mxu0 %v12307_v3  ;;  %12338 = vmatprep.subr.bf16.mxu1 %v12307_v3  ;;  %v9130_v28 = vld [vmem:[%s17747_s0 + $0x670] sm:$0xff]  ;;  %v9131_v30 = vld [vmem:[%s17747_s0 + $0x678] sm:$0xff]  ;;  %v31_v31 = vld [vmem:[%s17747_s0 + $0x60] sm:$0xff] }
   0xb   :  { %v9132_v32 = vld [vmem:[%s17747_s0 + $0x680] sm:$0xff]  ;;  %v32_v33 = vld [vmem:[%s17747_s0 + $0x68] sm:$0xff]  ;;  %v33_v35 = vld [vmem:[%s17747_s0 + $0x70] sm:$0xff] }
   0xc   :  { %11108 = vmatmul.mubr.msk.f32.vlgmr.msra.gmra.mrb[0].mxu0 %vm221_vm1, %v20_v9  ;;  %11410 = vmatmul.mubr.msk.f32.vlgmr.msra.gmra.mrb[0].mxu1 %vm221_vm1, %v9121_v10  ;;  %v9133_v34 = vld [vmem:[%s17747_s0 + $0x688] sm:$0xff]  ;;  %v9134_v36 = vld [vmem:[%s17747_s0 + $0x690] sm:$0xff]  ;;  %v34_v37 = vld [vmem:[%s17747_s0 + $0x78] sm:$0xff] }
   0xd   :  { %12330 = vmatpush3.bf16.msra.mxu0 %v12307_v3  ;;  %12340 = vmatpush3.bf16.msra.mxu1 %v12307_v3  ;;  %v9135_v38 = vld [vmem:[%s17747_s0 + $0x698] sm:$0xff]  ;;  %v35_v39 = vld [vmem:[%s17747_s0 + $0x80] sm:$0xff]  ;;  %v36_v41 = vld [vmem:[%s17747_s0 + $0x88] sm:$0xff] }
   0xe   :  { %11110 = vmatprep.mubr.msk.f32.mxu0 %vm221_vm1, %v21_v11  ;;  %11412 = vmatprep.mubr.msk.f32.mxu1 %vm221_vm1, %v9122_v12  ;;  %v9136_v40 = vld [vmem:[%s17747_s0 + $0x6a0] sm:$0xff]  ;;  %v9137_v42 = vld [vmem:[%s17747_s0 + $0x6a8] sm:$0xff]  ;;  %v37_v43 = vld [vmem:[%s17747_s0 + $0x90] sm:$0xff] }
   0xf   :  { %12333 = vmatprep.subr.msk.bf16.mxu0 %vm12392_vm3, %v12311_v6  ;;  %12343 = vmatprep.subr.msk.bf16.mxu1 %vm12392_vm3, %v12311_v6  ;;  %v9138_v44 = vld [vmem:[%s17747_s0 + $0x6b0] sm:$0xff]  ;;  %v38_v45 = vld [vmem:[%s17747_s0 + $0x98] sm:$0xff]  ;;  %v39_v47 = vld [vmem:[%s17747_s0 + $0xa0] sm:$0xff] }
  0x10   :  { %11111 = vmatmul.mubr.msk.f32.gmra.mrb[2].mxu0 %vm221_vm1, %v22_v13  ;;  %11413 = vmatmul.mubr.msk.f32.gmra.mrb[2].mxu1 %vm221_vm1, %v9123_v14  ;;  %v9139_v46 = vld [vmem:[%s17747_s0 + $0x6b8] sm:$0xff]  ;;  %v9140_v48 = vld [vmem:[%s17747_s0 + $0x6c0] sm:$0xff]  ;;  %v40_v49 = vld [vmem:[%s17747_s0 + $0xa8] sm:$0xff] }
  0x11   :  { %11113 = vmatprep.mubr.msk.f32.mxu0 %vm221_vm1, %v23_v15  ;;  %11415 = vmatprep.mubr.msk.f32.mxu1 %vm221_vm1, %v9124_v16  ;;  %v9141_v50 = vld [vmem:[%s17747_s0 + $0x6c8] sm:$0xff]  ;;  %v41_v51 = vld [vmem:[%s17747_s0 + $0xb0] sm:$0xff]  ;;  %v42_v53 = vld [vmem:[%s17747_s0 + $0xb8] sm:$0xff] }
  0x12   :  { %12336 = vmatpush3.bf16.msk.msra.mxu0 %vm12392_vm3, %v12311_v6  ;;  %12346 = vmatpush3.bf16.msk.msra.mxu1 %vm12392_vm3, %v12311_v6  ;;  %v9142_v52 = vld [vmem:[%s17747_s0 + $0x6d0] sm:$0xff]  ;;  %v9143_v54 = vld [vmem:[%s17747_s0 + $0x6d8] sm:$0xff]  ;;  %v43_v55 = vld [vmem:[%s17747_s0 + $0xc0] sm:$0xff] }
  0x13   :  { %v9144_v56 = vld [vmem:[%s17747_s0 + $0x6e0] sm:$0xff]  ;;  %v44_v57 = vld [vmem:[%s17747_s0 + $0xc8] sm:$0xff]  ;;  %v45_v59 = vld [vmem:[%s17747_s0 + $0xd0] sm:$0xff] }
  0x14   :  { %11114 = vmatmul.mubr.msk.f32.gmra.mrb[4].mxu0 %vm221_vm1, %v24_v17  ;;  %11416 = vmatmul.mubr.msk.f32.gmra.mrb[4].mxu1 %vm221_vm1, %v9125_v18  ;;  %v9145_v58 = vld [vmem:[%s17747_s0 + $0x6e8] sm:$0xff]  ;;  %v9146_v60 = vld [vmem:[%s17747_s0 + $0x6f0] sm:$0xff]  ;;  %v46_v61 = vld [vmem:[%s17747_s0 + $0xd8] sm:$0xff] }
  0x15   :  { %11116 = vmatprep.mubr.msk.f32.mxu0 %vm221_vm1, %v25_v19  ;;  %11418 = vmatprep.mubr.msk.f32.mxu1 %vm221_vm1, %v9126_v20  ;;  %v9147_v62 = vld [vmem:[%s17747_s0 + $0x6f8] sm:$0xff]  ;;  %v47_v63 = vld [vmem:[%s17747_s0 + $0xe0] sm:$0xff]  ;;  %v48_v1 = vld [vmem:[%s17747_s0 + $0xe8] sm:$0xff] }
  0x16   :  { %v9148_v0 = vld [vmem:[%s17747_s0 + $0x700] sm:$0xff]  ;;  %v9149_v2 = vld [vmem:[%s17747_s0 + $0x708] sm:$0xff]  ;;  %v49_v3 = vld [vmem:[%s17747_s0 + $0xf0] sm:$0xff] }
  0x17   :  { %v9150_v4 = vld [vmem:[%s17747_s0 + $0x710] sm:$0xff]  ;;  %v50_v5 = vld [vmem:[%s17747_s0 + $0xf8] sm:$0xff]  ;;  %v51_v7 = vld [vmem:[%s17747_s0 + $0x100] sm:$0xff] }
  0x18   :  { %11117 = vmatmul.mubr.msk.f32.gmra.mrb[6].mxu0 %vm221_vm1, %v26_v21  ;;  %11419 = vmatmul.mubr.msk.f32.gmra.mrb[6].mxu1 %vm221_vm1, %v9127_v22  ;;  %v9151_v6 = vld [vmem:[%s17747_s0 + $0x718] sm:$0xff]  ;;  %v9152_v8 = vld [vmem:[%s17747_s0 + $0x720] sm:$0xff]  ;;  %v52_v9 = vld [vmem:[%s17747_s0 + $0x108] sm:$0xff] }
  0x19   :  { %11119 = vmatprep.mubr.msk.f32.mxu0 %vm221_vm1, %v27_v23  ;;  %11421 = vmatprep.mubr.msk.f32.mxu1 %vm221_vm1, %v9128_v24  ;;  %v9153_v10 = vld [vmem:[%s17747_s0 + $0x728] sm:$0xff]  ;;  %v53_v11 = vld [vmem:[%s17747_s0 + $0x110] sm:$0xff]  ;;  %v54_v13 = vld [vmem:[%s17747_s0 + $0x118] sm:$0xff] }
  0x1a   :  { %v9154_v12 = vld [vmem:[%s17747_s0 + $0x730] sm:$0xff]  ;;  %v9155_v14 = vld [vmem:[%s17747_s0 + $0x738] sm:$0xff]  ;;  %v55_v15 = vld [vmem:[%s17747_s0 + $0x120] sm:$0xff] }
  0x1b   :  { %v9156_v16 = vld [vmem:[%s17747_s0 + $0x740] sm:$0xff]  ;;  %v56_v17 = vld [vmem:[%s17747_s0 + $0x128] sm:$0xff]  ;;  %v57_v19 = vld [vmem:[%s17747_s0 + $0x130] sm:$0xff] }
  0x1c   :  { %11120 = vmatmul.mubr.msk.f32.gmra.mrb[8].mxu0 %vm221_vm1, %v28_v25  ;;  %11422 = vmatmul.mubr.msk.f32.gmra.mrb[8].mxu1 %vm221_vm1, %v9129_v26  ;;  %v9157_v18 = vld [vmem:[%s17747_s0 + $0x748] sm:$0xff]  ;;  %v9158_v20 = vld [vmem:[%s17747_s0 + $0x750] sm:$0xff]  ;;  %v58_v21 = vld [vmem:[%s17747_s0 + $0x138] sm:$0xff] }
  0x1d   :  { %11122 = vmatprep.mubr.msk.f32.mxu0 %vm221_vm1, %v29_v27  ;;  %11424 = vmatprep.mubr.msk.f32.mxu1 %vm221_vm1, %v9130_v28  ;;  %v9159_v22 = vld [vmem:[%s17747_s0 + $0x758] sm:$0xff]  ;;  %v59_v23 = vld [vmem:[%s17747_s0 + $0x140] sm:$0xff]  ;;  %v60_v25 = vld [vmem:[%s17747_s0 + $0x148] sm:$0xff] }
  0x1e   :  { %v9160_v24 = vld [vmem:[%s17747_s0 + $0x760] sm:$0xff]  ;;  %v9161_v26 = vld [vmem:[%s17747_s0 + $0x768] sm:$0xff]  ;;  %v61_v27 = vld [vmem:[%s17747_s0 + $0x150] sm:$0xff] }
  0x1f   :  { %v9162_v28 = vld [vmem:[%s17747_s0 + $0x770] sm:$0xff] }
  0x20   :  { %11123 = vmatmul.mubr.msk.f32.gmra.mrb[10].mxu0 %vm221_vm1, %v30_v29  ;;  %11425 = vmatmul.mubr.msk.f32.gmra.mrb[10].mxu1 %vm221_vm1, %v9131_v30  ;;  %v62_v29 = vld [vmem:[%s17747_s0 + $0x158] sm:$0xff] }
  0x21   :  { %11125 = vmatprep.mubr.msk.f32.mxu0 %vm221_vm1, %v31_v31  ;;  %11427 = vmatprep.mubr.msk.f32.mxu1 %vm221_vm1, %v9132_v32  ;;  %v9163_v30 = vld [vmem:[%s17747_s0 + $0x778] sm:$0xff]  ;;  %v63_v31 = vld [vmem:[%s17747_s0 + $0x160] sm:$0xff] }
  0x22   :  { %v9164_v32 = vld [vmem:[%s17747_s0 + $0x780] sm:$0xff] }
  0x24   :  { %11126 = vmatmul.mubr.msk.f32.gmra.mrb[12].mxu0 %vm221_vm1, %v32_v33  ;;  %11428 = vmatmul.mubr.msk.f32.gmra.mrb[12].mxu1 %vm221_vm1, %v9133_v34  ;;  %v64_v33 = vld [vmem:[%s17747_s0 + $0x168] sm:$0xff] }
  0x25   :  { %11128 = vmatprep.mubr.msk.f32.mxu0 %vm221_vm1, %v33_v35  ;;  %11430 = vmatprep.mubr.msk.f32.mxu1 %vm221_vm1, %v9134_v36  ;;  %v9165_v34 = vld [vmem:[%s17747_s0 + $0x788] sm:$0xff]  ;;  %v65_v35 = vld [vmem:[%s17747_s0 + $0x170] sm:$0xff] }
  0x26   :  { %v9166_v36 = vld [vmem:[%s17747_s0 + $0x790] sm:$0xff] }
  0x28   :  { %11129 = vmatmul.mubr.msk.f32.gmra.mrb[14].mxu0 %vm221_vm1, %v34_v37  ;;  %11431 = vmatmul.mubr.msk.f32.gmra.mrb[14].mxu1 %vm221_vm1, %v9135_v38  ;;  %v66_v37 = vld [vmem:[%s17747_s0 + $0x178] sm:$0xff] }
  0x29   :  { %11131 = vmatprep.mubr.msk.f32.mxu0 %vm221_vm1, %v35_v39  ;;  %11433 = vmatprep.mubr.msk.f32.mxu1 %vm221_vm1, %v9136_v40  ;;  %v9167_v38 = vld [vmem:[%s17747_s0 + $0x798] sm:$0xff]  ;;  %v67_v39 = vld [vmem:[%s17747_s0 + $0x180] sm:$0xff] }
  0x2a   :  { %v9168_v40 = vld [vmem:[%s17747_s0 + $0x7a0] sm:$0xff] }
  0x2c   :  { %11132 = vmatmul.mubr.msk.f32.gmra.mrb[16].mxu0 %vm221_vm1, %v36_v41  ;;  %11434 = vmatmul.mubr.msk.f32.gmra.mrb[16].mxu1 %vm221_vm1, %v9137_v42  ;;  %v68_v41 = vld [vmem:[%s17747_s0 + $0x188] sm:$0xff] }
  0x2d   :  { %11134 = vmatprep.mubr.msk.f32.mxu0 %vm221_vm1, %v37_v43  ;;  %11436 = vmatprep.mubr.msk.f32.mxu1 %vm221_vm1, %v9138_v44  ;;  %v9169_v42 = vld [vmem:[%s17747_s0 + $0x7a8] sm:$0xff]  ;;  %v69_v43 = vld [vmem:[%s17747_s0 + $0x190] sm:$0xff] }
  0x2e   :  { %v9170_v44 = vld [vmem:[%s17747_s0 + $0x7b0] sm:$0xff] }
  0x30   :  { %11135 = vmatmul.mubr.msk.f32.gmra.mrb[18].mxu0 %vm221_vm1, %v38_v45  ;;  %11437 = vmatmul.mubr.msk.f32.gmra.mrb[18].mxu1 %vm221_vm1, %v9139_v46  ;;  %v70_v45 = vld [vmem:[%s17747_s0 + $0x198] sm:$0xff] }
  0x31   :  { %11137 = vmatprep.mubr.msk.f32.mxu0 %vm221_vm1, %v39_v47  ;;  %11439 = vmatprep.mubr.msk.f32.mxu1 %vm221_vm1, %v9140_v48  ;;  %v9171_v46 = vld [vmem:[%s17747_s0 + $0x7b8] sm:$0xff]  ;;  %v71_v47 = vld [vmem:[%s17747_s0 + $0x1a0] sm:$0xff] }
  0x32   :  { %v9172_v48 = vld [vmem:[%s17747_s0 + $0x7c0] sm:$0xff] }
  0x34   :  { %11138 = vmatmul.mubr.msk.f32.gmra.mrb[20].mxu0 %vm221_vm1, %v40_v49  ;;  %11440 = vmatmul.mubr.msk.f32.gmra.mrb[20].mxu1 %vm221_vm1, %v9141_v50  ;;  %v72_v49 = vld [vmem:[%s17747_s0 + $0x1a8] sm:$0xff] }
  0x35   :  { %11140 = vmatprep.mubr.msk.f32.mxu0 %vm221_vm1, %v41_v51  ;;  %11442 = vmatprep.mubr.msk.f32.mxu1 %vm221_vm1, %v9142_v52  ;;  %v9173_v50 = vld [vmem:[%s17747_s0 + $0x7c8] sm:$0xff]  ;;  %v73_v51 = vld [vmem:[%s17747_s0 + $0x1b0] sm:$0xff] }
  0x36   :  { %v9174_v52 = vld [vmem:[%s17747_s0 + $0x7d0] sm:$0xff] }
  0x38   :  { %11141 = vmatmul.mubr.msk.f32.gmra.mrb[22].mxu0 %vm221_vm1, %v42_v53  ;;  %11443 = vmatmul.mubr.msk.f32.gmra.mrb[22].mxu1 %vm221_vm1, %v9143_v54  ;;  %v74_v53 = vld [vmem:[%s17747_s0 + $0x1b8] sm:$0xff] }
  0x39   :  { %11143 = vmatprep.mubr.msk.f32.mxu0 %vm221_vm1, %v43_v55  ;;  %11445 = vmatprep.mubr.msk.f32.mxu1 %vm221_vm1, %v9144_v56  ;;  %v9175_v54 = vld [vmem:[%s17747_s0 + $0x7d8] sm:$0xff]  ;;  %v75_v55 = vld [vmem:[%s17747_s0 + $0x1c0] sm:$0xff] }
  0x3a   :  { %v9176_v56 = vld [vmem:[%s17747_s0 + $0x7e0] sm:$0xff] }
  0x3c   :  { %11144 = vmatmul.mubr.msk.f32.gmra.mrb[24].mxu0 %vm221_vm1, %v44_v57  ;;  %11446 = vmatmul.mubr.msk.f32.gmra.mrb[24].mxu1 %vm221_vm1, %v9145_v58  ;;  %v76_v57 = vld [vmem:[%s17747_s0 + $0x1c8] sm:$0xff] }
  0x3d   :  { %11146 = vmatprep.mubr.msk.f32.mxu0 %vm221_vm1, %v45_v59  ;;  %11448 = vmatprep.mubr.msk.f32.mxu1 %vm221_vm1, %v9146_v60  ;;  %v9177_v58 = vld [vmem:[%s17747_s0 + $0x7e8] sm:$0xff]  ;;  %v77_v59 = vld [vmem:[%s17747_s0 + $0x1d0] sm:$0xff] }
  0x3e   :  { %v9178_v60 = vld [vmem:[%s17747_s0 + $0x7f0] sm:$0xff] }
  0x40   :  { %11147 = vmatmul.mubr.msk.f32.gmra.mrb[26].mxu0 %vm221_vm1, %v46_v61  ;;  %11449 = vmatmul.mubr.msk.f32.gmra.mrb[26].mxu1 %vm221_vm1, %v9147_v62  ;;  %v78_v61 = vld [vmem:[%s17747_s0 + $0x1d8] sm:$0xff] }
  0x41   :  { %11149 = vmatprep.mubr.msk.f32.mxu0 %vm221_vm1, %v47_v63  ;;  %11451 = vmatprep.mubr.msk.f32.mxu1 %vm221_vm1, %v9148_v0  ;;  %v9179_v62 = vld [vmem:[%s17747_s0 + $0x7f8] sm:$0xff]  ;;  %v79_v63 = vld [vmem:[%s17747_s0 + $0x1e0] sm:$0xff] }
  0x42   :  { %v9180_v0 = vld [vmem:[%s17747_s0 + $0x800] sm:$0xff] }
  0x44   :  { %11150 = vmatmul.mubr.msk.f32.gmra.mrb[28].mxu0 %vm221_vm1, %v48_v1  ;;  %11452 = vmatmul.mubr.msk.f32.gmra.mrb[28].mxu1 %vm221_vm1, %v9149_v2  ;;  %v80_v1 = vld [vmem:[%s17747_s0 + $0x1e8] sm:$0xff] }
  0x45   :  { %11152 = vmatprep.mubr.msk.f32.mxu0 %vm221_vm1, %v49_v3  ;;  %11454 = vmatprep.mubr.msk.f32.mxu1 %vm221_vm1, %v9150_v4  ;;  %v9181_v2 = vld [vmem:[%s17747_s0 + $0x808] sm:$0xff]  ;;  %v81_v3 = vld [vmem:[%s17747_s0 + $0x1f0] sm:$0xff] }
  0x46   :  { %v9182_v4 = vld [vmem:[%s17747_s0 + $0x810] sm:$0xff] }
  0x48   :  { %11153 = vmatmul.mubr.msk.f32.gmra.mrb[30].mxu0 %vm221_vm1, %v50_v5  ;;  %11455 = vmatmul.mubr.msk.f32.gmra.mrb[30].mxu1 %vm221_vm1, %v9151_v6  ;;  %v82_v5 = vld [vmem:[%s17747_s0 + $0x1f8] sm:$0xff] }
  0x49   :  { %11155 = vmatprep.mubr.msk.f32.mxu0 %vm221_vm1, %v51_v7  ;;  %11457 = vmatprep.mubr.msk.f32.mxu1 %vm221_vm1, %v9152_v8  ;;  %v9183_v6 = vld [vmem:[%s17747_s0 + $0x818] sm:$0xff]  ;;  %v83_v7 = vld [vmem:[%s17747_s0 + $0x200] sm:$0xff] }
  0x4a   :  { %v9184_v8 = vld [vmem:[%s17747_s0 + $0x820] sm:$0xff] }
  0x4c   :  { %11156 = vmatmul.mubr.msk.f32.gmra.mrb[32].mxu0 %vm221_vm1, %v52_v9  ;;  %11458 = vmatmul.mubr.msk.f32.gmra.mrb[32].mxu1 %vm221_vm1, %v9153_v10  ;;  %v84_v9 = vld [vmem:[%s17747_s0 + $0x208] sm:$0xff] }
  0x4d   :  { %11158 = vmatprep.mubr.msk.f32.mxu0 %vm221_vm1, %v53_v11  ;;  %11460 = vmatprep.mubr.msk.f32.mxu1 %vm221_vm1, %v9154_v12  ;;  %v9185_v10 = vld [vmem:[%s17747_s0 + $0x828] sm:$0xff]  ;;  %v85_v11 = vld [vmem:[%s17747_s0 + $0x210] sm:$0xff] }
  0x4e   :  { %v9186_v12 = vld [vmem:[%s17747_s0 + $0x830] sm:$0xff] }
  0x50   :  { %11159 = vmatmul.mubr.msk.f32.gmra.mrb[34].mxu0 %vm221_vm1, %v54_v13  ;;  %11461 = vmatmul.mubr.msk.f32.gmra.mrb[34].mxu1 %vm221_vm1, %v9155_v14  ;;  %v86_v13 = vld [vmem:[%s17747_s0 + $0x218] sm:$0xff] }
  0x51   :  { %11161 = vmatprep.mubr.msk.f32.mxu0 %vm221_vm1, %v55_v15  ;;  %11463 = vmatprep.mubr.msk.f32.mxu1 %vm221_vm1, %v9156_v16  ;;  %v9187_v14 = vld [vmem:[%s17747_s0 + $0x838] sm:$0xff]  ;;  %v87_v15 = vld [vmem:[%s17747_s0 + $0x220] sm:$0xff] }
  0x52   :  { %v9188_v16 = vld [vmem:[%s17747_s0 + $0x840] sm:$0xff] }
  0x54   :  { %11162 = vmatmul.mubr.msk.f32.gmra.mrb[36].mxu0 %vm221_vm1, %v56_v17  ;;  %11464 = vmatmul.mubr.msk.f32.gmra.mrb[36].mxu1 %vm221_vm1, %v9157_v18  ;;  %v88_v17 = vld [vmem:[%s17747_s0 + $0x228] sm:$0xff] }
  0x55   :  { %11164 = vmatprep.mubr.msk.f32.mxu0 %vm221_vm1, %v57_v19  ;;  %11466 = vmatprep.mubr.msk.f32.mxu1 %vm221_vm1, %v9158_v20  ;;  %v9189_v18 = vld [vmem:[%s17747_s0 + $0x848] sm:$0xff]  ;;  %v89_v19 = vld [vmem:[%s17747_s0 + $0x230] sm:$0xff] }
  0x56   :  { %v9190_v20 = vld [vmem:[%s17747_s0 + $0x850] sm:$0xff] }
  0x58   :  { %11165 = vmatmul.mubr.msk.f32.gmra.mrb[38].mxu0 %vm221_vm1, %v58_v21  ;;  %11467 = vmatmul.mubr.msk.f32.gmra.mrb[38].mxu1 %vm221_vm1, %v9159_v22  ;;  %v90_v21 = vld [vmem:[%s17747_s0 + $0x238] sm:$0xff] }
  0x59   :  { %11167 = vmatprep.mubr.msk.f32.mxu0 %vm221_vm1, %v59_v23  ;;  %11469 = vmatprep.mubr.msk.f32.mxu1 %vm221_vm1, %v9160_v24  ;;  %v9191_v22 = vld [vmem:[%s17747_s0 + $0x858] sm:$0xff]  ;;  %v91_v23 = vld [vmem:[%s17747_s0 + $0x240] sm:$0xff] }
  0x5a   :  { %v9192_v24 = vld [vmem:[%s17747_s0 + $0x860] sm:$0xff] }
  0x5c   :  { %11168 = vmatmul.mubr.msk.f32.gmra.mrb[40].mxu0 %vm221_vm1, %v60_v25  ;;  %11470 = vmatmul.mubr.msk.f32.gmra.mrb[40].mxu1 %vm221_vm1, %v9161_v26  ;;  %v92_v25 = vld [vmem:[%s17747_s0 + $0x248] sm:$0xff] }
  0x5d   :  { %11170 = vmatprep.mubr.msk.f32.mxu0 %vm221_vm1, %v61_v27  ;;  %11472 = vmatprep.mubr.msk.f32.mxu1 %vm221_vm1, %v9162_v28  ;;  %v9193_v26 = vld [vmem:[%s17747_s0 + $0x868] sm:$0xff]  ;;  %v93_v27 = vld [vmem:[%s17747_s0 + $0x250] sm:$0xff] }
  0x5e   :  { %v9194_v28 = vld [vmem:[%s17747_s0 + $0x870] sm:$0xff] }
  0x60   :  { %11171 = vmatmul.mubr.msk.f32.gmra.mrb[42].mxu0 %vm221_vm1, %v62_v29  ;;  %11473 = vmatmul.mubr.msk.f32.gmra.mrb[42].mxu1 %vm221_vm1, %v9163_v30  ;;  %v94_v29 = vld [vmem:[%s17747_s0 + $0x258] sm:$0xff] }
  0x61   :  { %11173 = vmatprep.mubr.msk.f32.mxu0 %vm221_vm1, %v63_v31  ;;  %11475 = vmatprep.mubr.msk.f32.mxu1 %vm221_vm1, %v9164_v32  ;;  %v9195_v30 = vld [vmem:[%s17747_s0 + $0x878] sm:$0xff]  ;;  %v95_v31 = vld [vmem:[%s17747_s0 + $0x260] sm:$0xff] }
  0x62   :  { %v9196_v32 = vld [vmem:[%s17747_s0 + $0x880] sm:$0xff] }
  0x64   :  { %11174 = vmatmul.mubr.msk.f32.gmra.mrb[44].mxu0 %vm221_vm1, %v64_v33  ;;  %11476 = vmatmul.mubr.msk.f32.gmra.mrb[44].mxu1 %vm221_vm1, %v9165_v34  ;;  %v96_v33 = vld [vmem:[%s17747_s0 + $0x268] sm:$0xff] }
  0x65   :  { %11176 = vmatprep.mubr.msk.f32.mxu0 %vm221_vm1, %v65_v35  ;;  %11478 = vmatprep.mubr.msk.f32.mxu1 %vm221_vm1, %v9166_v36  ;;  %v9197_v34 = vld [vmem:[%s17747_s0 + $0x888] sm:$0xff]  ;;  %v97_v35 = vld [vmem:[%s17747_s0 + $0x270] sm:$0xff] }
  0x66   :  { %v9198_v36 = vld [vmem:[%s17747_s0 + $0x890] sm:$0xff] }
  0x68   :  { %11177 = vmatmul.mubr.msk.f32.gmra.mrb[46].mxu0 %vm221_vm1, %v66_v37  ;;  %11479 = vmatmul.mubr.msk.f32.gmra.mrb[46].mxu1 %vm221_vm1, %v9167_v38  ;;  %v98_v37 = vld [vmem:[%s17747_s0 + $0x278] sm:$0xff] }
  0x69   :  { %11179 = vmatprep.mubr.msk.f32.mxu0 %vm221_vm1, %v67_v39  ;;  %11481 = vmatprep.mubr.msk.f32.mxu1 %vm221_vm1, %v9168_v40  ;;  %v9199_v38 = vld [vmem:[%s17747_s0 + $0x898] sm:$0xff]  ;;  %v99_v39 = vld [vmem:[%s17747_s0 + $0x280] sm:$0xff] }
  0x6a   :  { %v9200_v40 = vld [vmem:[%s17747_s0 + $0x8a0] sm:$0xff] }
  0x6c   :  { %11180 = vmatmul.mubr.msk.f32.gmra.mrb[48].mxu0 %vm221_vm1, %v68_v41  ;;  %11482 = vmatmul.mubr.msk.f32.gmra.mrb[48].mxu1 %vm221_vm1, %v9169_v42  ;;  %v100_v41 = vld [vmem:[%s17747_s0 + $0x288] sm:$0xff] }
  0x6d   :  { %11182 = vmatprep.mubr.msk.f32.mxu0 %vm221_vm1, %v69_v43  ;;  %11484 = vmatprep.mubr.msk.f32.mxu1 %vm221_vm1, %v9170_v44  ;;  %v9201_v42 = vld [vmem:[%s17747_s0 + $0x8a8] sm:$0xff]  ;;  %v101_v43 = vld [vmem:[%s17747_s0 + $0x290] sm:$0xff] }
  0x6e   :  { %v9202_v44 = vld [vmem:[%s17747_s0 + $0x8b0] sm:$0xff] }
  0x70   :  { %11183 = vmatmul.mubr.msk.f32.gmra.mrb[50].mxu0 %vm221_vm1, %v70_v45  ;;  %11485 = vmatmul.mubr.msk.f32.gmra.mrb[50].mxu1 %vm221_vm1, %v9171_v46  ;;  %v102_v45 = vld [vmem:[%s17747_s0 + $0x298] sm:$0xff] }
  0x71   :  { %11185 = vmatprep.mubr.msk.f32.mxu0 %vm221_vm1, %v71_v47  ;;  %11487 = vmatprep.mubr.msk.f32.mxu1 %vm221_vm1, %v9172_v48  ;;  %v9203_v46 = vld [vmem:[%s17747_s0 + $0x8b8] sm:$0xff]  ;;  %v103_v47 = vld [vmem:[%s17747_s0 + $0x2a0] sm:$0xff] }
  0x72   :  { %v9204_v48 = vld [vmem:[%s17747_s0 + $0x8c0] sm:$0xff] }
  0x74   :  { %11186 = vmatmul.mubr.msk.f32.gmra.mrb[52].mxu0 %vm221_vm1, %v72_v49  ;;  %11488 = vmatmul.mubr.msk.f32.gmra.mrb[52].mxu1 %vm221_vm1, %v9173_v50  ;;  %v104_v49 = vld [vmem:[%s17747_s0 + $0x2a8] sm:$0xff] }
  0x75   :  { %11188 = vmatprep.mubr.msk.f32.mxu0 %vm221_vm1, %v73_v51  ;;  %11490 = vmatprep.mubr.msk.f32.mxu1 %vm221_vm1, %v9174_v52  ;;  %v9205_v50 = vld [vmem:[%s17747_s0 + $0x8c8] sm:$0xff]  ;;  %v105_v51 = vld [vmem:[%s17747_s0 + $0x2b0] sm:$0xff] }
  0x76   :  { %v9206_v52 = vld [vmem:[%s17747_s0 + $0x8d0] sm:$0xff] }
  0x78   :  { %11189 = vmatmul.mubr.msk.f32.gmra.mrb[54].mxu0 %vm221_vm1, %v74_v53  ;;  %11491 = vmatmul.mubr.msk.f32.gmra.mrb[54].mxu1 %vm221_vm1, %v9175_v54  ;;  %v106_v53 = vld [vmem:[%s17747_s0 + $0x2b8] sm:$0xff] }
  0x79   :  { %11191 = vmatprep.mubr.msk.f32.mxu0 %vm221_vm1, %v75_v55  ;;  %11493 = vmatprep.mubr.msk.f32.mxu1 %vm221_vm1, %v9176_v56  ;;  %v9207_v54 = vld [vmem:[%s17747_s0 + $0x8d8] sm:$0xff]  ;;  %v107_v55 = vld [vmem:[%s17747_s0 + $0x2c0] sm:$0xff] }
  0x7a   :  { %v9208_v56 = vld [vmem:[%s17747_s0 + $0x8e0] sm:$0xff] }
  0x7c   :  { %11192 = vmatmul.mubr.msk.f32.gmra.mrb[56].mxu0 %vm221_vm1, %v76_v57  ;;  %11494 = vmatmul.mubr.msk.f32.gmra.mrb[56].mxu1 %vm221_vm1, %v9177_v58  ;;  %v108_v57 = vld [vmem:[%s17747_s0 + $0x2c8] sm:$0xff] }
  0x7d   :  { %11194 = vmatprep.mubr.msk.f32.mxu0 %vm221_vm1, %v77_v59  ;;  %11496 = vmatprep.mubr.msk.f32.mxu1 %vm221_vm1, %v9178_v60  ;;  %v9209_v58 = vld [vmem:[%s17747_s0 + $0x8e8] sm:$0xff]  ;;  %v109_v59 = vld [vmem:[%s17747_s0 + $0x2d0] sm:$0xff] }
  0x7e   :  { %v9210_v60 = vld [vmem:[%s17747_s0 + $0x8f0] sm:$0xff] }
  0x80   :  { %11195 = vmatmul.mubr.msk.f32.gmra.mrb[58].mxu0 %vm221_vm1, %v78_v61  ;;  %11497 = vmatmul.mubr.msk.f32.gmra.mrb[58].mxu1 %vm221_vm1, %v9179_v62  ;;  %v110_v61 = vld [vmem:[%s17747_s0 + $0x2d8] sm:$0xff] }
  0x81   :  { %11197 = vmatprep.mubr.msk.f32.mxu0 %vm221_vm1, %v79_v63  ;;  %11499 = vmatprep.mubr.msk.f32.mxu1 %vm221_vm1, %v9180_v0  ;;  %v9211_v62 = vld [vmem:[%s17747_s0 + $0x8f8] sm:$0xff]  ;;  %v111_v63 = vld [vmem:[%s17747_s0 + $0x2e0] sm:$0xff] }
  0x82   :  { %v9212_v0 = vld [vmem:[%s17747_s0 + $0x900] sm:$0xff] }
  0x84   :  { %11198 = vmatmul.mubr.msk.f32.gmra.mrb[60].mxu0 %vm221_vm1, %v80_v1  ;;  %11500 = vmatmul.mubr.msk.f32.gmra.mrb[60].mxu1 %vm221_vm1, %v9181_v2  ;;  %v112_v1 = vld [vmem:[%s17747_s0 + $0x2e8] sm:$0xff] }
  0x85   :  { %11200 = vmatprep.mubr.msk.f32.mxu0 %vm221_vm1, %v81_v3  ;;  %11502 = vmatprep.mubr.msk.f32.mxu1 %vm221_vm1, %v9182_v4  ;;  %v9213_v2 = vld [vmem:[%s17747_s0 + $0x908] sm:$0xff]  ;;  %v113_v3 = vld [vmem:[%s17747_s0 + $0x2f0] sm:$0xff] }
  0x86   :  { %v9214_v4 = vld [vmem:[%s17747_s0 + $0x910] sm:$0xff] }
  0x88   :  { %11201 = vmatmul.mubr.msk.f32.gmra.mrb[62].mxu0 %vm221_vm1, %v82_v5  ;;  %11503 = vmatmul.mubr.msk.f32.gmra.mrb[62].mxu1 %vm221_vm1, %v9183_v6  ;;  %v114_v5 = vld [vmem:[%s17747_s0 + $0x2f8] sm:$0xff] }
  0x89   :  { %11203 = vmatprep.mubr.msk.f32.mxu0 %vm221_vm1, %v83_v7  ;;  %11505 = vmatprep.mubr.msk.f32.mxu1 %vm221_vm1, %v9184_v8  ;;  %v9215_v6 = vld [vmem:[%s17747_s0 + $0x918] sm:$0xff]  ;;  %v115_v7 = vld [vmem:[%s17747_s0 + $0x300] sm:$0xff] }
  0x8a   :  { %v9216_v8 = vld [vmem:[%s17747_s0 + $0x920] sm:$0xff] }
  0x8c   :  { %11204 = vmatmul.mubr.msk.f32.gmra.mrb[64].mxu0 %vm221_vm1, %v84_v9  ;;  %11506 = vmatmul.mubr.msk.f32.gmra.mrb[64].mxu1 %vm221_vm1, %v9185_v10  ;;  %v116_v9 = vld [vmem:[%s17747_s0 + $0x308] sm:$0xff] }
  0x8d   :  { %11206 = vmatprep.mubr.msk.f32.mxu0 %vm221_vm1, %v85_v11  ;;  %11508 = vmatprep.mubr.msk.f32.mxu1 %vm221_vm1, %v9186_v12  ;;  %v9217_v10 = vld [vmem:[%s17747_s0 + $0x928] sm:$0xff]  ;;  %v117_v11 = vld [vmem:[%s17747_s0 + $0x310] sm:$0xff] }
  0x8e   :  { %v9218_v12 = vld [vmem:[%s17747_s0 + $0x930] sm:$0xff] }
  0x90   :  { %11207 = vmatmul.mubr.msk.f32.gmra.mrb[66].mxu0 %vm221_vm1, %v86_v13  ;;  %11509 = vmatmul.mubr.msk.f32.gmra.mrb[66].mxu1 %vm221_vm1, %v9187_v14  ;;  %v118_v13 = vld [vmem:[%s17747_s0 + $0x318] sm:$0xff] }
  0x91   :  { %11209 = vmatprep.mubr.msk.f32.mxu0 %vm221_vm1, %v87_v15  ;;  %11511 = vmatprep.mubr.msk.f32.mxu1 %vm221_vm1, %v9188_v16  ;;  %v9219_v14 = vld [vmem:[%s17747_s0 + $0x938] sm:$0xff]  ;;  %v119_v15 = vld [vmem:[%s17747_s0 + $0x320] sm:$0xff] }
  0x92   :  { %v9220_v16 = vld [vmem:[%s17747_s0 + $0x940] sm:$0xff] }
  0x94   :  { %11210 = vmatmul.mubr.msk.f32.gmra.mrb[68].mxu0 %vm221_vm1, %v88_v17  ;;  %11512 = vmatmul.mubr.msk.f32.gmra.mrb[68].mxu1 %vm221_vm1, %v9189_v18  ;;  %v120_v17 = vld [vmem:[%s17747_s0 + $0x328] sm:$0xff] }
  0x95   :  { %11212 = vmatprep.mubr.msk.f32.mxu0 %vm221_vm1, %v89_v19  ;;  %11514 = vmatprep.mubr.msk.f32.mxu1 %vm221_vm1, %v9190_v20  ;;  %v9221_v18 = vld [vmem:[%s17747_s0 + $0x948] sm:$0xff]  ;;  %v121_v19 = vld [vmem:[%s17747_s0 + $0x330] sm:$0xff] }
  0x96   :  { %v9222_v20 = vld [vmem:[%s17747_s0 + $0x950] sm:$0xff] }
  0x98   :  { %11213 = vmatmul.mubr.msk.f32.gmra.mrb[70].mxu0 %vm221_vm1, %v90_v21  ;;  %11515 = vmatmul.mubr.msk.f32.gmra.mrb[70].mxu1 %vm221_vm1, %v9191_v22  ;;  %v122_v21 = vld [vmem:[%s17747_s0 + $0x338] sm:$0xff] }
  0x99   :  { %11215 = vmatprep.mubr.msk.f32.mxu0 %vm221_vm1, %v91_v23  ;;  %11517 = vmatprep.mubr.msk.f32.mxu1 %vm221_vm1, %v9192_v24  ;;  %v9223_v22 = vld [vmem:[%s17747_s0 + $0x958] sm:$0xff]  ;;  %v123_v23 = vld [vmem:[%s17747_s0 + $0x340] sm:$0xff] }
  0x9a   :  { %v9224_v24 = vld [vmem:[%s17747_s0 + $0x960] sm:$0xff] }
  0x9c   :  { %11216 = vmatmul.mubr.msk.f32.gmra.mrb[72].mxu0 %vm221_vm1, %v92_v25  ;;  %11518 = vmatmul.mubr.msk.f32.gmra.mrb[72].mxu1 %vm221_vm1, %v9193_v26  ;;  %v124_v25 = vld [vmem:[%s17747_s0 + $0x348] sm:$0xff] }
  0x9d   :  { %11218 = vmatprep.mubr.msk.f32.mxu0 %vm221_vm1, %v93_v27  ;;  %11520 = vmatprep.mubr.msk.f32.mxu1 %vm221_vm1, %v9194_v28  ;;  %v9225_v26 = vld [vmem:[%s17747_s0 + $0x968] sm:$0xff]  ;;  %v125_v27 = vld [vmem:[%s17747_s0 + $0x350] sm:$0xff] }
  0x9e   :  { %v9226_v28 = vld [vmem:[%s17747_s0 + $0x970] sm:$0xff] }
  0xa0   :  { %11219 = vmatmul.mubr.msk.f32.gmra.mrb[74].mxu0 %vm221_vm1, %v94_v29  ;;  %11521 = vmatmul.mubr.msk.f32.gmra.mrb[74].mxu1 %vm221_vm1, %v9195_v30  ;;  %v13266_v29 = vld [vmem:[%s17748_s2] ss:$0 sm:$0xff]  ;;  %v126_v30 = vld [vmem:[%s17747_s0 + $0x358] sm:$0xff] }
  0xa1   :  { %11221 = vmatprep.mubr.msk.f32.mxu0 %vm221_vm1, %v95_v31  ;;  %11523 = vmatprep.mubr.msk.f32.mxu1 %vm221_vm1, %v9196_v32  ;;  %v9227_v31 = vld [vmem:[%s17747_s0 + $0x978] sm:$0xff]  ;;  %v127_v32 = vld [vmem:[%s17747_s0 + $0x360] sm:$0xff] }
  0xa4   :  { %11222 = vmatmul.mubr.msk.f32.gmra.mrb[76].mxu0 %vm221_vm1, %v96_v33  ;;  %11524 = vmatmul.mubr.msk.f32.gmra.mrb[76].mxu1 %vm221_vm1, %v9197_v34  ;;  %v9228_v33 = vld [vmem:[%s17747_s0 + $0x980] sm:$0xff] }
  0xa5   :  { %11224 = vmatprep.mubr.msk.f32.mxu0 %vm221_vm1, %v97_v35  ;;  %11526 = vmatprep.mubr.msk.f32.mxu1 %vm221_vm1, %v9198_v36 }
  0xa8   :  { %11225 = vmatmul.mubr.msk.f32.gmra.mrb[78].mxu0 %vm221_vm1, %v98_v37  ;;  %11527 = vmatmul.mubr.msk.f32.gmra.mrb[78].mxu1 %vm221_vm1, %v9199_v38 }
  0xa9   :  { %11227 = vmatprep.mubr.msk.f32.mxu0 %vm221_vm1, %v99_v39  ;;  %11529 = vmatprep.mubr.msk.f32.mxu1 %vm221_vm1, %v9200_v40 }
  0xac   :  { %11228 = vmatmul.mubr.msk.f32.gmra.mrb[80].mxu0 %vm221_vm1, %v100_v41  ;;  %11530 = vmatmul.mubr.msk.f32.gmra.mrb[80].mxu1 %vm221_vm1, %v9201_v42  ;;  %v128_v42 = vld [vmem:[%s17747_s0 + $0x368] sm:$0xff] }
  0xad   :  { %11230 = vmatprep.mubr.msk.f32.mxu0 %vm221_vm1, %v101_v43  ;;  %11532 = vmatprep.mubr.msk.f32.mxu1 %vm221_vm1, %v9202_v44  ;;  %v9229_v43 = vld [vmem:[%s17747_s0 + $0x988] sm:$0xff] }
  0xb0   :  { %11231 = vmatmul.mubr.msk.f32.gmra.mrb[82].mxu0 %vm221_vm1, %v102_v45  ;;  %11533 = vmatmul.mubr.msk.f32.gmra.mrb[82].mxu1 %vm221_vm1, %v9203_v46  ;;  %v129_v46 = vld [vmem:[%s17747_s0 + $0x370] sm:$0xff] }
  0xb1   :  { %11233 = vmatprep.mubr.msk.f32.mxu0 %vm221_vm1, %v103_v47  ;;  %11535 = vmatprep.mubr.msk.f32.mxu1 %vm221_vm1, %v9204_v48  ;;  %v9230_v47 = vld [vmem:[%s17747_s0 + $0x990] sm:$0xff] }
  0xb4   :  { %11234 = vmatmul.mubr.msk.f32.gmra.mrb[84].mxu0 %vm221_vm1, %v104_v49  ;;  %11536 = vmatmul.mubr.msk.f32.gmra.mrb[84].mxu1 %vm221_vm1, %v9205_v50 }
  0xb5   :  { %11236 = vmatprep.mubr.msk.f32.mxu0 %vm221_vm1, %v105_v51  ;;  %11538 = vmatprep.mubr.msk.f32.mxu1 %vm221_vm1, %v9206_v52 }
  0xb8   :  { %11237 = vmatmul.mubr.msk.f32.gmra.mrb[86].mxu0 %vm221_vm1, %v106_v53  ;;  %11539 = vmatmul.mubr.msk.f32.gmra.mrb[86].mxu1 %vm221_vm1, %v9207_v54 }
  0xb9   :  { %11239 = vmatprep.mubr.msk.f32.mxu0 %vm221_vm1, %v107_v55  ;;  %11541 = vmatprep.mubr.msk.f32.mxu1 %vm221_vm1, %v9208_v56 }
  0xbc   :  { %11240 = vmatmul.mubr.msk.f32.gmra.mrb[88].mxu0 %vm221_vm1, %v108_v57  ;;  %11542 = vmatmul.mubr.msk.f32.gmra.mrb[88].mxu1 %vm221_vm1, %v9209_v58 }
  0xbd   :  { %11242 = vmatprep.mubr.msk.f32.mxu0 %vm221_vm1, %v109_v59  ;;  %11544 = vmatprep.mubr.msk.f32.mxu1 %vm221_vm1, %v9210_v60  ;;  %v130_v60 = vld [vmem:[%s17747_s0 + $0x378] sm:$0xff] }
  0xc0   :  { %11243 = vmatmul.mubr.msk.f32.gmra.mrb[90].mxu0 %vm221_vm1, %v110_v61  ;;  %11545 = vmatmul.mubr.msk.f32.gmra.mrb[90].mxu1 %vm221_vm1, %v9211_v62  ;;  %v9231_v61 = vld [vmem:[%s17747_s0 + $0x998] sm:$0xff] }
  0xc1   :  { %11245 = vmatprep.mubr.msk.f32.mxu0 %vm221_vm1, %v111_v63  ;;  %11547 = vmatprep.mubr.msk.f32.mxu1 %vm221_vm1, %v9212_v0  ;;  %v131_v0 = vld [vmem:[%s17747_s0 + $0x380] sm:$0xff] }
  0xc4   :  { %11246 = vmatmul.mubr.msk.f32.gmra.mrb[92].mxu0 %vm221_vm1, %v112_v1  ;;  %11548 = vmatmul.mubr.msk.f32.gmra.mrb[92].mxu1 %vm221_vm1, %v9213_v2  ;;  %v9232_v1 = vld [vmem:[%s17747_s0 + $0x9a0] sm:$0xff] }
  0xc5   :  { %11248 = vmatprep.mubr.msk.f32.mxu0 %vm221_vm1, %v113_v3  ;;  %11550 = vmatprep.mubr.msk.f32.mxu1 %vm221_vm1, %v9214_v4 }
  0xc8   :  { %11249 = vmatmul.mubr.msk.f32.gmra.mrb[94].mxu0 %vm221_vm1, %v114_v5  ;;  %11551 = vmatmul.mubr.msk.f32.gmra.mrb[94].mxu1 %vm221_vm1, %v9215_v6 }
  0xc9   :  { %11251 = vmatprep.mubr.msk.f32.mxu0 %vm221_vm1, %v115_v7  ;;  %11553 = vmatprep.mubr.msk.f32.mxu1 %vm221_vm1, %v9216_v8 }
  0xcc   :  { %11252 = vmatmul.mubr.msk.f32.gmra.mrb[96].mxu0 %vm221_vm1, %v116_v9  ;;  %11554 = vmatmul.mubr.msk.f32.gmra.mrb[96].mxu1 %vm221_vm1, %v9217_v10 }
  0xcd   :  { %11254 = vmatprep.mubr.msk.f32.mxu0 %vm221_vm1, %v117_v11  ;;  %11556 = vmatprep.mubr.msk.f32.mxu1 %vm221_vm1, %v9218_v12 }
  0xd0   :  { %11255 = vmatmul.mubr.msk.f32.gmra.mrb[98].mxu0 %vm221_vm1, %v118_v13  ;;  %11557 = vmatmul.mubr.msk.f32.gmra.mrb[98].mxu1 %vm221_vm1, %v9219_v14  ;;  %v132_v14 = vld [vmem:[%s17747_s0 + $0x388] sm:$0xff] }
  0xd1   :  { %11257 = vmatprep.mubr.msk.f32.mxu0 %vm221_vm1, %v119_v15  ;;  %11559 = vmatprep.mubr.msk.f32.mxu1 %vm221_vm1, %v9220_v16  ;;  %v9233_v15 = vld [vmem:[%s17747_s0 + $0x9a8] sm:$0xff] }
  0xd4   :  { %11258 = vmatmul.mubr.msk.f32.gmra.mrb[100].mxu0 %vm221_vm1, %v120_v17  ;;  %11560 = vmatmul.mubr.msk.f32.gmra.mrb[100].mxu1 %vm221_vm1, %v9221_v18  ;;  %v133_v18 = vld [vmem:[%s17747_s0 + $0x390] sm:$0xff] }
  0xd5   :  { %11260 = vmatprep.mubr.msk.f32.mxu0 %vm221_vm1, %v121_v19  ;;  %11562 = vmatprep.mubr.msk.f32.mxu1 %vm221_vm1, %v9222_v20  ;;  %v9234_v19 = vld [vmem:[%s17747_s0 + $0x9b0] sm:$0xff] }
  0xd8   :  { %11261 = vmatmul.mubr.msk.f32.gmra.mrb[102].mxu0 %vm221_vm1, %v122_v21  ;;  %11563 = vmatmul.mubr.msk.f32.gmra.mrb[102].mxu1 %vm221_vm1, %v9223_v22 }
  0xd9   :  { %11263 = vmatprep.mubr.msk.f32.mxu0 %vm221_vm1, %v123_v23  ;;  %11565 = vmatprep.mubr.msk.f32.mxu1 %vm221_vm1, %v9224_v24 }
  0xdc   :  { %11264 = vmatmul.mubr.msk.f32.gmra.mrb[104].mxu0 %vm221_vm1, %v124_v25  ;;  %11566 = vmatmul.mubr.msk.f32.gmra.mrb[104].mxu1 %vm221_vm1, %v9225_v26 }
  0xdd   :  { %11266 = vmatprep.mubr.msk.f32.mxu0 %vm221_vm1, %v125_v27  ;;  %11568 = vmatprep.mubr.msk.f32.mxu1 %vm221_vm1, %v9226_v28 }
  0xdf   :  { %v11109_v34 = vpop.f32.mrb[0].mxu0  ;;  %v11411_v35 = vpop.f32.mrb[0].mxu1 }
  0xe0   :  { %v886_v36 = vadd.f32 %v11109_v34, %v13266_v29  ;;  %v2912_v37 = vadd.f32 %v11411_v35, %v13266_v29  ;;  %v880_v38 = vpop.f32.mrb[1].mxu0  ;;  %11267 = vmatmul.mubr.msk.f32.gmra.mrb[106].mxu0 %vm221_vm1, %v126_v30  ;;  %v2906_v39 = vpop.f32.mrb[1].mxu1  ;;  %11569 = vmatmul.mubr.msk.f32.gmra.mrb[106].mxu1 %vm221_vm1, %v9227_v31  ;;  %v9235_v34 = vld [vmem:[%s17747_s0 + $0x9b8] sm:$0xff] }
  0xe1   :  { %v881_v40 = vadd.f32 %v13266_v29, %v880_v38  ;;  %v2907_v41 = vadd.f32 %v13266_v29, %v2906_v39  ;;  %11269 = vmatprep.mubr.msk.f32.mxu0 %vm221_vm1, %v127_v32  ;;  %11571 = vmatprep.mubr.msk.f32.mxu1 %vm221_vm1, %v9228_v33  ;;  %v134_v33 = vld [vmem:[%s17747_s0 + $0x398] sm:$0xff]  ;;  %v9236_v38 = vld [vmem:[%s17747_s0 + $0x9c0] sm:$0xff] }
  0xe2   :  { %v1860_v44 = vmax.f32 %v886_v36, 0.0  ;;  %v3886_v45 = vmax.f32 %v2912_v37, 0.0  ;;  %v135_v37 = vld [vmem:[%s17747_s0 + $0x3a0] sm:$0xff] }
  0xe3   :  { %v1859_v48 = vmax.f32 %v881_v40, 0.0  ;;  %v3885_v49 = vmax.f32 %v2907_v41, 0.0  ;;  %v11112_v50 = vpop.f32.mrb[2].mxu0  ;;  %v11414_v51 = vpop.f32.mrb[2].mxu1 }
  0xe4   :  { %v13302_v52 = vmax.f32 %v1860_v44, %v3886_v45  ;;  %v896_v53 = vadd.f32 %v11112_v50, %v13266_v29  ;;  %v2922_v54 = vadd.f32 %v11414_v51, %v13266_v29  ;;  %v890_v55 = vpop.f32.mrb[3].mxu0  ;;  %11270 = vmatmul.mubr.msk.f32.gmra.mrb[108].mxu0 %vm221_vm1, %v128_v42  ;;  %v2916_v56 = vpop.f32.mrb[3].mxu1  ;;  %11572 = vmatmul.mubr.msk.f32.gmra.mrb[108].mxu1 %vm221_vm1, %v9229_v43  ;;  %v136_v51 = vld [vmem:[%s17747_s0 + $0x3a8] sm:$0xff] }
  0xe5   :  { %v13308_v57 = vmax.f32 %v1859_v48, %v3885_v49  ;;  %v891_v58 = vadd.f32 %v13266_v29, %v890_v55  ;;  %v2917_v59 = vadd.f32 %v13266_v29, %v2916_v56  ;;  %11272 = vmatprep.mubr.msk.f32.mxu0 %vm221_vm1, %v129_v46  ;;  %11574 = vmatprep.mubr.msk.f32.mxu1 %vm221_vm1, %v9230_v47  ;;  %v137_v56 = vld [vmem:[%s17747_s0 + $0x3b0] sm:$0xff] }
  0xe6   :  { %v1862_v62 = vmax.f32 %v896_v53, 0.0  ;;  %v3888_v63 = vmax.f32 %v2922_v54, 0.0  ;;  %v9237_v53 = vld [vmem:[%s17747_s0 + $0x9c8] sm:$0xff] }
  0xe7   :  { %v1861_v2 = vmax.f32 %v891_v58, 0.0  ;;  %v3887_v3 = vmax.f32 %v2917_v59, 0.0  ;;  %v11115_v4 = vpop.f32.mrb[4].mxu0  ;;  %v11417_v5 = vpop.f32.mrb[4].mxu1  ;;  %v9238_v58 = vld [vmem:[%s17747_s0 + $0x9d0] sm:$0xff] }
  0xe8   :  { %v13326_v6 = vmax.f32 %v1862_v62, %v3888_v63  ;;  %v906_v7 = vadd.f32 %v11115_v4, %v13266_v29  ;;  %v2932_v8 = vadd.f32 %v11417_v5, %v13266_v29  ;;  %v900_v9 = vpop.f32.mrb[5].mxu0  ;;  %11273 = vmatmul.mubr.msk.f32.gmra.mrb[110].mxu0 %vm221_vm1, %v130_v60  ;;  %v2926_v10 = vpop.f32.mrb[5].mxu1  ;;  %11575 = vmatmul.mubr.msk.f32.gmra.mrb[110].mxu1 %vm221_vm1, %v9231_v61 }
  0xe9   :  { %v13332_v11 = vmax.f32 %v1861_v2, %v3887_v3  ;;  %v901_v12 = vadd.f32 %v13266_v29, %v900_v9  ;;  %v2927_v13 = vadd.f32 %v13266_v29, %v2926_v10  ;;  %11275 = vmatprep.mubr.msk.f32.mxu0 %vm221_vm1, %v131_v0  ;;  %11577 = vmatprep.mubr.msk.f32.mxu1 %vm221_vm1, %v9232_v1  ;;  %v9239_v9 = vld [vmem:[%s17747_s0 + $0x9d8] sm:$0xff] }
  0xea   :  { %v1864_v16 = vmax.f32 %v906_v7, 0.0  ;;  %v3890_v17 = vmax.f32 %v2932_v8, 0.0  ;;  %v138_v8 = vld [vmem:[%s17747_s0 + $0x3b8] sm:$0xff] }
  0xeb   :  { %v1863_v20 = vmax.f32 %v901_v12, 0.0  ;;  %v3889_v21 = vmax.f32 %v2927_v13, 0.0  ;;  %v11118_v22 = vpop.f32.mrb[6].mxu0  ;;  %v11420_v23 = vpop.f32.mrb[6].mxu1  ;;  %v139_v13 = vld [vmem:[%s17747_s0 + $0x3c0] sm:$0xff] }
  0xec   :  { %v13350_v24 = vmax.f32 %v1864_v16, %v3890_v17  ;;  %v916_v25 = vadd.f32 %v11118_v22, %v13266_v29  ;;  %v2942_v26 = vadd.f32 %v11420_v23, %v13266_v29  ;;  %v910_v27 = vpop.f32.mrb[7].mxu0  ;;  %11276 = vmatmul.mubr.msk.f32.gmra.mrb[112].mxu0 %vm221_vm1, %v132_v14  ;;  %v2936_v28 = vpop.f32.mrb[7].mxu1  ;;  %11578 = vmatmul.mubr.msk.f32.gmra.mrb[112].mxu1 %vm221_vm1, %v9233_v15  ;;  %v9240_v14 = vld [vmem:[%s17747_s0 + $0x9e0] sm:$0xff] }
  0xed   :  { %v13356_v30 = vmax.f32 %v1863_v20, %v3889_v21  ;;  %v911_v31 = vadd.f32 %v13266_v29, %v910_v27  ;;  %v2937_v32 = vadd.f32 %v13266_v29, %v2936_v28  ;;  %11278 = vmatprep.mubr.msk.f32.mxu0 %vm221_vm1, %v133_v18  ;;  %11580 = vmatprep.mubr.msk.f32.mxu1 %vm221_vm1, %v9234_v19  ;;  %v140_v28 = vld [vmem:[%s17747_s0 + $0x3c8] sm:$0xff] }
  0xee   :  { %v1866_v35 = vmax.f32 %v916_v25, 0.0  ;;  %v3892_v36 = vmax.f32 %v2942_v26, 0.0 }
  0xef   :  { %v1865_v39 = vmax.f32 %v911_v31, 0.0  ;;  %v3891_v40 = vmax.f32 %v2937_v32, 0.0  ;;  %v11121_v41 = vpop.f32.mrb[8].mxu0  ;;  %v11423_v42 = vpop.f32.mrb[8].mxu1  ;;  %v9241_v31 = vld [vmem:[%s17747_s0 + $0x9e8] sm:$0xff] }
  0xf0   :  { %v13374_v43 = vmax.f32 %v1866_v35, %v3892_v36  ;;  %v926_v44 = vadd.f32 %v11121_v41, %v13266_v29  ;;  %v2952_v45 = vadd.f32 %v11423_v42, %v13266_v29  ;;  %v920_v46 = vpop.f32.mrb[9].mxu0  ;;  %11279 = vmatmul.mubr.msk.f32.gmra.mrb[114].mxu0 %vm221_vm1, %v134_v33  ;;  %v2946_v47 = vpop.f32.mrb[9].mxu1  ;;  %11581 = vmatmul.mubr.msk.f32.gmra.mrb[114].mxu1 %vm221_vm1, %v9235_v34  ;;  %v141_v34 = vld [vmem:[%s17747_s0 + $0x3d0] sm:$0xff] }
  0xf1   :  { %v13380_v48 = vmax.f32 %v1865_v39, %v3891_v40  ;;  %v921_v49 = vadd.f32 %v13266_v29, %v920_v46  ;;  %v2947_v50 = vadd.f32 %v13266_v29, %v2946_v47  ;;  %11281 = vmatprep.mubr.msk.f32.mxu0 %vm221_vm1, %v135_v37  ;;  %11583 = vmatprep.mubr.msk.f32.mxu1 %vm221_vm1, %v9236_v38  ;;  %v9242_v35 = vld [vmem:[%s17747_s0 + $0x9f0] sm:$0xff] }
  0xf2   :  { %v1868_v54 = vmax.f32 %v926_v44, 0.0  ;;  %v3894_v55 = vmax.f32 %v2952_v45, 0.0 }
  0xf3   :  { %v1867_v59 = vmax.f32 %v921_v49, 0.0  ;;  %v3893_v60 = vmax.f32 %v2947_v50, 0.0  ;;  %v11124_v61 = vpop.f32.mrb[10].mxu0  ;;  %v11426_v62 = vpop.f32.mrb[10].mxu1  ;;  %v142_v50 = vld [vmem:[%s17747_s0 + $0x3d8] sm:$0xff] }
  0xf4   :  { %v13398_v63 = vmax.f32 %v1868_v54, %v3894_v55  ;;  %v936_v0 = vadd.f32 %v11124_v61, %v13266_v29  ;;  %v2962_v1 = vadd.f32 %v11426_v62, %v13266_v29  ;;  %v930_v2 = vpop.f32.mrb[11].mxu0  ;;  %11282 = vmatmul.mubr.msk.f32.gmra.mrb[116].mxu0 %vm221_vm1, %v136_v51  ;;  %v2956_v3 = vpop.f32.mrb[11].mxu1  ;;  %11584 = vmatmul.mubr.msk.f32.gmra.mrb[116].mxu1 %vm221_vm1, %v9237_v53  ;;  %v9243_v51 = vld [vmem:[%s17747_s0 + $0x9f8] sm:$0xff]  ;;  %v143_v55 = vld [vmem:[%s17747_s0 + $0x3e0] sm:$0xff] }
  0xf5   :  { %v13404_v4 = vmax.f32 %v1867_v59, %v3893_v60  ;;  %v931_v5 = vadd.f32 %v13266_v29, %v930_v2  ;;  %v2957_v7 = vadd.f32 %v13266_v29, %v2956_v3  ;;  %11284 = vmatprep.mubr.msk.f32.mxu0 %vm221_vm1, %v137_v56  ;;  %11586 = vmatprep.mubr.msk.f32.mxu1 %vm221_vm1, %v9238_v58  ;;  %v9244_v56 = vld [vmem:[%s17747_s0 + $0xa00] sm:$0xff] }
  0xf6   :  { %v1870_v10 = vmax.f32 %v936_v0, 0.0  ;;  %v3896_v12 = vmax.f32 %v2962_v1, 0.0 }
  0xf7   :  { %v1869_v15 = vmax.f32 %v931_v5, 0.0  ;;  %v3895_v16 = vmax.f32 %v2957_v7, 0.0  ;;  %v11127_v17 = vpop.f32.mrb[12].mxu0  ;;  %v11429_v18 = vpop.f32.mrb[12].mxu1 }
  0xf8   :  { %v13422_v19 = vmax.f32 %v1870_v10, %v3896_v12  ;;  %v946_v20 = vadd.f32 %v11127_v17, %v13266_v29  ;;  %v2972_v21 = vadd.f32 %v11429_v18, %v13266_v29  ;;  %v940_v22 = vpop.f32.mrb[13].mxu0  ;;  %11285 = vmatmul.mubr.msk.f32.gmra.mrb[118].mxu0 %vm221_vm1, %v138_v8  ;;  %v2966_v23 = vpop.f32.mrb[13].mxu1  ;;  %11587 = vmatmul.mubr.msk.f32.gmra.mrb[118].mxu1 %vm221_vm1, %v9239_v9  ;;  %v144_v9 = vld [vmem:[%s17747_s0 + $0x3e8] sm:$0xff] }
  0xf9   :  { %v13428_v25 = vmax.f32 %v1869_v15, %v3895_v16  ;;  %v941_v26 = vadd.f32 %v13266_v29, %v940_v22  ;;  %v2967_v27 = vadd.f32 %v13266_v29, %v2966_v23  ;;  %11287 = vmatprep.mubr.msk.f32.mxu0 %vm221_vm1, %v139_v13  ;;  %11589 = vmatprep.mubr.msk.f32.mxu1 %vm221_vm1, %v9240_v14  ;;  %v9245_v10 = vld [vmem:[%s17747_s0 + $0xa08] sm:$0xff]  ;;  %v145_v14 = vld [vmem:[%s17747_s0 + $0x3f0] sm:$0xff] }
  0xfa   :  { %v1872_v32 = vmax.f32 %v946_v20, 0.0  ;;  %v3898_v33 = vmax.f32 %v2972_v21, 0.0  ;;  %v9246_v15 = vld [vmem:[%s17747_s0 + $0xa10] sm:$0xff] }
  0xfb   :  { %v1871_v36 = vmax.f32 %v941_v26, 0.0  ;;  %v3897_v37 = vmax.f32 %v2967_v27, 0.0  ;;  %v11130_v38 = vpop.f32.mrb[14].mxu0  ;;  %v11432_v39 = vpop.f32.mrb[14].mxu1 }
  0xfc   :  { %v13446_v40 = vmax.f32 %v1872_v32, %v3898_v33  ;;  %v956_v41 = vadd.f32 %v11130_v38, %v13266_v29  ;;  %v2982_v42 = vadd.f32 %v11432_v39, %v13266_v29  ;;  %v950_v44 = vpop.f32.mrb[15].mxu0  ;;  %11288 = vmatmul.mubr.msk.f32.gmra.mrb[120].mxu0 %vm221_vm1, %v140_v28  ;;  %v2976_v45 = vpop.f32.mrb[15].mxu1  ;;  %11590 = vmatmul.mubr.msk.f32.gmra.mrb[120].mxu1 %vm221_vm1, %v9241_v31  ;;  %v146_v33 = vld [vmem:[%s17747_s0 + $0x3f8] sm:$0xff]  ;;  %v9248_v38 = vld [vmem:[%s17747_s0 + $0xa20] sm:$0xff] }
  0xfd   :  { %v13452_v46 = vmax.f32 %v1871_v36, %v3897_v37  ;;  %v951_v47 = vadd.f32 %v13266_v29, %v950_v44  ;;  %v2977_v49 = vadd.f32 %v13266_v29, %v2976_v45  ;;  %11290 = vmatprep.mubr.msk.f32.mxu0 %vm221_vm1, %v141_v34  ;;  %11592 = vmatprep.mubr.msk.f32.mxu1 %vm221_vm1, %v9242_v35  ;;  %v9247_v34 = vld [vmem:[%s17747_s0 + $0xa18] sm:$0xff]  ;;  %v147_v37 = vld [vmem:[%s17747_s0 + $0x400] sm:$0xff] }
  0xfe   :  { %v1874_v53 = vmax.f32 %v956_v41, 0.0  ;;  %v3900_v54 = vmax.f32 %v2982_v42, 0.0 }
  0xff   :  { %v1873_v58 = vmax.f32 %v951_v47, 0.0  ;;  %v3899_v59 = vmax.f32 %v2977_v49, 0.0  ;;  %v11133_v60 = vpop.f32.mrb[16].mxu0  ;;  %v11435_v61 = vpop.f32.mrb[16].mxu1 }
 0x100   :  { %v13470_v62 = vmax.f32 %v1874_v53, %v3900_v54  ;;  %v966_v0 = vadd.f32 %v11133_v60, %v13266_v29  ;;  %v2992_v1 = vadd.f32 %v11435_v61, %v13266_v29  ;;  %v960_v2 = vpop.f32.mrb[17].mxu0  ;;  %11291 = vmatmul.mubr.msk.f32.gmra.mrb[122].mxu0 %vm221_vm1, %v142_v50  ;;  %v2986_v3 = vpop.f32.mrb[17].mxu1  ;;  %11593 = vmatmul.mubr.msk.f32.gmra.mrb[122].mxu1 %vm221_vm1, %v9243_v51  ;;  %v149_v61 = vld [vmem:[%s17747_s0 + $0x410] sm:$0xff] }
 0x101   :  { %v13476_v5 = vmax.f32 %v1873_v58, %v3899_v59  ;;  %v961_v7 = vadd.f32 %v13266_v29, %v960_v2  ;;  %v2987_v8 = vadd.f32 %v13266_v29, %v2986_v3  ;;  %11293 = vmatprep.mubr.msk.f32.mxu0 %vm221_vm1, %v143_v55  ;;  %11595 = vmatprep.mubr.msk.f32.mxu1 %vm221_vm1, %v9244_v56  ;;  %v148_v56 = vld [vmem:[%s17747_s0 + $0x408] sm:$0xff] }
 0x102   :  { %v1876_v12 = vmax.f32 %v966_v0, 0.0  ;;  %v3902_v13 = vmax.f32 %v2992_v1, 0.0  ;;  %v9249_v58 = vld [vmem:[%s17747_s0 + $0xa28] sm:$0xff]  ;;  %v9250_v0 = vld [vmem:[%s17747_s0 + $0xa30] sm:$0xff] }
 0x103   :  { %v1875_v16 = vmax.f32 %v961_v7, 0.0  ;;  %v3901_v17 = vmax.f32 %v2987_v8, 0.0  ;;  %v11136_v18 = vpop.f32.mrb[18].mxu0  ;;  %v11438_v20 = vpop.f32.mrb[18].mxu1 }
 0x104   :  { %v13494_v21 = vmax.f32 %v1876_v12, %v3902_v13  ;;  %v976_v22 = vadd.f32 %v11136_v18, %v13266_v29  ;;  %v3002_v23 = vadd.f32 %v11438_v20, %v13266_v29  ;;  %v970_v26 = vpop.f32.mrb[19].mxu0  ;;  %11294 = vmatmul.mubr.msk.f32.gmra.mrb[124].mxu0 %vm221_vm1, %v144_v9  ;;  %v2996_v27 = vpop.f32.mrb[19].mxu1  ;;  %11596 = vmatmul.mubr.msk.f32.gmra.mrb[124].mxu1 %vm221_vm1, %v9245_v10  ;;  %v9251_v18 = vld [vmem:[%s17747_s0 + $0xa38] sm:$0xff] }
 0x105   :  { %v13500_v28 = vmax.f32 %v1875_v16, %v3901_v17  ;;  %v971_v31 = vadd.f32 %v13266_v29, %v970_v26  ;;  %v2997_v32 = vadd.f32 %v13266_v29, %v2996_v27  ;;  %11296 = vmatprep.mubr.msk.f32.mxu0 %vm221_vm1, %v145_v14  ;;  %11598 = vmatprep.mubr.msk.f32.mxu1 %vm221_vm1, %v9246_v15  ;;  %v150_v17 = vld [vmem:[%s17747_s0 + $0x418] sm:$0xff]  ;;  %v9252_v26 = vld [vmem:[%s17747_s0 + $0xa40] sm:$0xff] }
 0x106   :  { %v1878_v35 = vmax.f32 %v976_v22, 0.0  ;;  %v3904_v36 = vmax.f32 %v3002_v23, 0.0  ;;  %v151_v23 = vld [vmem:[%s17747_s0 + $0x420] sm:$0xff] }
 0x107   :  { %v1877_v39 = vmax.f32 %v971_v31, 0.0  ;;  %v3903_v41 = vmax.f32 %v2997_v32, 0.0  ;;  %v11139_v42 = vpop.f32.mrb[20].mxu0  ;;  %v11441_v44 = vpop.f32.mrb[20].mxu1 }
 0x108   :  { %v13518_v45 = vmax.f32 %v1878_v35, %v3904_v36  ;;  %v986_v47 = vadd.f32 %v11139_v42, %v13266_v29  ;;  %v3012_v49 = vadd.f32 %v11441_v44, %v13266_v29  ;;  %v980_v50 = vpop.f32.mrb[21].mxu0  ;;  %11297 = vmatmul.mubr.msk.f32.gmra.mrb[126].mxu0 %vm221_vm1, %v146_v33  ;;  %v3006_v51 = vpop.f32.mrb[21].mxu1  ;;  %11599 = vmatmul.mubr.msk.f32.gmra.mrb[126].mxu1 %vm221_vm1, %v9247_v34  ;;  %v152_v44 = vld [vmem:[%s17747_s0 + $0x428] sm:$0xff] }
 0x109   :  { %v13524_v53 = vmax.f32 %v1877_v39, %v3903_v41  ;;  %v981_v54 = vadd.f32 %v13266_v29, %v980_v50  ;;  %v3007_v55 = vadd.f32 %v13266_v29, %v3006_v51  ;;  %11299 = vmatprep.mubr.msk.f32.mxu0 %vm221_vm1, %v147_v37  ;;  %11601 = vmatprep.mubr.msk.f32.mxu1 %vm221_vm1, %v9248_v38  ;;  %v153_v51 = vld [vmem:[%s17747_s0 + $0x430] sm:$0xff] }
 0x10a   :  { %v1880_v59 = vmax.f32 %v986_v47, 0.0  ;;  %v3906_v60 = vmax.f32 %v3012_v49, 0.0  ;;  %v9253_v47 = vld [vmem:[%s17747_s0 + $0xa48] sm:$0xff] }
 0x10b   :  { %v1879_v1 = vmax.f32 %v981_v54, 0.0  ;;  %v3905_v2 = vmax.f32 %v3007_v55, 0.0  ;;  %v11142_v3 = vpop.f32.mrb[22].mxu0  ;;  %v11444_v7 = vpop.f32.mrb[22].mxu1  ;;  %v9254_v54 = vld [vmem:[%s17747_s0 + $0xa50] sm:$0xff] }
 0x10c   :  { %v13542_v8 = vmax.f32 %v1880_v59, %v3906_v60  ;;  %v996_v9 = vadd.f32 %v11142_v3, %v13266_v29  ;;  %v3022_v10 = vadd.f32 %v11444_v7, %v13266_v29  ;;  %v990_v12 = vpop.f32.mrb[23].mxu0  ;;  %11300 = vmatmul.mubr.msk.f32.gmra.mrb[128].mxu0 %vm221_vm1, %v148_v56  ;;  %v3016_v13 = vpop.f32.mrb[23].mxu1  ;;  %11602 = vmatmul.mubr.msk.f32.gmra.mrb[128].mxu1 %vm221_vm1, %v9249_v58 }
 0x10d   :  { %v13548_v14 = vmax.f32 %v1879_v1, %v3905_v2  ;;  %v991_v15 = vadd.f32 %v13266_v29, %v990_v12  ;;  %v3017_v16 = vadd.f32 %v13266_v29, %v3016_v13  ;;  %11302 = vmatprep.mubr.msk.f32.mxu0 %vm221_vm1, %v149_v61  ;;  %11604 = vmatprep.mubr.msk.f32.mxu1 %vm221_vm1, %v9250_v0  ;;  %v9255_v12 = vld [vmem:[%s17747_s0 + $0xa58] sm:$0xff] }
 0x10e   :  { %v1882_v20 = vmax.f32 %v996_v9, 0.0  ;;  %v3908_v22 = vmax.f32 %v3022_v10, 0.0  ;;  %v154_v10 = vld [vmem:[%s17747_s0 + $0x438] sm:$0xff] }
 0x10f   :  { %v1881_v27 = vmax.f32 %v991_v15, 0.0  ;;  %v3907_v31 = vmax.f32 %v3017_v16, 0.0  ;;  %v11145_v32 = vpop.f32.mrb[24].mxu0  ;;  %v11447_v33 = vpop.f32.mrb[24].mxu1  ;;  %v155_v16 = vld [vmem:[%s17747_s0 + $0x440] sm:$0xff] }
 0x110   :  { %v13566_v34 = vmax.f32 %v1882_v20, %v3908_v22  ;;  %v1006_v35 = vadd.f32 %v11145_v32, %v13266_v29  ;;  %v3032_v36 = vadd.f32 %v11447_v33, %v13266_v29  ;;  %v1000_v37 = vpop.f32.mrb[25].mxu0  ;;  %11303 = vmatmul.mubr.msk.f32.gmra.mrb[130].mxu0 %vm221_vm1, %v150_v17  ;;  %v3026_v38 = vpop.f32.mrb[25].mxu1  ;;  %11605 = vmatmul.mubr.msk.f32.gmra.mrb[130].mxu1 %vm221_vm1, %v9251_v18  ;;  %v9256_v17 = vld [vmem:[%s17747_s0 + $0xa60] sm:$0xff] }
 0x111   :  { %v13572_v39 = vmax.f32 %v1881_v27, %v3907_v31  ;;  %v1001_v41 = vadd.f32 %v13266_v29, %v1000_v37  ;;  %v3027_v42 = vadd.f32 %v13266_v29, %v3026_v38  ;;  %11305 = vmatprep.mubr.msk.f32.mxu0 %vm221_vm1, %v151_v23  ;;  %11607 = vmatprep.mubr.msk.f32.mxu1 %vm221_vm1, %v9252_v26  ;;  %v156_v38 = vld [vmem:[%s17747_s0 + $0x448] sm:$0xff] }
 0x112   :  { %v1884_v49 = vmax.f32 %v1006_v35, 0.0  ;;  %v3910_v50 = vmax.f32 %v3032_v36, 0.0 }
 0x113   :  { %v1883_v55 = vmax.f32 %v1001_v41, 0.0  ;;  %v3909_v56 = vmax.f32 %v3027_v42, 0.0  ;;  %v11148_v58 = vpop.f32.mrb[26].mxu0  ;;  %v11450_v59 = vpop.f32.mrb[26].mxu1  ;;  %v9257_v41 = vld [vmem:[%s17747_s0 + $0xa68] sm:$0xff] }
 0x114   :  { %v13590_v60 = vmax.f32 %v1884_v49, %v3910_v50  ;;  %v1016_v61 = vadd.f32 %v11148_v58, %v13266_v29  ;;  %v3042_v0 = vadd.f32 %v11450_v59, %v13266_v29  ;;  %v1010_v1 = vpop.f32.mrb[27].mxu0  ;;  %11306 = vmatmul.mubr.msk.f32.gmra.mrb[132].mxu0 %vm221_vm1, %v152_v44  ;;  %v3036_v2 = vpop.f32.mrb[27].mxu1  ;;  %11608 = vmatmul.mubr.msk.f32.gmra.mrb[132].mxu1 %vm221_vm1, %v9253_v47  ;;  %v157_v47 = vld [vmem:[%s17747_s0 + $0x450] sm:$0xff] }
 0x115   :  { %v13596_v3 = vmax.f32 %v1883_v55, %v3909_v56  ;;  %v1011_v7 = vadd.f32 %v13266_v29, %v1010_v1  ;;  %v3037_v9 = vadd.f32 %v13266_v29, %v3036_v2  ;;  %11308 = vmatprep.mubr.msk.f32.mxu0 %vm221_vm1, %v153_v51  ;;  %11610 = vmatprep.mubr.msk.f32.mxu1 %vm221_vm1, %v9254_v54  ;;  %v9258_v49 = vld [vmem:[%s17747_s0 + $0xa70] sm:$0xff] }
 0x116   :  { %v1886_v13 = vmax.f32 %v1016_v61, 0.0  ;;  %v3912_v15 = vmax.f32 %v3042_v0, 0.0 }
 0x117   :  { %v1885_v18 = vmax.f32 %v1011_v7, 0.0  ;;  %v3911_v20 = vmax.f32 %v3037_v9, 0.0  ;;  %v11151_v22 = vpop.f32.mrb[28].mxu0  ;;  %v11453_v23 = vpop.f32.mrb[28].mxu1  ;;  %v158_v9 = vld [vmem:[%s17747_s0 + $0x458] sm:$0xff] }
 0x118   :  { %v13614_v26 = vmax.f32 %v1886_v13, %v3912_v15  ;;  %v1026_v27 = vadd.f32 %v11151_v22, %v13266_v29  ;;  %v3052_v31 = vadd.f32 %v11453_v23, %v13266_v29  ;;  %v1020_v32 = vpop.f32.mrb[29].mxu0  ;;  %11309 = vmatmul.mubr.msk.f32.gmra.mrb[134].mxu0 %vm221_vm1, %v154_v10  ;;  %v3046_v33 = vpop.f32.mrb[29].mxu1  ;;  %11611 = vmatmul.mubr.msk.f32.gmra.mrb[134].mxu1 %vm221_vm1, %v9255_v12  ;;  %v9259_v10 = vld [vmem:[%s17747_s0 + $0xa78] sm:$0xff]  ;;  %v159_v15 = vld [vmem:[%s17747_s0 + $0x460] sm:$0xff] }
 0x119   :  { %v13620_v35 = vmax.f32 %v1885_v18, %v3911_v20  ;;  %v1021_v36 = vadd.f32 %v13266_v29, %v1020_v32  ;;  %v3047_v37 = vadd.f32 %v13266_v29, %v3046_v33  ;;  %11311 = vmatprep.mubr.msk.f32.mxu0 %vm221_vm1, %v155_v16  ;;  %11613 = vmatprep.mubr.msk.f32.mxu1 %vm221_vm1, %v9256_v17  ;;  %v9260_v16 = vld [vmem:[%s17747_s0 + $0xa80] sm:$0xff] }
 0x11a   :  { %v1888_v42 = vmax.f32 %v1026_v27, 0.0  ;;  %v3914_v44 = vmax.f32 %v3052_v31, 0.0 }
 0x11b   :  { %v1887_v50 = vmax.f32 %v1021_v36, 0.0  ;;  %v3913_v51 = vmax.f32 %v3047_v37, 0.0  ;;  %v11154_v54 = vpop.f32.mrb[30].mxu0  ;;  %v11456_v55 = vpop.f32.mrb[30].mxu1 }
 0x11c   :  { %v13638_v56 = vmax.f32 %v1888_v42, %v3914_v44  ;;  %v1036_v58 = vadd.f32 %v11154_v54, %v13266_v29  ;;  %v3062_v59 = vadd.f32 %v11456_v55, %v13266_v29  ;;  %v1030_v61 = vpop.f32.mrb[31].mxu0  ;;  %11312 = vmatmul.mubr.msk.f32.gmra.mrb[136].mxu0 %vm221_vm1, %v156_v38  ;;  %v3056_v0 = vpop.f32.mrb[31].mxu1  ;;  %11614 = vmatmul.mubr.msk.f32.gmra.mrb[136].mxu1 %vm221_vm1, %v9257_v41  ;;  %v160_v41 = vld [vmem:[%s17747_s0 + $0x468] sm:$0xff] }
 0x11d   :  { %v13644_v1 = vmax.f32 %v1887_v50, %v3913_v51  ;;  %v1031_v2 = vadd.f32 %v13266_v29, %v1030_v61  ;;  %v3057_v7 = vadd.f32 %v13266_v29, %v3056_v0  ;;  %11314 = vmatprep.mubr.msk.f32.mxu0 %vm221_vm1, %v157_v47  ;;  %11616 = vmatprep.mubr.msk.f32.mxu1 %vm221_vm1, %v9258_v49  ;;  %v9261_v42 = vld [vmem:[%s17747_s0 + $0xa88] sm:$0xff]  ;;  %v161_v49 = vld [vmem:[%s17747_s0 + $0x470] sm:$0xff] }
 0x11e   :  { %v1890_v12 = vmax.f32 %v1036_v58, 0.0  ;;  %v3916_v13 = vmax.f32 %v3062_v59, 0.0  ;;  %v9262_v50 = vld [vmem:[%s17747_s0 + $0xa90] sm:$0xff] }
 0x11f   :  { %v1889_v17 = vmax.f32 %v1031_v2, 0.0  ;;  %v3915_v18 = vmax.f32 %v3057_v7, 0.0  ;;  %v11157_v20 = vpop.f32.mrb[32].mxu0  ;;  %v11459_v22 = vpop.f32.mrb[32].mxu1 }
 0x120   :  { %v13662_v23 = vmax.f32 %v1890_v12, %v3916_v13  ;;  %v1046_v27 = vadd.f32 %v11157_v20, %v13266_v29  ;;  %v3072_v31 = vadd.f32 %v11459_v22, %v13266_v29  ;;  %v1040_v32 = vpop.f32.mrb[33].mxu0  ;;  %11315 = vmatmul.mubr.msk.f32.gmra.mrb[138].mxu0 %vm221_vm1, %v158_v9  ;;  %v3066_v33 = vpop.f32.mrb[33].mxu1  ;;  %11617 = vmatmul.mubr.msk.f32.gmra.mrb[138].mxu1 %vm221_vm1, %v9259_v10  ;;  %v162_v13 = vld [vmem:[%s17747_s0 + $0x478] sm:$0xff]  ;;  %v9264_v20 = vld [vmem:[%s17747_s0 + $0xaa0] sm:$0xff] }
 0x121   :  { %v13668_v36 = vmax.f32 %v1889_v17, %v3915_v18  ;;  %v1041_v37 = vadd.f32 %v13266_v29, %v1040_v32  ;;  %v3067_v38 = vadd.f32 %v13266_v29, %v3066_v33  ;;  %11317 = vmatprep.mubr.msk.f32.mxu0 %vm221_vm1, %v159_v15  ;;  %11619 = vmatprep.mubr.msk.f32.mxu1 %vm221_vm1, %v9260_v16  ;;  %v9263_v15 = vld [vmem:[%s17747_s0 + $0xa98] sm:$0xff]  ;;  %v163_v18 = vld [vmem:[%s17747_s0 + $0x480] sm:$0xff] }
 0x122   :  { %v1892_v44 = vmax.f32 %v1046_v27, 0.0  ;;  %v3918_v47 = vmax.f32 %v3072_v31, 0.0 }
 0x123   :  { %v1891_v51 = vmax.f32 %v1041_v37, 0.0  ;;  %v3917_v54 = vmax.f32 %v3067_v38, 0.0  ;;  %v11160_v55 = vpop.f32.mrb[34].mxu0  ;;  %v11462_v58 = vpop.f32.mrb[34].mxu1 }
 0x124   :  { %v13686_v59 = vmax.f32 %v1892_v44, %v3918_v47  ;;  %v1056_v61 = vadd.f32 %v11160_v55, %v13266_v29  ;;  %v3082_v0 = vadd.f32 %v11462_v58, %v13266_v29  ;;  %v1050_v2 = vpop.f32.mrb[35].mxu0  ;;  %11318 = vmatmul.mubr.msk.f32.gmra.mrb[140].mxu0 %vm221_vm1, %v160_v41  ;;  %v3076_v7 = vpop.f32.mrb[35].mxu1  ;;  %11620 = vmatmul.mubr.msk.f32.gmra.mrb[140].mxu1 %vm221_vm1, %v9261_v42  ;;  %v165_v58 = vld [vmem:[%s17747_s0 + $0x490] sm:$0xff] }
 0x125   :  { %v13692_v9 = vmax.f32 %v1891_v51, %v3917_v54  ;;  %v1051_v10 = vadd.f32 %v13266_v29, %v1050_v2  ;;  %v3077_v12 = vadd.f32 %v13266_v29, %v3076_v7  ;;  %11320 = vmatprep.mubr.msk.f32.mxu0 %vm221_vm1, %v161_v49  ;;  %11622 = vmatprep.mubr.msk.f32.mxu1 %vm221_vm1, %v9262_v50  ;;  %v164_v50 = vld [vmem:[%s17747_s0 + $0x488] sm:$0xff] }
 0x126   :  { %v1894_v16 = vmax.f32 %v1056_v61, 0.0  ;;  %v3920_v17 = vmax.f32 %v3082_v0, 0.0  ;;  %v9265_v51 = vld [vmem:[%s17747_s0 + $0xaa8] sm:$0xff]  ;;  %v9266_v61 = vld [vmem:[%s17747_s0 + $0xab0] sm:$0xff] }
 0x127   :  { %v1893_v22 = vmax.f32 %v1051_v10, 0.0  ;;  %v3919_v27 = vmax.f32 %v3077_v12, 0.0  ;;  %v11163_v31 = vpop.f32.mrb[36].mxu0  ;;  %v11465_v32 = vpop.f32.mrb[36].mxu1 }
 0x128   :  { %v13710_v33 = vmax.f32 %v1894_v16, %v3920_v17  ;;  %v1066_v37 = vadd.f32 %v11163_v31, %v13266_v29  ;;  %v3092_v38 = vadd.f32 %v11465_v32, %v13266_v29  ;;  %v1060_v41 = vpop.f32.mrb[37].mxu0  ;;  %11321 = vmatmul.mubr.msk.f32.gmra.mrb[142].mxu0 %vm221_vm1, %v162_v13  ;;  %v3086_v42 = vpop.f32.mrb[37].mxu1  ;;  %11623 = vmatmul.mubr.msk.f32.gmra.mrb[142].mxu1 %vm221_vm1, %v9263_v15  ;;  %v9267_v31 = vld [vmem:[%s17747_s0 + $0xab8] sm:$0xff] }
 0x129   :  { %v13716_v44 = vmax.f32 %v1893_v22, %v3919_v27  ;;  %v1061_v47 = vadd.f32 %v13266_v29, %v1060_v41  ;;  %v3087_v49 = vadd.f32 %v13266_v29, %v3086_v42  ;;  %11323 = vmatprep.mubr.msk.f32.mxu0 %vm221_vm1, %v163_v18  ;;  %11625 = vmatprep.mubr.msk.f32.mxu1 %vm221_vm1, %v9264_v20  ;;  %v166_v27 = vld [vmem:[%s17747_s0 + $0x498] sm:$0xff]  ;;  %v9268_v41 = vld [vmem:[%s17747_s0 + $0xac0] sm:$0xff] }
 0x12a   :  { %v1896_v54 = vmax.f32 %v1066_v37, 0.0  ;;  %v3922_v55 = vmax.f32 %v3092_v38, 0.0  ;;  %v167_v38 = vld [vmem:[%s17747_s0 + $0x4a0] sm:$0xff] }
 0x12b   :  { %v1895_v0 = vmax.f32 %v1061_v47, 0.0  ;;  %v3921_v2 = vmax.f32 %v3087_v49, 0.0  ;;  %v11166_v7 = vpop.f32.mrb[38].mxu0  ;;  %v11468_v10 = vpop.f32.mrb[38].mxu1 }
 0x12c   :  { %v13734_v12 = vmax.f32 %v1896_v54, %v3922_v55  ;;  %v1076_v13 = vadd.f32 %v11166_v7, %v13266_v29  ;;  %v3102_v15 = vadd.f32 %v11468_v10, %v13266_v29  ;;  %v1070_v16 = vpop.f32.mrb[39].mxu0  ;;  %11324 = vmatmul.mubr.msk.f32.gmra.mrb[144].mxu0 %vm221_vm1, %v164_v50  ;;  %v3096_v17 = vpop.f32.mrb[39].mxu1  ;;  %11626 = vmatmul.mubr.msk.f32.gmra.mrb[144].mxu1 %vm221_vm1, %v9265_v51  ;;  %v168_v10 = vld [vmem:[%s17747_s0 + $0x4a8] sm:$0xff] }
 0x12d   :  { %v13740_v18 = vmax.f32 %v1895_v0, %v3921_v2  ;;  %v1071_v20 = vadd.f32 %v13266_v29, %v1070_v16  ;;  %v3097_v22 = vadd.f32 %v13266_v29, %v3096_v17  ;;  %11326 = vmatprep.mubr.msk.f32.mxu0 %vm221_vm1, %v165_v58  ;;  %11628 = vmatprep.mubr.msk.f32.mxu1 %vm221_vm1, %v9266_v61  ;;  %v169_v17 = vld [vmem:[%s17747_s0 + $0x4b0] sm:$0xff] }
 0x12e   :  { %v1898_v32 = vmax.f32 %v1076_v13, 0.0  ;;  %v3924_v37 = vmax.f32 %v3102_v15, 0.0  ;;  %v9269_v13 = vld [vmem:[%s17747_s0 + $0xac8] sm:$0xff] }
 0x12f   :  { %v1897_v42 = vmax.f32 %v1071_v20, 0.0  ;;  %v3923_v47 = vmax.f32 %v3097_v22, 0.0  ;;  %v11169_v49 = vpop.f32.mrb[40].mxu0  ;;  %v11471_v50 = vpop.f32.mrb[40].mxu1  ;;  %v9270_v20 = vld [vmem:[%s17747_s0 + $0xad0] sm:$0xff] }
 0x130   :  { %v13758_v51 = vmax.f32 %v1898_v32, %v3924_v37  ;;  %v1086_v54 = vadd.f32 %v11169_v49, %v13266_v29  ;;  %v3112_v55 = vadd.f32 %v11471_v50, %v13266_v29  ;;  %v1080_v58 = vpop.f32.mrb[41].mxu0  ;;  %11327 = vmatmul.mubr.msk.f32.gmra.mrb[146].mxu0 %vm221_vm1, %v166_v27  ;;  %v3106_v61 = vpop.f32.mrb[41].mxu1  ;;  %11629 = vmatmul.mubr.msk.f32.gmra.mrb[146].mxu1 %vm221_vm1, %v9267_v31 }
 0x131   :  { %v13764_v0 = vmax.f32 %v1897_v42, %v3923_v47  ;;  %v1081_v2 = vadd.f32 %v13266_v29, %v1080_v58  ;;  %v3107_v7 = vadd.f32 %v13266_v29, %v3106_v61  ;;  %11329 = vmatprep.mubr.msk.f32.mxu0 %vm221_vm1, %v167_v38  ;;  %11631 = vmatprep.mubr.msk.f32.mxu1 %vm221_vm1, %v9268_v41  ;;  %v9271_v58 = vld [vmem:[%s17747_s0 + $0xad8] sm:$0xff] }
 0x132   :  { %v1900_v15 = vmax.f32 %v1086_v54, 0.0  ;;  %v3926_v16 = vmax.f32 %v3112_v55, 0.0  ;;  %v170_v55 = vld [vmem:[%s17747_s0 + $0x4b8] sm:$0xff] }
 0x133   :  { %v1899_v22 = vmax.f32 %v1081_v2, 0.0  ;;  %v3925_v27 = vmax.f32 %v3107_v7, 0.0  ;;  %v11172_v31 = vpop.f32.mrb[42].mxu0  ;;  %v11474_v32 = vpop.f32.mrb[42].mxu1  ;;  %v171_v7 = vld [vmem:[%s17747_s0 + $0x4c0] sm:$0xff] }
 0x134   :  { %v13782_v37 = vmax.f32 %v1900_v15, %v3926_v16  ;;  %v1096_v38 = vadd.f32 %v11172_v31, %v13266_v29  ;;  %v3122_v41 = vadd.f32 %v11474_v32, %v13266_v29  ;;  %v1090_v42 = vpop.f32.mrb[43].mxu0  ;;  %11330 = vmatmul.mubr.msk.f32.gmra.mrb[148].mxu0 %vm221_vm1, %v168_v10  ;;  %v3116_v47 = vpop.f32.mrb[43].mxu1  ;;  %11632 = vmatmul.mubr.msk.f32.gmra.mrb[148].mxu1 %vm221_vm1, %v9269_v13  ;;  %v9272_v10 = vld [vmem:[%s17747_s0 + $0xae0] sm:$0xff] }
 0x135   :  { %v13788_v49 = vmax.f32 %v1899_v22, %v3925_v27  ;;  %v1091_v50 = vadd.f32 %v13266_v29, %v1090_v42  ;;  %v3117_v54 = vadd.f32 %v13266_v29, %v3116_v47  ;;  %11332 = vmatprep.mubr.msk.f32.mxu0 %vm221_vm1, %v169_v17  ;;  %11634 = vmatprep.mubr.msk.f32.mxu1 %vm221_vm1, %v9270_v20  ;;  %v172_v47 = vld [vmem:[%s17747_s0 + $0x4c8] sm:$0xff] }
 0x136   :  { %v1902_v61 = vmax.f32 %v1096_v38, 0.0  ;;  %v3928_v2 = vmax.f32 %v3122_v41, 0.0 }
 0x137   :  { %v1901_v13 = vmax.f32 %v1091_v50, 0.0  ;;  %v3927_v15 = vmax.f32 %v3117_v54, 0.0  ;;  %v11175_v16 = vpop.f32.mrb[44].mxu0  ;;  %v11477_v17 = vpop.f32.mrb[44].mxu1  ;;  %v9273_v50 = vld [vmem:[%s17747_s0 + $0xae8] sm:$0xff] }
 0x138   :  { %v13806_v20 = vmax.f32 %v1902_v61, %v3928_v2  ;;  %v1106_v22 = vadd.f32 %v11175_v16, %v13266_v29  ;;  %v3132_v27 = vadd.f32 %v11477_v17, %v13266_v29  ;;  %v1100_v31 = vpop.f32.mrb[45].mxu0  ;;  %11333 = vmatmul.mubr.msk.f32.gmra.mrb[150].mxu0 %vm221_vm1, %v170_v55  ;;  %v3126_v32 = vpop.f32.mrb[45].mxu1  ;;  %11635 = vmatmul.mubr.msk.f32.gmra.mrb[150].mxu1 %vm221_vm1, %v9271_v58  ;;  %v173_v58 = vld [vmem:[%s17747_s0 + $0x4d0] sm:$0xff] }
 0x139   :  { %v13812_v38 = vmax.f32 %v1901_v13, %v3927_v15  ;;  %v1101_v41 = vadd.f32 %v13266_v29, %v1100_v31  ;;  %v3127_v42 = vadd.f32 %v13266_v29, %v3126_v32  ;;  %11335 = vmatprep.mubr.msk.f32.mxu0 %vm221_vm1, %v171_v7  ;;  %11637 = vmatprep.mubr.msk.f32.mxu1 %vm221_vm1, %v9272_v10  ;;  %v9274_v29 = vld [vmem:[%s17747_s0 + $0xaf0] sm:$0xff]  ;;  %v13835_v15 = vld [vmem:[%s17748_s2] ss:$0 sm:$0xff] }
 0x13a   :  { %v1904_v54 = vmax.f32 %v1106_v22, 0.0  ;;  %v3930_v55 = vmax.f32 %v3132_v27, 0.0 }
 0x13b   :  { %v1903_v61 = vmax.f32 %v1101_v41, 0.0  ;;  %v3929_v2 = vmax.f32 %v3127_v42, 0.0  ;;  %v11178_v7 = vpop.f32.mrb[46].mxu0  ;;  %v11480_v10 = vpop.f32.mrb[46].mxu1  ;;  %v174_v42 = vld [vmem:[%s17747_s0 + $0x4d8] sm:$0xff] }
 0x13c   :  { %v13830_v13 = vmax.f32 %v1904_v54, %v3930_v55  ;;  %v1116_v16 = vadd.f32 %v13835_v15, %v11178_v7  ;;  %v3142_v17 = vadd.f32 %v13835_v15, %v11480_v10  ;;  %v1110_v22 = vpop.f32.mrb[47].mxu0  ;;  %11336 = vmatmul.mubr.msk.f32.gmra.mrb[152].mxu0 %vm221_vm1, %v172_v47  ;;  %v3136_v27 = vpop.f32.mrb[47].mxu1  ;;  %11638 = vmatmul.mubr.msk.f32.gmra.mrb[152].mxu1 %vm221_vm1, %v9273_v50  ;;  %v9275_v47 = vld [vmem:[%s17747_s0 + $0xaf8] sm:$0xff]  ;;  %v175_v55 = vld [vmem:[%s17747_s0 + $0x4e0] sm:$0xff] }
 0x13d   :  { %v13841_v31 = vmax.f32 %v1903_v61, %v3929_v2  ;;  %v1111_v32 = vadd.f32 %v13835_v15, %v1110_v22  ;;  %v3137_v41 = vadd.f32 %v13835_v15, %v3136_v27  ;;  %11338 = vmatprep.mubr.msk.f32.mxu0 %vm221_vm1, %v173_v58  ;;  %11640 = vmatprep.mubr.msk.f32.mxu1 %vm221_vm1, %v9274_v29  ;;  %v9276_v58 = vld [vmem:[%s17747_s0 + $0xb00] sm:$0xff] }
 0x13e   :  { %17752 = vst [vmem:[#allocation2_spill] sm:$0xff] %v13830_v13  ;;  %v1906_v54 = vmax.f32 %v1116_v16, 0.0  ;;  %v3932_v50 = vmax.f32 %v3142_v17, 0.0 }
 0x13f   :  { %17753 = vst [vmem:[#allocation3_spill] sm:$0xff] %v13841_v31  ;;  %v1905_v61 = vmax.f32 %v1111_v32, 0.0  ;;  %v3931_v29 = vmax.f32 %v3137_v41, 0.0  ;;  %v11181_v2 = vpop.f32.mrb[48].mxu0  ;;  %v11483_v7 = vpop.f32.mrb[48].mxu1  ;;  %v176_v41 = vld [vmem:[%s17747_s0 + $0x4e8] sm:$0xff] }
 0x140   :  { %v13859_v10 = vmax.f32 %v1906_v54, %v3932_v50  ;;  %v1126_v22 = vadd.f32 %v13835_v15, %v11181_v2  ;;  %v3152_v27 = vadd.f32 %v13835_v15, %v11483_v7  ;;  %v1120_v16 = vpop.f32.mrb[49].mxu0  ;;  %11339 = vmatmul.mubr.msk.f32.gmra.mrb[154].mxu0 %vm221_vm1, %v174_v42  ;;  %v3146_v17 = vpop.f32.mrb[49].mxu1  ;;  %11641 = vmatmul.mubr.msk.f32.gmra.mrb[154].mxu1 %vm221_vm1, %v9275_v47  ;;  %v9277_v42 = vld [vmem:[%s17747_s0 + $0xb08] sm:$0xff]  ;;  %v177_v50 = vld [vmem:[%s17747_s0 + $0x4f0] sm:$0xff] }
 0x141   :  { %v13865_v31 = vmax.f32 %v1905_v61, %v3931_v29  ;;  %v1121_v13 = vadd.f32 %v13835_v15, %v1120_v16  ;;  %v3147_v32 = vadd.f32 %v13835_v15, %v3146_v17  ;;  %11341 = vmatprep.mubr.msk.f32.mxu0 %vm221_vm1, %v175_v55  ;;  %11643 = vmatprep.mubr.msk.f32.mxu1 %vm221_vm1, %v9276_v58  ;;  %v9278_v55 = vld [vmem:[%s17747_s0 + $0xb10] sm:$0xff] }
 0x142   :  { %17754 = vst [vmem:[#allocation4_spill] sm:$0xff] %v13859_v10  ;;  %v1908_v54 = vmax.f32 %v1126_v22, 0.0  ;;  %v3934_v47 = vmax.f32 %v3152_v27, 0.0 }
 0x143   :  { %17755 = vst [vmem:[#allocation5_spill] sm:$0xff] %v13865_v31  ;;  %v1907_v61 = vmax.f32 %v1121_v13, 0.0  ;;  %v3933_v58 = vmax.f32 %v3147_v32, 0.0  ;;  %v11184_v29 = vpop.f32.mrb[50].mxu0  ;;  %v11486_v2 = vpop.f32.mrb[50].mxu1  ;;  %v178_v32 = vld [vmem:[%s17747_s0 + $0x4f8] sm:$0xff] }
 0x144   :  { %v13883_v7 = vmax.f32 %v1908_v54, %v3934_v47  ;;  %v1136_v16 = vadd.f32 %v13835_v15, %v11184_v29  ;;  %v3162_v17 = vadd.f32 %v13835_v15, %v11486_v2  ;;  %v1130_v22 = vpop.f32.mrb[51].mxu0  ;;  %11342 = vmatmul.mubr.msk.f32.gmra.mrb[156].mxu0 %vm221_vm1, %v176_v41  ;;  %v3156_v27 = vpop.f32.mrb[51].mxu1  ;;  %11644 = vmatmul.mubr.msk.f32.gmra.mrb[156].mxu1 %vm221_vm1, %v9277_v42  ;;  %v9279_v41 = vld [vmem:[%s17747_s0 + $0xb18] sm:$0xff]  ;;  %v179_v47 = vld [vmem:[%s17747_s0 + $0x500] sm:$0xff] }
 0x145   :  { %v13889_v31 = vmax.f32 %v1907_v61, %v3933_v58  ;;  %v1131_v10 = vadd.f32 %v13835_v15, %v1130_v22  ;;  %v3157_v13 = vadd.f32 %v13835_v15, %v3156_v27  ;;  %11344 = vmatprep.mubr.msk.f32.mxu0 %vm221_vm1, %v177_v50  ;;  %11646 = vmatprep.mubr.msk.f32.mxu1 %vm221_vm1, %v9278_v55  ;;  %v9280_v50 = vld [vmem:[%s17747_s0 + $0xb20] sm:$0xff] }
 0x146   :  { %17756 = vst [vmem:[#allocation6_spill] sm:$0xff] %v13883_v7  ;;  %v1910_v54 = vmax.f32 %v1136_v16, 0.0  ;;  %v3936_v42 = vmax.f32 %v3162_v17, 0.0 }
 0x147   :  { %17757 = vst [vmem:[#allocation7_spill] sm:$0xff] %v13889_v31  ;;  %v1909_v61 = vmax.f32 %v1131_v10, 0.0  ;;  %v3935_v55 = vmax.f32 %v3157_v13, 0.0  ;;  %v11187_v58 = vpop.f32.mrb[52].mxu0  ;;  %v11489_v29 = vpop.f32.mrb[52].mxu1  ;;  %v180_v13 = vld [vmem:[%s17747_s0 + $0x508] sm:$0xff] }
 0x148   :  { %v13907_v2 = vmax.f32 %v1910_v54, %v3936_v42  ;;  %v1146_v22 = vadd.f32 %v13835_v15, %v11187_v58  ;;  %v3172_v27 = vadd.f32 %v13835_v15, %v11489_v29  ;;  %v1140_v16 = vpop.f32.mrb[53].mxu0  ;;  %11345 = vmatmul.mubr.msk.f32.gmra.mrb[158].mxu0 %vm221_vm1, %v178_v32  ;;  %v3166_v17 = vpop.f32.mrb[53].mxu1  ;;  %11647 = vmatmul.mubr.msk.f32.gmra.mrb[158].mxu1 %vm221_vm1, %v9279_v41  ;;  %v9281_v32 = vld [vmem:[%s17747_s0 + $0xb28] sm:$0xff]  ;;  %v181_v42 = vld [vmem:[%s17747_s0 + $0x510] sm:$0xff] }
 0x149   :  { %v13913_v31 = vmax.f32 %v1909_v61, %v3935_v55  ;;  %v1141_v7 = vadd.f32 %v13835_v15, %v1140_v16  ;;  %v3167_v10 = vadd.f32 %v13835_v15, %v3166_v17  ;;  %11347 = vmatprep.mubr.msk.f32.mxu0 %vm221_vm1, %v179_v47  ;;  %11649 = vmatprep.mubr.msk.f32.mxu1 %vm221_vm1, %v9280_v50  ;;  %v9282_v47 = vld [vmem:[%s17747_s0 + $0xb30] sm:$0xff] }
 0x14a   :  { %17758 = vst [vmem:[#allocation8_spill] sm:$0xff] %v13907_v2  ;;  %v1912_v54 = vmax.f32 %v1146_v22, 0.0  ;;  %v3938_v41 = vmax.f32 %v3172_v27, 0.0 }
 0x14b   :  { %17759 = vst [vmem:[#allocation9_spill] sm:$0xff] %v13913_v31  ;;  %v1911_v61 = vmax.f32 %v1141_v7, 0.0  ;;  %v3937_v50 = vmax.f32 %v3167_v10, 0.0  ;;  %v11190_v55 = vpop.f32.mrb[54].mxu0  ;;  %v11492_v58 = vpop.f32.mrb[54].mxu1  ;;  %v182_v10 = vld [vmem:[%s17747_s0 + $0x518] sm:$0xff] }
 0x14c   :  { %v13931_v29 = vmax.f32 %v1912_v54, %v3938_v41  ;;  %v1156_v16 = vadd.f32 %v13835_v15, %v11190_v55  ;;  %v3182_v17 = vadd.f32 %v13835_v15, %v11492_v58  ;;  %v1150_v22 = vpop.f32.mrb[55].mxu0  ;;  %11348 = vmatmul.mubr.msk.f32.gmra.mrb[160].mxu0 %vm221_vm1, %v180_v13  ;;  %v3176_v27 = vpop.f32.mrb[55].mxu1  ;;  %11650 = vmatmul.mubr.msk.f32.gmra.mrb[160].mxu1 %vm221_vm1, %v9281_v32  ;;  %v9283_v13 = vld [vmem:[%s17747_s0 + $0xb38] sm:$0xff]  ;;  %v183_v41 = vld [vmem:[%s17747_s0 + $0x520] sm:$0xff] }
 0x14d   :  { %v13937_v31 = vmax.f32 %v1911_v61, %v3937_v50  ;;  %v1151_v2 = vadd.f32 %v13835_v15, %v1150_v22  ;;  %v3177_v7 = vadd.f32 %v13835_v15, %v3176_v27  ;;  %11350 = vmatprep.mubr.msk.f32.mxu0 %vm221_vm1, %v181_v42  ;;  %11652 = vmatprep.mubr.msk.f32.mxu1 %vm221_vm1, %v9282_v47  ;;  %v9284_v42 = vld [vmem:[%s17747_s0 + $0xb40] sm:$0xff] }
 0x14e   :  { %17760 = vst [vmem:[#allocation10_spill] sm:$0xff] %v13931_v29  ;;  %v1914_v54 = vmax.f32 %v1156_v16, 0.0  ;;  %v3940_v32 = vmax.f32 %v3182_v17, 0.0 }
 0x14f   :  { %17761 = vst [vmem:[#allocation11_spill] sm:$0xff] %v13937_v31  ;;  %v1913_v61 = vmax.f32 %v1151_v2, 0.0  ;;  %v3939_v47 = vmax.f32 %v3177_v7, 0.0  ;;  %v11193_v50 = vpop.f32.mrb[56].mxu0  ;;  %v11495_v55 = vpop.f32.mrb[56].mxu1  ;;  %v184_v7 = vld [vmem:[%s17747_s0 + $0x528] sm:$0xff] }
 0x150   :  { %v13955_v58 = vmax.f32 %v1914_v54, %v3940_v32  ;;  %v1166_v22 = vadd.f32 %v13835_v15, %v11193_v50  ;;  %v3192_v27 = vadd.f32 %v13835_v15, %v11495_v55  ;;  %v1160_v16 = vpop.f32.mrb[57].mxu0  ;;  %11351 = vmatmul.mubr.msk.f32.gmra.mrb[162].mxu0 %vm221_vm1, %v182_v10  ;;  %v3186_v17 = vpop.f32.mrb[57].mxu1  ;;  %11653 = vmatmul.mubr.msk.f32.gmra.mrb[162].mxu1 %vm221_vm1, %v9283_v13  ;;  %v9285_v10 = vld [vmem:[%s17747_s0 + $0xb48] sm:$0xff]  ;;  %v185_v32 = vld [vmem:[%s17747_s0 + $0x530] sm:$0xff] }
 0x151   :  { %v13961_v31 = vmax.f32 %v1913_v61, %v3939_v47  ;;  %v1161_v29 = vadd.f32 %v13835_v15, %v1160_v16  ;;  %v3187_v2 = vadd.f32 %v13835_v15, %v3186_v17  ;;  %11353 = vmatprep.mubr.msk.f32.mxu0 %vm221_vm1, %v183_v41  ;;  %11655 = vmatprep.mubr.msk.f32.mxu1 %vm221_vm1, %v9284_v42  ;;  %v9286_v41 = vld [vmem:[%s17747_s0 + $0xb50] sm:$0xff] }
 0x152   :  { %17762 = vst [vmem:[#allocation12_spill] sm:$0xff] %v13955_v58  ;;  %v1916_v54 = vmax.f32 %v1166_v22, 0.0  ;;  %v3942_v13 = vmax.f32 %v3192_v27, 0.0 }
 0x153   :  { %17763 = vst [vmem:[#allocation13_spill] sm:$0xff] %v13961_v31  ;;  %v1915_v61 = vmax.f32 %v1161_v29, 0.0  ;;  %v3941_v42 = vmax.f32 %v3187_v2, 0.0  ;;  %v11196_v47 = vpop.f32.mrb[58].mxu0  ;;  %v11498_v50 = vpop.f32.mrb[58].mxu1  ;;  %v186_v2 = vld [vmem:[%s17747_s0 + $0x538] sm:$0xff] }
 0x154   :  { %v13979_v55 = vmax.f32 %v1916_v54, %v3942_v13  ;;  %v1176_v16 = vadd.f32 %v13835_v15, %v11196_v47  ;;  %v3202_v17 = vadd.f32 %v13835_v15, %v11498_v50  ;;  %v1170_v22 = vpop.f32.mrb[59].mxu0  ;;  %11354 = vmatmul.mubr.msk.f32.gmra.mrb[164].mxu0 %vm221_vm1, %v184_v7  ;;  %v3196_v27 = vpop.f32.mrb[59].mxu1  ;;  %11656 = vmatmul.mubr.msk.f32.gmra.mrb[164].mxu1 %vm221_vm1, %v9285_v10  ;;  %v9287_v7 = vld [vmem:[%s17747_s0 + $0xb58] sm:$0xff]  ;;  %v187_v13 = vld [vmem:[%s17747_s0 + $0x540] sm:$0xff] }
 0x155   :  { %v13985_v31 = vmax.f32 %v1915_v61, %v3941_v42  ;;  %v1171_v58 = vadd.f32 %v13835_v15, %v1170_v22  ;;  %v3197_v29 = vadd.f32 %v13835_v15, %v3196_v27  ;;  %11356 = vmatprep.mubr.msk.f32.mxu0 %vm221_vm1, %v185_v32  ;;  %11658 = vmatprep.mubr.msk.f32.mxu1 %vm221_vm1, %v9286_v41  ;;  %v9288_v32 = vld [vmem:[%s17747_s0 + $0xb60] sm:$0xff] }
 0x156   :  { %17764 = vst [vmem:[#allocation14_spill] sm:$0xff] %v13979_v55  ;;  %v1918_v54 = vmax.f32 %v1176_v16, 0.0  ;;  %v3944_v10 = vmax.f32 %v3202_v17, 0.0 }
 0x157   :  { %17765 = vst [vmem:[#allocation15_spill] sm:$0xff] %v13985_v31  ;;  %v1917_v61 = vmax.f32 %v1171_v58, 0.0  ;;  %v3943_v41 = vmax.f32 %v3197_v29, 0.0  ;;  %v11199_v42 = vpop.f32.mrb[60].mxu0  ;;  %v11501_v47 = vpop.f32.mrb[60].mxu1  ;;  %v188_v29 = vld [vmem:[%s17747_s0 + $0x548] sm:$0xff] }
 0x158   :  { %v14003_v50 = vmax.f32 %v1918_v54, %v3944_v10  ;;  %v1186_v22 = vadd.f32 %v13835_v15, %v11199_v42  ;;  %v3212_v27 = vadd.f32 %v13835_v15, %v11501_v47  ;;  %v1180_v16 = vpop.f32.mrb[61].mxu0  ;;  %11357 = vmatmul.mubr.msk.f32.gmra.mrb[166].mxu0 %vm221_vm1, %v186_v2  ;;  %v3206_v17 = vpop.f32.mrb[61].mxu1  ;;  %11659 = vmatmul.mubr.msk.f32.gmra.mrb[166].mxu1 %vm221_vm1, %v9287_v7  ;;  %v9289_v2 = vld [vmem:[%s17747_s0 + $0xb68] sm:$0xff]  ;;  %v189_v10 = vld [vmem:[%s17747_s0 + $0x550] sm:$0xff] }
 0x159   :  { %v14009_v31 = vmax.f32 %v1917_v61, %v3943_v41  ;;  %v1181_v55 = vadd.f32 %v13835_v15, %v1180_v16  ;;  %v3207_v58 = vadd.f32 %v13835_v15, %v3206_v17  ;;  %11359 = vmatprep.mubr.msk.f32.mxu0 %vm221_vm1, %v187_v13  ;;  %11661 = vmatprep.mubr.msk.f32.mxu1 %vm221_vm1, %v9288_v32  ;;  %v9290_v13 = vld [vmem:[%s17747_s0 + $0xb70] sm:$0xff] }
 0x15a   :  { %17766 = vst [vmem:[#allocation16_spill] sm:$0xff] %v14003_v50  ;;  %v1920_v54 = vmax.f32 %v1186_v22, 0.0  ;;  %v3946_v7 = vmax.f32 %v3212_v27, 0.0 }
 0x15b   :  { %17767 = vst [vmem:[#allocation17_spill] sm:$0xff] %v14009_v31  ;;  %v1919_v61 = vmax.f32 %v1181_v55, 0.0  ;;  %v3945_v32 = vmax.f32 %v3207_v58, 0.0  ;;  %v11202_v41 = vpop.f32.mrb[62].mxu0  ;;  %v11504_v42 = vpop.f32.mrb[62].mxu1  ;;  %v190_v58 = vld [vmem:[%s17747_s0 + $0x558] sm:$0xff] }
 0x15c   :  { %v14027_v47 = vmax.f32 %v1920_v54, %v3946_v7  ;;  %v1196_v16 = vadd.f32 %v13835_v15, %v11202_v41  ;;  %v3222_v17 = vadd.f32 %v13835_v15, %v11504_v42  ;;  %v1190_v22 = vpop.f32.mrb[63].mxu0  ;;  %11360 = vmatmul.mubr.msk.f32.gmra.mrb[168].mxu0 %vm221_vm1, %v188_v29  ;;  %v3216_v27 = vpop.f32.mrb[63].mxu1  ;;  %11662 = vmatmul.mubr.msk.f32.gmra.mrb[168].mxu1 %vm221_vm1, %v9289_v2  ;;  %v9291_v29 = vld [vmem:[%s17747_s0 + $0xb78] sm:$0xff]  ;;  %v191_v7 = vld [vmem:[%s17747_s0 + $0x560] sm:$0xff] }
 0x15d   :  { %v14033_v31 = vmax.f32 %v1919_v61, %v3945_v32  ;;  %v1191_v50 = vadd.f32 %v13835_v15, %v1190_v22  ;;  %v3217_v55 = vadd.f32 %v13835_v15, %v3216_v27  ;;  %11362 = vmatprep.mubr.msk.f32.mxu0 %vm221_vm1, %v189_v10  ;;  %11664 = vmatprep.mubr.msk.f32.mxu1 %vm221_vm1, %v9290_v13  ;;  %v9292_v10 = vld [vmem:[%s17747_s0 + $0xb80] sm:$0xff] }
 0x15e   :  { %17768 = vst [vmem:[#allocation18_spill] sm:$0xff] %v14027_v47  ;;  %v1922_v54 = vmax.f32 %v1196_v16, 0.0  ;;  %v3948_v2 = vmax.f32 %v3222_v17, 0.0 }
 0x15f   :  { %17769 = vst [vmem:[#allocation19_spill] sm:$0xff] %v14033_v31  ;;  %v1921_v61 = vmax.f32 %v1191_v50, 0.0  ;;  %v3947_v13 = vmax.f32 %v3217_v55, 0.0  ;;  %v11205_v32 = vpop.f32.mrb[64].mxu0  ;;  %v11507_v41 = vpop.f32.mrb[64].mxu1  ;;  %v192_v55 = vld [vmem:[%s17747_s0 + $0x568] sm:$0xff] }
 0x160   :  { %v14051_v42 = vmax.f32 %v1922_v54, %v3948_v2  ;;  %v1206_v22 = vadd.f32 %v13835_v15, %v11205_v32  ;;  %v3232_v27 = vadd.f32 %v13835_v15, %v11507_v41  ;;  %v1200_v16 = vpop.f32.mrb[65].mxu0  ;;  %11363 = vmatmul.mubr.msk.f32.gmra.mrb[170].mxu0 %vm221_vm1, %v190_v58  ;;  %v3226_v17 = vpop.f32.mrb[65].mxu1  ;;  %11665 = vmatmul.mubr.msk.f32.gmra.mrb[170].mxu1 %vm221_vm1, %v9291_v29  ;;  %v9293_v58 = vld [vmem:[%s17747_s0 + $0xb88] sm:$0xff]  ;;  %v193_v2 = vld [vmem:[%s17747_s0 + $0x570] sm:$0xff] }
 0x161   :  { %v14057_v31 = vmax.f32 %v1921_v61, %v3947_v13  ;;  %v1201_v47 = vadd.f32 %v13835_v15, %v1200_v16  ;;  %v3227_v50 = vadd.f32 %v13835_v15, %v3226_v17  ;;  %11365 = vmatprep.mubr.msk.f32.mxu0 %vm221_vm1, %v191_v7  ;;  %11667 = vmatprep.mubr.msk.f32.mxu1 %vm221_vm1, %v9292_v10  ;;  %v9294_v7 = vld [vmem:[%s17747_s0 + $0xb90] sm:$0xff] }
 0x162   :  { %17770 = vst [vmem:[#allocation20_spill] sm:$0xff] %v14051_v42  ;;  %v1924_v54 = vmax.f32 %v1206_v22, 0.0  ;;  %v3950_v29 = vmax.f32 %v3232_v27, 0.0 }
 0x163   :  { %17771 = vst [vmem:[#allocation21_spill] sm:$0xff] %v14057_v31  ;;  %v1923_v61 = vmax.f32 %v1201_v47, 0.0  ;;  %v3949_v10 = vmax.f32 %v3227_v50, 0.0  ;;  %v11208_v13 = vpop.f32.mrb[66].mxu0  ;;  %v11510_v32 = vpop.f32.mrb[66].mxu1  ;;  %v194_v50 = vld [vmem:[%s17747_s0 + $0x578] sm:$0xff] }
 0x164   :  { %v14075_v41 = vmax.f32 %v1924_v54, %v3950_v29  ;;  %v1216_v16 = vadd.f32 %v13835_v15, %v11208_v13  ;;  %v3242_v17 = vadd.f32 %v13835_v15, %v11510_v32  ;;  %v1210_v22 = vpop.f32.mrb[67].mxu0  ;;  %11366 = vmatmul.mubr.msk.f32.gmra.mrb[172].mxu0 %vm221_vm1, %v192_v55  ;;  %v3236_v27 = vpop.f32.mrb[67].mxu1  ;;  %11668 = vmatmul.mubr.msk.f32.gmra.mrb[172].mxu1 %vm221_vm1, %v9293_v58  ;;  %v9295_v55 = vld [vmem:[%s17747_s0 + $0xb98] sm:$0xff]  ;;  %v195_v29 = vld [vmem:[%s17747_s0 + $0x580] sm:$0xff] }
 0x165   :  { %v14081_v31 = vmax.f32 %v1923_v61, %v3949_v10  ;;  %v1211_v42 = vadd.f32 %v13835_v15, %v1210_v22  ;;  %v3237_v47 = vadd.f32 %v13835_v15, %v3236_v27  ;;  %11368 = vmatprep.mubr.msk.f32.mxu0 %vm221_vm1, %v193_v2  ;;  %11670 = vmatprep.mubr.msk.f32.mxu1 %vm221_vm1, %v9294_v7  ;;  %v9296_v2 = vld [vmem:[%s17747_s0 + $0xba0] sm:$0xff] }
 0x166   :  { %17772 = vst [vmem:[#allocation22_spill] sm:$0xff] %v14075_v41  ;;  %v1926_v54 = vmax.f32 %v1216_v16, 0.0  ;;  %v3952_v58 = vmax.f32 %v3242_v17, 0.0 }
 0x167   :  { %17773 = vst [vmem:[#allocation23_spill] sm:$0xff] %v14081_v31  ;;  %v1925_v61 = vmax.f32 %v1211_v42, 0.0  ;;  %v3951_v7 = vmax.f32 %v3237_v47, 0.0  ;;  %v11211_v10 = vpop.f32.mrb[68].mxu0  ;;  %v11513_v13 = vpop.f32.mrb[68].mxu1  ;;  %v196_v47 = vld [vmem:[%s17747_s0 + $0x588] sm:$0xff] }
 0x168   :  { %v14099_v32 = vmax.f32 %v1926_v54, %v3952_v58  ;;  %v1226_v22 = vadd.f32 %v13835_v15, %v11211_v10  ;;  %v3252_v27 = vadd.f32 %v13835_v15, %v11513_v13  ;;  %v1220_v16 = vpop.f32.mrb[69].mxu0  ;;  %11369 = vmatmul.mubr.msk.f32.gmra.mrb[174].mxu0 %vm221_vm1, %v194_v50  ;;  %v3246_v17 = vpop.f32.mrb[69].mxu1  ;;  %11671 = vmatmul.mubr.msk.f32.gmra.mrb[174].mxu1 %vm221_vm1, %v9295_v55  ;;  %v9297_v50 = vld [vmem:[%s17747_s0 + $0xba8] sm:$0xff]  ;;  %v197_v58 = vld [vmem:[%s17747_s0 + $0x590] sm:$0xff] }
 0x169   :  { %v14105_v31 = vmax.f32 %v1925_v61, %v3951_v7  ;;  %v1221_v41 = vadd.f32 %v13835_v15, %v1220_v16  ;;  %v3247_v42 = vadd.f32 %v13835_v15, %v3246_v17  ;;  %11371 = vmatprep.mubr.msk.f32.mxu0 %vm221_vm1, %v195_v29  ;;  %11673 = vmatprep.mubr.msk.f32.mxu1 %vm221_vm1, %v9296_v2  ;;  %v9298_v29 = vld [vmem:[%s17747_s0 + $0xbb0] sm:$0xff] }
 0x16a   :  { %17774 = vst [vmem:[#allocation24_spill] sm:$0xff] %v14099_v32  ;;  %v1928_v54 = vmax.f32 %v1226_v22, 0.0  ;;  %v3954_v55 = vmax.f32 %v3252_v27, 0.0 }
 0x16b   :  { %17775 = vst [vmem:[#allocation25_spill] sm:$0xff] %v14105_v31  ;;  %v1927_v61 = vmax.f32 %v1221_v41, 0.0  ;;  %v3953_v2 = vmax.f32 %v3247_v42, 0.0  ;;  %v11214_v7 = vpop.f32.mrb[70].mxu0  ;;  %v11516_v10 = vpop.f32.mrb[70].mxu1  ;;  %v198_v42 = vld [vmem:[%s17747_s0 + $0x598] sm:$0xff] }
 0x16c   :  { %v14123_v13 = vmax.f32 %v1928_v54, %v3954_v55  ;;  %v1236_v16 = vadd.f32 %v13835_v15, %v11214_v7  ;;  %v3262_v17 = vadd.f32 %v13835_v15, %v11516_v10  ;;  %v1230_v22 = vpop.f32.mrb[71].mxu0  ;;  %11372 = vmatmul.mubr.msk.f32.gmra.mrb[176].mxu0 %vm221_vm1, %v196_v47  ;;  %v3256_v27 = vpop.f32.mrb[71].mxu1  ;;  %11674 = vmatmul.mubr.msk.f32.gmra.mrb[176].mxu1 %vm221_vm1, %v9297_v50  ;;  %v9299_v47 = vld [vmem:[%s17747_s0 + $0xbb8] sm:$0xff]  ;;  %v199_v55 = vld [vmem:[%s17747_s0 + $0x5a0] sm:$0xff] }
 0x16d   :  { %v14129_v31 = vmax.f32 %v1927_v61, %v3953_v2  ;;  %v1231_v32 = vadd.f32 %v13835_v15, %v1230_v22  ;;  %v3257_v41 = vadd.f32 %v13835_v15, %v3256_v27  ;;  %11374 = vmatprep.mubr.msk.f32.mxu0 %vm221_vm1, %v197_v58  ;;  %11676 = vmatprep.mubr.msk.f32.mxu1 %vm221_vm1, %v9298_v29  ;;  %v9300_v58 = vld [vmem:[%s17747_s0 + $0xbc0] sm:$0xff] }
 0x16e   :  { %17776 = vst [vmem:[#allocation26_spill] sm:$0xff] %v14123_v13  ;;  %v1930_v54 = vmax.f32 %v1236_v16, 0.0  ;;  %v3956_v50 = vmax.f32 %v3262_v17, 0.0 }
 0x16f   :  { %17777 = vst [vmem:[#allocation27_spill] sm:$0xff] %v14129_v31  ;;  %v1929_v61 = vmax.f32 %v1231_v32, 0.0  ;;  %v3955_v29 = vmax.f32 %v3257_v41, 0.0  ;;  %v11217_v2 = vpop.f32.mrb[72].mxu0  ;;  %v11519_v7 = vpop.f32.mrb[72].mxu1  ;;  %v200_v41 = vld [vmem:[%s17747_s0 + $0x5a8] sm:$0xff] }
 0x170   :  { %v14147_v10 = vmax.f32 %v1930_v54, %v3956_v50  ;;  %v1246_v22 = vadd.f32 %v13835_v15, %v11217_v2  ;;  %v3272_v27 = vadd.f32 %v13835_v15, %v11519_v7  ;;  %v1240_v16 = vpop.f32.mrb[73].mxu0  ;;  %11375 = vmatmul.mubr.msk.f32.gmra.mrb[178].mxu0 %vm221_vm1, %v198_v42  ;;  %v3266_v17 = vpop.f32.mrb[73].mxu1  ;;  %11677 = vmatmul.mubr.msk.f32.gmra.mrb[178].mxu1 %vm221_vm1, %v9299_v47  ;;  %v9301_v42 = vld [vmem:[%s17747_s0 + $0xbc8] sm:$0xff]  ;;  %v201_v50 = vld [vmem:[%s17747_s0 + $0x5b0] sm:$0xff] }
 0x171   :  { %v14153_v31 = vmax.f32 %v1929_v61, %v3955_v29  ;;  %v1241_v13 = vadd.f32 %v13835_v15, %v1240_v16  ;;  %v3267_v32 = vadd.f32 %v13835_v15, %v3266_v17  ;;  %11377 = vmatprep.mubr.msk.f32.mxu0 %vm221_vm1, %v199_v55  ;;  %11679 = vmatprep.mubr.msk.f32.mxu1 %vm221_vm1, %v9300_v58  ;;  %v9302_v55 = vld [vmem:[%s17747_s0 + $0xbd0] sm:$0xff] }
 0x172   :  { %17778 = vst [vmem:[#allocation28_spill] sm:$0xff] %v14147_v10  ;;  %v1932_v54 = vmax.f32 %v1246_v22, 0.0  ;;  %v3958_v47 = vmax.f32 %v3272_v27, 0.0 }
 0x173   :  { %17779 = vst [vmem:[#allocation29_spill] sm:$0xff] %v14153_v31  ;;  %v1931_v61 = vmax.f32 %v1241_v13, 0.0  ;;  %v3957_v58 = vmax.f32 %v3267_v32, 0.0  ;;  %v11220_v29 = vpop.f32.mrb[74].mxu0  ;;  %v11522_v2 = vpop.f32.mrb[74].mxu1  ;;  %v202_v32 = vld [vmem:[%s17747_s0 + $0x5b8] sm:$0xff] }
 0x174   :  { %v14171_v7 = vmax.f32 %v1932_v54, %v3958_v47  ;;  %v1256_v16 = vadd.f32 %v13835_v15, %v11220_v29  ;;  %v3282_v17 = vadd.f32 %v13835_v15, %v11522_v2  ;;  %v1250_v22 = vpop.f32.mrb[75].mxu0  ;;  %11378 = vmatmul.mubr.msk.f32.gmra.mrb[180].mxu0 %vm221_vm1, %v200_v41  ;;  %v3276_v27 = vpop.f32.mrb[75].mxu1  ;;  %11680 = vmatmul.mubr.msk.f32.gmra.mrb[180].mxu1 %vm221_vm1, %v9301_v42  ;;  %v9303_v41 = vld [vmem:[%s17747_s0 + $0xbd8] sm:$0xff]  ;;  %v203_v47 = vld [vmem:[%s17747_s0 + $0x5c0] sm:$0xff] }
 0x175   :  { %v14177_v31 = vmax.f32 %v1931_v61, %v3957_v58  ;;  %v1251_v10 = vadd.f32 %v13835_v15, %v1250_v22  ;;  %v3277_v13 = vadd.f32 %v13835_v15, %v3276_v27  ;;  %11380 = vmatprep.mubr.msk.f32.mxu0 %vm221_vm1, %v201_v50  ;;  %11682 = vmatprep.mubr.msk.f32.mxu1 %vm221_vm1, %v9302_v55  ;;  %v9304_v50 = vld [vmem:[%s17747_s0 + $0xbe0] sm:$0xff] }
 0x176   :  { %17780 = vst [vmem:[#allocation30_spill] sm:$0xff] %v14171_v7  ;;  %v1934_v54 = vmax.f32 %v1256_v16, 0.0  ;;  %v3960_v42 = vmax.f32 %v3282_v17, 0.0 }
 0x177   :  { %17781 = vst [vmem:[#allocation31_spill] sm:$0xff] %v14177_v31  ;;  %v1933_v61 = vmax.f32 %v1251_v10, 0.0  ;;  %v3959_v55 = vmax.f32 %v3277_v13, 0.0  ;;  %v11223_v58 = vpop.f32.mrb[76].mxu0  ;;  %v11525_v29 = vpop.f32.mrb[76].mxu1  ;;  %v204_v13 = vld [vmem:[%s17747_s0 + $0x5c8] sm:$0xff] }
 0x178   :  { %v14195_v2 = vmax.f32 %v1934_v54, %v3960_v42  ;;  %v1266_v22 = vadd.f32 %v13835_v15, %v11223_v58  ;;  %v3292_v27 = vadd.f32 %v13835_v15, %v11525_v29  ;;  %v1260_v16 = vpop.f32.mrb[77].mxu0  ;;  %11381 = vmatmul.mubr.msk.f32.gmra.mrb[182].mxu0 %vm221_vm1, %v202_v32  ;;  %v3286_v17 = vpop.f32.mrb[77].mxu1  ;;  %11683 = vmatmul.mubr.msk.f32.gmra.mrb[182].mxu1 %vm221_vm1, %v9303_v41  ;;  %v9305_v32 = vld [vmem:[%s17747_s0 + $0xbe8] sm:$0xff]  ;;  %v205_v42 = vld [vmem:[%s17747_s0 + $0x5d0] sm:$0xff] }
 0x179   :  { %v14201_v31 = vmax.f32 %v1933_v61, %v3959_v55  ;;  %v1261_v7 = vadd.f32 %v13835_v15, %v1260_v16  ;;  %v3287_v10 = vadd.f32 %v13835_v15, %v3286_v17  ;;  %11383 = vmatprep.mubr.msk.f32.mxu0 %vm221_vm1, %v203_v47  ;;  %11685 = vmatprep.mubr.msk.f32.mxu1 %vm221_vm1, %v9304_v50  ;;  %v9306_v47 = vld [vmem:[%s17747_s0 + $0xbf0] sm:$0xff] }
 0x17a   :  { %17782 = vst [vmem:[#allocation32_spill] sm:$0xff] %v14195_v2  ;;  %v1936_v54 = vmax.f32 %v1266_v22, 0.0  ;;  %v3962_v41 = vmax.f32 %v3292_v27, 0.0 }
 0x17b   :  { %17783 = vst [vmem:[#allocation33_spill] sm:$0xff] %v14201_v31  ;;  %v1935_v61 = vmax.f32 %v1261_v7, 0.0  ;;  %v3961_v50 = vmax.f32 %v3287_v10, 0.0  ;;  %v11226_v55 = vpop.f32.mrb[78].mxu0  ;;  %v11528_v58 = vpop.f32.mrb[78].mxu1  ;;  %v206_v10 = vld [vmem:[%s17747_s0 + $0x5d8] sm:$0xff] }
 0x17c   :  { %v14219_v29 = vmax.f32 %v1936_v54, %v3962_v41  ;;  %v1276_v16 = vadd.f32 %v13835_v15, %v11226_v55  ;;  %v3302_v17 = vadd.f32 %v13835_v15, %v11528_v58  ;;  %v1270_v22 = vpop.f32.mrb[79].mxu0  ;;  %11384 = vmatmul.mubr.msk.f32.gmra.mrb[184].mxu0 %vm221_vm1, %v204_v13  ;;  %v3296_v27 = vpop.f32.mrb[79].mxu1  ;;  %11686 = vmatmul.mubr.msk.f32.gmra.mrb[184].mxu1 %vm221_vm1, %v9305_v32  ;;  %v9307_v13 = vld [vmem:[%s17747_s0 + $0xbf8] sm:$0xff]  ;;  %v207_v41 = vld [vmem:[%s17747_s0 + $0x5e0] sm:$0xff] }
 0x17d   :  { %v14225_v31 = vmax.f32 %v1935_v61, %v3961_v50  ;;  %v1271_v2 = vadd.f32 %v13835_v15, %v1270_v22  ;;  %v3297_v7 = vadd.f32 %v13835_v15, %v3296_v27  ;;  %11386 = vmatprep.mubr.msk.f32.mxu0 %vm221_vm1, %v205_v42  ;;  %11688 = vmatprep.mubr.msk.f32.mxu1 %vm221_vm1, %v9306_v47  ;;  %v9308_v42 = vld [vmem:[%s17747_s0 + $0xc00] sm:$0xff] }
 0x17e   :  { %17784 = vst [vmem:[#allocation34_spill] sm:$0xff] %v14219_v29  ;;  %v1938_v54 = vmax.f32 %v1276_v16, 0.0  ;;  %v3964_v32 = vmax.f32 %v3302_v17, 0.0 }
 0x17f   :  { %17785 = vst [vmem:[#allocation35_spill] sm:$0xff] %v14225_v31  ;;  %v1937_v61 = vmax.f32 %v1271_v2, 0.0  ;;  %v3963_v47 = vmax.f32 %v3297_v7, 0.0  ;;  %v11229_v50 = vpop.f32.mrb[80].mxu0  ;;  %v11531_v55 = vpop.f32.mrb[80].mxu1  ;;  %v208_v7 = vld [vmem:[%s17747_s0 + $0x5e8] sm:$0xff] }
 0x180   :  { %v14243_v58 = vmax.f32 %v1938_v54, %v3964_v32  ;;  %v1286_v22 = vadd.f32 %v13835_v15, %v11229_v50  ;;  %v3312_v27 = vadd.f32 %v13835_v15, %v11531_v55  ;;  %v1280_v16 = vpop.f32.mrb[81].mxu0  ;;  %11387 = vmatmul.mubr.msk.f32.gmra.mrb[186].mxu0 %vm221_vm1, %v206_v10  ;;  %v3306_v17 = vpop.f32.mrb[81].mxu1  ;;  %11689 = vmatmul.mubr.msk.f32.gmra.mrb[186].mxu1 %vm221_vm1, %v9307_v13  ;;  %v9309_v10 = vld [vmem:[%s17747_s0 + $0xc08] sm:$0xff]  ;;  %v209_v32 = vld [vmem:[%s17747_s0 + $0x5f0] sm:$0xff] }
 0x181   :  { %v14249_v31 = vmax.f32 %v1937_v61, %v3963_v47  ;;  %v1281_v29 = vadd.f32 %v13835_v15, %v1280_v16  ;;  %v3307_v2 = vadd.f32 %v13835_v15, %v3306_v17  ;;  %11389 = vmatprep.mubr.msk.f32.mxu0 %vm221_vm1, %v207_v41  ;;  %11691 = vmatprep.mubr.msk.f32.mxu1 %vm221_vm1, %v9308_v42  ;;  %v9310_v41 = vld [vmem:[%s17747_s0 + $0xc10] sm:$0xff] }
 0x182   :  { %17786 = vst [vmem:[#allocation36_spill] sm:$0xff] %v14243_v58  ;;  %v1940_v54 = vmax.f32 %v1286_v22, 0.0  ;;  %v3966_v13 = vmax.f32 %v3312_v27, 0.0 }
 0x183   :  { %17787 = vst [vmem:[#allocation37_spill] sm:$0xff] %v14249_v31  ;;  %v1939_v61 = vmax.f32 %v1281_v29, 0.0  ;;  %v3965_v42 = vmax.f32 %v3307_v2, 0.0  ;;  %v11232_v47 = vpop.f32.mrb[82].mxu0  ;;  %v11534_v50 = vpop.f32.mrb[82].mxu1  ;;  %v210_v2 = vld [vmem:[%s17747_s0 + $0x5f8] sm:$0xff] }
 0x184   :  { %v14267_v55 = vmax.f32 %v1940_v54, %v3966_v13  ;;  %v1296_v16 = vadd.f32 %v13835_v15, %v11232_v47  ;;  %v3322_v17 = vadd.f32 %v13835_v15, %v11534_v50  ;;  %v1290_v22 = vpop.f32.mrb[83].mxu0  ;;  %11390 = vmatmul.mubr.msk.f32.gmra.mrb[188].mxu0 %vm221_vm1, %v208_v7  ;;  %v3316_v27 = vpop.f32.mrb[83].mxu1  ;;  %11692 = vmatmul.mubr.msk.f32.gmra.mrb[188].mxu1 %vm221_vm1, %v9309_v10  ;;  %v9311_v7 = vld [vmem:[%s17747_s0 + $0xc18] sm:$0xff]  ;;  %v211_v13 = vld [vmem:[%s17747_s0 + $0x600] sm:$0xff] }
 0x185   :  { %v14273_v31 = vmax.f32 %v1939_v61, %v3965_v42  ;;  %v1291_v58 = vadd.f32 %v13835_v15, %v1290_v22  ;;  %v3317_v29 = vadd.f32 %v13835_v15, %v3316_v27  ;;  %11392 = vmatprep.mubr.msk.f32.mxu0 %vm221_vm1, %v209_v32  ;;  %11694 = vmatprep.mubr.msk.f32.mxu1 %vm221_vm1, %v9310_v41  ;;  %v9312_v32 = vld [vmem:[%s17747_s0 + $0xc20] sm:$0xff] }
 0x186   :  { %17788 = vst [vmem:[#allocation38_spill] sm:$0xff] %v14267_v55  ;;  %v1942_v54 = vmax.f32 %v1296_v16, 0.0  ;;  %v3968_v10 = vmax.f32 %v3322_v17, 0.0 }
 0x187   :  { %17789 = vst [vmem:[#allocation39_spill] sm:$0xff] %v14273_v31  ;;  %v1941_v61 = vmax.f32 %v1291_v58, 0.0  ;;  %v3967_v41 = vmax.f32 %v3317_v29, 0.0  ;;  %v11235_v42 = vpop.f32.mrb[84].mxu0  ;;  %v11537_v47 = vpop.f32.mrb[84].mxu1  ;;  %v212_v29 = vld [vmem:[%s17747_s0 + $0x608] sm:$0xff] }
 0x188   :  { %v14291_v50 = vmax.f32 %v1942_v54, %v3968_v10  ;;  %v1306_v22 = vadd.f32 %v13835_v15, %v11235_v42  ;;  %v3332_v27 = vadd.f32 %v13835_v15, %v11537_v47  ;;  %v1300_v16 = vpop.f32.mrb[85].mxu0  ;;  %11393 = vmatmul.mubr.msk.f32.gmra.mrb[190].mxu0 %vm221_vm1, %v210_v2  ;;  %v3326_v17 = vpop.f32.mrb[85].mxu1  ;;  %11695 = vmatmul.mubr.msk.f32.gmra.mrb[190].mxu1 %vm221_vm1, %v9311_v7  ;;  %v9313_v2 = vld [vmem:[%s17747_s0 + $0xc28] sm:$0xff]  ;;  %v213_v10 = vld [vmem:[%s17747_s0 + $0x610] sm:$0xff] }
 0x189   :  { %v14297_v31 = vmax.f32 %v1941_v61, %v3967_v41  ;;  %v1301_v55 = vadd.f32 %v13835_v15, %v1300_v16  ;;  %v3327_v58 = vadd.f32 %v13835_v15, %v3326_v17  ;;  %11395 = vmatprep.mubr.msk.f32.mxu0 %vm221_vm1, %v211_v13  ;;  %11697 = vmatprep.mubr.msk.f32.mxu1 %vm221_vm1, %v9312_v32  ;;  %v9314_v13 = vld [vmem:[%s17747_s0 + $0xc30] sm:$0xff] }
 0x18a   :  { %17790 = vst [vmem:[#allocation40_spill] sm:$0xff] %v14291_v50  ;;  %v1944_v54 = vmax.f32 %v1306_v22, 0.0  ;;  %v3970_v7 = vmax.f32 %v3332_v27, 0.0 }
 0x18b   :  { %17791 = vst [vmem:[#allocation41_spill] sm:$0xff] %v14297_v31  ;;  %v1943_v61 = vmax.f32 %v1301_v55, 0.0  ;;  %v3969_v32 = vmax.f32 %v3327_v58, 0.0  ;;  %v11238_v41 = vpop.f32.mrb[86].mxu0  ;;  %v11540_v42 = vpop.f32.mrb[86].mxu1  ;;  %v214_v58 = vld [vmem:[%s17747_s0 + $0x618] sm:$0xff] }
 0x18c   :  { %v14315_v47 = vmax.f32 %v1944_v54, %v3970_v7  ;;  %v1316_v16 = vadd.f32 %v13835_v15, %v11238_v41  ;;  %v3342_v17 = vadd.f32 %v13835_v15, %v11540_v42  ;;  %v1310_v22 = vpop.f32.mrb[87].mxu0  ;;  %11396 = vmatmul.mubr.msk.f32.gmra.mrb[192].mxu0 %vm221_vm1, %v212_v29  ;;  %v3336_v27 = vpop.f32.mrb[87].mxu1  ;;  %11698 = vmatmul.mubr.msk.f32.gmra.mrb[192].mxu1 %vm221_vm1, %v9313_v2  ;;  %v9315_v29 = vld [vmem:[%s17747_s0 + $0xc38] sm:$0xff]  ;;  %v9513_v7 = vld [vmem:[%s17747_s0 + $0xc40] sm:$0xff] }
 0x18d   :  { %v14321_v31 = vmax.f32 %v1943_v61, %v3969_v32  ;;  %v1311_v50 = vadd.f32 %v13835_v15, %v1310_v22  ;;  %v3337_v55 = vadd.f32 %v13835_v15, %v3336_v27  ;;  %11398 = vmatprep.mubr.msk.f32.mxu0 %vm221_vm1, %v213_v10  ;;  %11700 = vmatprep.mubr.msk.f32.mxu1 %vm221_vm1, %v9314_v13  ;;  %v9906_v10 = vld [vmem:[%s17747_s0 + $0x1260] sm:$0xff] }
 0x18e   :  { %17792 = vst [vmem:[#allocation42_spill] sm:$0xff] %v14315_v47  ;;  %v1946_v54 = vmax.f32 %v1316_v16, 0.0  ;;  %v3972_v2 = vmax.f32 %v3342_v17, 0.0 }
 0x18f   :  { %17793 = vst [vmem:[#allocation43_spill] sm:$0xff] %v14321_v31  ;;  %v1945_v61 = vmax.f32 %v1311_v50, 0.0  ;;  %v3971_v13 = vmax.f32 %v3337_v55, 0.0  ;;  %v11241_v32 = vpop.f32.mrb[88].mxu0  ;;  %v11543_v41 = vpop.f32.mrb[88].mxu1  ;;  %v9514_v55 = vld [vmem:[%s17747_s0 + $0xc48] sm:$0xff] }
 0x190   :  { %v14339_v42 = vmax.f32 %v1946_v54, %v3972_v2  ;;  %v1326_v22 = vadd.f32 %v13835_v15, %v11241_v32  ;;  %v3352_v27 = vadd.f32 %v13835_v15, %v11543_v41  ;;  %v1320_v16 = vpop.f32.mrb[89].mxu0  ;;  %11399 = vmatmul.mubr.msk.f32.gmra.mrb[194].mxu0 %vm221_vm1, %v214_v58  ;;  %v3346_v17 = vpop.f32.mrb[89].mxu1  ;;  %11701 = vmatmul.mubr.msk.f32.gmra.mrb[194].mxu1 %vm221_vm1, %v9315_v29  ;;  %v9907_v58 = vld [vmem:[%s17747_s0 + $0x1268] sm:$0xff]  ;;  %v9515_v2 = vld [vmem:[%s17747_s0 + $0xc50] sm:$0xff] }
 0x191   :  { %v14345_v31 = vmax.f32 %v1945_v61, %v3971_v13  ;;  %v1321_v47 = vadd.f32 %v13835_v15, %v1320_v16  ;;  %v3347_v50 = vadd.f32 %v13835_v15, %v3346_v17  ;;  %11711 = vmatprep.mubr.msk.f32.mxu0 %vm221_vm1, %v9513_v7  ;;  %12013 = vmatprep.mubr.msk.f32.mxu1 %vm221_vm1, %v9906_v10  ;;  %v9908_v7 = vld [vmem:[%s17747_s0 + $0x1270] sm:$0xff] }
 0x192   :  { %17794 = vst [vmem:[#allocation44_spill] sm:$0xff] %v14339_v42  ;;  %v1948_v54 = vmax.f32 %v1326_v22, 0.0  ;;  %v3974_v29 = vmax.f32 %v3352_v27, 0.0 }
 0x193   :  { %17795 = vst [vmem:[#allocation45_spill] sm:$0xff] %v14345_v31  ;;  %v1947_v61 = vmax.f32 %v1321_v47, 0.0  ;;  %v3973_v10 = vmax.f32 %v3347_v50, 0.0  ;;  %v11244_v13 = vpop.f32.mrb[90].mxu0  ;;  %v11546_v32 = vpop.f32.mrb[90].mxu1  ;;  %v9516_v50 = vld [vmem:[%s17747_s0 + $0xc58] sm:$0xff] }
 0x194   :  { %v14363_v41 = vmax.f32 %v1948_v54, %v3974_v29  ;;  %v1336_v16 = vadd.f32 %v13835_v15, %v11244_v13  ;;  %v3362_v17 = vadd.f32 %v13835_v15, %v11546_v32  ;;  %v1330_v22 = vpop.f32.mrb[91].mxu0  ;;  %v3356_v27 = vpop.f32.mrb[91].mxu1  ;;  %11712 = vmatmul.mubr.msk.f32.vlgmr.msra.gmra.mrb[196].mxu0 %vm221_vm1, %v9514_v55  ;;  %12014 = vmatmul.mubr.msk.f32.vlgmr.msra.gmra.mrb[196].mxu1 %vm221_vm1, %v9907_v58  ;;  %v9909_v55 = vld [vmem:[%s17747_s0 + $0x1278] sm:$0xff]  ;;  %v9517_v29 = vld [vmem:[%s17747_s0 + $0xc60] sm:$0xff] }
 0x195   :  { %v14369_v31 = vmax.f32 %v1947_v61, %v3973_v10  ;;  %v1331_v42 = vadd.f32 %v13835_v15, %v1330_v22  ;;  %v3357_v47 = vadd.f32 %v13835_v15, %v3356_v27  ;;  %11714 = vmatprep.mubr.msk.f32.mxu0 %vm221_vm1, %v9515_v2  ;;  %12016 = vmatprep.mubr.msk.f32.mxu1 %vm221_vm1, %v9908_v7  ;;  %v9910_v2 = vld [vmem:[%s17747_s0 + $0x1280] sm:$0xff] }
 0x196   :  { %17796 = vst [vmem:[#allocation46_spill] sm:$0xff] %v14363_v41  ;;  %v1950_v54 = vmax.f32 %v1336_v16, 0.0  ;;  %v3976_v58 = vmax.f32 %v3362_v17, 0.0 }
 0x197   :  { %17797 = vst [vmem:[#allocation47_spill] sm:$0xff] %v14369_v31  ;;  %v1949_v61 = vmax.f32 %v1331_v42, 0.0  ;;  %v3975_v7 = vmax.f32 %v3357_v47, 0.0  ;;  %v11247_v10 = vpop.f32.mrb[92].mxu0  ;;  %v11549_v13 = vpop.f32.mrb[92].mxu1 }
 0x198   :  { %v14387_v32 = vmax.f32 %v1950_v54, %v3976_v58  ;;  %v1346_v22 = vadd.f32 %v13835_v15, %v11247_v10  ;;  %v3372_v27 = vadd.f32 %v13835_v15, %v11549_v13  ;;  %v1340_v16 = vpop.f32.mrb[93].mxu0  ;;  %v3366_v17 = vpop.f32.mrb[93].mxu1  ;;  %11715 = vmatmul.mubr.msk.f32.gmra.mrb[198].mxu0 %vm221_vm1, %v9516_v50  ;;  %12017 = vmatmul.mubr.msk.f32.gmra.mrb[198].mxu1 %vm221_vm1, %v9909_v55  ;;  %v14398_v42 = vld [vmem:[%s17748_s2] ss:$0 sm:$0xff]  ;;  %v9518_v15 = vld [vmem:[%s17747_s0 + $0xc68] sm:$0xff] }
 0x199   :  { %v14393_v31 = vmax.f32 %v1949_v61, %v3975_v7  ;;  %v1341_v47 = vadd.f32 %v14398_v42, %v1340_v16  ;;  %v3367_v54 = vadd.f32 %v14398_v42, %v3366_v17  ;;  %11717 = vmatprep.mubr.msk.f32.mxu0 %vm221_vm1, %v9517_v29  ;;  %12019 = vmatprep.mubr.msk.f32.mxu1 %vm221_vm1, %v9910_v2  ;;  %v9911_v50 = vld [vmem:[%s17747_s0 + $0x1288] sm:$0xff]  ;;  %v9519_v61 = vld [vmem:[%s17747_s0 + $0xc70] sm:$0xff] }
 0x19a   :  { %17798 = vst [vmem:[#allocation48_spill] sm:$0xff] %v14387_v32  ;;  %v1952_v55 = vmax.f32 %v1346_v22, 0.0  ;;  %v3978_v58 = vmax.f32 %v3372_v27, 0.0  ;;  %v9912_v29 = vld [vmem:[%s17747_s0 + $0x1290] sm:$0xff] }
 0x19b   :  { %17799 = vst [vmem:[#allocation49_spill] sm:$0xff] %v14393_v31  ;;  %v1951_v7 = vmax.f32 %v1341_v47, 0.0  ;;  %v3977_v2 = vmax.f32 %v3367_v54, 0.0  ;;  %v11250_v10 = vpop.f32.mrb[94].mxu0  ;;  %v11552_v13 = vpop.f32.mrb[94].mxu1  ;;  %v9520_v54 = vld [vmem:[%s17747_s0 + $0xc78] sm:$0xff] }
 0x19c   :  { %v14416_v16 = vmax.f32 %v1952_v55, %v3978_v58  ;;  %v1356_v17 = vadd.f32 %v14398_v42, %v11250_v10  ;;  %v3382_v31 = vadd.f32 %v14398_v42, %v11552_v13  ;;  %v1350_v22 = vpop.f32.mrb[95].mxu0  ;;  %v3376_v27 = vpop.f32.mrb[95].mxu1  ;;  %11718 = vmatmul.mubr.msk.f32.gmra.mrb[200].mxu0 %vm221_vm1, %v9518_v15  ;;  %12020 = vmatmul.mubr.msk.f32.gmra.mrb[200].mxu1 %vm221_vm1, %v9911_v50  ;;  %v9913_v15 = vld [vmem:[%s17747_s0 + $0x1298] sm:$0xff]  ;;  %v9521_v58 = vld [vmem:[%s17747_s0 + $0xc80] sm:$0xff] }
 0x19d   :  { %v14422_v32 = vmax.f32 %v1951_v7, %v3977_v2  ;;  %v1351_v41 = vadd.f32 %v14398_v42, %v1350_v22  ;;  %v3377_v47 = vadd.f32 %v14398_v42, %v3376_v27  ;;  %11720 = vmatprep.mubr.msk.f32.mxu0 %vm221_vm1, %v9519_v61  ;;  %12022 = vmatprep.mubr.msk.f32.mxu1 %vm221_vm1, %v9912_v29  ;;  %v9914_v61 = vld [vmem:[%s17747_s0 + $0x12a0] sm:$0xff] }
 0x19e   :  { %17800 = vst [vmem:[#allocation50_spill] sm:$0xff] %v14416_v16  ;;  %v1954_v55 = vmax.f32 %v1356_v17, 0.0  ;;  %v3980_v50 = vmax.f32 %v3382_v31, 0.0 }
 0x19f   :  { %17801 = vst [vmem:[#allocation51_spill] sm:$0xff] %v14422_v32  ;;  %v1953_v7 = vmax.f32 %v1351_v41, 0.0  ;;  %v3979_v29 = vmax.f32 %v3377_v47, 0.0  ;;  %v11253_v2 = vpop.f32.mrb[96].mxu0  ;;  %v11555_v10 = vpop.f32.mrb[96].mxu1  ;;  %v9522_v47 = vld [vmem:[%s17747_s0 + $0xc88] sm:$0xff] }
 0x1a0   :  { %v14440_v13 = vmax.f32 %v1954_v55, %v3980_v50  ;;  %v1366_v22 = vadd.f32 %v14398_v42, %v11253_v2  ;;  %v3392_v27 = vadd.f32 %v14398_v42, %v11555_v10  ;;  %v1360_v17 = vpop.f32.mrb[97].mxu0  ;;  %v3386_v31 = vpop.f32.mrb[97].mxu1  ;;  %11721 = vmatmul.mubr.msk.f32.gmra.mrb[202].mxu0 %vm221_vm1, %v9520_v54  ;;  %12023 = vmatmul.mubr.msk.f32.gmra.mrb[202].mxu1 %vm221_vm1, %v9913_v15  ;;  %v9915_v54 = vld [vmem:[%s17747_s0 + $0x12a8] sm:$0xff]  ;;  %v9523_v50 = vld [vmem:[%s17747_s0 + $0xc90] sm:$0xff] }
 0x1a1   :  { %v14446_v32 = vmax.f32 %v1953_v7, %v3979_v29  ;;  %v1361_v16 = vadd.f32 %v14398_v42, %v1360_v17  ;;  %v3387_v41 = vadd.f32 %v14398_v42, %v3386_v31  ;;  %11723 = vmatprep.mubr.msk.f32.mxu0 %vm221_vm1, %v9521_v58  ;;  %12025 = vmatprep.mubr.msk.f32.mxu1 %vm221_vm1, %v9914_v61  ;;  %v9916_v58 = vld [vmem:[%s17747_s0 + $0x12b0] sm:$0xff] }
 0x1a2   :  { %17802 = vst [vmem:[#allocation52_spill] sm:$0xff] %v14440_v13  ;;  %v1956_v55 = vmax.f32 %v1366_v22, 0.0  ;;  %v3982_v15 = vmax.f32 %v3392_v27, 0.0 }
 0x1a3   :  { %17803 = vst [vmem:[#allocation53_spill] sm:$0xff] %v14446_v32  ;;  %v1955_v7 = vmax.f32 %v1361_v16, 0.0  ;;  %v3981_v61 = vmax.f32 %v3387_v41, 0.0  ;;  %v11256_v29 = vpop.f32.mrb[98].mxu0  ;;  %v11558_v2 = vpop.f32.mrb[98].mxu1  ;;  %v9524_v41 = vld [vmem:[%s17747_s0 + $0xc98] sm:$0xff] }
 0x1a4   :  { %v14464_v10 = vmax.f32 %v1956_v55, %v3982_v15  ;;  %v1376_v17 = vadd.f32 %v14398_v42, %v11256_v29  ;;  %v3402_v31 = vadd.f32 %v14398_v42, %v11558_v2  ;;  %v1370_v22 = vpop.f32.mrb[99].mxu0  ;;  %v3396_v27 = vpop.f32.mrb[99].mxu1  ;;  %11724 = vmatmul.mubr.msk.f32.gmra.mrb[204].mxu0 %vm221_vm1, %v9522_v47  ;;  %12026 = vmatmul.mubr.msk.f32.gmra.mrb[204].mxu1 %vm221_vm1, %v9915_v54  ;;  %v9917_v47 = vld [vmem:[%s17747_s0 + $0x12b8] sm:$0xff]  ;;  %v9525_v15 = vld [vmem:[%s17747_s0 + $0xca0] sm:$0xff] }
 0x1a5   :  { %v14470_v32 = vmax.f32 %v1955_v7, %v3981_v61  ;;  %v1371_v13 = vadd.f32 %v14398_v42, %v1370_v22  ;;  %v3397_v16 = vadd.f32 %v14398_v42, %v3396_v27  ;;  %11726 = vmatprep.mubr.msk.f32.mxu0 %vm221_vm1, %v9523_v50  ;;  %12028 = vmatprep.mubr.msk.f32.mxu1 %vm221_vm1, %v9916_v58  ;;  %v9918_v50 = vld [vmem:[%s17747_s0 + $0x12c0] sm:$0xff] }
 0x1a6   :  { %17804 = vst [vmem:[#allocation54_spill] sm:$0xff] %v14464_v10  ;;  %v1958_v55 = vmax.f32 %v1376_v17, 0.0  ;;  %v3984_v54 = vmax.f32 %v3402_v31, 0.0 }
 0x1a7   :  { %17805 = vst [vmem:[#allocation55_spill] sm:$0xff] %v14470_v32  ;;  %v1957_v7 = vmax.f32 %v1371_v13, 0.0  ;;  %v3983_v58 = vmax.f32 %v3397_v16, 0.0  ;;  %v11259_v61 = vpop.f32.mrb[100].mxu0  ;;  %v11561_v29 = vpop.f32.mrb[100].mxu1  ;;  %v9526_v16 = vld [vmem:[%s17747_s0 + $0xca8] sm:$0xff] }
 0x1a8   :  { %v14488_v2 = vmax.f32 %v1958_v55, %v3984_v54  ;;  %v1386_v22 = vadd.f32 %v14398_v42, %v11259_v61  ;;  %v3412_v27 = vadd.f32 %v14398_v42, %v11561_v29  ;;  %v1380_v17 = vpop.f32.mrb[101].mxu0  ;;  %v3406_v31 = vpop.f32.mrb[101].mxu1  ;;  %11727 = vmatmul.mubr.msk.f32.gmra.mrb[206].mxu0 %vm221_vm1, %v9524_v41  ;;  %12029 = vmatmul.mubr.msk.f32.gmra.mrb[206].mxu1 %vm221_vm1, %v9917_v47  ;;  %v9919_v41 = vld [vmem:[%s17747_s0 + $0x12c8] sm:$0xff]  ;;  %v9527_v54 = vld [vmem:[%s17747_s0 + $0xcb0] sm:$0xff] }
 0x1a9   :  { %v14494_v32 = vmax.f32 %v1957_v7, %v3983_v58  ;;  %v1381_v10 = vadd.f32 %v14398_v42, %v1380_v17  ;;  %v3407_v13 = vadd.f32 %v14398_v42, %v3406_v31  ;;  %11729 = vmatprep.mubr.msk.f32.mxu0 %vm221_vm1, %v9525_v15  ;;  %12031 = vmatprep.mubr.msk.f32.mxu1 %vm221_vm1, %v9918_v50  ;;  %v9920_v15 = vld [vmem:[%s17747_s0 + $0x12d0] sm:$0xff] }
 0x1aa   :  { %17806 = vst [vmem:[#allocation56_spill] sm:$0xff] %v14488_v2  ;;  %v1960_v55 = vmax.f32 %v1386_v22, 0.0  ;;  %v3986_v47 = vmax.f32 %v3412_v27, 0.0 }
 0x1ab   :  { %17807 = vst [vmem:[#allocation57_spill] sm:$0xff] %v14494_v32  ;;  %v1959_v7 = vmax.f32 %v1381_v10, 0.0  ;;  %v3985_v50 = vmax.f32 %v3407_v13, 0.0  ;;  %v11262_v58 = vpop.f32.mrb[102].mxu0  ;;  %v11564_v61 = vpop.f32.mrb[102].mxu1  ;;  %v9528_v13 = vld [vmem:[%s17747_s0 + $0xcb8] sm:$0xff] }
 0x1ac   :  { %v14512_v29 = vmax.f32 %v1960_v55, %v3986_v47  ;;  %v1396_v17 = vadd.f32 %v14398_v42, %v11262_v58  ;;  %v3422_v31 = vadd.f32 %v14398_v42, %v11564_v61  ;;  %v1390_v22 = vpop.f32.mrb[103].mxu0  ;;  %v3416_v27 = vpop.f32.mrb[103].mxu1  ;;  %11730 = vmatmul.mubr.msk.f32.gmra.mrb[208].mxu0 %vm221_vm1, %v9526_v16  ;;  %12032 = vmatmul.mubr.msk.f32.gmra.mrb[208].mxu1 %vm221_vm1, %v9919_v41  ;;  %v9921_v16 = vld [vmem:[%s17747_s0 + $0x12d8] sm:$0xff]  ;;  %v9529_v47 = vld [vmem:[%s17747_s0 + $0xcc0] sm:$0xff] }
 0x1ad   :  { %v14518_v32 = vmax.f32 %v1959_v7, %v3985_v50  ;;  %v1391_v2 = vadd.f32 %v14398_v42, %v1390_v22  ;;  %v3417_v10 = vadd.f32 %v14398_v42, %v3416_v27  ;;  %11732 = vmatprep.mubr.msk.f32.mxu0 %vm221_vm1, %v9527_v54  ;;  %12034 = vmatprep.mubr.msk.f32.mxu1 %vm221_vm1, %v9920_v15  ;;  %v9922_v54 = vld [vmem:[%s17747_s0 + $0x12e0] sm:$0xff] }
 0x1ae   :  { %17808 = vst [vmem:[#allocation58_spill] sm:$0xff] %v14512_v29  ;;  %v1962_v55 = vmax.f32 %v1396_v17, 0.0  ;;  %v3988_v41 = vmax.f32 %v3422_v31, 0.0 }
 0x1af   :  { %17809 = vst [vmem:[#allocation59_spill] sm:$0xff] %v14518_v32  ;;  %v1961_v7 = vmax.f32 %v1391_v2, 0.0  ;;  %v3987_v15 = vmax.f32 %v3417_v10, 0.0  ;;  %v11265_v50 = vpop.f32.mrb[104].mxu0  ;;  %v11567_v58 = vpop.f32.mrb[104].mxu1  ;;  %v9530_v10 = vld [vmem:[%s17747_s0 + $0xcc8] sm:$0xff] }
 0x1b0   :  { %v14536_v61 = vmax.f32 %v1962_v55, %v3988_v41  ;;  %v1406_v22 = vadd.f32 %v14398_v42, %v11265_v50  ;;  %v3432_v27 = vadd.f32 %v14398_v42, %v11567_v58  ;;  %v1400_v17 = vpop.f32.mrb[105].mxu0  ;;  %v3426_v31 = vpop.f32.mrb[105].mxu1  ;;  %11733 = vmatmul.mubr.msk.f32.gmra.mrb[210].mxu0 %vm221_vm1, %v9528_v13  ;;  %12035 = vmatmul.mubr.msk.f32.gmra.mrb[210].mxu1 %vm221_vm1, %v9921_v16  ;;  %v9923_v13 = vld [vmem:[%s17747_s0 + $0x12e8] sm:$0xff]  ;;  %v9531_v41 = vld [vmem:[%s17747_s0 + $0xcd0] sm:$0xff] }
 0x1b1   :  { %v14542_v32 = vmax.f32 %v1961_v7, %v3987_v15  ;;  %v1401_v29 = vadd.f32 %v14398_v42, %v1400_v17  ;;  %v3427_v2 = vadd.f32 %v14398_v42, %v3426_v31  ;;  %11735 = vmatprep.mubr.msk.f32.mxu0 %vm221_vm1, %v9529_v47  ;;  %12037 = vmatprep.mubr.msk.f32.mxu1 %vm221_vm1, %v9922_v54  ;;  %v9924_v47 = vld [vmem:[%s17747_s0 + $0x12f0] sm:$0xff] }
 0x1b2   :  { %17810 = vst [vmem:[#allocation60_spill] sm:$0xff] %v14536_v61  ;;  %v1964_v55 = vmax.f32 %v1406_v22, 0.0  ;;  %v3990_v16 = vmax.f32 %v3432_v27, 0.0 }
 0x1b3   :  { %17811 = vst [vmem:[#allocation61_spill] sm:$0xff] %v14542_v32  ;;  %v1963_v7 = vmax.f32 %v1401_v29, 0.0  ;;  %v3989_v54 = vmax.f32 %v3427_v2, 0.0  ;;  %v11268_v15 = vpop.f32.mrb[106].mxu0  ;;  %v11570_v50 = vpop.f32.mrb[106].mxu1  ;;  %v9532_v2 = vld [vmem:[%s17747_s0 + $0xcd8] sm:$0xff] }
 0x1b4   :  { %v14560_v58 = vmax.f32 %v1964_v55, %v3990_v16  ;;  %v1416_v17 = vadd.f32 %v14398_v42, %v11268_v15  ;;  %v3442_v31 = vadd.f32 %v14398_v42, %v11570_v50  ;;  %v1410_v22 = vpop.f32.mrb[107].mxu0  ;;  %v3436_v27 = vpop.f32.mrb[107].mxu1  ;;  %11736 = vmatmul.mubr.msk.f32.gmra.mrb[212].mxu0 %vm221_vm1, %v9530_v10  ;;  %12038 = vmatmul.mubr.msk.f32.gmra.mrb[212].mxu1 %vm221_vm1, %v9923_v13  ;;  %v9925_v10 = vld [vmem:[%s17747_s0 + $0x12f8] sm:$0xff]  ;;  %v9533_v16 = vld [vmem:[%s17747_s0 + $0xce0] sm:$0xff] }
 0x1b5   :  { %v14566_v32 = vmax.f32 %v1963_v7, %v3989_v54  ;;  %v1411_v61 = vadd.f32 %v14398_v42, %v1410_v22  ;;  %v3437_v29 = vadd.f32 %v14398_v42, %v3436_v27  ;;  %11738 = vmatprep.mubr.msk.f32.mxu0 %vm221_vm1, %v9531_v41  ;;  %12040 = vmatprep.mubr.msk.f32.mxu1 %vm221_vm1, %v9924_v47  ;;  %v9926_v41 = vld [vmem:[%s17747_s0 + $0x1300] sm:$0xff] }
 0x1b6   :  { %17812 = vst [vmem:[#allocation62_spill] sm:$0xff] %v14560_v58  ;;  %v1966_v55 = vmax.f32 %v1416_v17, 0.0  ;;  %v3992_v13 = vmax.f32 %v3442_v31, 0.0 }
 0x1b7   :  { %17813 = vst [vmem:[#allocation63_spill] sm:$0xff] %v14566_v32  ;;  %v1965_v7 = vmax.f32 %v1411_v61, 0.0  ;;  %v3991_v47 = vmax.f32 %v3437_v29, 0.0  ;;  %v11271_v54 = vpop.f32.mrb[108].mxu0  ;;  %v11573_v15 = vpop.f32.mrb[108].mxu1  ;;  %v9534_v29 = vld [vmem:[%s17747_s0 + $0xce8] sm:$0xff] }
 0x1b8   :  { %v14584_v50 = vmax.f32 %v1966_v55, %v3992_v13  ;;  %v1426_v22 = vadd.f32 %v14398_v42, %v11271_v54  ;;  %v3452_v27 = vadd.f32 %v14398_v42, %v11573_v15  ;;  %v1420_v17 = vpop.f32.mrb[109].mxu0  ;;  %v3446_v31 = vpop.f32.mrb[109].mxu1  ;;  %11739 = vmatmul.mubr.msk.f32.gmra.mrb[214].mxu0 %vm221_vm1, %v9532_v2  ;;  %12041 = vmatmul.mubr.msk.f32.gmra.mrb[214].mxu1 %vm221_vm1, %v9925_v10  ;;  %v9927_v2 = vld [vmem:[%s17747_s0 + $0x1308] sm:$0xff]  ;;  %v9535_v13 = vld [vmem:[%s17747_s0 + $0xcf0] sm:$0xff] }
 0x1b9   :  { %v14590_v32 = vmax.f32 %v1965_v7, %v3991_v47  ;;  %v1421_v58 = vadd.f32 %v14398_v42, %v1420_v17  ;;  %v3447_v61 = vadd.f32 %v14398_v42, %v3446_v31  ;;  %11741 = vmatprep.mubr.msk.f32.mxu0 %vm221_vm1, %v9533_v16  ;;  %12043 = vmatprep.mubr.msk.f32.mxu1 %vm221_vm1, %v9926_v41  ;;  %v9928_v16 = vld [vmem:[%s17747_s0 + $0x1310] sm:$0xff] }
 0x1ba   :  { %17814 = vst [vmem:[#allocation64_spill] sm:$0xff] %v14584_v50  ;;  %v1968_v55 = vmax.f32 %v1426_v22, 0.0  ;;  %v3994_v10 = vmax.f32 %v3452_v27, 0.0 }
 0x1bb   :  { %17815 = vst [vmem:[#allocation65_spill] sm:$0xff] %v14590_v32  ;;  %v1967_v7 = vmax.f32 %v1421_v58, 0.0  ;;  %v3993_v41 = vmax.f32 %v3447_v61, 0.0  ;;  %v11274_v47 = vpop.f32.mrb[110].mxu0  ;;  %v11576_v54 = vpop.f32.mrb[110].mxu1  ;;  %v9536_v61 = vld [vmem:[%s17747_s0 + $0xcf8] sm:$0xff] }
 0x1bc   :  { %v14608_v15 = vmax.f32 %v1968_v55, %v3994_v10  ;;  %v1436_v17 = vadd.f32 %v14398_v42, %v11274_v47  ;;  %v3462_v31 = vadd.f32 %v14398_v42, %v11576_v54  ;;  %v1430_v22 = vpop.f32.mrb[111].mxu0  ;;  %v3456_v27 = vpop.f32.mrb[111].mxu1  ;;  %11742 = vmatmul.mubr.msk.f32.gmra.mrb[216].mxu0 %vm221_vm1, %v9534_v29  ;;  %12044 = vmatmul.mubr.msk.f32.gmra.mrb[216].mxu1 %vm221_vm1, %v9927_v2  ;;  %v9929_v29 = vld [vmem:[%s17747_s0 + $0x1318] sm:$0xff]  ;;  %v9537_v10 = vld [vmem:[%s17747_s0 + $0xd00] sm:$0xff] }
 0x1bd   :  { %v14614_v32 = vmax.f32 %v1967_v7, %v3993_v41  ;;  %v1431_v50 = vadd.f32 %v14398_v42, %v1430_v22  ;;  %v3457_v58 = vadd.f32 %v14398_v42, %v3456_v27  ;;  %11744 = vmatprep.mubr.msk.f32.mxu0 %vm221_vm1, %v9535_v13  ;;  %12046 = vmatprep.mubr.msk.f32.mxu1 %vm221_vm1, %v9928_v16  ;;  %v9930_v13 = vld [vmem:[%s17747_s0 + $0x1320] sm:$0xff] }
 0x1be   :  { %17816 = vst [vmem:[#allocation66_spill] sm:$0xff] %v14608_v15  ;;  %v1970_v55 = vmax.f32 %v1436_v17, 0.0  ;;  %v3996_v2 = vmax.f32 %v3462_v31, 0.0 }
 0x1bf   :  { %17817 = vst [vmem:[#allocation67_spill] sm:$0xff] %v14614_v32  ;;  %v1969_v7 = vmax.f32 %v1431_v50, 0.0  ;;  %v3995_v16 = vmax.f32 %v3457_v58, 0.0  ;;  %v11277_v41 = vpop.f32.mrb[112].mxu0  ;;  %v11579_v47 = vpop.f32.mrb[112].mxu1  ;;  %v9538_v58 = vld [vmem:[%s17747_s0 + $0xd08] sm:$0xff] }
 0x1c0   :  { %v14632_v54 = vmax.f32 %v1970_v55, %v3996_v2  ;;  %v1446_v22 = vadd.f32 %v14398_v42, %v11277_v41  ;;  %v3472_v27 = vadd.f32 %v14398_v42, %v11579_v47  ;;  %v1440_v17 = vpop.f32.mrb[113].mxu0  ;;  %v3466_v31 = vpop.f32.mrb[113].mxu1  ;;  %11745 = vmatmul.mubr.msk.f32.gmra.mrb[218].mxu0 %vm221_vm1, %v9536_v61  ;;  %12047 = vmatmul.mubr.msk.f32.gmra.mrb[218].mxu1 %vm221_vm1, %v9929_v29  ;;  %v9931_v61 = vld [vmem:[%s17747_s0 + $0x1328] sm:$0xff]  ;;  %v9539_v2 = vld [vmem:[%s17747_s0 + $0xd10] sm:$0xff] }
 0x1c1   :  { %v14638_v32 = vmax.f32 %v1969_v7, %v3995_v16  ;;  %v1441_v15 = vadd.f32 %v14398_v42, %v1440_v17  ;;  %v3467_v50 = vadd.f32 %v14398_v42, %v3466_v31  ;;  %11747 = vmatprep.mubr.msk.f32.mxu0 %vm221_vm1, %v9537_v10  ;;  %12049 = vmatprep.mubr.msk.f32.mxu1 %vm221_vm1, %v9930_v13  ;;  %v9932_v10 = vld [vmem:[%s17747_s0 + $0x1330] sm:$0xff] }
 0x1c2   :  { %17818 = vst [vmem:[#allocation68_spill] sm:$0xff] %v14632_v54  ;;  %v1972_v55 = vmax.f32 %v1446_v22, 0.0  ;;  %v3998_v29 = vmax.f32 %v3472_v27, 0.0 }
 0x1c3   :  { %17819 = vst [vmem:[#allocation69_spill] sm:$0xff] %v14638_v32  ;;  %v1971_v7 = vmax.f32 %v1441_v15, 0.0  ;;  %v3997_v13 = vmax.f32 %v3467_v50, 0.0  ;;  %v11280_v16 = vpop.f32.mrb[114].mxu0  ;;  %v11582_v41 = vpop.f32.mrb[114].mxu1  ;;  %v9540_v50 = vld [vmem:[%s17747_s0 + $0xd18] sm:$0xff] }
 0x1c4   :  { %v14656_v47 = vmax.f32 %v1972_v55, %v3998_v29  ;;  %v1456_v17 = vadd.f32 %v14398_v42, %v11280_v16  ;;  %v3482_v31 = vadd.f32 %v14398_v42, %v11582_v41  ;;  %v1450_v22 = vpop.f32.mrb[115].mxu0  ;;  %v3476_v27 = vpop.f32.mrb[115].mxu1  ;;  %11748 = vmatmul.mubr.msk.f32.gmra.mrb[220].mxu0 %vm221_vm1, %v9538_v58  ;;  %12050 = vmatmul.mubr.msk.f32.gmra.mrb[220].mxu1 %vm221_vm1, %v9931_v61  ;;  %v9933_v58 = vld [vmem:[%s17747_s0 + $0x1338] sm:$0xff]  ;;  %v9541_v29 = vld [vmem:[%s17747_s0 + $0xd20] sm:$0xff] }
 0x1c5   :  { %v14662_v32 = vmax.f32 %v1971_v7, %v3997_v13  ;;  %v1451_v54 = vadd.f32 %v14398_v42, %v1450_v22  ;;  %v3477_v15 = vadd.f32 %v14398_v42, %v3476_v27  ;;  %11750 = vmatprep.mubr.msk.f32.mxu0 %vm221_vm1, %v9539_v2  ;;  %12052 = vmatprep.mubr.msk.f32.mxu1 %vm221_vm1, %v9932_v10  ;;  %v9934_v2 = vld [vmem:[%s17747_s0 + $0x1340] sm:$0xff] }
 0x1c6   :  { %17820 = vst [vmem:[#allocation70_spill] sm:$0xff] %v14656_v47  ;;  %v1974_v55 = vmax.f32 %v1456_v17, 0.0  ;;  %v4000_v61 = vmax.f32 %v3482_v31, 0.0 }
 0x1c7   :  { %17821 = vst [vmem:[#allocation71_spill] sm:$0xff] %v14662_v32  ;;  %v1973_v7 = vmax.f32 %v1451_v54, 0.0  ;;  %v3999_v10 = vmax.f32 %v3477_v15, 0.0  ;;  %v11283_v13 = vpop.f32.mrb[116].mxu0  ;;  %v11585_v16 = vpop.f32.mrb[116].mxu1  ;;  %v9542_v15 = vld [vmem:[%s17747_s0 + $0xd28] sm:$0xff] }
 0x1c8   :  { %v14680_v41 = vmax.f32 %v1974_v55, %v4000_v61  ;;  %v1466_v22 = vadd.f32 %v14398_v42, %v11283_v13  ;;  %v3492_v27 = vadd.f32 %v14398_v42, %v11585_v16  ;;  %v1460_v17 = vpop.f32.mrb[117].mxu0  ;;  %v3486_v31 = vpop.f32.mrb[117].mxu1  ;;  %11751 = vmatmul.mubr.msk.f32.gmra.mrb[222].mxu0 %vm221_vm1, %v9540_v50  ;;  %12053 = vmatmul.mubr.msk.f32.gmra.mrb[222].mxu1 %vm221_vm1, %v9933_v58  ;;  %v9935_v50 = vld [vmem:[%s17747_s0 + $0x1348] sm:$0xff]  ;;  %v9543_v61 = vld [vmem:[%s17747_s0 + $0xd30] sm:$0xff] }
 0x1c9   :  { %v14686_v32 = vmax.f32 %v1973_v7, %v3999_v10  ;;  %v1461_v47 = vadd.f32 %v14398_v42, %v1460_v17  ;;  %v3487_v54 = vadd.f32 %v14398_v42, %v3486_v31  ;;  %11753 = vmatprep.mubr.msk.f32.mxu0 %vm221_vm1, %v9541_v29  ;;  %12055 = vmatprep.mubr.msk.f32.mxu1 %vm221_vm1, %v9934_v2  ;;  %v9936_v29 = vld [vmem:[%s17747_s0 + $0x1350] sm:$0xff] }
 0x1ca   :  { %17822 = vst [vmem:[#allocation72_spill] sm:$0xff] %v14680_v41  ;;  %v1976_v55 = vmax.f32 %v1466_v22, 0.0  ;;  %v4002_v58 = vmax.f32 %v3492_v27, 0.0 }
 0x1cb   :  { %17823 = vst [vmem:[#allocation73_spill] sm:$0xff] %v14686_v32  ;;  %v1975_v7 = vmax.f32 %v1461_v47, 0.0  ;;  %v4001_v2 = vmax.f32 %v3487_v54, 0.0  ;;  %v11286_v10 = vpop.f32.mrb[118].mxu0  ;;  %v11588_v13 = vpop.f32.mrb[118].mxu1  ;;  %v9544_v54 = vld [vmem:[%s17747_s0 + $0xd38] sm:$0xff] }
 0x1cc   :  { %v14704_v16 = vmax.f32 %v1976_v55, %v4002_v58  ;;  %v1476_v17 = vadd.f32 %v14398_v42, %v11286_v10  ;;  %v3502_v31 = vadd.f32 %v14398_v42, %v11588_v13  ;;  %v1470_v22 = vpop.f32.mrb[119].mxu0  ;;  %v3496_v27 = vpop.f32.mrb[119].mxu1  ;;  %11754 = vmatmul.mubr.msk.f32.gmra.mrb[224].mxu0 %vm221_vm1, %v9542_v15  ;;  %12056 = vmatmul.mubr.msk.f32.gmra.mrb[224].mxu1 %vm221_vm1, %v9935_v50  ;;  %v9937_v15 = vld [vmem:[%s17747_s0 + $0x1358] sm:$0xff]  ;;  %v9545_v58 = vld [vmem:[%s17747_s0 + $0xd40] sm:$0xff] }
 0x1cd   :  { %v14710_v32 = vmax.f32 %v1975_v7, %v4001_v2  ;;  %v1471_v41 = vadd.f32 %v14398_v42, %v1470_v22  ;;  %v3497_v47 = vadd.f32 %v14398_v42, %v3496_v27  ;;  %11756 = vmatprep.mubr.msk.f32.mxu0 %vm221_vm1, %v9543_v61  ;;  %12058 = vmatprep.mubr.msk.f32.mxu1 %vm221_vm1, %v9936_v29  ;;  %v9938_v61 = vld [vmem:[%s17747_s0 + $0x1360] sm:$0xff] }
 0x1ce   :  { %17824 = vst [vmem:[#allocation74_spill] sm:$0xff] %v14704_v16  ;;  %v1978_v55 = vmax.f32 %v1476_v17, 0.0  ;;  %v4004_v50 = vmax.f32 %v3502_v31, 0.0 }
 0x1cf   :  { %17825 = vst [vmem:[#allocation75_spill] sm:$0xff] %v14710_v32  ;;  %v1977_v7 = vmax.f32 %v1471_v41, 0.0  ;;  %v4003_v29 = vmax.f32 %v3497_v47, 0.0  ;;  %v11289_v2 = vpop.f32.mrb[120].mxu0  ;;  %v11591_v10 = vpop.f32.mrb[120].mxu1  ;;  %v9546_v47 = vld [vmem:[%s17747_s0 + $0xd48] sm:$0xff] }
 0x1d0   :  { %v14728_v13 = vmax.f32 %v1978_v55, %v4004_v50  ;;  %v1486_v22 = vadd.f32 %v14398_v42, %v11289_v2  ;;  %v3512_v27 = vadd.f32 %v14398_v42, %v11591_v10  ;;  %v1480_v17 = vpop.f32.mrb[121].mxu0  ;;  %v3506_v31 = vpop.f32.mrb[121].mxu1  ;;  %11757 = vmatmul.mubr.msk.f32.gmra.mrb[226].mxu0 %vm221_vm1, %v9544_v54  ;;  %12059 = vmatmul.mubr.msk.f32.gmra.mrb[226].mxu1 %vm221_vm1, %v9937_v15  ;;  %v9939_v54 = vld [vmem:[%s17747_s0 + $0x1368] sm:$0xff]  ;;  %v9547_v50 = vld [vmem:[%s17747_s0 + $0xd50] sm:$0xff] }
 0x1d1   :  { %v14734_v32 = vmax.f32 %v1977_v7, %v4003_v29  ;;  %v1481_v16 = vadd.f32 %v14398_v42, %v1480_v17  ;;  %v3507_v41 = vadd.f32 %v14398_v42, %v3506_v31  ;;  %11759 = vmatprep.mubr.msk.f32.mxu0 %vm221_vm1, %v9545_v58  ;;  %12061 = vmatprep.mubr.msk.f32.mxu1 %vm221_vm1, %v9938_v61  ;;  %v9940_v58 = vld [vmem:[%s17747_s0 + $0x1370] sm:$0xff] }
 0x1d2   :  { %17826 = vst [vmem:[#allocation76_spill] sm:$0xff] %v14728_v13  ;;  %v1980_v55 = vmax.f32 %v1486_v22, 0.0  ;;  %v4006_v15 = vmax.f32 %v3512_v27, 0.0 }
 0x1d3   :  { %17827 = vst [vmem:[#allocation77_spill] sm:$0xff] %v14734_v32  ;;  %v1979_v7 = vmax.f32 %v1481_v16, 0.0  ;;  %v4005_v61 = vmax.f32 %v3507_v41, 0.0  ;;  %v11292_v29 = vpop.f32.mrb[122].mxu0  ;;  %v11594_v2 = vpop.f32.mrb[122].mxu1  ;;  %v9548_v41 = vld [vmem:[%s17747_s0 + $0xd58] sm:$0xff] }
 0x1d4   :  { %v14752_v10 = vmax.f32 %v1980_v55, %v4006_v15  ;;  %v1496_v17 = vadd.f32 %v14398_v42, %v11292_v29  ;;  %v3522_v31 = vadd.f32 %v14398_v42, %v11594_v2  ;;  %v1490_v22 = vpop.f32.mrb[123].mxu0  ;;  %v3516_v27 = vpop.f32.mrb[123].mxu1  ;;  %11760 = vmatmul.mubr.msk.f32.gmra.mrb[228].mxu0 %vm221_vm1, %v9546_v47  ;;  %12062 = vmatmul.mubr.msk.f32.gmra.mrb[228].mxu1 %vm221_vm1, %v9939_v54  ;;  %v9941_v47 = vld [vmem:[%s17747_s0 + $0x1378] sm:$0xff]  ;;  %v9549_v15 = vld [vmem:[%s17747_s0 + $0xd60] sm:$0xff] }
 0x1d5   :  { %v14758_v32 = vmax.f32 %v1979_v7, %v4005_v61  ;;  %v1491_v13 = vadd.f32 %v14398_v42, %v1490_v22  ;;  %v3517_v16 = vadd.f32 %v14398_v42, %v3516_v27  ;;  %11762 = vmatprep.mubr.msk.f32.mxu0 %vm221_vm1, %v9547_v50  ;;  %12064 = vmatprep.mubr.msk.f32.mxu1 %vm221_vm1, %v9940_v58  ;;  %v9942_v50 = vld [vmem:[%s17747_s0 + $0x1380] sm:$0xff] }
 0x1d6   :  { %17828 = vst [vmem:[#allocation78_spill] sm:$0xff] %v14752_v10  ;;  %v1982_v55 = vmax.f32 %v1496_v17, 0.0  ;;  %v4008_v54 = vmax.f32 %v3522_v31, 0.0 }
 0x1d7   :  { %17829 = vst [vmem:[#allocation79_spill] sm:$0xff] %v14758_v32  ;;  %v1981_v7 = vmax.f32 %v1491_v13, 0.0  ;;  %v4007_v58 = vmax.f32 %v3517_v16, 0.0  ;;  %v11295_v61 = vpop.f32.mrb[124].mxu0  ;;  %v11597_v29 = vpop.f32.mrb[124].mxu1  ;;  %v9550_v16 = vld [vmem:[%s17747_s0 + $0xd68] sm:$0xff] }
 0x1d8   :  { %v14776_v2 = vmax.f32 %v1982_v55, %v4008_v54  ;;  %v1506_v22 = vadd.f32 %v14398_v42, %v11295_v61  ;;  %v3532_v27 = vadd.f32 %v14398_v42, %v11597_v29  ;;  %v1500_v17 = vpop.f32.mrb[125].mxu0  ;;  %v3526_v31 = vpop.f32.mrb[125].mxu1  ;;  %11763 = vmatmul.mubr.msk.f32.gmra.mrb[230].mxu0 %vm221_vm1, %v9548_v41  ;;  %12065 = vmatmul.mubr.msk.f32.gmra.mrb[230].mxu1 %vm221_vm1, %v9941_v47  ;;  %v9943_v41 = vld [vmem:[%s17747_s0 + $0x1388] sm:$0xff]  ;;  %v9551_v54 = vld [vmem:[%s17747_s0 + $0xd70] sm:$0xff] }
 0x1d9   :  { %v14782_v32 = vmax.f32 %v1981_v7, %v4007_v58  ;;  %v1501_v10 = vadd.f32 %v14398_v42, %v1500_v17  ;;  %v3527_v13 = vadd.f32 %v14398_v42, %v3526_v31  ;;  %11765 = vmatprep.mubr.msk.f32.mxu0 %vm221_vm1, %v9549_v15  ;;  %12067 = vmatprep.mubr.msk.f32.mxu1 %vm221_vm1, %v9942_v50  ;;  %v9944_v15 = vld [vmem:[%s17747_s0 + $0x1390] sm:$0xff] }
 0x1da   :  { %17830 = vst [vmem:[#allocation80_spill] sm:$0xff] %v14776_v2  ;;  %v1984_v55 = vmax.f32 %v1506_v22, 0.0  ;;  %v4010_v47 = vmax.f32 %v3532_v27, 0.0 }
 0x1db   :  { %17831 = vst [vmem:[#allocation81_spill] sm:$0xff] %v14782_v32  ;;  %v1983_v7 = vmax.f32 %v1501_v10, 0.0  ;;  %v4009_v50 = vmax.f32 %v3527_v13, 0.0  ;;  %v11298_v58 = vpop.f32.mrb[126].mxu0  ;;  %v11600_v61 = vpop.f32.mrb[126].mxu1  ;;  %v9552_v13 = vld [vmem:[%s17747_s0 + $0xd78] sm:$0xff] }
 0x1dc   :  { %v14800_v29 = vmax.f32 %v1984_v55, %v4010_v47  ;;  %v1516_v17 = vadd.f32 %v14398_v42, %v11298_v58  ;;  %v3542_v31 = vadd.f32 %v14398_v42, %v11600_v61  ;;  %v1510_v22 = vpop.f32.mrb[127].mxu0  ;;  %v3536_v27 = vpop.f32.mrb[127].mxu1  ;;  %11766 = vmatmul.mubr.msk.f32.gmra.mrb[232].mxu0 %vm221_vm1, %v9550_v16  ;;  %12068 = vmatmul.mubr.msk.f32.gmra.mrb[232].mxu1 %vm221_vm1, %v9943_v41  ;;  %v9945_v16 = vld [vmem:[%s17747_s0 + $0x1398] sm:$0xff]  ;;  %v9553_v47 = vld [vmem:[%s17747_s0 + $0xd80] sm:$0xff] }
 0x1dd   :  { %v14806_v32 = vmax.f32 %v1983_v7, %v4009_v50  ;;  %v1511_v2 = vadd.f32 %v14398_v42, %v1510_v22  ;;  %v3537_v10 = vadd.f32 %v14398_v42, %v3536_v27  ;;  %11768 = vmatprep.mubr.msk.f32.mxu0 %vm221_vm1, %v9551_v54  ;;  %12070 = vmatprep.mubr.msk.f32.mxu1 %vm221_vm1, %v9944_v15  ;;  %v9946_v54 = vld [vmem:[%s17747_s0 + $0x13a0] sm:$0xff] }
 0x1de   :  { %17832 = vst [vmem:[#allocation82_spill] sm:$0xff] %v14800_v29  ;;  %v1986_v55 = vmax.f32 %v1516_v17, 0.0  ;;  %v4012_v41 = vmax.f32 %v3542_v31, 0.0 }
 0x1df   :  { %17833 = vst [vmem:[#allocation83_spill] sm:$0xff] %v14806_v32  ;;  %v1985_v7 = vmax.f32 %v1511_v2, 0.0  ;;  %v4011_v15 = vmax.f32 %v3537_v10, 0.0  ;;  %v11301_v50 = vpop.f32.mrb[128].mxu0  ;;  %v11603_v58 = vpop.f32.mrb[128].mxu1  ;;  %v9554_v10 = vld [vmem:[%s17747_s0 + $0xd88] sm:$0xff] }
 0x1e0   :  { %v14824_v61 = vmax.f32 %v1986_v55, %v4012_v41  ;;  %v1526_v22 = vadd.f32 %v14398_v42, %v11301_v50  ;;  %v3552_v27 = vadd.f32 %v14398_v42, %v11603_v58  ;;  %v1520_v17 = vpop.f32.mrb[129].mxu0  ;;  %v3546_v31 = vpop.f32.mrb[129].mxu1  ;;  %11769 = vmatmul.mubr.msk.f32.gmra.mrb[234].mxu0 %vm221_vm1, %v9552_v13  ;;  %12071 = vmatmul.mubr.msk.f32.gmra.mrb[234].mxu1 %vm221_vm1, %v9945_v16  ;;  %v9947_v13 = vld [vmem:[%s17747_s0 + $0x13a8] sm:$0xff]  ;;  %v9555_v41 = vld [vmem:[%s17747_s0 + $0xd90] sm:$0xff] }
 0x1e1   :  { %v14830_v32 = vmax.f32 %v1985_v7, %v4011_v15  ;;  %v1521_v29 = vadd.f32 %v14398_v42, %v1520_v17  ;;  %v3547_v2 = vadd.f32 %v14398_v42, %v3546_v31  ;;  %11771 = vmatprep.mubr.msk.f32.mxu0 %vm221_vm1, %v9553_v47  ;;  %12073 = vmatprep.mubr.msk.f32.mxu1 %vm221_vm1, %v9946_v54  ;;  %v9948_v47 = vld [vmem:[%s17747_s0 + $0x13b0] sm:$0xff] }
 0x1e2   :  { %17834 = vst [vmem:[#allocation84_spill] sm:$0xff] %v14824_v61  ;;  %v1988_v55 = vmax.f32 %v1526_v22, 0.0  ;;  %v4014_v16 = vmax.f32 %v3552_v27, 0.0 }
 0x1e3   :  { %17835 = vst [vmem:[#allocation85_spill] sm:$0xff] %v14830_v32  ;;  %v1987_v7 = vmax.f32 %v1521_v29, 0.0  ;;  %v4013_v54 = vmax.f32 %v3547_v2, 0.0  ;;  %v11304_v15 = vpop.f32.mrb[130].mxu0  ;;  %v11606_v50 = vpop.f32.mrb[130].mxu1  ;;  %v9556_v2 = vld [vmem:[%s17747_s0 + $0xd98] sm:$0xff] }
 0x1e4   :  { %v14848_v58 = vmax.f32 %v1988_v55, %v4014_v16  ;;  %v1536_v17 = vadd.f32 %v14398_v42, %v11304_v15  ;;  %v3562_v31 = vadd.f32 %v14398_v42, %v11606_v50  ;;  %v1530_v22 = vpop.f32.mrb[131].mxu0  ;;  %v3556_v27 = vpop.f32.mrb[131].mxu1  ;;  %11772 = vmatmul.mubr.msk.f32.gmra.mrb[236].mxu0 %vm221_vm1, %v9554_v10  ;;  %12074 = vmatmul.mubr.msk.f32.gmra.mrb[236].mxu1 %vm221_vm1, %v9947_v13  ;;  %v9949_v10 = vld [vmem:[%s17747_s0 + $0x13b8] sm:$0xff]  ;;  %v9557_v16 = vld [vmem:[%s17747_s0 + $0xda0] sm:$0xff] }
 0x1e5   :  { %v14854_v32 = vmax.f32 %v1987_v7, %v4013_v54  ;;  %v1531_v61 = vadd.f32 %v14398_v42, %v1530_v22  ;;  %v3557_v29 = vadd.f32 %v14398_v42, %v3556_v27  ;;  %11774 = vmatprep.mubr.msk.f32.mxu0 %vm221_vm1, %v9555_v41  ;;  %12076 = vmatprep.mubr.msk.f32.mxu1 %vm221_vm1, %v9948_v47  ;;  %v9950_v41 = vld [vmem:[%s17747_s0 + $0x13c0] sm:$0xff] }
 0x1e6   :  { %17836 = vst [vmem:[#allocation86_spill] sm:$0xff] %v14848_v58  ;;  %v1990_v55 = vmax.f32 %v1536_v17, 0.0  ;;  %v4016_v13 = vmax.f32 %v3562_v31, 0.0 }
 0x1e7   :  { %17837 = vst [vmem:[#allocation87_spill] sm:$0xff] %v14854_v32  ;;  %v1989_v7 = vmax.f32 %v1531_v61, 0.0  ;;  %v4015_v47 = vmax.f32 %v3557_v29, 0.0  ;;  %v11307_v54 = vpop.f32.mrb[132].mxu0  ;;  %v11609_v15 = vpop.f32.mrb[132].mxu1  ;;  %v9558_v29 = vld [vmem:[%s17747_s0 + $0xda8] sm:$0xff] }
 0x1e8   :  { %v14872_v50 = vmax.f32 %v1990_v55, %v4016_v13  ;;  %v1546_v22 = vadd.f32 %v14398_v42, %v11307_v54  ;;  %v3572_v27 = vadd.f32 %v14398_v42, %v11609_v15  ;;  %v1540_v17 = vpop.f32.mrb[133].mxu0  ;;  %v3566_v31 = vpop.f32.mrb[133].mxu1  ;;  %11775 = vmatmul.mubr.msk.f32.gmra.mrb[238].mxu0 %vm221_vm1, %v9556_v2  ;;  %12077 = vmatmul.mubr.msk.f32.gmra.mrb[238].mxu1 %vm221_vm1, %v9949_v10  ;;  %v9951_v2 = vld [vmem:[%s17747_s0 + $0x13c8] sm:$0xff]  ;;  %v9559_v13 = vld [vmem:[%s17747_s0 + $0xdb0] sm:$0xff] }
 0x1e9   :  { %v14878_v32 = vmax.f32 %v1989_v7, %v4015_v47  ;;  %v1541_v58 = vadd.f32 %v14398_v42, %v1540_v17  ;;  %v3567_v61 = vadd.f32 %v14398_v42, %v3566_v31  ;;  %11777 = vmatprep.mubr.msk.f32.mxu0 %vm221_vm1, %v9557_v16  ;;  %12079 = vmatprep.mubr.msk.f32.mxu1 %vm221_vm1, %v9950_v41  ;;  %v9952_v16 = vld [vmem:[%s17747_s0 + $0x13d0] sm:$0xff] }
 0x1ea   :  { %17838 = vst [vmem:[#allocation88_spill] sm:$0xff] %v14872_v50  ;;  %v1992_v55 = vmax.f32 %v1546_v22, 0.0  ;;  %v4018_v10 = vmax.f32 %v3572_v27, 0.0 }
 0x1eb   :  { %17839 = vst [vmem:[#allocation89_spill] sm:$0xff] %v14878_v32  ;;  %v1991_v7 = vmax.f32 %v1541_v58, 0.0  ;;  %v4017_v41 = vmax.f32 %v3567_v61, 0.0  ;;  %v11310_v47 = vpop.f32.mrb[134].mxu0  ;;  %v11612_v54 = vpop.f32.mrb[134].mxu1  ;;  %v9560_v61 = vld [vmem:[%s17747_s0 + $0xdb8] sm:$0xff] }
 0x1ec   :  { %v14896_v15 = vmax.f32 %v1992_v55, %v4018_v10  ;;  %v1556_v17 = vadd.f32 %v14398_v42, %v11310_v47  ;;  %v3582_v31 = vadd.f32 %v14398_v42, %v11612_v54  ;;  %v1550_v22 = vpop.f32.mrb[135].mxu0  ;;  %v3576_v27 = vpop.f32.mrb[135].mxu1  ;;  %11778 = vmatmul.mubr.msk.f32.gmra.mrb[240].mxu0 %vm221_vm1, %v9558_v29  ;;  %12080 = vmatmul.mubr.msk.f32.gmra.mrb[240].mxu1 %vm221_vm1, %v9951_v2  ;;  %v9953_v29 = vld [vmem:[%s17747_s0 + $0x13d8] sm:$0xff]  ;;  %v9561_v10 = vld [vmem:[%s17747_s0 + $0xdc0] sm:$0xff] }
 0x1ed   :  { %v14902_v32 = vmax.f32 %v1991_v7, %v4017_v41  ;;  %v1551_v50 = vadd.f32 %v14398_v42, %v1550_v22  ;;  %v3577_v58 = vadd.f32 %v14398_v42, %v3576_v27  ;;  %11780 = vmatprep.mubr.msk.f32.mxu0 %vm221_vm1, %v9559_v13  ;;  %12082 = vmatprep.mubr.msk.f32.mxu1 %vm221_vm1, %v9952_v16  ;;  %v9954_v13 = vld [vmem:[%s17747_s0 + $0x13e0] sm:$0xff] }
 0x1ee   :  { %17840 = vst [vmem:[#allocation90_spill] sm:$0xff] %v14896_v15  ;;  %v1994_v55 = vmax.f32 %v1556_v17, 0.0  ;;  %v4020_v2 = vmax.f32 %v3582_v31, 0.0 }
 0x1ef   :  { %17841 = vst [vmem:[#allocation91_spill] sm:$0xff] %v14902_v32  ;;  %v1993_v7 = vmax.f32 %v1551_v50, 0.0  ;;  %v4019_v16 = vmax.f32 %v3577_v58, 0.0  ;;  %v11313_v41 = vpop.f32.mrb[136].mxu0  ;;  %v11615_v47 = vpop.f32.mrb[136].mxu1  ;;  %v9562_v58 = vld [vmem:[%s17747_s0 + $0xdc8] sm:$0xff] }
 0x1f0   :  { %v14920_v54 = vmax.f32 %v1994_v55, %v4020_v2  ;;  %v1566_v22 = vadd.f32 %v14398_v42, %v11313_v41  ;;  %v3592_v27 = vadd.f32 %v14398_v42, %v11615_v47  ;;  %v1560_v17 = vpop.f32.mrb[137].mxu0  ;;  %v3586_v31 = vpop.f32.mrb[137].mxu1  ;;  %11781 = vmatmul.mubr.msk.f32.gmra.mrb[242].mxu0 %vm221_vm1, %v9560_v61  ;;  %12083 = vmatmul.mubr.msk.f32.gmra.mrb[242].mxu1 %vm221_vm1, %v9953_v29  ;;  %v9955_v61 = vld [vmem:[%s17747_s0 + $0x13e8] sm:$0xff]  ;;  %v9563_v2 = vld [vmem:[%s17747_s0 + $0xdd0] sm:$0xff] }
 0x1f1   :  { %v14926_v32 = vmax.f32 %v1993_v7, %v4019_v16  ;;  %v1561_v15 = vadd.f32 %v14398_v42, %v1560_v17  ;;  %v3587_v50 = vadd.f32 %v14398_v42, %v3586_v31  ;;  %11783 = vmatprep.mubr.msk.f32.mxu0 %vm221_vm1, %v9561_v10  ;;  %12085 = vmatprep.mubr.msk.f32.mxu1 %vm221_vm1, %v9954_v13  ;;  %v9956_v10 = vld [vmem:[%s17747_s0 + $0x13f0] sm:$0xff] }
 0x1f2   :  { %17842 = vst [vmem:[#allocation92_spill] sm:$0xff] %v14920_v54  ;;  %v1996_v55 = vmax.f32 %v1566_v22, 0.0  ;;  %v4022_v29 = vmax.f32 %v3592_v27, 0.0 }
 0x1f3   :  { %17843 = vst [vmem:[#allocation93_spill] sm:$0xff] %v14926_v32  ;;  %v1995_v7 = vmax.f32 %v1561_v15, 0.0  ;;  %v4021_v13 = vmax.f32 %v3587_v50, 0.0  ;;  %v11316_v16 = vpop.f32.mrb[138].mxu0  ;;  %v11618_v41 = vpop.f32.mrb[138].mxu1  ;;  %v9564_v50 = vld [vmem:[%s17747_s0 + $0xdd8] sm:$0xff] }
 0x1f4   :  { %v14944_v47 = vmax.f32 %v1996_v55, %v4022_v29  ;;  %v1576_v17 = vadd.f32 %v14398_v42, %v11316_v16  ;;  %v3602_v31 = vadd.f32 %v14398_v42, %v11618_v41  ;;  %v1570_v22 = vpop.f32.mrb[139].mxu0  ;;  %v3596_v27 = vpop.f32.mrb[139].mxu1  ;;  %11784 = vmatmul.mubr.msk.f32.gmra.mrb[244].mxu0 %vm221_vm1, %v9562_v58  ;;  %12086 = vmatmul.mubr.msk.f32.gmra.mrb[244].mxu1 %vm221_vm1, %v9955_v61  ;;  %v9957_v58 = vld [vmem:[%s17747_s0 + $0x13f8] sm:$0xff]  ;;  %v9565_v29 = vld [vmem:[%s17747_s0 + $0xde0] sm:$0xff] }
 0x1f5   :  { %v14950_v32 = vmax.f32 %v1995_v7, %v4021_v13  ;;  %v1571_v54 = vadd.f32 %v14398_v42, %v1570_v22  ;;  %v3597_v15 = vadd.f32 %v14398_v42, %v3596_v27  ;;  %11786 = vmatprep.mubr.msk.f32.mxu0 %vm221_vm1, %v9563_v2  ;;  %12088 = vmatprep.mubr.msk.f32.mxu1 %vm221_vm1, %v9956_v10  ;;  %v9958_v42 = vld [vmem:[%s17747_s0 + $0x1400] sm:$0xff] }
 0x1f6   :  { %17844 = vst [vmem:[#allocation94_spill] sm:$0xff] %v14944_v47  ;;  %v1998_v55 = vmax.f32 %v1576_v17, 0.0  ;;  %v4024_v61 = vmax.f32 %v3602_v31, 0.0  ;;  %v14973_v41 = vld [vmem:[%s17748_s2] ss:$0 sm:$0xff] }
 0x1f7   :  { %17845 = vst [vmem:[#allocation95_spill] sm:$0xff] %v14950_v32  ;;  %v1997_v2 = vmax.f32 %v1571_v54, 0.0  ;;  %v4023_v10 = vmax.f32 %v3597_v15, 0.0  ;;  %v11319_v7 = vpop.f32.mrb[140].mxu0  ;;  %v11621_v13 = vpop.f32.mrb[140].mxu1 }
 0x1f8   :  { %v14968_v16 = vmax.f32 %v1998_v55, %v4024_v61  ;;  %v1586_v17 = vadd.f32 %v14973_v41, %v11319_v7  ;;  %v3612_v31 = vadd.f32 %v14973_v41, %v11621_v13  ;;  %v1580_v22 = vpop.f32.mrb[141].mxu0  ;;  %v3606_v27 = vpop.f32.mrb[141].mxu1  ;;  %11787 = vmatmul.mubr.msk.f32.gmra.mrb[246].mxu0 %vm221_vm1, %v9564_v50  ;;  %12089 = vmatmul.mubr.msk.f32.gmra.mrb[246].mxu1 %vm221_vm1, %v9957_v58  ;;  %v9566_v61 = vld [vmem:[%s17747_s0 + $0xde8] sm:$0xff] }
 0x1f9   :  { %v14979_v54 = vmax.f32 %v1997_v2, %v4023_v10  ;;  %v1581_v15 = vadd.f32 %v14973_v41, %v1580_v22  ;;  %v3607_v55 = vadd.f32 %v14973_v41, %v3606_v27  ;;  %11789 = vmatprep.mubr.msk.f32.mxu0 %vm221_vm1, %v9565_v29  ;;  %12091 = vmatprep.mubr.msk.f32.mxu1 %vm221_vm1, %v9958_v42  ;;  %v9959_v50 = vld [vmem:[%s17747_s0 + $0x1408] sm:$0xff]  ;;  %v9567_v2 = vld [vmem:[%s17747_s0 + $0xdf0] sm:$0xff] }
 0x1fa   :  { %17846 = vst [vmem:[#allocation96_spill] sm:$0xff] %v14968_v16  ;;  %v2000_v7 = vmax.f32 %v1586_v17, 0.0  ;;  %v4026_v58 = vmax.f32 %v3612_v31, 0.0  ;;  %v9960_v29 = vld [vmem:[%s17747_s0 + $0x1410] sm:$0xff] }
 0x1fb   :  { %17847 = vst [vmem:[#allocation97_spill] sm:$0xff] %v14979_v54  ;;  %v1999_v10 = vmax.f32 %v1581_v15, 0.0  ;;  %v4025_v42 = vmax.f32 %v3607_v55, 0.0  ;;  %v11322_v13 = vpop.f32.mrb[142].mxu0  ;;  %v11624_v22 = vpop.f32.mrb[142].mxu1  ;;  %v9568_v55 = vld [vmem:[%s17747_s0 + $0xdf8] sm:$0xff] }
 0x1fc   :  { %v14997_v27 = vmax.f32 %v2000_v7, %v4026_v58  ;;  %v1596_v54 = vadd.f32 %v14973_v41, %v11322_v13  ;;  %v3622_v16 = vadd.f32 %v14973_v41, %v11624_v22  ;;  %v1590_v17 = vpop.f32.mrb[143].mxu0  ;;  %v3616_v31 = vpop.f32.mrb[143].mxu1  ;;  %11790 = vmatmul.mubr.msk.f32.gmra.mrb[248].mxu0 %vm221_vm1, %v9566_v61  ;;  %12092 = vmatmul.mubr.msk.f32.gmra.mrb[248].mxu1 %vm221_vm1, %v9959_v50  ;;  %v9961_v61 = vld [vmem:[%s17747_s0 + $0x1418] sm:$0xff]  ;;  %v9569_v58 = vld [vmem:[%s17747_s0 + $0xe00] sm:$0xff] }
 0x1fd   :  { %v15003_v32 = vmax.f32 %v1999_v10, %v4025_v42  ;;  %v1591_v47 = vadd.f32 %v14973_v41, %v1590_v17  ;;  %v3617_v15 = vadd.f32 %v14973_v41, %v3616_v31  ;;  %11792 = vmatprep.mubr.msk.f32.mxu0 %vm221_vm1, %v9567_v2  ;;  %12094 = vmatprep.mubr.msk.f32.mxu1 %vm221_vm1, %v9960_v29  ;;  %v9962_v2 = vld [vmem:[%s17747_s0 + $0x1420] sm:$0xff] }
 0x1fe   :  { %17848 = vst [vmem:[#allocation98_spill] sm:$0xff] %v14997_v27  ;;  %v2002_v7 = vmax.f32 %v1596_v54, 0.0  ;;  %v4028_v50 = vmax.f32 %v3622_v16, 0.0 }
 0x1ff   :  { %17849 = vst [vmem:[#allocation99_spill] sm:$0xff] %v15003_v32  ;;  %v2001_v10 = vmax.f32 %v1591_v47, 0.0  ;;  %v4027_v29 = vmax.f32 %v3617_v15, 0.0  ;;  %v11325_v42 = vpop.f32.mrb[144].mxu0  ;;  %v11627_v13 = vpop.f32.mrb[144].mxu1  ;;  %v9570_v15 = vld [vmem:[%s17747_s0 + $0xe08] sm:$0xff] }
 0x200   :  { %v15021_v22 = vmax.f32 %v2002_v7, %v4028_v50  ;;  %v1606_v17 = vadd.f32 %v14973_v41, %v11325_v42  ;;  %v3632_v31 = vadd.f32 %v14973_v41, %v11627_v13  ;;  %v1600_v54 = vpop.f32.mrb[145].mxu0  ;;  %v3626_v16 = vpop.f32.mrb[145].mxu1  ;;  %11793 = vmatmul.mubr.msk.f32.gmra.mrb[250].mxu0 %vm221_vm1, %v9568_v55  ;;  %12095 = vmatmul.mubr.msk.f32.gmra.mrb[250].mxu1 %vm221_vm1, %v9961_v61  ;;  %v9963_v55 = vld [vmem:[%s17747_s0 + $0x1428] sm:$0xff]  ;;  %v9571_v50 = vld [vmem:[%s17747_s0 + $0xe10] sm:$0xff] }
 0x201   :  { %v15027_v32 = vmax.f32 %v2001_v10, %v4027_v29  ;;  %v1601_v27 = vadd.f32 %v14973_v41, %v1600_v54  ;;  %v3627_v47 = vadd.f32 %v14973_v41, %v3626_v16  ;;  %11795 = vmatprep.mubr.msk.f32.mxu0 %vm221_vm1, %v9569_v58  ;;  %12097 = vmatprep.mubr.msk.f32.mxu1 %vm221_vm1, %v9962_v2  ;;  %v9964_v58 = vld [vmem:[%s17747_s0 + $0x1430] sm:$0xff] }
 0x202   :  { %17850 = vst [vmem:[#allocation100_spill] sm:$0xff] %v15021_v22  ;;  %v2004_v7 = vmax.f32 %v1606_v17, 0.0  ;;  %v4030_v61 = vmax.f32 %v3632_v31, 0.0 }
 0x203   :  { %17851 = vst [vmem:[#allocation101_spill] sm:$0xff] %v15027_v32  ;;  %v2003_v10 = vmax.f32 %v1601_v27, 0.0  ;;  %v4029_v2 = vmax.f32 %v3627_v47, 0.0  ;;  %v11328_v29 = vpop.f32.mrb[146].mxu0  ;;  %v11630_v42 = vpop.f32.mrb[146].mxu1  ;;  %v9572_v47 = vld [vmem:[%s17747_s0 + $0xe18] sm:$0xff] }
 0x204   :  { %v15045_v13 = vmax.f32 %v2004_v7, %v4030_v61  ;;  %v1616_v54 = vadd.f32 %v14973_v41, %v11328_v29  ;;  %v3642_v16 = vadd.f32 %v14973_v41, %v11630_v42  ;;  %v1610_v17 = vpop.f32.mrb[147].mxu0  ;;  %v3636_v31 = vpop.f32.mrb[147].mxu1  ;;  %11796 = vmatmul.mubr.msk.f32.gmra.mrb[252].mxu0 %vm221_vm1, %v9570_v15  ;;  %12098 = vmatmul.mubr.msk.f32.gmra.mrb[252].mxu1 %vm221_vm1, %v9963_v55  ;;  %v9965_v15 = vld [vmem:[%s17747_s0 + $0x1438] sm:$0xff]  ;;  %v9573_v61 = vld [vmem:[%s17747_s0 + $0xe20] sm:$0xff] }
 0x205   :  { %v15051_v32 = vmax.f32 %v2003_v10, %v4029_v2  ;;  %v1611_v22 = vadd.f32 %v14973_v41, %v1610_v17  ;;  %v3637_v27 = vadd.f32 %v14973_v41, %v3636_v31  ;;  %11798 = vmatprep.mubr.msk.f32.mxu0 %vm221_vm1, %v9571_v50  ;;  %12100 = vmatprep.mubr.msk.f32.mxu1 %vm221_vm1, %v9964_v58  ;;  %v9966_v50 = vld [vmem:[%s17747_s0 + $0x1440] sm:$0xff] }
 0x206   :  { %17852 = vst [vmem:[#allocation102_spill] sm:$0xff] %v15045_v13  ;;  %v2006_v7 = vmax.f32 %v1616_v54, 0.0  ;;  %v4032_v55 = vmax.f32 %v3642_v16, 0.0 }
 0x207   :  { %17853 = vst [vmem:[#allocation103_spill] sm:$0xff] %v15051_v32  ;;  %v2005_v10 = vmax.f32 %v1611_v22, 0.0  ;;  %v4031_v58 = vmax.f32 %v3637_v27, 0.0  ;;  %v11331_v2 = vpop.f32.mrb[148].mxu0  ;;  %v11633_v29 = vpop.f32.mrb[148].mxu1  ;;  %v9574_v27 = vld [vmem:[%s17747_s0 + $0xe28] sm:$0xff] }
 0x208   :  { %v15069_v42 = vmax.f32 %v2006_v7, %v4032_v55  ;;  %v1626_v17 = vadd.f32 %v14973_v41, %v11331_v2  ;;  %v3652_v31 = vadd.f32 %v14973_v41, %v11633_v29  ;;  %v1620_v54 = vpop.f32.mrb[149].mxu0  ;;  %v3646_v16 = vpop.f32.mrb[149].mxu1  ;;  %11799 = vmatmul.mubr.msk.f32.gmra.mrb[254].mxu0 %vm221_vm1, %v9572_v47  ;;  %12101 = vmatmul.mubr.msk.f32.gmra.mrb[254].mxu1 %vm221_vm1, %v9965_v15  ;;  %v9967_v47 = vld [vmem:[%s17747_s0 + $0x1448] sm:$0xff]  ;;  %v9575_v55 = vld [vmem:[%s17747_s0 + $0xe30] sm:$0xff] }
 0x209   :  { %v15075_v32 = vmax.f32 %v2005_v10, %v4031_v58  ;;  %v1621_v13 = vadd.f32 %v14973_v41, %v1620_v54  ;;  %v3647_v22 = vadd.f32 %v14973_v41, %v3646_v16  ;;  %11801 = vmatprep.mubr.msk.f32.mxu0 %vm221_vm1, %v9573_v61  ;;  %12103 = vmatprep.mubr.msk.f32.mxu1 %vm221_vm1, %v9966_v50  ;;  %v9968_v61 = vld [vmem:[%s17747_s0 + $0x1450] sm:$0xff] }
 0x20a   :  { %17854 = vst [vmem:[#allocation104_spill] sm:$0xff] %v15069_v42  ;;  %v2008_v7 = vmax.f32 %v1626_v17, 0.0  ;;  %v4034_v15 = vmax.f32 %v3652_v31, 0.0 }
 0x20b   :  { %17855 = vst [vmem:[#allocation105_spill] sm:$0xff] %v15075_v32  ;;  %v2007_v10 = vmax.f32 %v1621_v13, 0.0  ;;  %v4033_v50 = vmax.f32 %v3647_v22, 0.0  ;;  %v11334_v58 = vpop.f32.mrb[150].mxu0  ;;  %v11636_v2 = vpop.f32.mrb[150].mxu1  ;;  %v9576_v22 = vld [vmem:[%s17747_s0 + $0xe38] sm:$0xff] }
 0x20c   :  { %v15093_v29 = vmax.f32 %v2008_v7, %v4034_v15  ;;  %v1636_v54 = vadd.f32 %v14973_v41, %v11334_v58  ;;  %v3662_v16 = vadd.f32 %v14973_v41, %v11636_v2  ;;  %v1630_v17 = vpop.f32.mrb[151].mxu0  ;;  %v3656_v31 = vpop.f32.mrb[151].mxu1  ;;  %11802 = vmatmul.mubr.msk.f32.gmra.mrb[0].mxu0 %vm221_vm1, %v9574_v27  ;;  %12104 = vmatmul.mubr.msk.f32.gmra.mrb[0].mxu1 %vm221_vm1, %v9967_v47  ;;  %v9969_v27 = vld [vmem:[%s17747_s0 + $0x1458] sm:$0xff]  ;;  %v9577_v15 = vld [vmem:[%s17747_s0 + $0xe40] sm:$0xff] }
 0x20d   :  { %v15099_v32 = vmax.f32 %v2007_v10, %v4033_v50  ;;  %v1631_v42 = vadd.f32 %v14973_v41, %v1630_v17  ;;  %v3657_v13 = vadd.f32 %v14973_v41, %v3656_v31  ;;  %11804 = vmatprep.mubr.msk.f32.mxu0 %vm221_vm1, %v9575_v55  ;;  %12106 = vmatprep.mubr.msk.f32.mxu1 %vm221_vm1, %v9968_v61  ;;  %v9970_v55 = vld [vmem:[%s17747_s0 + $0x1460] sm:$0xff] }
 0x20e   :  { %17856 = vst [vmem:[#allocation106_spill] sm:$0xff] %v15093_v29  ;;  %v2010_v7 = vmax.f32 %v1636_v54, 0.0  ;;  %v4036_v47 = vmax.f32 %v3662_v16, 0.0 }
 0x20f   :  { %17857 = vst [vmem:[#allocation107_spill] sm:$0xff] %v15099_v32  ;;  %v2009_v10 = vmax.f32 %v1631_v42, 0.0  ;;  %v4035_v61 = vmax.f32 %v3657_v13, 0.0  ;;  %v11337_v50 = vpop.f32.mrb[152].mxu0  ;;  %v11639_v58 = vpop.f32.mrb[152].mxu1  ;;  %v9578_v13 = vld [vmem:[%s17747_s0 + $0xe48] sm:$0xff] }
 0x210   :  { %v15117_v2 = vmax.f32 %v2010_v7, %v4036_v47  ;;  %v1646_v17 = vadd.f32 %v14973_v41, %v11337_v50  ;;  %v3672_v31 = vadd.f32 %v14973_v41, %v11639_v58  ;;  %v1640_v54 = vpop.f32.mrb[153].mxu0  ;;  %v3666_v16 = vpop.f32.mrb[153].mxu1  ;;  %11805 = vmatmul.mubr.msk.f32.gmra.mrb[2].mxu0 %vm221_vm1, %v9576_v22  ;;  %12107 = vmatmul.mubr.msk.f32.gmra.mrb[2].mxu1 %vm221_vm1, %v9969_v27  ;;  %v9971_v22 = vld [vmem:[%s17747_s0 + $0x1468] sm:$0xff]  ;;  %v9579_v47 = vld [vmem:[%s17747_s0 + $0xe50] sm:$0xff] }
 0x211   :  { %v15123_v32 = vmax.f32 %v2009_v10, %v4035_v61  ;;  %v1641_v29 = vadd.f32 %v14973_v41, %v1640_v54  ;;  %v3667_v42 = vadd.f32 %v14973_v41, %v3666_v16  ;;  %11807 = vmatprep.mubr.msk.f32.mxu0 %vm221_vm1, %v9577_v15  ;;  %12109 = vmatprep.mubr.msk.f32.mxu1 %vm221_vm1, %v9970_v55  ;;  %v9972_v15 = vld [vmem:[%s17747_s0 + $0x1470] sm:$0xff] }
 0x212   :  { %17858 = vst [vmem:[#allocation108_spill] sm:$0xff] %v15117_v2  ;;  %v2012_v7 = vmax.f32 %v1646_v17, 0.0  ;;  %v4038_v27 = vmax.f32 %v3672_v31, 0.0 }
 0x213   :  { %17859 = vst [vmem:[#allocation109_spill] sm:$0xff] %v15123_v32  ;;  %v2011_v10 = vmax.f32 %v1641_v29, 0.0  ;;  %v4037_v55 = vmax.f32 %v3667_v42, 0.0  ;;  %v11340_v61 = vpop.f32.mrb[154].mxu0  ;;  %v11642_v50 = vpop.f32.mrb[154].mxu1  ;;  %v9580_v42 = vld [vmem:[%s17747_s0 + $0xe58] sm:$0xff] }
 0x214   :  { %v15141_v58 = vmax.f32 %v2012_v7, %v4038_v27  ;;  %v1656_v54 = vadd.f32 %v14973_v41, %v11340_v61  ;;  %v3682_v16 = vadd.f32 %v14973_v41, %v11642_v50  ;;  %v1650_v17 = vpop.f32.mrb[155].mxu0  ;;  %v3676_v31 = vpop.f32.mrb[155].mxu1  ;;  %11808 = vmatmul.mubr.msk.f32.gmra.mrb[4].mxu0 %vm221_vm1, %v9578_v13  ;;  %12110 = vmatmul.mubr.msk.f32.gmra.mrb[4].mxu1 %vm221_vm1, %v9971_v22  ;;  %v9973_v13 = vld [vmem:[%s17747_s0 + $0x1478] sm:$0xff]  ;;  %v9581_v27 = vld [vmem:[%s17747_s0 + $0xe60] sm:$0xff] }
 0x215   :  { %v15147_v32 = vmax.f32 %v2011_v10, %v4037_v55  ;;  %v1651_v2 = vadd.f32 %v14973_v41, %v1650_v17  ;;  %v3677_v29 = vadd.f32 %v14973_v41, %v3676_v31  ;;  %11810 = vmatprep.mubr.msk.f32.mxu0 %vm221_vm1, %v9579_v47  ;;  %12112 = vmatprep.mubr.msk.f32.mxu1 %vm221_vm1, %v9972_v15  ;;  %v9974_v47 = vld [vmem:[%s17747_s0 + $0x1480] sm:$0xff] }
 0x216   :  { %17860 = vst [vmem:[#allocation110_spill] sm:$0xff] %v15141_v58  ;;  %v2014_v7 = vmax.f32 %v1656_v54, 0.0  ;;  %v4040_v22 = vmax.f32 %v3682_v16, 0.0 }
 0x217   :  { %17861 = vst [vmem:[#allocation111_spill] sm:$0xff] %v15147_v32  ;;  %v2013_v10 = vmax.f32 %v1651_v2, 0.0  ;;  %v4039_v15 = vmax.f32 %v3677_v29, 0.0  ;;  %v11343_v55 = vpop.f32.mrb[156].mxu0  ;;  %v11645_v61 = vpop.f32.mrb[156].mxu1  ;;  %v9582_v29 = vld [vmem:[%s17747_s0 + $0xe68] sm:$0xff] }
 0x218   :  { %v15165_v50 = vmax.f32 %v2014_v7, %v4040_v22  ;;  %v1666_v17 = vadd.f32 %v14973_v41, %v11343_v55  ;;  %v3692_v31 = vadd.f32 %v14973_v41, %v11645_v61  ;;  %v1660_v54 = vpop.f32.mrb[157].mxu0  ;;  %v3686_v16 = vpop.f32.mrb[157].mxu1  ;;  %11811 = vmatmul.mubr.msk.f32.gmra.mrb[6].mxu0 %vm221_vm1, %v9580_v42  ;;  %12113 = vmatmul.mubr.msk.f32.gmra.mrb[6].mxu1 %vm221_vm1, %v9973_v13  ;;  %v9975_v42 = vld [vmem:[%s17747_s0 + $0x1488] sm:$0xff]  ;;  %v9583_v22 = vld [vmem:[%s17747_s0 + $0xe70] sm:$0xff] }
 0x219   :  { %v15171_v32 = vmax.f32 %v2013_v10, %v4039_v15  ;;  %v1661_v58 = vadd.f32 %v14973_v41, %v1660_v54  ;;  %v3687_v2 = vadd.f32 %v14973_v41, %v3686_v16  ;;  %11813 = vmatprep.mubr.msk.f32.mxu0 %vm221_vm1, %v9581_v27  ;;  %12115 = vmatprep.mubr.msk.f32.mxu1 %vm221_vm1, %v9974_v47  ;;  %v9976_v27 = vld [vmem:[%s17747_s0 + $0x1490] sm:$0xff] }
 0x21a   :  { %17862 = vst [vmem:[#allocation112_spill] sm:$0xff] %v15165_v50  ;;  %v2016_v7 = vmax.f32 %v1666_v17, 0.0  ;;  %v4042_v13 = vmax.f32 %v3692_v31, 0.0 }
 0x21b   :  { %17863 = vst [vmem:[#allocation113_spill] sm:$0xff] %v15171_v32  ;;  %v2015_v10 = vmax.f32 %v1661_v58, 0.0  ;;  %v4041_v47 = vmax.f32 %v3687_v2, 0.0  ;;  %v11346_v15 = vpop.f32.mrb[158].mxu0  ;;  %v11648_v55 = vpop.f32.mrb[158].mxu1  ;;  %v9584_v2 = vld [vmem:[%s17747_s0 + $0xe78] sm:$0xff] }
 0x21c   :  { %v15189_v61 = vmax.f32 %v2016_v7, %v4042_v13  ;;  %v1676_v54 = vadd.f32 %v14973_v41, %v11346_v15  ;;  %v3702_v16 = vadd.f32 %v14973_v41, %v11648_v55  ;;  %v1670_v17 = vpop.f32.mrb[159].mxu0  ;;  %v3696_v31 = vpop.f32.mrb[159].mxu1  ;;  %11814 = vmatmul.mubr.msk.f32.gmra.mrb[8].mxu0 %vm221_vm1, %v9582_v29  ;;  %12116 = vmatmul.mubr.msk.f32.gmra.mrb[8].mxu1 %vm221_vm1, %v9975_v42  ;;  %v9977_v29 = vld [vmem:[%s17747_s0 + $0x1498] sm:$0xff]  ;;  %v9585_v13 = vld [vmem:[%s17747_s0 + $0xe80] sm:$0xff] }
 0x21d   :  { %v15195_v32 = vmax.f32 %v2015_v10, %v4041_v47  ;;  %v1671_v50 = vadd.f32 %v14973_v41, %v1670_v17  ;;  %v3697_v58 = vadd.f32 %v14973_v41, %v3696_v31  ;;  %11816 = vmatprep.mubr.msk.f32.mxu0 %vm221_vm1, %v9583_v22  ;;  %12118 = vmatprep.mubr.msk.f32.mxu1 %vm221_vm1, %v9976_v27  ;;  %v9978_v22 = vld [vmem:[%s17747_s0 + $0x14a0] sm:$0xff] }
 0x21e   :  { %17864 = vst [vmem:[#allocation114_spill] sm:$0xff] %v15189_v61  ;;  %v2018_v7 = vmax.f32 %v1676_v54, 0.0  ;;  %v4044_v42 = vmax.f32 %v3702_v16, 0.0 }
 0x21f   :  { %17865 = vst [vmem:[#allocation115_spill] sm:$0xff] %v15195_v32  ;;  %v2017_v10 = vmax.f32 %v1671_v50, 0.0  ;;  %v4043_v27 = vmax.f32 %v3697_v58, 0.0  ;;  %v11349_v47 = vpop.f32.mrb[160].mxu0  ;;  %v11651_v15 = vpop.f32.mrb[160].mxu1  ;;  %v9586_v58 = vld [vmem:[%s17747_s0 + $0xe88] sm:$0xff] }
 0x220   :  { %v15213_v55 = vmax.f32 %v2018_v7, %v4044_v42  ;;  %v1686_v17 = vadd.f32 %v14973_v41, %v11349_v47  ;;  %v3712_v31 = vadd.f32 %v14973_v41, %v11651_v15  ;;  %v1680_v54 = vpop.f32.mrb[161].mxu0  ;;  %v3706_v16 = vpop.f32.mrb[161].mxu1  ;;  %11817 = vmatmul.mubr.msk.f32.gmra.mrb[10].mxu0 %vm221_vm1, %v9584_v2  ;;  %12119 = vmatmul.mubr.msk.f32.gmra.mrb[10].mxu1 %vm221_vm1, %v9977_v29  ;;  %v9979_v2 = vld [vmem:[%s17747_s0 + $0x14a8] sm:$0xff]  ;;  %v9587_v42 = vld [vmem:[%s17747_s0 + $0xe90] sm:$0xff] }
 0x221   :  { %v15219_v32 = vmax.f32 %v2017_v10, %v4043_v27  ;;  %v1681_v61 = vadd.f32 %v14973_v41, %v1680_v54  ;;  %v3707_v50 = vadd.f32 %v14973_v41, %v3706_v16  ;;  %11819 = vmatprep.mubr.msk.f32.mxu0 %vm221_vm1, %v9585_v13  ;;  %12121 = vmatprep.mubr.msk.f32.mxu1 %vm221_vm1, %v9978_v22  ;;  %v9980_v13 = vld [vmem:[%s17747_s0 + $0x14b0] sm:$0xff] }
 0x222   :  { %17866 = vst [vmem:[#allocation116_spill] sm:$0xff] %v15213_v55  ;;  %v2020_v7 = vmax.f32 %v1686_v17, 0.0  ;;  %v4046_v29 = vmax.f32 %v3712_v31, 0.0 }
 0x223   :  { %17867 = vst [vmem:[#allocation117_spill] sm:$0xff] %v15219_v32  ;;  %v2019_v10 = vmax.f32 %v1681_v61, 0.0  ;;  %v4045_v22 = vmax.f32 %v3707_v50, 0.0  ;;  %v11352_v27 = vpop.f32.mrb[162].mxu0  ;;  %v11654_v47 = vpop.f32.mrb[162].mxu1  ;;  %v9588_v50 = vld [vmem:[%s17747_s0 + $0xe98] sm:$0xff] }
 0x224   :  { %v15237_v15 = vmax.f32 %v2020_v7, %v4046_v29  ;;  %v1696_v54 = vadd.f32 %v14973_v41, %v11352_v27  ;;  %v3722_v16 = vadd.f32 %v14973_v41, %v11654_v47  ;;  %v1690_v17 = vpop.f32.mrb[163].mxu0  ;;  %v3716_v31 = vpop.f32.mrb[163].mxu1  ;;  %11820 = vmatmul.mubr.msk.f32.gmra.mrb[12].mxu0 %vm221_vm1, %v9586_v58  ;;  %12122 = vmatmul.mubr.msk.f32.gmra.mrb[12].mxu1 %vm221_vm1, %v9979_v2  ;;  %v9981_v58 = vld [vmem:[%s17747_s0 + $0x14b8] sm:$0xff]  ;;  %v9589_v29 = vld [vmem:[%s17747_s0 + $0xea0] sm:$0xff] }
 0x225   :  { %v15243_v32 = vmax.f32 %v2019_v10, %v4045_v22  ;;  %v1691_v55 = vadd.f32 %v14973_v41, %v1690_v17  ;;  %v3717_v61 = vadd.f32 %v14973_v41, %v3716_v31  ;;  %11822 = vmatprep.mubr.msk.f32.mxu0 %vm221_vm1, %v9587_v42  ;;  %12124 = vmatprep.mubr.msk.f32.mxu1 %vm221_vm1, %v9980_v13  ;;  %v9982_v42 = vld [vmem:[%s17747_s0 + $0x14c0] sm:$0xff] }
 0x226   :  { %17868 = vst [vmem:[#allocation118_spill] sm:$0xff] %v15237_v15  ;;  %v2022_v7 = vmax.f32 %v1696_v54, 0.0  ;;  %v4048_v2 = vmax.f32 %v3722_v16, 0.0 }
 0x227   :  { %17869 = vst [vmem:[#allocation119_spill] sm:$0xff] %v15243_v32  ;;  %v2021_v10 = vmax.f32 %v1691_v55, 0.0  ;;  %v4047_v13 = vmax.f32 %v3717_v61, 0.0  ;;  %v11355_v22 = vpop.f32.mrb[164].mxu0  ;;  %v11657_v27 = vpop.f32.mrb[164].mxu1  ;;  %v9590_v61 = vld [vmem:[%s17747_s0 + $0xea8] sm:$0xff] }
 0x228   :  { %v15261_v47 = vmax.f32 %v2022_v7, %v4048_v2  ;;  %v1706_v17 = vadd.f32 %v14973_v41, %v11355_v22  ;;  %v3732_v31 = vadd.f32 %v14973_v41, %v11657_v27  ;;  %v1700_v54 = vpop.f32.mrb[165].mxu0  ;;  %v3726_v16 = vpop.f32.mrb[165].mxu1  ;;  %11823 = vmatmul.mubr.msk.f32.gmra.mrb[14].mxu0 %vm221_vm1, %v9588_v50  ;;  %12125 = vmatmul.mubr.msk.f32.gmra.mrb[14].mxu1 %vm221_vm1, %v9981_v58  ;;  %v9983_v50 = vld [vmem:[%s17747_s0 + $0x14c8] sm:$0xff]  ;;  %v9591_v2 = vld [vmem:[%s17747_s0 + $0xeb0] sm:$0xff] }
 0x229   :  { %v15267_v32 = vmax.f32 %v2021_v10, %v4047_v13  ;;  %v1701_v15 = vadd.f32 %v14973_v41, %v1700_v54  ;;  %v3727_v55 = vadd.f32 %v14973_v41, %v3726_v16  ;;  %11825 = vmatprep.mubr.msk.f32.mxu0 %vm221_vm1, %v9589_v29  ;;  %12127 = vmatprep.mubr.msk.f32.mxu1 %vm221_vm1, %v9982_v42  ;;  %v9984_v29 = vld [vmem:[%s17747_s0 + $0x14d0] sm:$0xff] }
 0x22a   :  { %17870 = vst [vmem:[#allocation120_spill] sm:$0xff] %v15261_v47  ;;  %v2024_v7 = vmax.f32 %v1706_v17, 0.0  ;;  %v4050_v58 = vmax.f32 %v3732_v31, 0.0 }
 0x22b   :  { %17871 = vst [vmem:[#allocation121_spill] sm:$0xff] %v15267_v32  ;;  %v2023_v10 = vmax.f32 %v1701_v15, 0.0  ;;  %v4049_v42 = vmax.f32 %v3727_v55, 0.0  ;;  %v11358_v13 = vpop.f32.mrb[166].mxu0  ;;  %v11660_v22 = vpop.f32.mrb[166].mxu1  ;;  %v9592_v55 = vld [vmem:[%s17747_s0 + $0xeb8] sm:$0xff] }
 0x22c   :  { %v15285_v27 = vmax.f32 %v2024_v7, %v4050_v58  ;;  %v1716_v54 = vadd.f32 %v14973_v41, %v11358_v13  ;;  %v3742_v16 = vadd.f32 %v14973_v41, %v11660_v22  ;;  %v1710_v17 = vpop.f32.mrb[167].mxu0  ;;  %v3736_v31 = vpop.f32.mrb[167].mxu1  ;;  %11826 = vmatmul.mubr.msk.f32.gmra.mrb[16].mxu0 %vm221_vm1, %v9590_v61  ;;  %12128 = vmatmul.mubr.msk.f32.gmra.mrb[16].mxu1 %vm221_vm1, %v9983_v50  ;;  %v9985_v61 = vld [vmem:[%s17747_s0 + $0x14d8] sm:$0xff]  ;;  %v9593_v58 = vld [vmem:[%s17747_s0 + $0xec0] sm:$0xff] }
 0x22d   :  { %v15291_v32 = vmax.f32 %v2023_v10, %v4049_v42  ;;  %v1711_v47 = vadd.f32 %v14973_v41, %v1710_v17  ;;  %v3737_v15 = vadd.f32 %v14973_v41, %v3736_v31  ;;  %11828 = vmatprep.mubr.msk.f32.mxu0 %vm221_vm1, %v9591_v2  ;;  %12130 = vmatprep.mubr.msk.f32.mxu1 %vm221_vm1, %v9984_v29  ;;  %v9986_v2 = vld [vmem:[%s17747_s0 + $0x14e0] sm:$0xff] }
 0x22e   :  { %17872 = vst [vmem:[#allocation122_spill] sm:$0xff] %v15285_v27  ;;  %v2026_v7 = vmax.f32 %v1716_v54, 0.0  ;;  %v4052_v50 = vmax.f32 %v3742_v16, 0.0 }
 0x22f   :  { %17873 = vst [vmem:[#allocation123_spill] sm:$0xff] %v15291_v32  ;;  %v2025_v10 = vmax.f32 %v1711_v47, 0.0  ;;  %v4051_v29 = vmax.f32 %v3737_v15, 0.0  ;;  %v11361_v42 = vpop.f32.mrb[168].mxu0  ;;  %v11663_v13 = vpop.f32.mrb[168].mxu1  ;;  %v9594_v15 = vld [vmem:[%s17747_s0 + $0xec8] sm:$0xff] }
 0x230   :  { %v15309_v22 = vmax.f32 %v2026_v7, %v4052_v50  ;;  %v1726_v17 = vadd.f32 %v14973_v41, %v11361_v42  ;;  %v3752_v31 = vadd.f32 %v14973_v41, %v11663_v13  ;;  %v1720_v54 = vpop.f32.mrb[169].mxu0  ;;  %v3746_v16 = vpop.f32.mrb[169].mxu1  ;;  %11829 = vmatmul.mubr.msk.f32.gmra.mrb[18].mxu0 %vm221_vm1, %v9592_v55  ;;  %12131 = vmatmul.mubr.msk.f32.gmra.mrb[18].mxu1 %vm221_vm1, %v9985_v61  ;;  %v9987_v55 = vld [vmem:[%s17747_s0 + $0x14e8] sm:$0xff]  ;;  %v9595_v50 = vld [vmem:[%s17747_s0 + $0xed0] sm:$0xff] }
 0x231   :  { %v15315_v32 = vmax.f32 %v2025_v10, %v4051_v29  ;;  %v1721_v27 = vadd.f32 %v14973_v41, %v1720_v54  ;;  %v3747_v47 = vadd.f32 %v14973_v41, %v3746_v16  ;;  %11831 = vmatprep.mubr.msk.f32.mxu0 %vm221_vm1, %v9593_v58  ;;  %12133 = vmatprep.mubr.msk.f32.mxu1 %vm221_vm1, %v9986_v2  ;;  %v9988_v58 = vld [vmem:[%s17747_s0 + $0x14f0] sm:$0xff] }
 0x232   :  { %17874 = vst [vmem:[#allocation124_spill] sm:$0xff] %v15309_v22  ;;  %v2028_v7 = vmax.f32 %v1726_v17, 0.0  ;;  %v4054_v61 = vmax.f32 %v3752_v31, 0.0 }
 0x233   :  { %17875 = vst [vmem:[#allocation125_spill] sm:$0xff] %v15315_v32  ;;  %v2027_v10 = vmax.f32 %v1721_v27, 0.0  ;;  %v4053_v2 = vmax.f32 %v3747_v47, 0.0  ;;  %v11364_v29 = vpop.f32.mrb[170].mxu0  ;;  %v11666_v42 = vpop.f32.mrb[170].mxu1  ;;  %v9596_v47 = vld [vmem:[%s17747_s0 + $0xed8] sm:$0xff] }
 0x234   :  { %v15333_v13 = vmax.f32 %v2028_v7, %v4054_v61  ;;  %v1736_v54 = vadd.f32 %v14973_v41, %v11364_v29  ;;  %v3762_v16 = vadd.f32 %v14973_v41, %v11666_v42  ;;  %v1730_v17 = vpop.f32.mrb[171].mxu0  ;;  %v3756_v31 = vpop.f32.mrb[171].mxu1  ;;  %11832 = vmatmul.mubr.msk.f32.gmra.mrb[20].mxu0 %vm221_vm1, %v9594_v15  ;;  %12134 = vmatmul.mubr.msk.f32.gmra.mrb[20].mxu1 %vm221_vm1, %v9987_v55  ;;  %v9989_v15 = vld [vmem:[%s17747_s0 + $0x14f8] sm:$0xff]  ;;  %v9597_v61 = vld [vmem:[%s17747_s0 + $0xee0] sm:$0xff] }
 0x235   :  { %v15339_v32 = vmax.f32 %v2027_v10, %v4053_v2  ;;  %v1731_v22 = vadd.f32 %v14973_v41, %v1730_v17  ;;  %v3757_v27 = vadd.f32 %v14973_v41, %v3756_v31  ;;  %11834 = vmatprep.mubr.msk.f32.mxu0 %vm221_vm1, %v9595_v50  ;;  %12136 = vmatprep.mubr.msk.f32.mxu1 %vm221_vm1, %v9988_v58  ;;  %v9990_v50 = vld [vmem:[%s17747_s0 + $0x1500] sm:$0xff] }
 0x236   :  { %17876 = vst [vmem:[#allocation126_spill] sm:$0xff] %v15333_v13  ;;  %v2030_v7 = vmax.f32 %v1736_v54, 0.0  ;;  %v4056_v55 = vmax.f32 %v3762_v16, 0.0 }
 0x237   :  { %17877 = vst [vmem:[#allocation127_spill] sm:$0xff] %v15339_v32  ;;  %v2029_v10 = vmax.f32 %v1731_v22, 0.0  ;;  %v4055_v58 = vmax.f32 %v3757_v27, 0.0  ;;  %v11367_v2 = vpop.f32.mrb[172].mxu0  ;;  %v11669_v29 = vpop.f32.mrb[172].mxu1  ;;  %v9598_v27 = vld [vmem:[%s17747_s0 + $0xee8] sm:$0xff] }
 0x238   :  { %v15357_v42 = vmax.f32 %v2030_v7, %v4056_v55  ;;  %v1746_v17 = vadd.f32 %v14973_v41, %v11367_v2  ;;  %v3772_v31 = vadd.f32 %v14973_v41, %v11669_v29  ;;  %v1740_v54 = vpop.f32.mrb[173].mxu0  ;;  %v3766_v16 = vpop.f32.mrb[173].mxu1  ;;  %11835 = vmatmul.mubr.msk.f32.gmra.mrb[22].mxu0 %vm221_vm1, %v9596_v47  ;;  %12137 = vmatmul.mubr.msk.f32.gmra.mrb[22].mxu1 %vm221_vm1, %v9989_v15  ;;  %v9991_v47 = vld [vmem:[%s17747_s0 + $0x1508] sm:$0xff]  ;;  %v9599_v55 = vld [vmem:[%s17747_s0 + $0xef0] sm:$0xff] }
 0x239   :  { %v15363_v32 = vmax.f32 %v2029_v10, %v4055_v58  ;;  %v1741_v13 = vadd.f32 %v14973_v41, %v1740_v54  ;;  %v3767_v22 = vadd.f32 %v14973_v41, %v3766_v16  ;;  %11837 = vmatprep.mubr.msk.f32.mxu0 %vm221_vm1, %v9597_v61  ;;  %12139 = vmatprep.mubr.msk.f32.mxu1 %vm221_vm1, %v9990_v50  ;;  %v9992_v61 = vld [vmem:[%s17747_s0 + $0x1510] sm:$0xff] }
 0x23a   :  { %17878 = vst [vmem:[#allocation128_spill] sm:$0xff] %v15357_v42  ;;  %v2032_v7 = vmax.f32 %v1746_v17, 0.0  ;;  %v4058_v15 = vmax.f32 %v3772_v31, 0.0 }
 0x23b   :  { %17879 = vst [vmem:[#allocation129_spill] sm:$0xff] %v15363_v32  ;;  %v2031_v10 = vmax.f32 %v1741_v13, 0.0  ;;  %v4057_v50 = vmax.f32 %v3767_v22, 0.0  ;;  %v11370_v58 = vpop.f32.mrb[174].mxu0  ;;  %v11672_v2 = vpop.f32.mrb[174].mxu1  ;;  %v9600_v22 = vld [vmem:[%s17747_s0 + $0xef8] sm:$0xff] }
 0x23c   :  { %v15381_v29 = vmax.f32 %v2032_v7, %v4058_v15  ;;  %v1756_v54 = vadd.f32 %v14973_v41, %v11370_v58  ;;  %v3782_v16 = vadd.f32 %v14973_v41, %v11672_v2  ;;  %v1750_v17 = vpop.f32.mrb[175].mxu0  ;;  %v3776_v31 = vpop.f32.mrb[175].mxu1  ;;  %11838 = vmatmul.mubr.msk.f32.gmra.mrb[24].mxu0 %vm221_vm1, %v9598_v27  ;;  %12140 = vmatmul.mubr.msk.f32.gmra.mrb[24].mxu1 %vm221_vm1, %v9991_v47  ;;  %v9993_v27 = vld [vmem:[%s17747_s0 + $0x1518] sm:$0xff]  ;;  %v9601_v15 = vld [vmem:[%s17747_s0 + $0xf00] sm:$0xff] }
 0x23d   :  { %v15387_v32 = vmax.f32 %v2031_v10, %v4057_v50  ;;  %v1751_v42 = vadd.f32 %v14973_v41, %v1750_v17  ;;  %v3777_v13 = vadd.f32 %v14973_v41, %v3776_v31  ;;  %11840 = vmatprep.mubr.msk.f32.mxu0 %vm221_vm1, %v9599_v55  ;;  %12142 = vmatprep.mubr.msk.f32.mxu1 %vm221_vm1, %v9992_v61  ;;  %v9994_v55 = vld [vmem:[%s17747_s0 + $0x1520] sm:$0xff] }
 0x23e   :  { %17880 = vst [vmem:[#allocation130_spill] sm:$0xff] %v15381_v29  ;;  %v2034_v7 = vmax.f32 %v1756_v54, 0.0  ;;  %v4060_v47 = vmax.f32 %v3782_v16, 0.0 }
 0x23f   :  { %17881 = vst [vmem:[#allocation131_spill] sm:$0xff] %v15387_v32  ;;  %v2033_v10 = vmax.f32 %v1751_v42, 0.0  ;;  %v4059_v61 = vmax.f32 %v3777_v13, 0.0  ;;  %v11373_v50 = vpop.f32.mrb[176].mxu0  ;;  %v11675_v58 = vpop.f32.mrb[176].mxu1  ;;  %v9602_v13 = vld [vmem:[%s17747_s0 + $0xf08] sm:$0xff] }
 0x240   :  { %v15405_v2 = vmax.f32 %v2034_v7, %v4060_v47  ;;  %v1766_v17 = vadd.f32 %v14973_v41, %v11373_v50  ;;  %v3792_v31 = vadd.f32 %v14973_v41, %v11675_v58  ;;  %v1760_v54 = vpop.f32.mrb[177].mxu0  ;;  %v3786_v16 = vpop.f32.mrb[177].mxu1  ;;  %11841 = vmatmul.mubr.msk.f32.gmra.mrb[26].mxu0 %vm221_vm1, %v9600_v22  ;;  %12143 = vmatmul.mubr.msk.f32.gmra.mrb[26].mxu1 %vm221_vm1, %v9993_v27  ;;  %v9995_v22 = vld [vmem:[%s17747_s0 + $0x1528] sm:$0xff]  ;;  %v9603_v47 = vld [vmem:[%s17747_s0 + $0xf10] sm:$0xff] }
 0x241   :  { %v15411_v32 = vmax.f32 %v2033_v10, %v4059_v61  ;;  %v1761_v29 = vadd.f32 %v14973_v41, %v1760_v54  ;;  %v3787_v42 = vadd.f32 %v14973_v41, %v3786_v16  ;;  %11843 = vmatprep.mubr.msk.f32.mxu0 %vm221_vm1, %v9601_v15  ;;  %12145 = vmatprep.mubr.msk.f32.mxu1 %vm221_vm1, %v9994_v55  ;;  %v9996_v15 = vld [vmem:[%s17747_s0 + $0x1530] sm:$0xff] }
 0x242   :  { %17882 = vst [vmem:[#allocation132_spill] sm:$0xff] %v15405_v2  ;;  %v2036_v7 = vmax.f32 %v1766_v17, 0.0  ;;  %v4062_v27 = vmax.f32 %v3792_v31, 0.0 }
 0x243   :  { %17883 = vst [vmem:[#allocation133_spill] sm:$0xff] %v15411_v32  ;;  %v2035_v10 = vmax.f32 %v1761_v29, 0.0  ;;  %v4061_v55 = vmax.f32 %v3787_v42, 0.0  ;;  %v11376_v61 = vpop.f32.mrb[178].mxu0  ;;  %v11678_v50 = vpop.f32.mrb[178].mxu1  ;;  %v9604_v42 = vld [vmem:[%s17747_s0 + $0xf18] sm:$0xff] }
 0x244   :  { %v15429_v58 = vmax.f32 %v2036_v7, %v4062_v27  ;;  %v1776_v54 = vadd.f32 %v14973_v41, %v11376_v61  ;;  %v3802_v16 = vadd.f32 %v14973_v41, %v11678_v50  ;;  %v1770_v17 = vpop.f32.mrb[179].mxu0  ;;  %v3796_v31 = vpop.f32.mrb[179].mxu1  ;;  %11844 = vmatmul.mubr.msk.f32.gmra.mrb[28].mxu0 %vm221_vm1, %v9602_v13  ;;  %12146 = vmatmul.mubr.msk.f32.gmra.mrb[28].mxu1 %vm221_vm1, %v9995_v22  ;;  %v9997_v13 = vld [vmem:[%s17747_s0 + $0x1538] sm:$0xff]  ;;  %v9605_v27 = vld [vmem:[%s17747_s0 + $0xf20] sm:$0xff] }
 0x245   :  { %v15435_v32 = vmax.f32 %v2035_v10, %v4061_v55  ;;  %v1771_v2 = vadd.f32 %v14973_v41, %v1770_v17  ;;  %v3797_v29 = vadd.f32 %v14973_v41, %v3796_v31  ;;  %11846 = vmatprep.mubr.msk.f32.mxu0 %vm221_vm1, %v9603_v47  ;;  %12148 = vmatprep.mubr.msk.f32.mxu1 %vm221_vm1, %v9996_v15  ;;  %v9998_v47 = vld [vmem:[%s17747_s0 + $0x1540] sm:$0xff] }
 0x246   :  { %17884 = vst [vmem:[#allocation134_spill] sm:$0xff] %v15429_v58  ;;  %v2038_v7 = vmax.f32 %v1776_v54, 0.0  ;;  %v4064_v22 = vmax.f32 %v3802_v16, 0.0 }
 0x247   :  { %17885 = vst [vmem:[#allocation135_spill] sm:$0xff] %v15435_v32  ;;  %v2037_v10 = vmax.f32 %v1771_v2, 0.0  ;;  %v4063_v15 = vmax.f32 %v3797_v29, 0.0  ;;  %v11379_v55 = vpop.f32.mrb[180].mxu0  ;;  %v11681_v61 = vpop.f32.mrb[180].mxu1  ;;  %v9606_v29 = vld [vmem:[%s17747_s0 + $0xf28] sm:$0xff] }
 0x248   :  { %v15453_v50 = vmax.f32 %v2038_v7, %v4064_v22  ;;  %v1786_v17 = vadd.f32 %v14973_v41, %v11379_v55  ;;  %v3812_v31 = vadd.f32 %v14973_v41, %v11681_v61  ;;  %v1780_v54 = vpop.f32.mrb[181].mxu0  ;;  %v3806_v16 = vpop.f32.mrb[181].mxu1  ;;  %11847 = vmatmul.mubr.msk.f32.gmra.mrb[30].mxu0 %vm221_vm1, %v9604_v42  ;;  %12149 = vmatmul.mubr.msk.f32.gmra.mrb[30].mxu1 %vm221_vm1, %v9997_v13  ;;  %v9999_v42 = vld [vmem:[%s17747_s0 + $0x1548] sm:$0xff]  ;;  %v9607_v22 = vld [vmem:[%s17747_s0 + $0xf30] sm:$0xff] }
 0x249   :  { %v15459_v32 = vmax.f32 %v2037_v10, %v4063_v15  ;;  %v1781_v58 = vadd.f32 %v14973_v41, %v1780_v54  ;;  %v3807_v2 = vadd.f32 %v14973_v41, %v3806_v16  ;;  %11849 = vmatprep.mubr.msk.f32.mxu0 %vm221_vm1, %v9605_v27  ;;  %12151 = vmatprep.mubr.msk.f32.mxu1 %vm221_vm1, %v9998_v47  ;;  %v10000_v27 = vld [vmem:[%s17747_s0 + $0x1550] sm:$0xff] }
 0x24a   :  { %17886 = vst [vmem:[#allocation136_spill] sm:$0xff] %v15453_v50  ;;  %v2040_v7 = vmax.f32 %v1786_v17, 0.0  ;;  %v4066_v13 = vmax.f32 %v3812_v31, 0.0 }
 0x24b   :  { %17887 = vst [vmem:[#allocation137_spill] sm:$0xff] %v15459_v32  ;;  %v2039_v10 = vmax.f32 %v1781_v58, 0.0  ;;  %v4065_v47 = vmax.f32 %v3807_v2, 0.0  ;;  %v11382_v15 = vpop.f32.mrb[182].mxu0  ;;  %v11684_v55 = vpop.f32.mrb[182].mxu1  ;;  %v9608_v2 = vld [vmem:[%s17747_s0 + $0xf38] sm:$0xff] }
 0x24c   :  { %v15477_v61 = vmax.f32 %v2040_v7, %v4066_v13  ;;  %v1796_v54 = vadd.f32 %v14973_v41, %v11382_v15  ;;  %v3822_v16 = vadd.f32 %v14973_v41, %v11684_v55  ;;  %v1790_v17 = vpop.f32.mrb[183].mxu0  ;;  %v3816_v31 = vpop.f32.mrb[183].mxu1  ;;  %11850 = vmatmul.mubr.msk.f32.gmra.mrb[32].mxu0 %vm221_vm1, %v9606_v29  ;;  %12152 = vmatmul.mubr.msk.f32.gmra.mrb[32].mxu1 %vm221_vm1, %v9999_v42  ;;  %v10001_v29 = vld [vmem:[%s17747_s0 + $0x1558] sm:$0xff]  ;;  %v9609_v13 = vld [vmem:[%s17747_s0 + $0xf40] sm:$0xff] }
 0x24d   :  { %v15483_v32 = vmax.f32 %v2039_v10, %v4065_v47  ;;  %v1791_v50 = vadd.f32 %v14973_v41, %v1790_v17  ;;  %v3817_v58 = vadd.f32 %v14973_v41, %v3816_v31  ;;  %11852 = vmatprep.mubr.msk.f32.mxu0 %vm221_vm1, %v9607_v22  ;;  %12154 = vmatprep.mubr.msk.f32.mxu1 %vm221_vm1, %v10000_v27  ;;  %v10002_v22 = vld [vmem:[%s17747_s0 + $0x1560] sm:$0xff] }
 0x24e   :  { %17888 = vst [vmem:[#allocation138_spill] sm:$0xff] %v15477_v61  ;;  %v2042_v7 = vmax.f32 %v1796_v54, 0.0  ;;  %v4068_v42 = vmax.f32 %v3822_v16, 0.0 }
 0x24f   :  { %17889 = vst [vmem:[#allocation139_spill] sm:$0xff] %v15483_v32  ;;  %v2041_v10 = vmax.f32 %v1791_v50, 0.0  ;;  %v4067_v27 = vmax.f32 %v3817_v58, 0.0  ;;  %v11385_v47 = vpop.f32.mrb[184].mxu0  ;;  %v11687_v15 = vpop.f32.mrb[184].mxu1  ;;  %v9610_v58 = vld [vmem:[%s17747_s0 + $0xf48] sm:$0xff] }
 0x250   :  { %v15501_v55 = vmax.f32 %v2042_v7, %v4068_v42  ;;  %v1806_v17 = vadd.f32 %v14973_v41, %v11385_v47  ;;  %v3832_v31 = vadd.f32 %v14973_v41, %v11687_v15  ;;  %v1800_v54 = vpop.f32.mrb[185].mxu0  ;;  %v3826_v16 = vpop.f32.mrb[185].mxu1  ;;  %11853 = vmatmul.mubr.msk.f32.gmra.mrb[34].mxu0 %vm221_vm1, %v9608_v2  ;;  %12155 = vmatmul.mubr.msk.f32.gmra.mrb[34].mxu1 %vm221_vm1, %v10001_v29  ;;  %v10003_v2 = vld [vmem:[%s17747_s0 + $0x1568] sm:$0xff]  ;;  %v9611_v42 = vld [vmem:[%s17747_s0 + $0xf50] sm:$0xff] }
 0x251   :  { %v15507_v32 = vmax.f32 %v2041_v10, %v4067_v27  ;;  %v1801_v61 = vadd.f32 %v14973_v41, %v1800_v54  ;;  %v3827_v50 = vadd.f32 %v14973_v41, %v3826_v16  ;;  %11855 = vmatprep.mubr.msk.f32.mxu0 %vm221_vm1, %v9609_v13  ;;  %12157 = vmatprep.mubr.msk.f32.mxu1 %vm221_vm1, %v10002_v22  ;;  %v10004_v13 = vld [vmem:[%s17747_s0 + $0x1570] sm:$0xff] }
 0x252   :  { %17890 = vst [vmem:[#allocation140_spill] sm:$0xff] %v15501_v55  ;;  %v2044_v7 = vmax.f32 %v1806_v17, 0.0  ;;  %v4070_v29 = vmax.f32 %v3832_v31, 0.0 }
 0x253   :  { %17891 = vst [vmem:[#allocation141_spill] sm:$0xff] %v15507_v32  ;;  %v2043_v10 = vmax.f32 %v1801_v61, 0.0  ;;  %v4069_v22 = vmax.f32 %v3827_v50, 0.0  ;;  %v11388_v27 = vpop.f32.mrb[186].mxu0  ;;  %v11690_v47 = vpop.f32.mrb[186].mxu1 }
 0x254   :  { %v15525_v15 = vmax.f32 %v2044_v7, %v4070_v29  ;;  %v1816_v54 = vadd.f32 %v14973_v41, %v11388_v27  ;;  %v3842_v16 = vadd.f32 %v14973_v41, %v11690_v47  ;;  %v1810_v17 = vpop.f32.mrb[187].mxu0  ;;  %v3836_v31 = vpop.f32.mrb[187].mxu1  ;;  %11856 = vmatmul.mubr.msk.f32.gmra.mrb[36].mxu0 %vm221_vm1, %v9610_v58  ;;  %12158 = vmatmul.mubr.msk.f32.gmra.mrb[36].mxu1 %vm221_vm1, %v10003_v2  ;;  %v15536_v61 = vld [vmem:[%s17748_s2] ss:$0 sm:$0xff]  ;;  %v9612_v41 = vld [vmem:[%s17747_s0 + $0xf58] sm:$0xff] }
 0x255   :  { %v15531_v32 = vmax.f32 %v2043_v10, %v4069_v22  ;;  %v1811_v50 = vadd.f32 %v15536_v61, %v1810_v17  ;;  %v3837_v7 = vadd.f32 %v15536_v61, %v3836_v31  ;;  %11858 = vmatprep.mubr.msk.f32.mxu0 %vm221_vm1, %v9611_v42  ;;  %12160 = vmatprep.mubr.msk.f32.mxu1 %vm221_vm1, %v10004_v13  ;;  %v10005_v58 = vld [vmem:[%s17747_s0 + $0x1578] sm:$0xff]  ;;  %v9613_v10 = vld [vmem:[%s17747_s0 + $0xf60] sm:$0xff] }
 0x256   :  { %17892 = vst [vmem:[#allocation142_spill] sm:$0xff] %v15525_v15  ;;  %v2046_v2 = vmax.f32 %v1816_v54, 0.0  ;;  %v4072_v29 = vmax.f32 %v3842_v16, 0.0  ;;  %v10006_v42 = vld [vmem:[%s17747_s0 + $0x1580] sm:$0xff] }
 0x257   :  { %17893 = vst [vmem:[#allocation143_spill] sm:$0xff] %v15531_v32  ;;  %v2045_v22 = vmax.f32 %v1811_v50, 0.0  ;;  %v4071_v13 = vmax.f32 %v3837_v7, 0.0  ;;  %v11391_v27 = vpop.f32.mrb[188].mxu0  ;;  %v11693_v47 = vpop.f32.mrb[188].mxu1  ;;  %v9614_v7 = vld [vmem:[%s17747_s0 + $0xf68] sm:$0xff] }
 0x258   :  { %v15554_v17 = vmax.f32 %v2046_v2, %v4072_v29  ;;  %v1826_v31 = vadd.f32 %v15536_v61, %v11391_v27  ;;  %v3852_v32 = vadd.f32 %v15536_v61, %v11693_v47  ;;  %v1820_v54 = vpop.f32.mrb[189].mxu0  ;;  %v3846_v16 = vpop.f32.mrb[189].mxu1  ;;  %11859 = vmatmul.mubr.msk.f32.gmra.mrb[38].mxu0 %vm221_vm1, %v9612_v41  ;;  %12161 = vmatmul.mubr.msk.f32.gmra.mrb[38].mxu1 %vm221_vm1, %v10005_v58  ;;  %v10007_v41 = vld [vmem:[%s17747_s0 + $0x1588] sm:$0xff]  ;;  %v9615_v29 = vld [vmem:[%s17747_s0 + $0xf70] sm:$0xff] }
 0x259   :  { %v15560_v15 = vmax.f32 %v2045_v22, %v4071_v13  ;;  %v1821_v55 = vadd.f32 %v15536_v61, %v1820_v54  ;;  %v3847_v50 = vadd.f32 %v15536_v61, %v3846_v16  ;;  %11861 = vmatprep.mubr.msk.f32.mxu0 %vm221_vm1, %v9613_v10  ;;  %12163 = vmatprep.mubr.msk.f32.mxu1 %vm221_vm1, %v10006_v42  ;;  %v10008_v10 = vld [vmem:[%s17747_s0 + $0x1590] sm:$0xff] }
 0x25a   :  { %17894 = vst [vmem:[#allocation144_spill] sm:$0xff] %v15554_v17  ;;  %v2048_v2 = vmax.f32 %v1826_v31, 0.0  ;;  %v4074_v58 = vmax.f32 %v3852_v32, 0.0 }
 0x25b   :  { %17895 = vst [vmem:[#allocation145_spill] sm:$0xff] %v15560_v15  ;;  %v2047_v22 = vmax.f32 %v1821_v55, 0.0  ;;  %v4073_v42 = vmax.f32 %v3847_v50, 0.0  ;;  %v11394_v13 = vpop.f32.mrb[190].mxu0  ;;  %v11696_v27 = vpop.f32.mrb[190].mxu1  ;;  %v9616_v50 = vld [vmem:[%s17747_s0 + $0xf78] sm:$0xff] }
 0x25c   :  { %v15578_v47 = vmax.f32 %v2048_v2, %v4074_v58  ;;  %v1836_v54 = vadd.f32 %v15536_v61, %v11394_v13  ;;  %v3862_v16 = vadd.f32 %v15536_v61, %v11696_v27  ;;  %v1830_v31 = vpop.f32.mrb[191].mxu0  ;;  %v3856_v32 = vpop.f32.mrb[191].mxu1  ;;  %11862 = vmatmul.mubr.msk.f32.gmra.mrb[40].mxu0 %vm221_vm1, %v9614_v7  ;;  %12164 = vmatmul.mubr.msk.f32.gmra.mrb[40].mxu1 %vm221_vm1, %v10007_v41  ;;  %v10009_v7 = vld [vmem:[%s17747_s0 + $0x1598] sm:$0xff]  ;;  %v9617_v58 = vld [vmem:[%s17747_s0 + $0xf80] sm:$0xff] }
 0x25d   :  { %v15584_v15 = vmax.f32 %v2047_v22, %v4073_v42  ;;  %v1831_v17 = vadd.f32 %v15536_v61, %v1830_v31  ;;  %v3857_v55 = vadd.f32 %v15536_v61, %v3856_v32  ;;  %11864 = vmatprep.mubr.msk.f32.mxu0 %vm221_vm1, %v9615_v29  ;;  %12166 = vmatprep.mubr.msk.f32.mxu1 %vm221_vm1, %v10008_v10  ;;  %v10010_v29 = vld [vmem:[%s17747_s0 + $0x15a0] sm:$0xff] }
 0x25e   :  { %17896 = vst [vmem:[#allocation146_spill] sm:$0xff] %v15578_v47  ;;  %v2050_v2 = vmax.f32 %v1836_v54, 0.0  ;;  %v4076_v41 = vmax.f32 %v3862_v16, 0.0 }
 0x25f   :  { %17897 = vst [vmem:[#allocation147_spill] sm:$0xff] %v15584_v15  ;;  %v2049_v22 = vmax.f32 %v1831_v17, 0.0  ;;  %v4075_v10 = vmax.f32 %v3857_v55, 0.0  ;;  %v11397_v42 = vpop.f32.mrb[192].mxu0  ;;  %v11699_v13 = vpop.f32.mrb[192].mxu1  ;;  %v9618_v55 = vld [vmem:[%s17747_s0 + $0xf88] sm:$0xff] }
 0x260   :  { %v15602_v27 = vmax.f32 %v2050_v2, %v4076_v41  ;;  %v1846_v31 = vadd.f32 %v15536_v61, %v11397_v42  ;;  %v3872_v32 = vadd.f32 %v15536_v61, %v11699_v13  ;;  %v1840_v54 = vpop.f32.mrb[193].mxu0  ;;  %v3866_v16 = vpop.f32.mrb[193].mxu1  ;;  %11865 = vmatmul.mubr.msk.f32.gmra.mrb[42].mxu0 %vm221_vm1, %v9616_v50  ;;  %12167 = vmatmul.mubr.msk.f32.gmra.mrb[42].mxu1 %vm221_vm1, %v10009_v7  ;;  %v10011_v50 = vld [vmem:[%s17747_s0 + $0x15a8] sm:$0xff]  ;;  %v9619_v41 = vld [vmem:[%s17747_s0 + $0xf90] sm:$0xff] }
 0x261   :  { %v15608_v15 = vmax.f32 %v2049_v22, %v4075_v10  ;;  %v1841_v47 = vadd.f32 %v15536_v61, %v1840_v54  ;;  %v3867_v17 = vadd.f32 %v15536_v61, %v3866_v16  ;;  %11867 = vmatprep.mubr.msk.f32.mxu0 %vm221_vm1, %v9617_v58  ;;  %12169 = vmatprep.mubr.msk.f32.mxu1 %vm221_vm1, %v10010_v29  ;;  %v10012_v58 = vld [vmem:[%s17747_s0 + $0x15b0] sm:$0xff] }
 0x262   :  { %17898 = vst [vmem:[#allocation148_spill] sm:$0xff] %v15602_v27  ;;  %v2052_v2 = vmax.f32 %v1846_v31, 0.0  ;;  %v4078_v7 = vmax.f32 %v3872_v32, 0.0 }
 0x263   :  { %17899 = vst [vmem:[#allocation149_spill] sm:$0xff] %v15608_v15  ;;  %v2051_v22 = vmax.f32 %v1841_v47, 0.0  ;;  %v4077_v29 = vmax.f32 %v3867_v17, 0.0  ;;  %v11400_v10 = vpop.f32.mrb[194].mxu0  ;;  %v11702_v42 = vpop.f32.mrb[194].mxu1  ;;  %v9620_v17 = vld [vmem:[%s17747_s0 + $0xf98] sm:$0xff] }
 0x264   :  { %v15626_v13 = vmax.f32 %v2052_v2, %v4078_v7  ;;  %v1856_v54 = vadd.f32 %v15536_v61, %v11400_v10  ;;  %v3882_v16 = vadd.f32 %v15536_v61, %v11702_v42  ;;  %v1850_v31 = vpop.f32.mrb[195].mxu0  ;;  %v3876_v32 = vpop.f32.mrb[195].mxu1  ;;  %11868 = vmatmul.mubr.msk.f32.gmra.mrb[44].mxu0 %vm221_vm1, %v9618_v55  ;;  %12170 = vmatmul.mubr.msk.f32.gmra.mrb[44].mxu1 %vm221_vm1, %v10011_v50  ;;  %v10013_v55 = vld [vmem:[%s17747_s0 + $0x15b8] sm:$0xff]  ;;  %v9621_v7 = vld [vmem:[%s17747_s0 + $0xfa0] sm:$0xff] }
 0x265   :  { %v15632_v15 = vmax.f32 %v2051_v22, %v4077_v29  ;;  %v1851_v27 = vadd.f32 %v15536_v61, %v1850_v31  ;;  %v3877_v47 = vadd.f32 %v15536_v61, %v3876_v32  ;;  %11870 = vmatprep.mubr.msk.f32.mxu0 %vm221_vm1, %v9619_v41  ;;  %12172 = vmatprep.mubr.msk.f32.mxu1 %vm221_vm1, %v10012_v58  ;;  %v10014_v41 = vld [vmem:[%s17747_s0 + $0x15c0] sm:$0xff] }
 0x266   :  { %17900 = vst [vmem:[#allocation150_spill] sm:$0xff] %v15626_v13  ;;  %v2054_v2 = vmax.f32 %v1856_v54, 0.0  ;;  %v4080_v50 = vmax.f32 %v3882_v16, 0.0 }
 0x267   :  { %17901 = vst [vmem:[#allocation151_spill] sm:$0xff] %v15632_v15  ;;  %v2053_v22 = vmax.f32 %v1851_v27, 0.0  ;;  %v4079_v58 = vmax.f32 %v3877_v47, 0.0  ;;  %v11713_v29 = vpop.f32.mrb[196].mxu0  ;;  %v12015_v10 = vpop.f32.mrb[196].mxu1  ;;  %v9622_v47 = vld [vmem:[%s17747_s0 + $0xfa8] sm:$0xff] }
 0x268   :  { %v15650_v42 = vmax.f32 %v2054_v2, %v4080_v50  ;;  %v5134_v31 = vadd.f32 %v15536_v61, %v11713_v29  ;;  %v7160_v32 = vadd.f32 %v15536_v61, %v12015_v10  ;;  %v5128_v54 = vpop.f32.mrb[197].mxu0  ;;  %11871 = vmatmul.mubr.msk.f32.gmra.mrb[46].mxu0 %vm221_vm1, %v9620_v17  ;;  %v7154_v16 = vpop.f32.mrb[197].mxu1  ;;  %12173 = vmatmul.mubr.msk.f32.gmra.mrb[46].mxu1 %vm221_vm1, %v10013_v55  ;;  %v10015_v17 = vld [vmem:[%s17747_s0 + $0x15c8] sm:$0xff]  ;;  %v9623_v50 = vld [vmem:[%s17747_s0 + $0xfb0] sm:$0xff] }
 0x269   :  { %v15656_v15 = vmax.f32 %v2053_v22, %v4079_v58  ;;  %v5129_v13 = vadd.f32 %v15536_v61, %v5128_v54  ;;  %v7155_v27 = vadd.f32 %v15536_v61, %v7154_v16  ;;  %11873 = vmatprep.mubr.msk.f32.mxu0 %vm221_vm1, %v9621_v7  ;;  %12175 = vmatprep.mubr.msk.f32.mxu1 %vm221_vm1, %v10014_v41  ;;  %v10016_v7 = vld [vmem:[%s17747_s0 + $0x15d0] sm:$0xff] }
 0x26a   :  { %17902 = vst [vmem:[#allocation152_spill] sm:$0xff] %v15650_v42  ;;  %v6108_v2 = vmax.f32 %v5134_v31, 0.0  ;;  %v8134_v55 = vmax.f32 %v7160_v32, 0.0 }
 0x26b   :  { %17903 = vst [vmem:[#allocation153_spill] sm:$0xff] %v15656_v15  ;;  %v6107_v22 = vmax.f32 %v5129_v13, 0.0  ;;  %v8133_v41 = vmax.f32 %v7155_v27, 0.0  ;;  %v11716_v58 = vpop.f32.mrb[198].mxu0  ;;  %v12018_v29 = vpop.f32.mrb[198].mxu1  ;;  %v9624_v27 = vld [vmem:[%s17747_s0 + $0xfb8] sm:$0xff] }
 0x26c   :  { %v8330_v10 = vmax.f32 %v6108_v2, %v8134_v55  ;;  %v5144_v54 = vadd.f32 %v15536_v61, %v11716_v58  ;;  %v7170_v16 = vadd.f32 %v15536_v61, %v12018_v29  ;;  %v5138_v15 = vpop.f32.mrb[199].mxu0  ;;  %11874 = vmatmul.mubr.msk.f32.gmra.mrb[48].mxu0 %vm221_vm1, %v9622_v47  ;;  %v7164_v31 = vpop.f32.mrb[199].mxu1  ;;  %12176 = vmatmul.mubr.msk.f32.gmra.mrb[48].mxu1 %vm221_vm1, %v10015_v17  ;;  %v10017_v47 = vld [vmem:[%s17747_s0 + $0x15d8] sm:$0xff] }
 0x26d   :  { %v8329_v32 = vmax.f32 %v6107_v22, %v8133_v41  ;;  %v5139_v42 = vadd.f32 %v15536_v61, %v5138_v15  ;;  %v7165_v13 = vadd.f32 %v15536_v61, %v7164_v31  ;;  %11876 = vmatprep.mubr.msk.f32.mxu0 %vm221_vm1, %v9623_v50  ;;  %12178 = vmatprep.mubr.msk.f32.mxu1 %vm221_vm1, %v10016_v7  ;;  %v9625_v15 = vld [vmem:[%s17747_s0 + $0xfc0] sm:$0xff] }
 0x26e   :  { %v8526_v17 = vmax.f32 %v13302_v52, %v8330_v10  ;;  %v6110_v2 = vmax.f32 %v5144_v54, 0.0  ;;  %v8136_v55 = vmax.f32 %v7170_v16, 0.0  ;;  %v10018_v50 = vld [vmem:[%s17747_s0 + $0x15e0] sm:$0xff] }
 0x26f   :  { %v8525_v7 = vmax.f32 %v13308_v57, %v8329_v32  ;;  %v6109_v22 = vmax.f32 %v5139_v42, 0.0  ;;  %v8135_v41 = vmax.f32 %v7165_v13, 0.0  ;;  %v11719_v58 = vpop.f32.mrb[200].mxu0  ;;  %v12021_v29 = vpop.f32.mrb[200].mxu1  ;;  %v9626_v13 = vld [vmem:[%s17747_s0 + $0xfc8] sm:$0xff] }
 0x270   :  { %8723 = vst.msk [vmem:[%s17749_s3 + $0x8] sm:$0xff] %vm8721_vm4, %v8526_v17  ;;  %v8332_v52 = vmax.f32 %v6110_v2, %v8136_v55  ;;  %v5154_v10 = vadd.f32 %v15536_v61, %v11719_v58  ;;  %v7180_v54 = vadd.f32 %v15536_v61, %v12021_v29  ;;  %v5148_v16 = vpop.f32.mrb[201].mxu0  ;;  %11877 = vmatmul.mubr.msk.f32.gmra.mrb[50].mxu0 %vm221_vm1, %v9624_v27  ;;  %v7174_v31 = vpop.f32.mrb[201].mxu1  ;;  %v10019_v27 = vld [vmem:[%s17747_s0 + $0x15e8] sm:$0xff]  ;;  %v9627_v55 = vld [vmem:[%s17747_s0 + $0xfd0] sm:$0xff] }
 0x271   :  { %12179 = vmatmul.mubr.msk.f32.gmra.mrb[50].mxu1 %vm221_vm1, %v10017_v47  ;;  %8722 = vst.msk [vmem:[%s17749_s3] sm:$0xff] %vm8721_vm4, %v8525_v7  ;;  %v8331_v57 = vmax.f32 %v6109_v22, %v8135_v41  ;;  %v5149_v42 = vadd.f32 %v15536_v61, %v5148_v16  ;;  %v7175_v32 = vadd.f32 %v15536_v61, %v7174_v31 }
 0x272   :  { %11879 = vmatprep.mubr.msk.f32.mxu0 %vm221_vm1, %v9625_v15  ;;  %12181 = vmatprep.mubr.msk.f32.mxu1 %vm221_vm1, %v10018_v50  ;;  %v8528_v47 = vmax.f32 %v13326_v6, %v8332_v52  ;;  %v6112_v17 = vmax.f32 %v5154_v10, 0.0  ;;  %v8138_v2 = vmax.f32 %v7180_v54, 0.0  ;;  %v10020_v15 = vld [vmem:[%s17747_s0 + $0x15f0] sm:$0xff] }
 0x273   :  { %v8527_v50 = vmax.f32 %v13332_v11, %v8331_v57  ;;  %v6111_v7 = vmax.f32 %v5149_v42, 0.0  ;;  %v8137_v22 = vmax.f32 %v7175_v32, 0.0  ;;  %v11722_v41 = vpop.f32.mrb[202].mxu0  ;;  %v12024_v58 = vpop.f32.mrb[202].mxu1  ;;  %v9628_v57 = vld [vmem:[%s17747_s0 + $0xfd8] sm:$0xff] }
 0x274   :  { %8725 = vst.msk [vmem:[%s17749_s3 + $0x18] sm:$0xff] %vm8721_vm4, %v8528_v47  ;;  %v8334_v6 = vmax.f32 %v6112_v17, %v8138_v2  ;;  %v5164_v29 = vadd.f32 %v15536_v61, %v11722_v41  ;;  %v7190_v52 = vadd.f32 %v15536_v61, %v12024_v58  ;;  %v5158_v10 = vpop.f32.mrb[203].mxu0  ;;  %11880 = vmatmul.mubr.msk.f32.gmra.mrb[52].mxu0 %vm221_vm1, %v9626_v13  ;;  %v7184_v54 = vpop.f32.mrb[203].mxu1  ;;  %v10021_v42 = vld [vmem:[%s17747_s0 + $0x15f8] sm:$0xff]  ;;  %v9629_v47 = vld [vmem:[%s17747_s0 + $0xfe0] sm:$0xff] }
 0x275   :  { %12182 = vmatmul.mubr.msk.f32.gmra.mrb[52].mxu1 %vm221_vm1, %v10019_v27  ;;  %8724 = vst.msk [vmem:[%s17749_s3 + $0x10] sm:$0xff] %vm8721_vm4, %v8527_v50  ;;  %v8333_v11 = vmax.f32 %v6111_v7, %v8137_v22  ;;  %v5159_v16 = vadd.f32 %v15536_v61, %v5158_v10  ;;  %v7185_v31 = vadd.f32 %v15536_v61, %v7184_v54  ;;  %v10022_v17 = vld [vmem:[%s17747_s0 + $0x1600] sm:$0xff]  ;;  %v9630_v10 = vld [vmem:[%s17747_s0 + $0xfe8] sm:$0xff] }
 0x276   :  { %11882 = vmatprep.mubr.msk.f32.mxu0 %vm221_vm1, %v9627_v55  ;;  %12184 = vmatprep.mubr.msk.f32.mxu1 %vm221_vm1, %v10020_v15  ;;  %v8530_v32 = vmax.f32 %v13350_v24, %v8334_v6  ;;  %v6114_v13 = vmax.f32 %v5164_v29, 0.0  ;;  %v8140_v27 = vmax.f32 %v7190_v52, 0.0  ;;  %v10023_v54 = vld [vmem:[%s17747_s0 + $0x1608] sm:$0xff] }
 0x277   :  { %v8529_v2 = vmax.f32 %v13356_v30, %v8333_v11  ;;  %v6113_v55 = vmax.f32 %v5159_v16, 0.0  ;;  %v8139_v15 = vmax.f32 %v7185_v31, 0.0  ;;  %v11725_v50 = vpop.f32.mrb[204].mxu0  ;;  %v12027_v7 = vpop.f32.mrb[204].mxu1 }
 0x278   :  { %8727 = vst.msk [vmem:[%s17749_s3 + $0x28] sm:$0xff] %vm8721_vm4, %v8530_v32  ;;  %v8336_v24 = vmax.f32 %v6114_v13, %v8140_v27  ;;  %v5174_v22 = vadd.f32 %v15536_v61, %v11725_v50  ;;  %v7200_v41 = vadd.f32 %v15536_v61, %v12027_v7  ;;  %v5168_v58 = vpop.f32.mrb[205].mxu0  ;;  %11883 = vmatmul.mubr.msk.f32.gmra.mrb[54].mxu0 %vm221_vm1, %v9628_v57  ;;  %v7194_v6 = vpop.f32.mrb[205].mxu1  ;;  %v9631_v57 = vld [vmem:[%s17747_s0 + $0xff0] sm:$0xff] }
 0x279   :  { %12185 = vmatmul.mubr.msk.f32.gmra.mrb[54].mxu1 %vm221_vm1, %v10021_v42  ;;  %8726 = vst.msk [vmem:[%s17749_s3 + $0x20] sm:$0xff] %vm8721_vm4, %v8529_v2  ;;  %v8335_v30 = vmax.f32 %v6113_v55, %v8139_v15  ;;  %v5169_v29 = vadd.f32 %v15536_v61, %v5168_v58  ;;  %v7195_v52 = vadd.f32 %v15536_v61, %v7194_v6  ;;  %v10024_v42 = vld [vmem:[%s17747_s0 + $0x1610] sm:$0xff] }
 0x27a   :  { %11885 = vmatprep.mubr.msk.f32.mxu0 %vm221_vm1, %v9629_v47  ;;  %12187 = vmatprep.mubr.msk.f32.mxu1 %vm221_vm1, %v10022_v17  ;;  %v8532_v11 = vmax.f32 %v13374_v43, %v8336_v24  ;;  %v6116_v16 = vmax.f32 %v5174_v22, 0.0  ;;  %v8142_v31 = vmax.f32 %v7200_v41, 0.0  ;;  %v9632_v22 = vld [vmem:[%s17747_s0 + $0xff8] sm:$0xff] }
 0x27b   :  { %v8531_v32 = vmax.f32 %v13380_v48, %v8335_v30  ;;  %v6115_v13 = vmax.f32 %v5169_v29, 0.0  ;;  %v8141_v27 = vmax.f32 %v7195_v52, 0.0  ;;  %v11728_v47 = vpop.f32.mrb[206].mxu0  ;;  %v12030_v17 = vpop.f32.mrb[206].mxu1  ;;  %v10025_v41 = vld [vmem:[%s17747_s0 + $0x1618] sm:$0xff]  ;;  %v9633_v29 = vld [vmem:[%s17747_s0 + $0x1000] sm:$0xff] }
 0x27c   :  { %8729 = vst.msk [vmem:[%s17749_s3 + $0x38] sm:$0xff] %vm8721_vm4, %v8532_v11  ;;  %v8338_v43 = vmax.f32 %v6116_v16, %v8142_v31  ;;  %v5184_v2 = vadd.f32 %v15536_v61, %v11728_v47  ;;  %v7210_v55 = vadd.f32 %v15536_v61, %v12030_v17  ;;  %v5178_v15 = vpop.f32.mrb[207].mxu0  ;;  %11886 = vmatmul.mubr.msk.f32.gmra.mrb[56].mxu0 %vm221_vm1, %v9630_v10  ;;  %v7204_v50 = vpop.f32.mrb[207].mxu1  ;;  %v10026_v52 = vld [vmem:[%s17747_s0 + $0x1620] sm:$0xff]  ;;  %v9634_v17 = vld [vmem:[%s17747_s0 + $0x1008] sm:$0xff] }
 0x27d   :  { %12188 = vmatmul.mubr.msk.f32.gmra.mrb[56].mxu1 %vm221_vm1, %v10023_v54  ;;  %8728 = vst.msk [vmem:[%s17749_s3 + $0x30] sm:$0xff] %vm8721_vm4, %v8531_v32  ;;  %v8337_v48 = vmax.f32 %v6115_v13, %v8141_v27  ;;  %v5179_v7 = vadd.f32 %v15536_v61, %v5178_v15  ;;  %v7205_v24 = vadd.f32 %v15536_v61, %v7204_v50  ;;  %v9635_v50 = vld [vmem:[%s17747_s0 + $0x1010] sm:$0xff] }
 0x27e   :  { %11888 = vmatprep.mubr.msk.f32.mxu0 %vm221_vm1, %v9631_v57  ;;  %12190 = vmatprep.mubr.msk.f32.mxu1 %vm221_vm1, %v10024_v42  ;;  %v8534_v58 = vmax.f32 %v13398_v63, %v8338_v43  ;;  %v6118_v6 = vmax.f32 %v5184_v2, 0.0  ;;  %v8144_v30 = vmax.f32 %v7210_v55, 0.0  ;;  %v10027_v43 = vld [vmem:[%s17747_s0 + $0x1628] sm:$0xff] }
 0x27f   :  { %v8533_v10 = vmax.f32 %v13404_v4, %v8337_v48  ;;  %v6117_v54 = vmax.f32 %v5179_v7, 0.0  ;;  %v8143_v11 = vmax.f32 %v7205_v24, 0.0  ;;  %v11731_v16 = vpop.f32.mrb[208].mxu0  ;;  %v12033_v31 = vpop.f32.mrb[208].mxu1  ;;  %v10028_v48 = vld [vmem:[%s17747_s0 + $0x1630] sm:$0xff] }
 0x280   :  { %8731 = vst.msk [vmem:[%s17749_s3 + $0x48] sm:$0xff] %vm8721_vm4, %v8534_v58  ;;  %v8340_v63 = vmax.f32 %v6118_v6, %v8144_v30  ;;  %v5194_v57 = vadd.f32 %v15536_v61, %v11731_v16  ;;  %v7220_v42 = vadd.f32 %v15536_v61, %v12033_v31  ;;  %v5188_v32 = vpop.f32.mrb[209].mxu0  ;;  %11889 = vmatmul.mubr.msk.f32.gmra.mrb[58].mxu0 %vm221_vm1, %v9632_v22  ;;  %v7214_v13 = vpop.f32.mrb[209].mxu1  ;;  %v10029_v16 = vld [vmem:[%s17747_s0 + $0x1638] sm:$0xff] }
 0x281   :  { %12191 = vmatmul.mubr.msk.f32.gmra.mrb[58].mxu1 %vm221_vm1, %v10025_v41  ;;  %8730 = vst.msk [vmem:[%s17749_s3 + $0x40] sm:$0xff] %vm8721_vm4, %v8533_v10  ;;  %v8339_v4 = vmax.f32 %v6117_v54, %v8143_v11  ;;  %v5189_v27 = vadd.f32 %v15536_v61, %v5188_v32  ;;  %v7215_v47 = vadd.f32 %v15536_v61, %v7214_v13  ;;  %v9636_v11 = vld [vmem:[%s17747_s0 + $0x1018] sm:$0xff]  ;;  %v10030_v32 = vld [vmem:[%s17747_s0 + $0x1640] sm:$0xff] }
 0x282   :  { %11891 = vmatprep.mubr.msk.f32.mxu0 %vm221_vm1, %v9633_v29  ;;  %12193 = vmatprep.mubr.msk.f32.mxu1 %vm221_vm1, %v10026_v52  ;;  %v8536_v2 = vmax.f32 %v13422_v19, %v8340_v63  ;;  %v6120_v55 = vmax.f32 %v5194_v57, 0.0  ;;  %v8146_v15 = vmax.f32 %v7220_v42, 0.0  ;;  %v9637_v42 = vld [vmem:[%s17747_s0 + $0x1020] sm:$0xff] }
 0x283   :  { %v8535_v7 = vmax.f32 %v13428_v25, %v8339_v4  ;;  %v6119_v24 = vmax.f32 %v5189_v27, 0.0  ;;  %v8145_v22 = vmax.f32 %v7215_v47, 0.0  ;;  %v11734_v41 = vpop.f32.mrb[210].mxu0  ;;  %v12036_v58 = vpop.f32.mrb[210].mxu1 }
 0x284   :  { %8733 = vst.msk [vmem:[%s17749_s3 + $0x58] sm:$0xff] %vm8721_vm4, %v8536_v2  ;;  %v8342_v19 = vmax.f32 %v6120_v55, %v8146_v15  ;;  %v5204_v6 = vadd.f32 %v15536_v61, %v11734_v41  ;;  %v7230_v30 = vadd.f32 %v15536_v61, %v12036_v58  ;;  %v5198_v29 = vpop.f32.mrb[211].mxu0  ;;  %11892 = vmatmul.mubr.msk.f32.gmra.mrb[60].mxu0 %vm221_vm1, %v9634_v17  ;;  %v7224_v52 = vpop.f32.mrb[211].mxu1 }
 0x285   :  { %12194 = vmatmul.mubr.msk.f32.gmra.mrb[60].mxu1 %vm221_vm1, %v10027_v43  ;;  %8732 = vst.msk [vmem:[%s17749_s3 + $0x50] sm:$0xff] %vm8721_vm4, %v8535_v7  ;;  %v8341_v25 = vmax.f32 %v6119_v24, %v8145_v22  ;;  %v5199_v10 = vadd.f32 %v15536_v61, %v5198_v29  ;;  %v7225_v54 = vadd.f32 %v15536_v61, %v7224_v52  ;;  %v9638_v7 = vld [vmem:[%s17747_s0 + $0x1028] sm:$0xff] }
 0x286   :  { %11894 = vmatprep.mubr.msk.f32.mxu0 %vm221_vm1, %v9635_v50  ;;  %12196 = vmatprep.mubr.msk.f32.mxu1 %vm221_vm1, %v10028_v48  ;;  %v8538_v31 = vmax.f32 %v13446_v40, %v8342_v19  ;;  %v6122_v63 = vmax.f32 %v5204_v6, 0.0  ;;  %v8148_v57 = vmax.f32 %v7230_v30, 0.0  ;;  %v10031_v24 = vld [vmem:[%s17747_s0 + $0x1648] sm:$0xff]  ;;  %v9639_v19 = vld [vmem:[%s17747_s0 + $0x1030] sm:$0xff] }
 0x287   :  { %v8537_v13 = vmax.f32 %v13452_v46, %v8341_v25  ;;  %v6121_v4 = vmax.f32 %v5199_v10, 0.0  ;;  %v8147_v27 = vmax.f32 %v7225_v54, 0.0  ;;  %v11737_v47 = vpop.f32.mrb[212].mxu0  ;;  %v12039_v17 = vpop.f32.mrb[212].mxu1  ;;  %v10032_v6 = vld [vmem:[%s17747_s0 + $0x1650] sm:$0xff] }
 0x288   :  { %8735 = vst.msk [vmem:[%s17749_s3 + $0x68] sm:$0xff] %vm8721_vm4, %v8538_v31  ;;  %v8344_v40 = vmax.f32 %v6122_v63, %v8148_v57  ;;  %v5214_v43 = vadd.f32 %v15536_v61, %v11737_v47  ;;  %v7240_v2 = vadd.f32 %v15536_v61, %v12039_v17  ;;  %v5208_v55 = vpop.f32.mrb[213].mxu0  ;;  %11895 = vmatmul.mubr.msk.f32.gmra.mrb[62].mxu0 %vm221_vm1, %v9636_v11  ;;  %v7234_v15 = vpop.f32.mrb[213].mxu1  ;;  %v9641_v47 = vld [vmem:[%s17747_s0 + $0x1040] sm:$0xff] }
 0x289   :  { %12197 = vmatmul.mubr.msk.f32.gmra.mrb[62].mxu1 %vm221_vm1, %v10029_v16  ;;  %8734 = vst.msk [vmem:[%s17749_s3 + $0x60] sm:$0xff] %vm8721_vm4, %v8537_v13  ;;  %v8343_v46 = vmax.f32 %v6121_v4, %v8147_v27  ;;  %v5209_v50 = vadd.f32 %v15536_v61, %v5208_v55  ;;  %v7235_v48 = vadd.f32 %v15536_v61, %v7234_v15  ;;  %v10034_v17 = vld [vmem:[%s17747_s0 + $0x1660] sm:$0xff] }
 0x28a   :  { %11897 = vmatprep.mubr.msk.f32.mxu0 %vm221_vm1, %v9637_v42  ;;  %12199 = vmatprep.mubr.msk.f32.mxu1 %vm221_vm1, %v10030_v32  ;;  %v8540_v22 = vmax.f32 %v13470_v62, %v8344_v40  ;;  %v6124_v41 = vmax.f32 %v5214_v43, 0.0  ;;  %v8150_v58 = vmax.f32 %v7240_v2, 0.0  ;;  %v9640_v42 = vld [vmem:[%s17747_s0 + $0x1038] sm:$0xff] }
 0x28b   :  { %v8539_v30 = vmax.f32 %v13476_v5, %v8343_v46  ;;  %v6123_v29 = vmax.f32 %v5209_v50, 0.0  ;;  %v8149_v52 = vmax.f32 %v7235_v48, 0.0  ;;  %v11740_v25 = vpop.f32.mrb[214].mxu0  ;;  %v12042_v10 = vpop.f32.mrb[214].mxu1  ;;  %v10033_v32 = vld [vmem:[%s17747_s0 + $0x1658] sm:$0xff] }
 0x28c   :  { %8737 = vst.msk [vmem:[%s17749_s3 + $0x78] sm:$0xff] %vm8721_vm4, %v8540_v22  ;;  %v8346_v62 = vmax.f32 %v6124_v41, %v8150_v58  ;;  %v5224_v54 = vadd.f32 %v15536_v61, %v11740_v25  ;;  %v7250_v11 = vadd.f32 %v15536_v61, %v12042_v10  ;;  %v5218_v16 = vpop.f32.mrb[215].mxu0  ;;  %11898 = vmatmul.mubr.msk.f32.gmra.mrb[64].mxu0 %vm221_vm1, %v9638_v7  ;;  %v7244_v31 = vpop.f32.mrb[215].mxu1  ;;  %v9642_v41 = vld [vmem:[%s17747_s0 + $0x1048] sm:$0xff] }
 0x28d   :  { %12200 = vmatmul.mubr.msk.f32.gmra.mrb[64].mxu1 %vm221_vm1, %v10031_v24  ;;  %8736 = vst.msk [vmem:[%s17749_s3 + $0x70] sm:$0xff] %vm8721_vm4, %v8539_v30  ;;  %v8345_v5 = vmax.f32 %v6123_v29, %v8149_v52  ;;  %v5219_v63 = vadd.f32 %v15536_v61, %v5218_v16  ;;  %v7245_v57 = vadd.f32 %v15536_v61, %v7244_v31  ;;  %v10035_v58 = vld [vmem:[%s17747_s0 + $0x1668] sm:$0xff]  ;;  %v9643_v29 = vld [vmem:[%s17747_s0 + $0x1050] sm:$0xff] }
 0x28e   :  { %11900 = vmatprep.mubr.msk.f32.mxu0 %vm221_vm1, %v9639_v19  ;;  %12202 = vmatprep.mubr.msk.f32.mxu1 %vm221_vm1, %v10032_v6  ;;  %v8542_v13 = vmax.f32 %v13494_v21, %v8346_v62  ;;  %v6126_v4 = vmax.f32 %v5224_v54, 0.0  ;;  %v8152_v27 = vmax.f32 %v7250_v11, 0.0  ;;  %v10036_v52 = vld [vmem:[%s17747_s0 + $0x1670] sm:$0xff] }
 0x28f   :  { %v8541_v40 = vmax.f32 %v13500_v28, %v8345_v5  ;;  %v6125_v43 = vmax.f32 %v5219_v63, 0.0  ;;  %v8151_v2 = vmax.f32 %v7245_v57, 0.0  ;;  %v11743_v55 = vpop.f32.mrb[216].mxu0  ;;  %v12045_v15 = vpop.f32.mrb[216].mxu1 }
 0x290   :  { %8739 = vst.msk [vmem:[%s17749_s3 + $0x88] sm:$0xff] %vm8721_vm4, %v8542_v13  ;;  %v8348_v21 = vmax.f32 %v6126_v4, %v8152_v27  ;;  %v5234_v46 = vadd.f32 %v15536_v61, %v11743_v55  ;;  %v7260_v50 = vadd.f32 %v15536_v61, %v12045_v15  ;;  %v5228_v48 = vpop.f32.mrb[217].mxu0  ;;  %11901 = vmatmul.mubr.msk.f32.gmra.mrb[66].mxu0 %vm221_vm1, %v9640_v42  ;;  %v7254_v7 = vpop.f32.mrb[217].mxu1  ;;  %v10037_v13 = vld [vmem:[%s17747_s0 + $0x1678] sm:$0xff] }
 0x291   :  { %12203 = vmatmul.mubr.msk.f32.gmra.mrb[66].mxu1 %vm221_vm1, %v10033_v32  ;;  %8738 = vst.msk [vmem:[%s17749_s3 + $0x80] sm:$0xff] %vm8721_vm4, %v8541_v40  ;;  %v8347_v28 = vmax.f32 %v6125_v43, %v8151_v2  ;;  %v5229_v24 = vadd.f32 %v15536_v61, %v5228_v48  ;;  %v7255_v22 = vadd.f32 %v15536_v61, %v7254_v7  ;;  %v9644_v32 = vld [vmem:[%s17747_s0 + $0x1058] sm:$0xff]  ;;  %v10038_v40 = vld [vmem:[%s17747_s0 + $0x1680] sm:$0xff] }
 0x292   :  { %11903 = vmatprep.mubr.msk.f32.mxu0 %vm221_vm1, %v9641_v47  ;;  %12205 = vmatprep.mubr.msk.f32.mxu1 %vm221_vm1, %v10034_v17  ;;  %v8544_v19 = vmax.f32 %v13518_v45, %v8348_v21  ;;  %v6128_v6 = vmax.f32 %v5234_v46, 0.0  ;;  %v8154_v30 = vmax.f32 %v7260_v50, 0.0  ;;  %v9645_v17 = vld [vmem:[%s17747_s0 + $0x1060] sm:$0xff] }
 0x293   :  { %v8543_v25 = vmax.f32 %v13524_v53, %v8347_v28  ;;  %v6127_v10 = vmax.f32 %v5229_v24, 0.0  ;;  %v8153_v62 = vmax.f32 %v7255_v22, 0.0  ;;  %v11746_v54 = vpop.f32.mrb[218].mxu0  ;;  %v12048_v11 = vpop.f32.mrb[218].mxu1  ;;  %v9646_v22 = vld [vmem:[%s17747_s0 + $0x1068] sm:$0xff] }
 0x294   :  { %8741 = vst.msk [vmem:[%s17749_s3 + $0x98] sm:$0xff] %vm8721_vm4, %v8544_v19  ;;  %v8350_v45 = vmax.f32 %v6128_v6, %v8154_v30  ;;  %v5244_v16 = vadd.f32 %v15536_v61, %v11746_v54  ;;  %v7270_v31 = vadd.f32 %v15536_v61, %v12048_v11  ;;  %v5238_v5 = vpop.f32.mrb[219].mxu0  ;;  %11904 = vmatmul.mubr.msk.f32.gmra.mrb[68].mxu0 %vm221_vm1, %v9642_v41  ;;  %v7264_v63 = vpop.f32.mrb[219].mxu1  ;;  %v10039_v41 = vld [vmem:[%s17747_s0 + $0x1688] sm:$0xff]  ;;  %v9647_v30 = vld [vmem:[%s17747_s0 + $0x1070] sm:$0xff] }
 0x295   :  { %12206 = vmatmul.mubr.msk.f32.gmra.mrb[68].mxu1 %vm221_vm1, %v10035_v58  ;;  %8740 = vst.msk [vmem:[%s17749_s3 + $0x90] sm:$0xff] %vm8721_vm4, %v8543_v25  ;;  %v8349_v53 = vmax.f32 %v6127_v10, %v8153_v62  ;;  %v5239_v57 = vadd.f32 %v15536_v61, %v5238_v5  ;;  %v7265_v42 = vadd.f32 %v15536_v61, %v7264_v63 }
 0x296   :  { %11906 = vmatprep.mubr.msk.f32.mxu0 %vm221_vm1, %v9643_v29  ;;  %12208 = vmatprep.mubr.msk.f32.mxu1 %vm221_vm1, %v10036_v52  ;;  %v8546_v4 = vmax.f32 %v13542_v8, %v8350_v45  ;;  %v6130_v27 = vmax.f32 %v5244_v16, 0.0  ;;  %v8156_v47 = vmax.f32 %v7270_v31, 0.0  ;;  %v10040_v29 = vld [vmem:[%s17747_s0 + $0x1690] sm:$0xff] }
 0x297   :  { %v8545_v43 = vmax.f32 %v13548_v14, %v8349_v53  ;;  %v6129_v2 = vmax.f32 %v5239_v57, 0.0  ;;  %v8155_v55 = vmax.f32 %v7265_v42, 0.0  ;;  %v11749_v15 = vpop.f32.mrb[220].mxu0  ;;  %v12051_v21 = vpop.f32.mrb[220].mxu1  ;;  %v9648_v53 = vld [vmem:[%s17747_s0 + $0x1078] sm:$0xff] }
 0x298   :  { %8743 = vst.msk [vmem:[%s17749_s3 + $0xa8] sm:$0xff] %vm8721_vm4, %v8546_v4  ;;  %v8352_v8 = vmax.f32 %v6130_v27, %v8156_v47  ;;  %v5254_v46 = vadd.f32 %v15536_v61, %v11749_v15  ;;  %v7280_v50 = vadd.f32 %v15536_v61, %v12051_v21  ;;  %v5248_v48 = vpop.f32.mrb[221].mxu0  ;;  %11907 = vmatmul.mubr.msk.f32.gmra.mrb[70].mxu0 %vm221_vm1, %v9644_v32  ;;  %v7274_v7 = vpop.f32.mrb[221].mxu1  ;;  %v10041_v57 = vld [vmem:[%s17747_s0 + $0x1698] sm:$0xff]  ;;  %v9649_v4 = vld [vmem:[%s17747_s0 + $0x1080] sm:$0xff] }
 0x299   :  { %12209 = vmatmul.mubr.msk.f32.gmra.mrb[70].mxu1 %vm221_vm1, %v10037_v13  ;;  %8742 = vst.msk [vmem:[%s17749_s3 + $0xa0] sm:$0xff] %vm8721_vm4, %v8545_v43  ;;  %v8351_v14 = vmax.f32 %v6129_v2, %v8155_v55  ;;  %v5249_v28 = vadd.f32 %v15536_v61, %v5248_v48  ;;  %v7275_v24 = vadd.f32 %v15536_v61, %v7274_v7  ;;  %v10042_v27 = vld [vmem:[%s17747_s0 + $0x16a0] sm:$0xff]  ;;  %v9650_v48 = vld [vmem:[%s17747_s0 + $0x1088] sm:$0xff] }
 0x29a   :  { %11909 = vmatprep.mubr.msk.f32.mxu0 %vm221_vm1, %v9645_v17  ;;  %12211 = vmatprep.mubr.msk.f32.mxu1 %vm221_vm1, %v10038_v40  ;;  %v8548_v58 = vmax.f32 %v13566_v34, %v8352_v8  ;;  %v6132_v19 = vmax.f32 %v5254_v46, 0.0  ;;  %v8158_v6 = vmax.f32 %v7280_v50, 0.0  ;;  %v10043_v7 = vld [vmem:[%s17747_s0 + $0x16a8] sm:$0xff] }
 0x29b   :  { %v8547_v52 = vmax.f32 %v13572_v39, %v8351_v14  ;;  %v6131_v25 = vmax.f32 %v5249_v28, 0.0  ;;  %v8157_v10 = vmax.f32 %v7275_v24, 0.0  ;;  %v11752_v62 = vpop.f32.mrb[222].mxu0  ;;  %v12054_v54 = vpop.f32.mrb[222].mxu1 }
 0x29c   :  { %8745 = vst.msk [vmem:[%s17749_s3 + $0xb8] sm:$0xff] %vm8721_vm4, %v8548_v58  ;;  %v8354_v34 = vmax.f32 %v6132_v19, %v8158_v6  ;;  %v5264_v11 = vadd.f32 %v15536_v61, %v11752_v62  ;;  %v7290_v45 = vadd.f32 %v15536_v61, %v12054_v54  ;;  %v5258_v16 = vpop.f32.mrb[223].mxu0  ;;  %11910 = vmatmul.mubr.msk.f32.gmra.mrb[72].mxu0 %vm221_vm1, %v9646_v22  ;;  %v7284_v31 = vpop.f32.mrb[223].mxu1  ;;  %v9651_v22 = vld [vmem:[%s17747_s0 + $0x1090] sm:$0xff] }
 0x29d   :  { %12212 = vmatmul.mubr.msk.f32.gmra.mrb[72].mxu1 %vm221_vm1, %v10039_v41  ;;  %8744 = vst.msk [vmem:[%s17749_s3 + $0xb0] sm:$0xff] %vm8721_vm4, %v8547_v52  ;;  %v8353_v39 = vmax.f32 %v6131_v25, %v8157_v10  ;;  %v5259_v5 = vadd.f32 %v15536_v61, %v5258_v16  ;;  %v7285_v63 = vadd.f32 %v15536_v61, %v7284_v31  ;;  %v10044_v41 = vld [vmem:[%s17747_s0 + $0x16b0] sm:$0xff] }
 0x29e   :  { %11912 = vmatprep.mubr.msk.f32.mxu0 %vm221_vm1, %v9647_v30  ;;  %12214 = vmatprep.mubr.msk.f32.mxu1 %vm221_vm1, %v10040_v29  ;;  %v8550_v42 = vmax.f32 %v13590_v60, %v8354_v34  ;;  %v6134_v32 = vmax.f32 %v5264_v11, 0.0  ;;  %v8160_v13 = vmax.f32 %v7290_v45, 0.0  ;;  %v9652_v11 = vld [vmem:[%s17747_s0 + $0x1098] sm:$0xff] }
 0x29f   :  { %v8549_v47 = vmax.f32 %v13596_v3, %v8353_v39  ;;  %v6133_v17 = vmax.f32 %v5259_v5, 0.0  ;;  %v8159_v40 = vmax.f32 %v7285_v63, 0.0  ;;  %v11755_v43 = vpop.f32.mrb[224].mxu0  ;;  %v12057_v2 = vpop.f32.mrb[224].mxu1  ;;  %v10045_v45 = vld [vmem:[%s17747_s0 + $0x16b8] sm:$0xff]  ;;  %v10046_v5 = vld [vmem:[%s17747_s0 + $0x16c0] sm:$0xff] }
 0x2a0   :  { %8747 = vst.msk [vmem:[%s17749_s3 + $0xc8] sm:$0xff] %vm8721_vm4, %v8550_v42  ;;  %v8356_v60 = vmax.f32 %v6134_v32, %v8160_v13  ;;  %v5274_v55 = vadd.f32 %v15536_v61, %v11755_v43  ;;  %v7300_v15 = vadd.f32 %v15536_v61, %v12057_v2  ;;  %v5268_v21 = vpop.f32.mrb[225].mxu0  ;;  %11913 = vmatmul.mubr.msk.f32.gmra.mrb[74].mxu0 %vm221_vm1, %v9648_v53  ;;  %v7294_v8 = vpop.f32.mrb[225].mxu1  ;;  %v16123_v13 = vld [vmem:[%s17748_s2] ss:$0 sm:$0xff]  ;;  %v9654_v2 = vld [vmem:[%s17747_s0 + $0x10a8] sm:$0xff] }
 0x2a1   :  { %12215 = vmatmul.mubr.msk.f32.gmra.mrb[74].mxu1 %vm221_vm1, %v10041_v57  ;;  %8746 = vst.msk [vmem:[%s17749_s3 + $0xc0] sm:$0xff] %vm8721_vm4, %v8549_v47  ;;  %v8355_v3 = vmax.f32 %v6133_v17, %v8159_v40  ;;  %v5269_v46 = vadd.f32 %v15536_v61, %v5268_v21  ;;  %v7295_v50 = vadd.f32 %v15536_v61, %v7294_v8  ;;  %v9655_v8 = vld [vmem:[%s17747_s0 + $0x10b0] sm:$0xff] }
 0x2a2   :  { %11915 = vmatprep.mubr.msk.f32.mxu0 %vm221_vm1, %v9649_v4  ;;  %12217 = vmatprep.mubr.msk.f32.mxu1 %vm221_vm1, %v10042_v27  ;;  %v8552_v14 = vmax.f32 %v13614_v26, %v8356_v60  ;;  %v6136_v28 = vmax.f32 %v5274_v55, 0.0  ;;  %v8162_v24 = vmax.f32 %v7300_v15, 0.0  ;;  %v10047_v60 = vld [vmem:[%s17747_s0 + $0x16c8] sm:$0xff] }
 0x2a3   :  { %v8551_v58 = vmax.f32 %v13620_v35, %v8355_v3  ;;  %v6135_v19 = vmax.f32 %v5269_v46, 0.0  ;;  %v8161_v6 = vmax.f32 %v7295_v50, 0.0  ;;  %v11758_v30 = vpop.f32.mrb[226].mxu0  ;;  %v12060_v29 = vpop.f32.mrb[226].mxu1  ;;  %v10048_v3 = vld [vmem:[%s17747_s0 + $0x16d0] sm:$0xff] }
 0x2a4   :  { %8749 = vst.msk [vmem:[%s17749_s3 + $0xd8] sm:$0xff] %vm8721_vm4, %v8552_v14  ;;  %v8358_v26 = vmax.f32 %v6136_v28, %v8162_v24  ;;  %v5284_v52 = vadd.f32 %v15536_v61, %v11758_v30  ;;  %v7310_v25 = vadd.f32 %v15536_v61, %v12060_v29  ;;  %v5278_v10 = vpop.f32.mrb[227].mxu0  ;;  %11916 = vmatmul.mubr.msk.f32.gmra.mrb[76].mxu0 %vm221_vm1, %v9650_v48  ;;  %v7304_v62 = vpop.f32.mrb[227].mxu1  ;;  %v10049_v30 = vld [vmem:[%s17747_s0 + $0x16d8] sm:$0xff] }
 0x2a5   :  { %12218 = vmatmul.mubr.msk.f32.gmra.mrb[76].mxu1 %vm221_vm1, %v10043_v7  ;;  %8748 = vst.msk [vmem:[%s17749_s3 + $0xd0] sm:$0xff] %vm8721_vm4, %v8551_v58  ;;  %v8357_v35 = vmax.f32 %v6135_v19, %v8161_v6  ;;  %v5279_v54 = vadd.f32 %v15536_v61, %v5278_v10  ;;  %v7305_v34 = vadd.f32 %v15536_v61, %v7304_v62  ;;  %v9653_v61 = vld [vmem:[%s17747_s0 + $0x10a0] sm:$0xff]  ;;  %v9656_v6 = vld [vmem:[%s17747_s0 + $0x10b8] sm:$0xff] }
 0x2a6   :  { %11918 = vmatprep.mubr.msk.f32.mxu0 %vm221_vm1, %v9651_v22  ;;  %12220 = vmatprep.mubr.msk.f32.mxu1 %vm221_vm1, %v10044_v41  ;;  %v8554_v16 = vmax.f32 %v13638_v56, %v8358_v26  ;;  %v6138_v31 = vmax.f32 %v5284_v52, 0.0  ;;  %v8164_v39 = vmax.f32 %v7310_v25, 0.0  ;;  %v9657_v25 = vld [vmem:[%s17747_s0 + $0x10c0] sm:$0xff] }
 0x2a7   :  { %v8553_v63 = vmax.f32 %v13644_v1, %v8357_v35  ;;  %v6137_v53 = vmax.f32 %v5279_v54, 0.0  ;;  %v8163_v57 = vmax.f32 %v7305_v34, 0.0  ;;  %v11761_v42 = vpop.f32.mrb[228].mxu0  ;;  %v12063_v32 = vpop.f32.mrb[228].mxu1  ;;  %v10050_v10 = vld [vmem:[%s17747_s0 + $0x16e0] sm:$0xff] }
 0x2a8   :  { %8751 = vst.msk [vmem:[%s17749_s3 + $0xe8] sm:$0xff] %vm8721_vm4, %v8554_v16  ;;  %v8360_v56 = vmax.f32 %v6138_v31, %v8164_v39  ;;  %v5294_v4 = vadd.f32 %v16123_v13, %v11761_v42  ;;  %v7320_v27 = vadd.f32 %v16123_v13, %v12063_v32  ;;  %v5288_v1 = vpop.f32.mrb[229].mxu0  ;;  %11919 = vmatmul.mubr.msk.f32.gmra.mrb[78].mxu0 %vm221_vm1, %v9652_v11  ;;  %v7314_v47 = vpop.f32.mrb[229].mxu1 }
 0x2a9   :  { %12221 = vmatmul.mubr.msk.f32.gmra.mrb[78].mxu1 %vm221_vm1, %v10045_v45  ;;  %8750 = vst.msk [vmem:[%s17749_s3 + $0xe0] sm:$0xff] %vm8721_vm4, %v8553_v63  ;;  %v8359_v17 = vmax.f32 %v6137_v53, %v8163_v57  ;;  %v5289_v40 = vadd.f32 %v16123_v13, %v5288_v1  ;;  %v7315_v43 = vadd.f32 %v16123_v13, %v7314_v47  ;;  %v9658_v63 = vld [vmem:[%s17747_s0 + $0x10c8] sm:$0xff] }
 0x2aa   :  { %11921 = vmatprep.mubr.msk.f32.mxu0 %vm221_vm1, %v9653_v61  ;;  %12223 = vmatprep.mubr.msk.f32.mxu1 %vm221_vm1, %v10046_v5  ;;  %v8556_v55 = vmax.f32 %v13662_v23, %v8360_v56  ;;  %v6140_v15 = vmax.f32 %v5294_v4, 0.0  ;;  %v8166_v21 = vmax.f32 %v7320_v27, 0.0  ;;  %v10051_v53 = vld [vmem:[%s17747_s0 + $0x16e8] sm:$0xff]  ;;  %v9659_v56 = vld [vmem:[%s17747_s0 + $0x10d0] sm:$0xff] }
 0x2ab   :  { %v8555_v46 = vmax.f32 %v13668_v36, %v8359_v17  ;;  %v6139_v50 = vmax.f32 %v5289_v40, 0.0  ;;  %v8165_v48 = vmax.f32 %v7315_v43, 0.0  ;;  %v11764_v7 = vpop.f32.mrb[230].mxu0  ;;  %v12066_v14 = vpop.f32.mrb[230].mxu1  ;;  %v10052_v4 = vld [vmem:[%s17747_s0 + $0x16f0] sm:$0xff] }
 0x2ac   :  { %8753 = vst.msk [vmem:[%s17749_s3 + $0xf8] sm:$0xff] %vm8721_vm4, %v8556_v55  ;;  %v8362_v23 = vmax.f32 %v6140_v15, %v8166_v21  ;;  %v5304_v28 = vadd.f32 %v16123_v13, %v11764_v7  ;;  %v7330_v24 = vadd.f32 %v16123_v13, %v12066_v14  ;;  %v5298_v22 = vpop.f32.mrb[231].mxu0  ;;  %11922 = vmatmul.mubr.msk.f32.gmra.mrb[80].mxu0 %vm221_vm1, %v9654_v2  ;;  %v7324_v41 = vpop.f32.mrb[231].mxu1  ;;  %v9661_v7 = vld [vmem:[%s17747_s0 + $0x10e0] sm:$0xff] }
 0x2ad   :  { %12224 = vmatmul.mubr.msk.f32.gmra.mrb[80].mxu1 %vm221_vm1, %v10047_v60  ;;  %8752 = vst.msk [vmem:[%s17749_s3 + $0xf0] sm:$0xff] %vm8721_vm4, %v8555_v46  ;;  %v8361_v36 = vmax.f32 %v6139_v50, %v8165_v48  ;;  %v5299_v58 = vadd.f32 %v16123_v13, %v5298_v22  ;;  %v7325_v19 = vadd.f32 %v16123_v13, %v7324_v41  ;;  %v10054_v14 = vld [vmem:[%s17747_s0 + $0x1700] sm:$0xff] }
 0x2ae   :  { %11924 = vmatprep.mubr.msk.f32.mxu0 %vm221_vm1, %v9655_v8  ;;  %12226 = vmatprep.mubr.msk.f32.mxu1 %vm221_vm1, %v10048_v3  ;;  %v8558_v29 = vmax.f32 %v13686_v59, %v8362_v23  ;;  %v6142_v26 = vmax.f32 %v5304_v28, 0.0  ;;  %v8168_v52 = vmax.f32 %v7330_v24, 0.0  ;;  %v9660_v8 = vld [vmem:[%s17747_s0 + $0x10d8] sm:$0xff] }
 0x2af   :  { %v8557_v62 = vmax.f32 %v13692_v9, %v8361_v36  ;;  %v6141_v35 = vmax.f32 %v5299_v58, 0.0  ;;  %v8167_v54 = vmax.f32 %v7325_v19, 0.0  ;;  %v11767_v34 = vpop.f32.mrb[232].mxu0  ;;  %v12069_v11 = vpop.f32.mrb[232].mxu1  ;;  %v10053_v3 = vld [vmem:[%s17747_s0 + $0x16f8] sm:$0xff] }
 0x2b0   :  { %8755 = vst.msk [vmem:[%s17749_s3 + $0x108] sm:$0xff] %vm8721_vm4, %v8558_v29  ;;  %v8364_v59 = vmax.f32 %v6142_v26, %v8168_v52  ;;  %v5314_v45 = vadd.f32 %v16123_v13, %v11767_v34  ;;  %v7340_v16 = vadd.f32 %v16123_v13, %v12069_v11  ;;  %v5308_v31 = vpop.f32.mrb[233].mxu0  ;;  %11925 = vmatmul.mubr.msk.f32.gmra.mrb[82].mxu0 %vm221_vm1, %v9656_v6  ;;  %v7334_v39 = vpop.f32.mrb[233].mxu1  ;;  %v9662_v26 = vld [vmem:[%s17747_s0 + $0x10e8] sm:$0xff] }
 0x2b1   :  { %12227 = vmatmul.mubr.msk.f32.gmra.mrb[82].mxu1 %vm221_vm1, %v10049_v30  ;;  %8754 = vst.msk [vmem:[%s17749_s3 + $0x100] sm:$0xff] %vm8721_vm4, %v8557_v62  ;;  %v8363_v9 = vmax.f32 %v6141_v35, %v8167_v54  ;;  %v5309_v61 = vadd.f32 %v16123_v13, %v5308_v31  ;;  %v7335_v5 = vadd.f32 %v16123_v13, %v7334_v39  ;;  %v10055_v52 = vld [vmem:[%s17747_s0 + $0x1708] sm:$0xff]  ;;  %v9663_v35 = vld [vmem:[%s17747_s0 + $0x10f0] sm:$0xff] }
 0x2b2   :  { %11927 = vmatprep.mubr.msk.f32.mxu0 %vm221_vm1, %v9657_v25  ;;  %12229 = vmatprep.mubr.msk.f32.mxu1 %vm221_vm1, %v10050_v10  ;;  %v8560_v57 = vmax.f32 %v13710_v33, %v8364_v59  ;;  %v6144_v42 = vmax.f32 %v5314_v45, 0.0  ;;  %v8170_v32 = vmax.f32 %v7340_v16, 0.0  ;;  %v10056_v54 = vld [vmem:[%s17747_s0 + $0x1710] sm:$0xff] }
 0x2b3   :  { %v8559_v27 = vmax.f32 %v13716_v44, %v8363_v9  ;;  %v6143_v1 = vmax.f32 %v5309_v61, 0.0  ;;  %v8169_v47 = vmax.f32 %v7335_v5, 0.0  ;;  %v11770_v17 = vpop.f32.mrb[234].mxu0  ;;  %v12072_v40 = vpop.f32.mrb[234].mxu1 }
 0x2b4   :  { %8757 = vst.msk [vmem:[%s17749_s3 + $0x118] sm:$0xff] %vm8721_vm4, %v8560_v57  ;;  %v8366_v33 = vmax.f32 %v6144_v42, %v8170_v32  ;;  %v5324_v43 = vadd.f32 %v16123_v13, %v11770_v17  ;;  %v7350_v2 = vadd.f32 %v16123_v13, %v12072_v40  ;;  %v5318_v60 = vpop.f32.mrb[235].mxu0  ;;  %11928 = vmatmul.mubr.msk.f32.gmra.mrb[84].mxu0 %vm221_vm1, %v9658_v63  ;;  %v7344_v55 = vpop.f32.mrb[235].mxu1  ;;  %v10057_v57 = vld [vmem:[%s17747_s0 + $0x1718] sm:$0xff] }
 0x2b5   :  { %12230 = vmatmul.mubr.msk.f32.gmra.mrb[84].mxu1 %vm221_vm1, %v10051_v53  ;;  %8756 = vst.msk [vmem:[%s17749_s3 + $0x110] sm:$0xff] %vm8721_vm4, %v8559_v27  ;;  %v8365_v44 = vmax.f32 %v6143_v1, %v8169_v47  ;;  %v5319_v15 = vadd.f32 %v16123_v13, %v5318_v60  ;;  %v7345_v21 = vadd.f32 %v16123_v13, %v7344_v55  ;;  %v9664_v53 = vld [vmem:[%s17747_s0 + $0x10f8] sm:$0xff]  ;;  %v10058_v27 = vld [vmem:[%s17747_s0 + $0x1720] sm:$0xff] }
 0x2b6   :  { %11930 = vmatprep.mubr.msk.f32.mxu0 %vm221_vm1, %v9659_v56  ;;  %12232 = vmatprep.mubr.msk.f32.mxu1 %vm221_vm1, %v10052_v4  ;;  %v8562_v46 = vmax.f32 %v13734_v12, %v8366_v33  ;;  %v6146_v50 = vmax.f32 %v5324_v43, 0.0  ;;  %v8172_v48 = vmax.f32 %v7350_v2, 0.0  ;;  %v9665_v4 = vld [vmem:[%s17747_s0 + $0x1100] sm:$0xff] }
 0x2b7   :  { %v8561_v23 = vmax.f32 %v13740_v18, %v8365_v44  ;;  %v6145_v28 = vmax.f32 %v5319_v15, 0.0  ;;  %v8171_v24 = vmax.f32 %v7345_v21, 0.0  ;;  %v11773_v22 = vpop.f32.mrb[236].mxu0  ;;  %v12075_v41 = vpop.f32.mrb[236].mxu1  ;;  %v9666_v21 = vld [vmem:[%s17747_s0 + $0x1108] sm:$0xff] }
 0x2b8   :  { %8759 = vst.msk [vmem:[%s17749_s3 + $0x128] sm:$0xff] %vm8721_vm4, %v8562_v46  ;;  %v8368_v12 = vmax.f32 %v6146_v50, %v8172_v48  ;;  %v5334_v36 = vadd.f32 %v16123_v13, %v11773_v22  ;;  %v7360_v58 = vadd.f32 %v16123_v13, %v12075_v41  ;;  %v5328_v19 = vpop.f32.mrb[237].mxu0  ;;  %11931 = vmatmul.mubr.msk.f32.gmra.mrb[86].mxu0 %vm221_vm1, %v9660_v8  ;;  %v7354_v6 = vpop.f32.mrb[237].mxu1  ;;  %v10059_v8 = vld [vmem:[%s17747_s0 + $0x1728] sm:$0xff]  ;;  %v9667_v48 = vld [vmem:[%s17747_s0 + $0x1110] sm:$0xff] }
 0x2b9   :  { %12233 = vmatmul.mubr.msk.f32.gmra.mrb[86].mxu1 %vm221_vm1, %v10053_v3  ;;  %8758 = vst.msk [vmem:[%s17749_s3 + $0x120] sm:$0xff] %vm8721_vm4, %v8561_v23  ;;  %v8367_v18 = vmax.f32 %v6145_v28, %v8171_v24  ;;  %v5329_v30 = vadd.f32 %v16123_v13, %v5328_v19  ;;  %v7355_v29 = vadd.f32 %v16123_v13, %v7354_v6 }
 0x2ba   :  { %11933 = vmatprep.mubr.msk.f32.mxu0 %vm221_vm1, %v9661_v7  ;;  %12235 = vmatprep.mubr.msk.f32.mxu1 %vm221_vm1, %v10054_v14  ;;  %v8564_v25 = vmax.f32 %v13758_v51, %v8368_v12  ;;  %v6148_v10 = vmax.f32 %v5334_v36, 0.0  ;;  %v8174_v62 = vmax.f32 %v7360_v58, 0.0  ;;  %v10060_v7 = vld [vmem:[%s17747_s0 + $0x1730] sm:$0xff] }
 0x2bb   :  { %v8563_v34 = vmax.f32 %v13764_v0, %v8367_v18  ;;  %v6147_v11 = vmax.f32 %v5329_v30, 0.0  ;;  %v8173_v59 = vmax.f32 %v7355_v29, 0.0  ;;  %v11776_v45 = vpop.f32.mrb[238].mxu0  ;;  %v12078_v16 = vpop.f32.mrb[238].mxu1  ;;  %v9668_v18 = vld [vmem:[%s17747_s0 + $0x1118] sm:$0xff]  ;;  %v17904_v29 = vld [vmem:[#allocation2_spill] sm:$0xff] }
 0x2bc   :  { %8761 = vst.msk [vmem:[%s17749_s3 + $0x138] sm:$0xff] %vm8721_vm4, %v8564_v25  ;;  %v8370_v51 = vmax.f32 %v6148_v10, %v8174_v62  ;;  %v5344_v31 = vadd.f32 %v16123_v13, %v11776_v45  ;;  %v7370_v39 = vadd.f32 %v16123_v13, %v12078_v16  ;;  %v5338_v9 = vpop.f32.mrb[239].mxu0  ;;  %11934 = vmatmul.mubr.msk.f32.gmra.mrb[88].mxu0 %vm221_vm1, %v9662_v26  ;;  %v7364_v61 = vpop.f32.mrb[239].mxu1  ;;  %v10061_v30 = vld [vmem:[%s17747_s0 + $0x1738] sm:$0xff]  ;;  %v9669_v10 = vld [vmem:[%s17747_s0 + $0x1120] sm:$0xff] }
 0x2bd   :  { %12236 = vmatmul.mubr.msk.f32.gmra.mrb[88].mxu1 %vm221_vm1, %v10055_v52  ;;  %8760 = vst.msk [vmem:[%s17749_s3 + $0x130] sm:$0xff] %vm8721_vm4, %v8563_v34  ;;  %v8369_v0 = vmax.f32 %v6147_v11, %v8173_v59  ;;  %v5339_v5 = vadd.f32 %v16123_v13, %v5338_v9  ;;  %v7365_v63 = vadd.f32 %v16123_v13, %v7364_v61  ;;  %v10062_v62 = vld [vmem:[%s17747_s0 + $0x1740] sm:$0xff] }
 0x2be   :  { %11936 = vmatprep.mubr.msk.f32.mxu0 %vm221_vm1, %v9663_v35  ;;  %12238 = vmatprep.mubr.msk.f32.mxu1 %vm221_vm1, %v10056_v54  ;;  %v8566_v42 = vmax.f32 %v13782_v37, %v8370_v51  ;;  %v6150_v32 = vmax.f32 %v5344_v31, 0.0  ;;  %v8176_v56 = vmax.f32 %v7370_v39, 0.0  ;;  %v17905_v35 = vld [vmem:[#allocation3_spill] sm:$0xff] }
 0x2bf   :  { %v8565_v1 = vmax.f32 %v13788_v49, %v8369_v0  ;;  %v6149_v47 = vmax.f32 %v5339_v5, 0.0  ;;  %v8175_v17 = vmax.f32 %v7365_v63, 0.0  ;;  %v11779_v40 = vpop.f32.mrb[240].mxu0  ;;  %v12081_v33 = vpop.f32.mrb[240].mxu1  ;;  %v9670_v63 = vld [vmem:[%s17747_s0 + $0x1128] sm:$0xff] }
 0x2c0   :  { %8763 = vst.msk [vmem:[%s17749_s3 + $0x148] sm:$0xff] %vm8721_vm4, %v8566_v42  ;;  %v8372_v37 = vmax.f32 %v6150_v32, %v8176_v56  ;;  %v5354_v43 = vadd.f32 %v16123_v13, %v11779_v40  ;;  %v7380_v2 = vadd.f32 %v16123_v13, %v12081_v33  ;;  %v5348_v60 = vpop.f32.mrb[241].mxu0  ;;  %11937 = vmatmul.mubr.msk.f32.gmra.mrb[90].mxu0 %vm221_vm1, %v9664_v53  ;;  %v7374_v55 = vpop.f32.mrb[241].mxu1  ;;  %v10063_v53 = vld [vmem:[%s17747_s0 + $0x1748] sm:$0xff] }
 0x2c1   :  { %12239 = vmatmul.mubr.msk.f32.gmra.mrb[90].mxu1 %vm221_vm1, %v10057_v57  ;;  %8762 = vst.msk [vmem:[%s17749_s3 + $0x140] sm:$0xff] %vm8721_vm4, %v8565_v1  ;;  %v8371_v49 = vmax.f32 %v6149_v47, %v8175_v17  ;;  %v5349_v44 = vadd.f32 %v16123_v13, %v5348_v60  ;;  %v7375_v15 = vadd.f32 %v16123_v13, %v7374_v55  ;;  %v17906_v57 = vld [vmem:[#allocation4_spill] sm:$0xff]  ;;  %v17907_v1 = vld [vmem:[#allocation5_spill] sm:$0xff] }
 0x2c2   :  { %11939 = vmatprep.mubr.msk.f32.mxu0 %vm221_vm1, %v9665_v4  ;;  %12241 = vmatprep.mubr.msk.f32.mxu1 %vm221_vm1, %v10058_v27  ;;  %v8568_v3 = vmax.f32 %v13806_v20, %v8372_v37  ;;  %v6152_v46 = vmax.f32 %v5354_v43, 0.0  ;;  %v8178_v50 = vmax.f32 %v7380_v2, 0.0  ;;  %v9671_v4 = vld [vmem:[%s17747_s0 + $0x1130] sm:$0xff] }
 0x2c3   :  { %v8567_v14 = vmax.f32 %v13812_v38, %v8371_v49  ;;  %v6151_v23 = vmax.f32 %v5349_v44, 0.0  ;;  %v8177_v28 = vmax.f32 %v7375_v15, 0.0  ;;  %v11782_v24 = vpop.f32.mrb[242].mxu0  ;;  %v12084_v22 = vpop.f32.mrb[242].mxu1  ;;  %v10064_v27 = vld [vmem:[%s17747_s0 + $0x1750] sm:$0xff] }
 0x2c4   :  { %8765 = vst.msk [vmem:[%s17749_s3 + $0x158] sm:$0xff] %vm8721_vm4, %v8568_v3  ;;  %v8374_v20 = vmax.f32 %v6152_v46, %v8178_v50  ;;  %v5364_v41 = vadd.f32 %v16123_v13, %v11782_v24  ;;  %v7390_v12 = vadd.f32 %v16123_v13, %v12084_v22  ;;  %v5358_v36 = vpop.f32.mrb[243].mxu0  ;;  %11940 = vmatmul.mubr.msk.f32.gmra.mrb[92].mxu0 %vm221_vm1, %v9666_v21  ;;  %v7384_v58 = vpop.f32.mrb[243].mxu1  ;;  %v10065_v3 = vld [vmem:[%s17747_s0 + $0x1758] sm:$0xff]  ;;  %v17908_v46 = vld [vmem:[#allocation6_spill] sm:$0xff] }
 0x2c5   :  { %12242 = vmatmul.mubr.msk.f32.gmra.mrb[92].mxu1 %vm221_vm1, %v10059_v8  ;;  %8764 = vst.msk [vmem:[%s17749_s3 + $0x150] sm:$0xff] %vm8721_vm4, %v8567_v14  ;;  %v8373_v38 = vmax.f32 %v6151_v23, %v8177_v28  ;;  %v5359_v19 = vadd.f32 %v16123_v13, %v5358_v36  ;;  %v7385_v6 = vadd.f32 %v16123_v13, %v7384_v58  ;;  %v9672_v8 = vld [vmem:[%s17747_s0 + $0x1138] sm:$0xff]  ;;  %v9673_v14 = vld [vmem:[%s17747_s0 + $0x1140] sm:$0xff]  ;;  %v17909_v28 = vld [vmem:[#allocation7_spill] sm:$0xff] }
 0x2c6   :  { %11942 = vmatprep.mubr.msk.f32.mxu0 %vm221_vm1, %v9667_v48  ;;  %12244 = vmatprep.mubr.msk.f32.mxu1 %vm221_vm1, %v10060_v7  ;;  %v8570_v26 = vmax.f32 %v17904_v29, %v8374_v20  ;;  %v6154_v52 = vmax.f32 %v5364_v41, 0.0  ;;  %v8180_v25 = vmax.f32 %v7390_v12, 0.0  ;;  %v10066_v23 = vld [vmem:[%s17747_s0 + $0x1760] sm:$0xff] }
 0x2c7   :  { %v8569_v54 = vmax.f32 %v17905_v35, %v8373_v38  ;;  %v6153_v34 = vmax.f32 %v5359_v19, 0.0  ;;  %v8179_v11 = vmax.f32 %v7385_v6, 0.0  ;;  %v11785_v59 = vpop.f32.mrb[244].mxu0  ;;  %v12087_v45 = vpop.f32.mrb[244].mxu1 }
 0x2c8   :  { %8767 = vst.msk [vmem:[%s17749_s3 + $0x168] sm:$0xff] %vm8721_vm4, %v8570_v26  ;;  %v8376_v16 = vmax.f32 %v6154_v52, %v8180_v25  ;;  %v5374_v51 = vadd.f32 %v16123_v13, %v11785_v59  ;;  %v7400_v31 = vadd.f32 %v16123_v13, %v12087_v45  ;;  %v5368_v39 = vpop.f32.mrb[245].mxu0  ;;  %11943 = vmatmul.mubr.msk.f32.gmra.mrb[94].mxu0 %vm221_vm1, %v9668_v18  ;;  %v7394_v9 = vpop.f32.mrb[245].mxu1  ;;  %v9674_v26 = vld [vmem:[%s17747_s0 + $0x1148] sm:$0xff]  ;;  %v17910_v25 = vld [vmem:[#allocation8_spill] sm:$0xff] }
 0x2c9   :  { %12245 = vmatmul.mubr.msk.f32.gmra.mrb[94].mxu1 %vm221_vm1, %v10061_v30  ;;  %8766 = vst.msk [vmem:[%s17749_s3 + $0x160] sm:$0xff] %vm8721_vm4, %v8569_v54  ;;  %v8375_v61 = vmax.f32 %v6153_v34, %v8179_v11  ;;  %v5369_v0 = vadd.f32 %v16123_v13, %v5368_v39  ;;  %v7395_v5 = vadd.f32 %v16123_v13, %v7394_v9  ;;  %v10067_v52 = vld [vmem:[%s17747_s0 + $0x1768] sm:$0xff]  ;;  %v9675_v54 = vld [vmem:[%s17747_s0 + $0x1150] sm:$0xff]  ;;  %v17911_v11 = vld [vmem:[#allocation9_spill] sm:$0xff] }
 0x2ca   :  { %11945 = vmatprep.mubr.msk.f32.mxu0 %vm221_vm1, %v9669_v10  ;;  %12247 = vmatprep.mubr.msk.f32.mxu1 %vm221_vm1, %v10062_v62  ;;  %v8572_v42 = vmax.f32 %v17906_v57, %v8376_v16  ;;  %v6156_v32 = vmax.f32 %v5374_v51, 0.0  ;;  %v8182_v56 = vmax.f32 %v7400_v31, 0.0  ;;  %v10068_v34 = vld [vmem:[%s17747_s0 + $0x1770] sm:$0xff] }
 0x2cb   :  { %v8571_v47 = vmax.f32 %v17907_v1, %v8375_v61  ;;  %v6155_v17 = vmax.f32 %v5369_v0, 0.0  ;;  %v8181_v40 = vmax.f32 %v7395_v5, 0.0  ;;  %v11788_v33 = vpop.f32.mrb[246].mxu0  ;;  %v12090_v37 = vpop.f32.mrb[246].mxu1 }
 0x2cc   :  { %8769 = vst.msk [vmem:[%s17749_s3 + $0x178] sm:$0xff] %vm8721_vm4, %v8572_v42  ;;  %v8378_v43 = vmax.f32 %v6156_v32, %v8182_v56  ;;  %v5384_v2 = vadd.f32 %v16123_v13, %v11788_v33  ;;  %v7410_v60 = vadd.f32 %v16123_v13, %v12090_v37  ;;  %v5378_v55 = vpop.f32.mrb[247].mxu0  ;;  %11946 = vmatmul.mubr.msk.f32.gmra.mrb[96].mxu0 %vm221_vm1, %v9670_v63  ;;  %v7404_v49 = vpop.f32.mrb[247].mxu1  ;;  %v9676_v42 = vld [vmem:[%s17747_s0 + $0x1158] sm:$0xff]  ;;  %v17912_v56 = vld [vmem:[#allocation10_spill] sm:$0xff] }
 0x2cd   :  { %12248 = vmatmul.mubr.msk.f32.gmra.mrb[96].mxu1 %vm221_vm1, %v10063_v53  ;;  %8768 = vst.msk [vmem:[%s17749_s3 + $0x170] sm:$0xff] %vm8721_vm4, %v8571_v47  ;;  %v8377_v44 = vmax.f32 %v6155_v17, %v8181_v40  ;;  %v5379_v15 = vadd.f32 %v16123_v13, %v5378_v55  ;;  %v7405_v21 = vadd.f32 %v16123_v13, %v7404_v49  ;;  %v10069_v32 = vld [vmem:[%s17747_s0 + $0x1778] sm:$0xff]  ;;  %v9677_v47 = vld [vmem:[%s17747_s0 + $0x1160] sm:$0xff]  ;;  %v17913_v40 = vld [vmem:[#allocation11_spill] sm:$0xff] }
 0x2ce   :  { %11948 = vmatprep.mubr.msk.f32.mxu0 %vm221_vm1, %v9671_v4  ;;  %12250 = vmatprep.mubr.msk.f32.mxu1 %vm221_vm1, %v10064_v27  ;;  %v8574_v50 = vmax.f32 %v17908_v46, %v8378_v43  ;;  %v6158_v48 = vmax.f32 %v5384_v2, 0.0  ;;  %v8184_v7 = vmax.f32 %v7410_v60, 0.0  ;;  %v10070_v17 = vld [vmem:[%s17747_s0 + $0x1780] sm:$0xff] }
 0x2cf   :  { %v8573_v24 = vmax.f32 %v17909_v28, %v8377_v44  ;;  %v6157_v22 = vmax.f32 %v5379_v15, 0.0  ;;  %v8183_v20 = vmax.f32 %v7405_v21, 0.0  ;;  %v11791_v41 = vpop.f32.mrb[248].mxu0  ;;  %v12093_v12 = vpop.f32.mrb[248].mxu1 }
 0x2d0   :  { %8771 = vst.msk [vmem:[%s17749_s3 + $0x188] sm:$0xff] %vm8721_vm4, %v8574_v50  ;;  %v8380_v36 = vmax.f32 %v6158_v48, %v8184_v7  ;;  %v5394_v58 = vadd.f32 %v16123_v13, %v11791_v41  ;;  %v7420_v38 = vadd.f32 %v16123_v13, %v12093_v12  ;;  %v5388_v19 = vpop.f32.mrb[249].mxu0  ;;  %11949 = vmatmul.mubr.msk.f32.gmra.mrb[98].mxu0 %vm221_vm1, %v9672_v8  ;;  %v7414_v6 = vpop.f32.mrb[249].mxu1  ;;  %v9678_v50 = vld [vmem:[%s17747_s0 + $0x1168] sm:$0xff]  ;;  %v17914_v7 = vld [vmem:[#allocation12_spill] sm:$0xff] }
 0x2d1   :  { %12251 = vmatmul.mubr.msk.f32.gmra.mrb[98].mxu1 %vm221_vm1, %v10065_v3  ;;  %8770 = vst.msk [vmem:[%s17749_s3 + $0x180] sm:$0xff] %vm8721_vm4, %v8573_v24  ;;  %v8379_v18 = vmax.f32 %v6157_v22, %v8183_v20  ;;  %v5389_v30 = vadd.f32 %v16123_v13, %v5388_v19  ;;  %v7415_v29 = vadd.f32 %v16123_v13, %v7414_v6  ;;  %v10071_v48 = vld [vmem:[%s17747_s0 + $0x1788] sm:$0xff]  ;;  %v9679_v24 = vld [vmem:[%s17747_s0 + $0x1170] sm:$0xff]  ;;  %v17915_v20 = vld [vmem:[#allocation13_spill] sm:$0xff] }
 0x2d2   :  { %11951 = vmatprep.mubr.msk.f32.mxu0 %vm221_vm1, %v9673_v14  ;;  %12253 = vmatprep.mubr.msk.f32.mxu1 %vm221_vm1, %v10066_v23  ;;  %v8576_v10 = vmax.f32 %v17910_v25, %v8380_v36  ;;  %v6160_v62 = vmax.f32 %v5394_v58, 0.0  ;;  %v8186_v35 = vmax.f32 %v7420_v38, 0.0  ;;  %v10072_v22 = vld [vmem:[%s17747_s0 + $0x1790] sm:$0xff] }
 0x2d3   :  { %v8575_v59 = vmax.f32 %v17911_v11, %v8379_v18  ;;  %v6159_v45 = vmax.f32 %v5389_v30, 0.0  ;;  %v8185_v16 = vmax.f32 %v7415_v29, 0.0  ;;  %v11794_v51 = vpop.f32.mrb[250].mxu0  ;;  %v12096_v31 = vpop.f32.mrb[250].mxu1 }
 0x2d4   :  { %8773 = vst.msk [vmem:[%s17749_s3 + $0x198] sm:$0xff] %vm8721_vm4, %v8576_v10  ;;  %v8382_v39 = vmax.f32 %v6160_v62, %v8186_v35  ;;  %v5404_v9 = vadd.f32 %v16123_v13, %v11794_v51  ;;  %v7430_v61 = vadd.f32 %v16123_v13, %v12096_v31  ;;  %v5398_v0 = vpop.f32.mrb[251].mxu0  ;;  %11952 = vmatmul.mubr.msk.f32.gmra.mrb[100].mxu0 %vm221_vm1, %v9674_v26  ;;  %v7424_v5 = vpop.f32.mrb[251].mxu1  ;;  %v9680_v10 = vld [vmem:[%s17747_s0 + $0x1178] sm:$0xff]  ;;  %v17916_v35 = vld [vmem:[#allocation14_spill] sm:$0xff] }
 0x2d5   :  { %12254 = vmatmul.mubr.msk.f32.gmra.mrb[100].mxu1 %vm221_vm1, %v10067_v52  ;;  %8772 = vst.msk [vmem:[%s17749_s3 + $0x190] sm:$0xff] %vm8721_vm4, %v8575_v59  ;;  %v8381_v63 = vmax.f32 %v6159_v45, %v8185_v16  ;;  %v5399_v53 = vadd.f32 %v16123_v13, %v5398_v0  ;;  %v7425_v57 = vadd.f32 %v16123_v13, %v7424_v5  ;;  %v10073_v62 = vld [vmem:[%s17747_s0 + $0x1798] sm:$0xff]  ;;  %v9681_v59 = vld [vmem:[%s17747_s0 + $0x1180] sm:$0xff]  ;;  %v17917_v16 = vld [vmem:[#allocation15_spill] sm:$0xff] }
 0x2d6   :  { %11954 = vmatprep.mubr.msk.f32.mxu0 %vm221_vm1, %v9675_v54  ;;  %12256 = vmatprep.mubr.msk.f32.mxu1 %vm221_vm1, %v10068_v34  ;;  %v8578_v4 = vmax.f32 %v17912_v56, %v8382_v39  ;;  %v6162_v27 = vmax.f32 %v5404_v9, 0.0  ;;  %v8188_v1 = vmax.f32 %v7430_v61, 0.0  ;;  %v10074_v45 = vld [vmem:[%s17747_s0 + $0x17a0] sm:$0xff] }
 0x2d7   :  { %v8577_v33 = vmax.f32 %v17913_v40, %v8381_v63  ;;  %v6161_v37 = vmax.f32 %v5399_v53, 0.0  ;;  %v8187_v43 = vmax.f32 %v7425_v57, 0.0  ;;  %v11797_v2 = vpop.f32.mrb[252].mxu0  ;;  %v12099_v60 = vpop.f32.mrb[252].mxu1 }
 0x2d8   :  { %8775 = vst.msk [vmem:[%s17749_s3 + $0x1a8] sm:$0xff] %vm8721_vm4, %v8578_v4  ;;  %v8384_v55 = vmax.f32 %v6162_v27, %v8188_v1  ;;  %v5414_v49 = vadd.f32 %v16123_v13, %v11797_v2  ;;  %v7440_v44 = vadd.f32 %v16123_v13, %v12099_v60  ;;  %v5408_v15 = vpop.f32.mrb[253].mxu0  ;;  %11955 = vmatmul.mubr.msk.f32.gmra.mrb[102].mxu0 %vm221_vm1, %v9676_v42  ;;  %v7434_v21 = vpop.f32.mrb[253].mxu1  ;;  %v9682_v4 = vld [vmem:[%s17747_s0 + $0x1188] sm:$0xff]  ;;  %v17918_v1 = vld [vmem:[#allocation16_spill] sm:$0xff] }
 0x2d9   :  { %12257 = vmatmul.mubr.msk.f32.gmra.mrb[102].mxu1 %vm221_vm1, %v10069_v32  ;;  %8774 = vst.msk [vmem:[%s17749_s3 + $0x1a0] sm:$0xff] %vm8721_vm4, %v8577_v33  ;;  %v8383_v8 = vmax.f32 %v6161_v37, %v8187_v43  ;;  %v5409_v3 = vadd.f32 %v16123_v13, %v5408_v15  ;;  %v7435_v46 = vadd.f32 %v16123_v13, %v7434_v21  ;;  %v10075_v27 = vld [vmem:[%s17747_s0 + $0x17a8] sm:$0xff]  ;;  %v9683_v33 = vld [vmem:[%s17747_s0 + $0x1190] sm:$0xff]  ;;  %v17919_v43 = vld [vmem:[#allocation17_spill] sm:$0xff] }
 0x2da   :  { %11957 = vmatprep.mubr.msk.f32.mxu0 %vm221_vm1, %v9677_v47  ;;  %12259 = vmatprep.mubr.msk.f32.mxu1 %vm221_vm1, %v10070_v17  ;;  %v8580_v14 = vmax.f32 %v17914_v7, %v8384_v55  ;;  %v6164_v23 = vmax.f32 %v5414_v49, 0.0  ;;  %v8190_v28 = vmax.f32 %v7440_v44, 0.0  ;;  %v10076_v37 = vld [vmem:[%s17747_s0 + $0x17b0] sm:$0xff] }
 0x2db   :  { %v8579_v41 = vmax.f32 %v17915_v20, %v8383_v8  ;;  %v6163_v12 = vmax.f32 %v5409_v3, 0.0  ;;  %v8189_v36 = vmax.f32 %v7435_v46, 0.0  ;;  %v11800_v58 = vpop.f32.mrb[254].mxu0  ;;  %v12102_v38 = vpop.f32.mrb[254].mxu1 }
 0x2dc   :  { %8777 = vst.msk [vmem:[%s17749_s3 + $0x1b8] sm:$0xff] %vm8721_vm4, %v8580_v14  ;;  %v8386_v19 = vmax.f32 %v6164_v23, %v8190_v28  ;;  %v5424_v6 = vadd.f32 %v16123_v13, %v11800_v58  ;;  %v7450_v18 = vadd.f32 %v16123_v13, %v12102_v38  ;;  %v5418_v30 = vpop.f32.mrb[255].mxu0  ;;  %11958 = vmatmul.mubr.msk.f32.gmra.mrb[104].mxu0 %vm221_vm1, %v9678_v50  ;;  %v7444_v29 = vpop.f32.mrb[255].mxu1  ;;  %v9684_v14 = vld [vmem:[%s17747_s0 + $0x1198] sm:$0xff]  ;;  %v17920_v28 = vld [vmem:[#allocation18_spill] sm:$0xff] }
 0x2dd   :  { %12260 = vmatmul.mubr.msk.f32.gmra.mrb[104].mxu1 %vm221_vm1, %v10071_v48  ;;  %8776 = vst.msk [vmem:[%s17749_s3 + $0x1b0] sm:$0xff] %vm8721_vm4, %v8579_v41  ;;  %v8385_v26 = vmax.f32 %v6163_v12, %v8189_v36  ;;  %v5419_v52 = vadd.f32 %v16123_v13, %v5418_v30  ;;  %v7445_v25 = vadd.f32 %v16123_v13, %v7444_v29  ;;  %v10077_v23 = vld [vmem:[%s17747_s0 + $0x17b8] sm:$0xff]  ;;  %v9685_v41 = vld [vmem:[%s17747_s0 + $0x11a0] sm:$0xff]  ;;  %v17921_v36 = vld [vmem:[#allocation19_spill] sm:$0xff] }
 0x2de   :  { %11960 = vmatprep.mubr.msk.f32.mxu0 %vm221_vm1, %v9679_v24  ;;  %12262 = vmatprep.mubr.msk.f32.mxu1 %vm221_vm1, %v10072_v22  ;;  %v8582_v54 = vmax.f32 %v17916_v35, %v8386_v19  ;;  %v6166_v34 = vmax.f32 %v5424_v6, 0.0  ;;  %v8192_v11 = vmax.f32 %v7450_v18, 0.0  ;;  %v10078_v12 = vld [vmem:[%s17747_s0 + $0x17c0] sm:$0xff] }
 0x2df   :  { %v8581_v51 = vmax.f32 %v17917_v16, %v8385_v26  ;;  %v6165_v31 = vmax.f32 %v5419_v52, 0.0  ;;  %v8191_v39 = vmax.f32 %v7445_v25, 0.0  ;;  %v11803_v9 = vpop.f32.mrb[0].mxu0  ;;  %v12105_v61 = vpop.f32.mrb[0].mxu1 }
 0x2e0   :  { %8779 = vst.msk [vmem:[%s17749_s3 + $0x1c8] sm:$0xff] %vm8721_vm4, %v8582_v54  ;;  %v8388_v0 = vmax.f32 %v6166_v34, %v8192_v11  ;;  %v5434_v5 = vadd.f32 %v16123_v13, %v11803_v9  ;;  %v7460_v63 = vadd.f32 %v16123_v13, %v12105_v61  ;;  %v5428_v53 = vpop.f32.mrb[1].mxu0  ;;  %11961 = vmatmul.mubr.msk.f32.gmra.mrb[106].mxu0 %vm221_vm1, %v9680_v10  ;;  %v7454_v57 = vpop.f32.mrb[1].mxu1  ;;  %v9686_v54 = vld [vmem:[%s17747_s0 + $0x11a8] sm:$0xff]  ;;  %v17922_v11 = vld [vmem:[#allocation20_spill] sm:$0xff] }
 0x2e1   :  { %12263 = vmatmul.mubr.msk.f32.gmra.mrb[106].mxu1 %vm221_vm1, %v10073_v62  ;;  %8778 = vst.msk [vmem:[%s17749_s3 + $0x1c0] sm:$0xff] %vm8721_vm4, %v8581_v51  ;;  %v8387_v42 = vmax.f32 %v6165_v31, %v8191_v39  ;;  %v5429_v32 = vadd.f32 %v16123_v13, %v5428_v53  ;;  %v7455_v56 = vadd.f32 %v16123_v13, %v7454_v57  ;;  %v10079_v34 = vld [vmem:[%s17747_s0 + $0x17c8] sm:$0xff]  ;;  %v9687_v51 = vld [vmem:[%s17747_s0 + $0x11b0] sm:$0xff]  ;;  %v17923_v39 = vld [vmem:[#allocation21_spill] sm:$0xff] }
 0x2e2   :  { %11963 = vmatprep.mubr.msk.f32.mxu0 %vm221_vm1, %v9681_v59  ;;  %12265 = vmatprep.mubr.msk.f32.mxu1 %vm221_vm1, %v10074_v45  ;;  %v8584_v47 = vmax.f32 %v17918_v1, %v8388_v0  ;;  %v6168_v17 = vmax.f32 %v5434_v5, 0.0  ;;  %v8194_v40 = vmax.f32 %v7460_v63, 0.0  ;;  %v10080_v31 = vld [vmem:[%s17747_s0 + $0x17d0] sm:$0xff] }
 0x2e3   :  { %v8583_v2 = vmax.f32 %v17919_v43, %v8387_v42  ;;  %v6167_v60 = vmax.f32 %v5429_v32, 0.0  ;;  %v8193_v55 = vmax.f32 %v7455_v56, 0.0  ;;  %v11806_v49 = vpop.f32.mrb[2].mxu0  ;;  %v12108_v44 = vpop.f32.mrb[2].mxu1 }
 0x2e4   :  { %8781 = vst.msk [vmem:[%s17749_s3 + $0x1d8] sm:$0xff] %vm8721_vm4, %v8584_v47  ;;  %v8390_v15 = vmax.f32 %v6168_v17, %v8194_v40  ;;  %v5444_v21 = vadd.f32 %v16123_v13, %v11806_v49  ;;  %v7470_v8 = vadd.f32 %v16123_v13, %v12108_v44  ;;  %v5438_v3 = vpop.f32.mrb[3].mxu0  ;;  %11964 = vmatmul.mubr.msk.f32.gmra.mrb[108].mxu0 %vm221_vm1, %v9682_v4  ;;  %v7464_v46 = vpop.f32.mrb[3].mxu1  ;;  %v9688_v47 = vld [vmem:[%s17747_s0 + $0x11b8] sm:$0xff]  ;;  %v17924_v40 = vld [vmem:[#allocation22_spill] sm:$0xff] }
 0x2e5   :  { %12266 = vmatmul.mubr.msk.f32.gmra.mrb[108].mxu1 %vm221_vm1, %v10075_v27  ;;  %8780 = vst.msk [vmem:[%s17749_s3 + $0x1d0] sm:$0xff] %vm8721_vm4, %v8583_v2  ;;  %v8389_v50 = vmax.f32 %v6167_v60, %v8193_v55  ;;  %v5439_v48 = vadd.f32 %v16123_v13, %v5438_v3  ;;  %v7465_v7 = vadd.f32 %v16123_v13, %v7464_v46  ;;  %v10081_v17 = vld [vmem:[%s17747_s0 + $0x17d8] sm:$0xff]  ;;  %v9689_v2 = vld [vmem:[%s17747_s0 + $0x11c0] sm:$0xff]  ;;  %v17925_v55 = vld [vmem:[#allocation23_spill] sm:$0xff] }
 0x2e6   :  { %11966 = vmatprep.mubr.msk.f32.mxu0 %vm221_vm1, %v9683_v33  ;;  %12268 = vmatprep.mubr.msk.f32.mxu1 %vm221_vm1, %v10076_v37  ;;  %v8586_v24 = vmax.f32 %v17920_v28, %v8390_v15  ;;  %v6170_v22 = vmax.f32 %v5444_v21, 0.0  ;;  %v8196_v20 = vmax.f32 %v7470_v8, 0.0  ;;  %v10082_v60 = vld [vmem:[%s17747_s0 + $0x17e0] sm:$0xff] }
 0x2e7   :  { %v8585_v58 = vmax.f32 %v17921_v36, %v8389_v50  ;;  %v6169_v38 = vmax.f32 %v5439_v48, 0.0  ;;  %v8195_v19 = vmax.f32 %v7465_v7, 0.0  ;;  %v11809_v6 = vpop.f32.mrb[4].mxu0  ;;  %v12111_v18 = vpop.f32.mrb[4].mxu1 }
 0x2e8   :  { %8783 = vst.msk [vmem:[%s17749_s3 + $0x1e8] sm:$0xff] %vm8721_vm4, %v8586_v24  ;;  %v8392_v30 = vmax.f32 %v6170_v22, %v8196_v20  ;;  %v5454_v29 = vadd.f32 %v16123_v13, %v11809_v6  ;;  %v7480_v26 = vadd.f32 %v16123_v13, %v12111_v18  ;;  %v5448_v52 = vpop.f32.mrb[5].mxu0  ;;  %11967 = vmatmul.mubr.msk.f32.gmra.mrb[110].mxu0 %vm221_vm1, %v9684_v14  ;;  %v7474_v25 = vpop.f32.mrb[5].mxu1  ;;  %v9690_v24 = vld [vmem:[%s17747_s0 + $0x11c8] sm:$0xff]  ;;  %v17926_v20 = vld [vmem:[#allocation24_spill] sm:$0xff] }
 0x2e9   :  { %12269 = vmatmul.mubr.msk.f32.gmra.mrb[110].mxu1 %vm221_vm1, %v10077_v23  ;;  %8782 = vst.msk [vmem:[%s17749_s3 + $0x1e0] sm:$0xff] %vm8721_vm4, %v8585_v58  ;;  %v8391_v10 = vmax.f32 %v6169_v38, %v8195_v19  ;;  %v5449_v62 = vadd.f32 %v16123_v13, %v5448_v52  ;;  %v7475_v35 = vadd.f32 %v16123_v13, %v7474_v25  ;;  %v10083_v22 = vld [vmem:[%s17747_s0 + $0x17e8] sm:$0xff]  ;;  %v9691_v58 = vld [vmem:[%s17747_s0 + $0x11d0] sm:$0xff]  ;;  %v17927_v19 = vld [vmem:[#allocation25_spill] sm:$0xff] }
 0x2ea   :  { %11969 = vmatprep.mubr.msk.f32.mxu0 %vm221_vm1, %v9685_v41  ;;  %12271 = vmatprep.mubr.msk.f32.mxu1 %vm221_vm1, %v10078_v12  ;;  %v8588_v59 = vmax.f32 %v17922_v11, %v8392_v30  ;;  %v6172_v45 = vmax.f32 %v5454_v29, 0.0  ;;  %v8198_v16 = vmax.f32 %v7480_v26, 0.0  ;;  %v10084_v38 = vld [vmem:[%s17747_s0 + $0x17f0] sm:$0xff] }
 0x2eb   :  { %v8587_v9 = vmax.f32 %v17923_v39, %v8391_v10  ;;  %v6171_v61 = vmax.f32 %v5449_v62, 0.0  ;;  %v8197_v0 = vmax.f32 %v7475_v35, 0.0  ;;  %v11812_v5 = vpop.f32.mrb[6].mxu0  ;;  %v12114_v63 = vpop.f32.mrb[6].mxu1 }
 0x2ec   :  { %8785 = vst.msk [vmem:[%s17749_s3 + $0x1f8] sm:$0xff] %vm8721_vm4, %v8588_v59  ;;  %v8394_v53 = vmax.f32 %v6172_v45, %v8198_v16  ;;  %v5464_v57 = vadd.f32 %v16123_v13, %v11812_v5  ;;  %v7490_v42 = vadd.f32 %v16123_v13, %v12114_v63  ;;  %v5458_v32 = vpop.f32.mrb[7].mxu0  ;;  %11970 = vmatmul.mubr.msk.f32.gmra.mrb[112].mxu0 %vm221_vm1, %v9686_v54  ;;  %v7484_v56 = vpop.f32.mrb[7].mxu1  ;;  %v9692_v59 = vld [vmem:[%s17747_s0 + $0x11d8] sm:$0xff]  ;;  %v17928_v16 = vld [vmem:[#allocation26_spill] sm:$0xff] }
 0x2ed   :  { %12272 = vmatmul.mubr.msk.f32.gmra.mrb[112].mxu1 %vm221_vm1, %v10079_v34  ;;  %8784 = vst.msk [vmem:[%s17749_s3 + $0x1f0] sm:$0xff] %vm8721_vm4, %v8587_v9  ;;  %v8393_v4 = vmax.f32 %v6171_v61, %v8197_v0  ;;  %v5459_v27 = vadd.f32 %v16123_v13, %v5458_v32  ;;  %v7485_v1 = vadd.f32 %v16123_v13, %v7484_v56  ;;  %v10085_v45 = vld [vmem:[%s17747_s0 + $0x17f8] sm:$0xff]  ;;  %v10086_v9 = vld [vmem:[%s17747_s0 + $0x1800] sm:$0xff]  ;;  %v17929_v61 = vld [vmem:[#allocation27_spill] sm:$0xff] }
 0x2ee   :  { %11972 = vmatprep.mubr.msk.f32.mxu0 %vm221_vm1, %v9687_v51  ;;  %12274 = vmatprep.mubr.msk.f32.mxu1 %vm221_vm1, %v10080_v31  ;;  %v8590_v33 = vmax.f32 %v17924_v40, %v8394_v53  ;;  %v6174_v37 = vmax.f32 %v5464_v57, 0.0  ;;  %v8200_v43 = vmax.f32 %v7490_v42, 0.0  ;;  %v16728_v32 = vld [vmem:[%s17748_s2] ss:$0 sm:$0xff] }
 0x2ef   :  { %v8589_v49 = vmax.f32 %v17925_v55, %v8393_v4  ;;  %v6173_v44 = vmax.f32 %v5459_v27, 0.0  ;;  %v8199_v15 = vmax.f32 %v7485_v1, 0.0  ;;  %v11815_v21 = vpop.f32.mrb[8].mxu0  ;;  %v12117_v8 = vpop.f32.mrb[8].mxu1 }
 0x2f0   :  { %8787 = vst.msk [vmem:[%s17749_s3 + $0x208] sm:$0xff] %vm8721_vm4, %v8590_v33  ;;  %v8396_v3 = vmax.f32 %v6174_v37, %v8200_v43  ;;  %v5474_v46 = vadd.f32 %v16123_v13, %v11815_v21  ;;  %v7500_v50 = vadd.f32 %v16123_v13, %v12117_v8  ;;  %v5468_v48 = vpop.f32.mrb[9].mxu0  ;;  %11973 = vmatmul.mubr.msk.f32.gmra.mrb[114].mxu0 %vm221_vm1, %v9688_v47  ;;  %v7494_v7 = vpop.f32.mrb[9].mxu1  ;;  %v9694_v33 = vld [vmem:[%s17747_s0 + $0x11e8] sm:$0xff]  ;;  %v17930_v43 = vld [vmem:[#allocation28_spill] sm:$0xff] }
 0x2f1   :  { %12275 = vmatmul.mubr.msk.f32.gmra.mrb[114].mxu1 %vm221_vm1, %v10081_v17  ;;  %8786 = vst.msk [vmem:[%s17749_s3 + $0x200] sm:$0xff] %vm8721_vm4, %v8589_v49  ;;  %v8395_v14 = vmax.f32 %v6173_v44, %v8199_v15  ;;  %v5469_v23 = vadd.f32 %v16123_v13, %v5468_v48  ;;  %v7495_v28 = vadd.f32 %v16123_v13, %v7494_v7  ;;  %v10087_v37 = vld [vmem:[%s17747_s0 + $0x1808] sm:$0xff]  ;;  %v9695_v49 = vld [vmem:[%s17747_s0 + $0x11f0] sm:$0xff]  ;;  %v17931_v15 = vld [vmem:[#allocation29_spill] sm:$0xff] }
 0x2f2   :  { %11975 = vmatprep.mubr.msk.f32.mxu0 %vm221_vm1, %v9689_v2  ;;  %12277 = vmatprep.mubr.msk.f32.mxu1 %vm221_vm1, %v10082_v60  ;;  %v8592_v41 = vmax.f32 %v17926_v20, %v8396_v3  ;;  %v6176_v12 = vmax.f32 %v5474_v46, 0.0  ;;  %v8202_v36 = vmax.f32 %v7500_v50, 0.0  ;;  %v10088_v44 = vld [vmem:[%s17747_s0 + $0x1810] sm:$0xff] }
 0x2f3   :  { %v8591_v6 = vmax.f32 %v17927_v19, %v8395_v14  ;;  %v6175_v18 = vmax.f32 %v5469_v23, 0.0  ;;  %v8201_v30 = vmax.f32 %v7495_v28, 0.0  ;;  %v11818_v29 = vpop.f32.mrb[10].mxu0  ;;  %v12120_v26 = vpop.f32.mrb[10].mxu1 }
 0x2f4   :  { %8789 = vst.msk [vmem:[%s17749_s3 + $0x218] sm:$0xff] %vm8721_vm4, %v8592_v41  ;;  %v8398_v52 = vmax.f32 %v6176_v12, %v8202_v36  ;;  %v5484_v25 = vadd.f32 %v16123_v13, %v11818_v29  ;;  %v7510_v10 = vadd.f32 %v16123_v13, %v12120_v26  ;;  %v5478_v62 = vpop.f32.mrb[11].mxu0  ;;  %11976 = vmatmul.mubr.msk.f32.gmra.mrb[116].mxu0 %vm221_vm1, %v9690_v24  ;;  %v7504_v35 = vpop.f32.mrb[11].mxu1  ;;  %v9696_v41 = vld [vmem:[%s17747_s0 + $0x11f8] sm:$0xff]  ;;  %v17932_v36 = vld [vmem:[#allocation30_spill] sm:$0xff] }
 0x2f5   :  { %12278 = vmatmul.mubr.msk.f32.gmra.mrb[116].mxu1 %vm221_vm1, %v10083_v22  ;;  %8788 = vst.msk [vmem:[%s17749_s3 + $0x210] sm:$0xff] %vm8721_vm4, %v8591_v6  ;;  %v8397_v54 = vmax.f32 %v6175_v18, %v8201_v30  ;;  %v5479_v34 = vadd.f32 %v16123_v13, %v5478_v62  ;;  %v7505_v11 = vadd.f32 %v16123_v13, %v7504_v35  ;;  %v9693_v13 = vld [vmem:[%s17747_s0 + $0x11e0] sm:$0xff]  ;;  %v10089_v12 = vld [vmem:[%s17747_s0 + $0x1818] sm:$0xff]  ;;  %v17933_v30 = vld [vmem:[#allocation31_spill] sm:$0xff] }
 0x2f6   :  { %11978 = vmatprep.mubr.msk.f32.mxu0 %vm221_vm1, %v9691_v58  ;;  %12280 = vmatprep.mubr.msk.f32.mxu1 %vm221_vm1, %v10084_v38  ;;  %v8594_v51 = vmax.f32 %v17928_v16, %v8398_v52  ;;  %v6178_v31 = vmax.f32 %v5484_v25, 0.0  ;;  %v8204_v39 = vmax.f32 %v7510_v10, 0.0  ;;  %v9697_v6 = vld [vmem:[%s17747_s0 + $0x1200] sm:$0xff] }
 0x2f7   :  { %v8593_v0 = vmax.f32 %v17929_v61, %v8397_v54  ;;  %v6177_v5 = vmax.f32 %v5479_v34, 0.0  ;;  %v8203_v63 = vmax.f32 %v7505_v11, 0.0  ;;  %v11821_v53 = vpop.f32.mrb[12].mxu0  ;;  %v12123_v57 = vpop.f32.mrb[12].mxu1  ;;  %v10090_v18 = vld [vmem:[%s17747_s0 + $0x1820] sm:$0xff] }
 0x2f8   :  { %8791 = vst.msk [vmem:[%s17749_s3 + $0x228] sm:$0xff] %vm8721_vm4, %v8594_v51  ;;  %v8400_v42 = vmax.f32 %v6178_v31, %v8204_v39  ;;  %v5494_v56 = vadd.f32 %v16728_v32, %v11821_v53  ;;  %v7520_v4 = vadd.f32 %v16728_v32, %v12123_v57  ;;  %v5488_v27 = vpop.f32.mrb[13].mxu0  ;;  %11979 = vmatmul.mubr.msk.f32.gmra.mrb[118].mxu0 %vm221_vm1, %v9692_v59  ;;  %v7514_v1 = vpop.f32.mrb[13].mxu1  ;;  %v9698_v51 = vld [vmem:[%s17747_s0 + $0x1208] sm:$0xff]  ;;  %v17934_v39 = vld [vmem:[#allocation32_spill] sm:$0xff] }
 0x2f9   :  { %12281 = vmatmul.mubr.msk.f32.gmra.mrb[118].mxu1 %vm221_vm1, %v10085_v45  ;;  %8790 = vst.msk [vmem:[%s17749_s3 + $0x220] sm:$0xff] %vm8721_vm4, %v8593_v0  ;;  %v8399_v47 = vmax.f32 %v6177_v5, %v8203_v63  ;;  %v5489_v17 = vadd.f32 %v16728_v32, %v5488_v27  ;;  %v7515_v40 = vadd.f32 %v16728_v32, %v7514_v1  ;;  %v10091_v31 = vld [vmem:[%s17747_s0 + $0x1828] sm:$0xff]  ;;  %v9699_v0 = vld [vmem:[%s17747_s0 + $0x1210] sm:$0xff]  ;;  %v17935_v63 = vld [vmem:[#allocation33_spill] sm:$0xff] }
 0x2fa   :  { %11981 = vmatprep.mubr.msk.f32.mxu0 %vm221_vm1, %v9693_v13  ;;  %12283 = vmatprep.mubr.msk.f32.mxu1 %vm221_vm1, %v10086_v9  ;;  %v8596_v2 = vmax.f32 %v17930_v43, %v8400_v42  ;;  %v6180_v60 = vmax.f32 %v5494_v56, 0.0  ;;  %v8206_v55 = vmax.f32 %v7520_v4, 0.0  ;;  %v10092_v5 = vld [vmem:[%s17747_s0 + $0x1830] sm:$0xff] }
 0x2fb   :  { %v8595_v21 = vmax.f32 %v17931_v15, %v8399_v47  ;;  %v6179_v8 = vmax.f32 %v5489_v17, 0.0  ;;  %v8205_v3 = vmax.f32 %v7515_v40, 0.0  ;;  %v11824_v46 = vpop.f32.mrb[14].mxu0  ;;  %v12126_v50 = vpop.f32.mrb[14].mxu1 }
 0x2fc   :  { %8793 = vst.msk [vmem:[%s17749_s3 + $0x238] sm:$0xff] %vm8721_vm4, %v8596_v2  ;;  %v8402_v48 = vmax.f32 %v6180_v60, %v8206_v55  ;;  %v5504_v7 = vadd.f32 %v16728_v32, %v11824_v46  ;;  %v7530_v14 = vadd.f32 %v16728_v32, %v12126_v50  ;;  %v5498_v23 = vpop.f32.mrb[15].mxu0  ;;  %11982 = vmatmul.mubr.msk.f32.gmra.mrb[120].mxu0 %vm221_vm1, %v9694_v33  ;;  %v7524_v28 = vpop.f32.mrb[15].mxu1  ;;  %v9700_v2 = vld [vmem:[%s17747_s0 + $0x1218] sm:$0xff]  ;;  %v17936_v55 = vld [vmem:[#allocation34_spill] sm:$0xff] }
 0x2fd   :  { %12284 = vmatmul.mubr.msk.f32.gmra.mrb[120].mxu1 %vm221_vm1, %v10087_v37  ;;  %8792 = vst.msk [vmem:[%s17749_s3 + $0x230] sm:$0xff] %vm8721_vm4, %v8595_v21  ;;  %v8401_v24 = vmax.f32 %v6179_v8, %v8205_v3  ;;  %v5499_v22 = vadd.f32 %v16728_v32, %v5498_v23  ;;  %v7525_v20 = vadd.f32 %v16728_v32, %v7524_v28  ;;  %v10093_v60 = vld [vmem:[%s17747_s0 + $0x1838] sm:$0xff]  ;;  %v9701_v21 = vld [vmem:[%s17747_s0 + $0x1220] sm:$0xff]  ;;  %v17937_v3 = vld [vmem:[#allocation35_spill] sm:$0xff] }
 0x2fe   :  { %11984 = vmatprep.mubr.msk.f32.mxu0 %vm221_vm1, %v9695_v49  ;;  %12286 = vmatprep.mubr.msk.f32.mxu1 %vm221_vm1, %v10088_v44  ;;  %v8598_v58 = vmax.f32 %v17932_v36, %v8402_v48  ;;  %v6182_v38 = vmax.f32 %v5504_v7, 0.0  ;;  %v8208_v19 = vmax.f32 %v7530_v14, 0.0  ;;  %v10094_v8 = vld [vmem:[%s17747_s0 + $0x1840] sm:$0xff] }
 0x2ff   :  { %v8597_v29 = vmax.f32 %v17933_v30, %v8401_v24  ;;  %v6181_v26 = vmax.f32 %v5499_v22, 0.0  ;;  %v8207_v52 = vmax.f32 %v7525_v20, 0.0  ;;  %v11827_v25 = vpop.f32.mrb[16].mxu0  ;;  %v12129_v10 = vpop.f32.mrb[16].mxu1 }
 0x300   :  { %8795 = vst.msk [vmem:[%s17749_s3 + $0x248] sm:$0xff] %vm8721_vm4, %v8598_v58  ;;  %v8404_v62 = vmax.f32 %v6182_v38, %v8208_v19  ;;  %v5514_v35 = vadd.f32 %v16728_v32, %v11827_v25  ;;  %v7540_v54 = vadd.f32 %v16728_v32, %v12129_v10  ;;  %v5508_v34 = vpop.f32.mrb[17].mxu0  ;;  %11985 = vmatmul.mubr.msk.f32.gmra.mrb[122].mxu0 %vm221_vm1, %v9696_v41  ;;  %v7534_v11 = vpop.f32.mrb[17].mxu1  ;;  %v9702_v58 = vld [vmem:[%s17747_s0 + $0x1228] sm:$0xff]  ;;  %v17938_v19 = vld [vmem:[#allocation36_spill] sm:$0xff] }
 0x301   :  { %12287 = vmatmul.mubr.msk.f32.gmra.mrb[122].mxu1 %vm221_vm1, %v10089_v12  ;;  %8794 = vst.msk [vmem:[%s17749_s3 + $0x240] sm:$0xff] %vm8721_vm4, %v8597_v29  ;;  %v8403_v59 = vmax.f32 %v6181_v26, %v8207_v52  ;;  %v5509_v45 = vadd.f32 %v16728_v32, %v5508_v34  ;;  %v7535_v16 = vadd.f32 %v16728_v32, %v7534_v11  ;;  %v10095_v38 = vld [vmem:[%s17747_s0 + $0x1848] sm:$0xff]  ;;  %v9703_v29 = vld [vmem:[%s17747_s0 + $0x1230] sm:$0xff]  ;;  %v17939_v52 = vld [vmem:[#allocation37_spill] sm:$0xff] }
 0x302   :  { %11987 = vmatprep.mubr.msk.f32.mxu0 %vm221_vm1, %v9697_v6  ;;  %12289 = vmatprep.mubr.msk.f32.mxu1 %vm221_vm1, %v10090_v18  ;;  %v8600_v13 = vmax.f32 %v17934_v39, %v8404_v62  ;;  %v6184_v9 = vmax.f32 %v5514_v35, 0.0  ;;  %v8210_v61 = vmax.f32 %v7540_v54, 0.0  ;;  %v10096_v26 = vld [vmem:[%s17747_s0 + $0x1850] sm:$0xff] }
 0x303   :  { %v8599_v53 = vmax.f32 %v17935_v63, %v8403_v59  ;;  %v6183_v57 = vmax.f32 %v5509_v45, 0.0  ;;  %v8209_v42 = vmax.f32 %v7535_v16, 0.0  ;;  %v11830_v56 = vpop.f32.mrb[18].mxu0  ;;  %v12132_v4 = vpop.f32.mrb[18].mxu1 }
 0x304   :  { %8797 = vst.msk [vmem:[%s17749_s3 + $0x258] sm:$0xff] %vm8721_vm4, %v8600_v13  ;;  %v8406_v27 = vmax.f32 %v6184_v9, %v8210_v61  ;;  %v5524_v1 = vadd.f32 %v16728_v32, %v11830_v56  ;;  %v7550_v47 = vadd.f32 %v16728_v32, %v12132_v4  ;;  %v5518_v17 = vpop.f32.mrb[19].mxu0  ;;  %11988 = vmatmul.mubr.msk.f32.gmra.mrb[124].mxu0 %vm221_vm1, %v9698_v51  ;;  %v7544_v40 = vpop.f32.mrb[19].mxu1  ;;  %v9704_v13 = vld [vmem:[%s17747_s0 + $0x1238] sm:$0xff]  ;;  %v17940_v61 = vld [vmem:[#allocation38_spill] sm:$0xff] }
 0x305   :  { %12290 = vmatmul.mubr.msk.f32.gmra.mrb[124].mxu1 %vm221_vm1, %v10091_v31  ;;  %8796 = vst.msk [vmem:[%s17749_s3 + $0x250] sm:$0xff] %vm8721_vm4, %v8599_v53  ;;  %v8405_v33 = vmax.f32 %v6183_v57, %v8209_v42  ;;  %v5519_v37 = vadd.f32 %v16728_v32, %v5518_v17  ;;  %v7545_v43 = vadd.f32 %v16728_v32, %v7544_v40  ;;  %v10097_v9 = vld [vmem:[%s17747_s0 + $0x1858] sm:$0xff]  ;;  %v9705_v53 = vld [vmem:[%s17747_s0 + $0x1240] sm:$0xff]  ;;  %v17941_v42 = vld [vmem:[#allocation39_spill] sm:$0xff] }
 0x306   :  { %11990 = vmatprep.mubr.msk.f32.mxu0 %vm221_vm1, %v9699_v0  ;;  %12292 = vmatprep.mubr.msk.f32.mxu1 %vm221_vm1, %v10092_v5  ;;  %v8602_v49 = vmax.f32 %v17936_v55, %v8406_v27  ;;  %v6186_v44 = vmax.f32 %v5524_v1, 0.0  ;;  %v8212_v15 = vmax.f32 %v7550_v47, 0.0  ;;  %v10098_v57 = vld [vmem:[%s17747_s0 + $0x1860] sm:$0xff] }
 0x307   :  { %v8601_v46 = vmax.f32 %v17937_v3, %v8405_v33  ;;  %v6185_v50 = vmax.f32 %v5519_v37, 0.0  ;;  %v8211_v48 = vmax.f32 %v7545_v43, 0.0  ;;  %v11833_v7 = vpop.f32.mrb[20].mxu0  ;;  %v12135_v14 = vpop.f32.mrb[20].mxu1 }
 0x308   :  { %8799 = vst.msk [vmem:[%s17749_s3 + $0x268] sm:$0xff] %vm8721_vm4, %v8602_v49  ;;  %v8408_v23 = vmax.f32 %v6186_v44, %v8212_v15  ;;  %v5534_v28 = vadd.f32 %v16728_v32, %v11833_v7  ;;  %v7560_v24 = vadd.f32 %v16728_v32, %v12135_v14  ;;  %v5528_v22 = vpop.f32.mrb[21].mxu0  ;;  %11991 = vmatmul.mubr.msk.f32.gmra.mrb[126].mxu0 %vm221_vm1, %v9700_v2  ;;  %v7554_v20 = vpop.f32.mrb[21].mxu1  ;;  %v9706_v49 = vld [vmem:[%s17747_s0 + $0x1248] sm:$0xff]  ;;  %v17942_v15 = vld [vmem:[#allocation40_spill] sm:$0xff] }
 0x309   :  { %12293 = vmatmul.mubr.msk.f32.gmra.mrb[126].mxu1 %vm221_vm1, %v10093_v60  ;;  %8798 = vst.msk [vmem:[%s17749_s3 + $0x260] sm:$0xff] %vm8721_vm4, %v8601_v46  ;;  %v8407_v41 = vmax.f32 %v6185_v50, %v8211_v48  ;;  %v5529_v12 = vadd.f32 %v16728_v32, %v5528_v22  ;;  %v7555_v36 = vadd.f32 %v16728_v32, %v7554_v20  ;;  %v10099_v44 = vld [vmem:[%s17747_s0 + $0x1868] sm:$0xff]  ;;  %v9707_v46 = vld [vmem:[%s17747_s0 + $0x1250] sm:$0xff]  ;;  %v17943_v48 = vld [vmem:[#allocation41_spill] sm:$0xff] }
 0x30a   :  { %11993 = vmatprep.mubr.msk.f32.mxu0 %vm221_vm1, %v9701_v21  ;;  %12295 = vmatprep.mubr.msk.f32.mxu1 %vm221_vm1, %v10094_v8  ;;  %v8604_v6 = vmax.f32 %v17938_v19, %v8408_v23  ;;  %v6188_v18 = vmax.f32 %v5534_v28, 0.0  ;;  %v8214_v30 = vmax.f32 %v7560_v24, 0.0  ;;  %v10100_v50 = vld [vmem:[%s17747_s0 + $0x1870] sm:$0xff] }
 0x30b   :  { %v8603_v25 = vmax.f32 %v17939_v52, %v8407_v41  ;;  %v6187_v10 = vmax.f32 %v5529_v12, 0.0  ;;  %v8213_v62 = vmax.f32 %v7555_v36, 0.0  ;;  %v11836_v35 = vpop.f32.mrb[22].mxu0  ;;  %v12138_v54 = vpop.f32.mrb[22].mxu1 }
 0x30c   :  { %8801 = vst.msk [vmem:[%s17749_s3 + $0x278] sm:$0xff] %vm8721_vm4, %v8604_v6  ;;  %v8410_v34 = vmax.f32 %v6188_v18, %v8214_v30  ;;  %v5544_v11 = vadd.f32 %v16728_v32, %v11836_v35  ;;  %v7570_v59 = vadd.f32 %v16728_v32, %v12138_v54  ;;  %v5538_v45 = vpop.f32.mrb[23].mxu0  ;;  %11994 = vmatmul.mubr.msk.f32.gmra.mrb[128].mxu0 %vm221_vm1, %v9702_v58  ;;  %v7564_v16 = vpop.f32.mrb[23].mxu1  ;;  %v9708_v6 = vld [vmem:[%s17747_s0 + $0x1258] sm:$0xff]  ;;  %v17944_v30 = vld [vmem:[#allocation42_spill] sm:$0xff] }
 0x30d   :  { %12296 = vmatmul.mubr.msk.f32.gmra.mrb[128].mxu1 %vm221_vm1, %v10095_v38  ;;  %8800 = vst.msk [vmem:[%s17749_s3 + $0x270] sm:$0xff] %vm8721_vm4, %v8603_v25  ;;  %v8409_v51 = vmax.f32 %v6187_v10, %v8213_v62  ;;  %v5539_v31 = vadd.f32 %v16728_v32, %v5538_v45  ;;  %v7565_v39 = vadd.f32 %v16728_v32, %v7564_v16  ;;  %v10101_v18 = vld [vmem:[%s17747_s0 + $0x1878] sm:$0xff]  ;;  %v17945_v25 = vld [vmem:[#allocation43_spill] sm:$0xff] }
 0x30e   :  { %11996 = vmatprep.mubr.msk.f32.mxu0 %vm221_vm1, %v9703_v29  ;;  %12298 = vmatprep.mubr.msk.f32.mxu1 %vm221_vm1, %v10096_v26  ;;  %v8606_v0 = vmax.f32 %v17940_v61, %v8410_v34  ;;  %v6190_v5 = vmax.f32 %v5544_v11, 0.0  ;;  %v8216_v63 = vmax.f32 %v7570_v59, 0.0 }
 0x30f   :  { %v8605_v56 = vmax.f32 %v17941_v42, %v8409_v51  ;;  %v6189_v4 = vmax.f32 %v5539_v31, 0.0  ;;  %v8215_v27 = vmax.f32 %v7565_v39, 0.0  ;;  %v11839_v1 = vpop.f32.mrb[24].mxu0  ;;  %v12141_v47 = vpop.f32.mrb[24].mxu1 }
 0x310   :  { %8803 = vst.msk [vmem:[%s17749_s3 + $0x288] sm:$0xff] %vm8721_vm4, %v8606_v0  ;;  %v8412_v17 = vmax.f32 %v6190_v5, %v8216_v63  ;;  %v5554_v40 = vadd.f32 %v16728_v32, %v11839_v1  ;;  %v7580_v33 = vadd.f32 %v16728_v32, %v12141_v47  ;;  %v5548_v37 = vpop.f32.mrb[25].mxu0  ;;  %11997 = vmatmul.mubr.msk.f32.gmra.mrb[130].mxu0 %vm221_vm1, %v9704_v13  ;;  %v7574_v43 = vpop.f32.mrb[25].mxu1  ;;  %v17947_v63 = vld [vmem:[#allocation45_spill] sm:$0xff] }
 0x311   :  { %12299 = vmatmul.mubr.msk.f32.gmra.mrb[130].mxu1 %vm221_vm1, %v10097_v9  ;;  %8802 = vst.msk [vmem:[%s17749_s3 + $0x280] sm:$0xff] %vm8721_vm4, %v8605_v56  ;;  %v8411_v2 = vmax.f32 %v6189_v4, %v8215_v27  ;;  %v5549_v60 = vadd.f32 %v16728_v32, %v5548_v37  ;;  %v7575_v55 = vadd.f32 %v16728_v32, %v7574_v43  ;;  %v17946_v9 = vld [vmem:[#allocation44_spill] sm:$0xff] }
 0x312   :  { %11999 = vmatprep.mubr.msk.f32.mxu0 %vm221_vm1, %v9705_v53  ;;  %12301 = vmatprep.mubr.msk.f32.mxu1 %vm221_vm1, %v10098_v57  ;;  %v8608_v21 = vmax.f32 %v17942_v15, %v8412_v17  ;;  %v6192_v8 = vmax.f32 %v5554_v40, 0.0  ;;  %v8218_v3 = vmax.f32 %v7580_v33, 0.0 }
 0x313   :  { %v8607_v7 = vmax.f32 %v17943_v48, %v8411_v2  ;;  %v6191_v14 = vmax.f32 %v5549_v60, 0.0  ;;  %v8217_v23 = vmax.f32 %v7575_v55, 0.0  ;;  %v11842_v28 = vpop.f32.mrb[26].mxu0  ;;  %v12144_v24 = vpop.f32.mrb[26].mxu1  ;;  %v17948_v2 = vld [vmem:[#allocation46_spill] sm:$0xff] }
 0x314   :  { %8805 = vst.msk [vmem:[%s17749_s3 + $0x298] sm:$0xff] %vm8721_vm4, %v8608_v21  ;;  %v8414_v22 = vmax.f32 %v6192_v8, %v8218_v3  ;;  %v5564_v20 = vadd.f32 %v16728_v32, %v11842_v28  ;;  %v7590_v41 = vadd.f32 %v16728_v32, %v12144_v24  ;;  %v5558_v12 = vpop.f32.mrb[27].mxu0  ;;  %12000 = vmatmul.mubr.msk.f32.gmra.mrb[132].mxu0 %vm221_vm1, %v9706_v49  ;;  %v7584_v36 = vpop.f32.mrb[27].mxu1 }
 0x315   :  { %12302 = vmatmul.mubr.msk.f32.gmra.mrb[132].mxu1 %vm221_vm1, %v10099_v44  ;;  %8804 = vst.msk [vmem:[%s17749_s3 + $0x290] sm:$0xff] %vm8721_vm4, %v8607_v7  ;;  %v8413_v58 = vmax.f32 %v6191_v14, %v8217_v23  ;;  %v5559_v38 = vadd.f32 %v16728_v32, %v5558_v12  ;;  %v7585_v19 = vadd.f32 %v16728_v32, %v7584_v36  ;;  %v17949_v44 = vld [vmem:[#allocation47_spill] sm:$0xff] }
 0x316   :  { %12002 = vmatprep.mubr.msk.f32.mxu0 %vm221_vm1, %v9707_v46  ;;  %12304 = vmatprep.mubr.msk.f32.mxu1 %vm221_vm1, %v10100_v50  ;;  %v8610_v29 = vmax.f32 %v17944_v30, %v8414_v22  ;;  %v6194_v26 = vmax.f32 %v5564_v20, 0.0  ;;  %v8220_v52 = vmax.f32 %v7590_v41, 0.0  ;;  %v17950_v20 = vld [vmem:[#allocation48_spill] sm:$0xff] }
 0x317   :  { %v8609_v10 = vmax.f32 %v17945_v25, %v8413_v58  ;;  %v6193_v62 = vmax.f32 %v5559_v38, 0.0  ;;  %v8219_v35 = vmax.f32 %v7585_v19, 0.0  ;;  %v11845_v54 = vpop.f32.mrb[28].mxu0  ;;  %v12147_v34 = vpop.f32.mrb[28].mxu1  ;;  %v17951_v58 = vld [vmem:[#allocation49_spill] sm:$0xff] }
 0x318   :  { %8807 = vst.msk [vmem:[%s17749_s3 + $0x2a8] sm:$0xff] %vm8721_vm4, %v8610_v29  ;;  %v8416_v11 = vmax.f32 %v6194_v26, %v8220_v52  ;;  %v5574_v59 = vadd.f32 %v16728_v32, %v11845_v54  ;;  %v7600_v45 = vadd.f32 %v16728_v32, %v12147_v34  ;;  %v5568_v16 = vpop.f32.mrb[29].mxu0  ;;  %12003 = vmatmul.mubr.msk.f32.gmra.mrb[134].mxu0 %vm221_vm1, %v9708_v6  ;;  %v7594_v51 = vpop.f32.mrb[29].mxu1  ;;  %v17952_v34 = vld [vmem:[#allocation50_spill] sm:$0xff] }
 0x319   :  { %12305 = vmatmul.mubr.msk.f32.gmra.mrb[134].mxu1 %vm221_vm1, %v10101_v18  ;;  %8806 = vst.msk [vmem:[%s17749_s3 + $0x2a0] sm:$0xff] %vm8721_vm4, %v8609_v10  ;;  %v8415_v31 = vmax.f32 %v6193_v62, %v8219_v35  ;;  %v5569_v39 = vadd.f32 %v16728_v32, %v5568_v16  ;;  %v7595_v13 = vadd.f32 %v16728_v32, %v7594_v51  ;;  %v17953_v16 = vld [vmem:[#allocation51_spill] sm:$0xff] }
 0x31a   :  { %v8612_v61 = vmax.f32 %v17946_v9, %v8416_v11  ;;  %v6196_v0 = vmax.f32 %v5574_v59, 0.0  ;;  %v8222_v5 = vmax.f32 %v7600_v45, 0.0 }
 0x31b   :  { %v8611_v53 = vmax.f32 %v17947_v63, %v8415_v31  ;;  %v6195_v57 = vmax.f32 %v5569_v39, 0.0  ;;  %v8221_v42 = vmax.f32 %v7595_v13, 0.0  ;;  %v11848_v56 = vpop.f32.mrb[30].mxu0  ;;  %v12150_v4 = vpop.f32.mrb[30].mxu1 }
 0x31c   :  { %8809 = vst.msk [vmem:[%s17749_s3 + $0x2b8] sm:$0xff] %vm8721_vm4, %v8612_v61  ;;  %v8418_v27 = vmax.f32 %v6196_v0, %v8222_v5  ;;  %v5584_v1 = vadd.f32 %v16728_v32, %v11848_v56  ;;  %v7610_v47 = vadd.f32 %v16728_v32, %v12150_v4  ;;  %v5578_v17 = vpop.f32.mrb[31].mxu0  ;;  %v7604_v40 = vpop.f32.mrb[31].mxu1  ;;  %v17954_v4 = vld [vmem:[#allocation52_spill] sm:$0xff] }
 0x31d   :  { %8808 = vst.msk [vmem:[%s17749_s3 + $0x2b0] sm:$0xff] %vm8721_vm4, %v8611_v53  ;;  %v8417_v33 = vmax.f32 %v6195_v57, %v8221_v42  ;;  %v5579_v37 = vadd.f32 %v16728_v32, %v5578_v17  ;;  %v7605_v43 = vadd.f32 %v16728_v32, %v7604_v40  ;;  %v17955_v17 = vld [vmem:[#allocation53_spill] sm:$0xff] }
 0x31e   :  { %v8614_v60 = vmax.f32 %v17948_v2, %v8418_v27  ;;  %v6198_v55 = vmax.f32 %v5584_v1, 0.0  ;;  %v8224_v49 = vmax.f32 %v7610_v47, 0.0 }
 0x31f   :  { %v8613_v15 = vmax.f32 %v17949_v44, %v8417_v33  ;;  %v6197_v21 = vmax.f32 %v5579_v37, 0.0  ;;  %v8223_v8 = vmax.f32 %v7605_v43, 0.0  ;;  %v11851_v3 = vpop.f32.mrb[32].mxu0  ;;  %v12153_v46 = vpop.f32.mrb[32].mxu1 }
 0x320   :  { %8811 = vst.msk [vmem:[%s17749_s3 + $0x2c8] sm:$0xff] %vm8721_vm4, %v8614_v60  ;;  %v8420_v50 = vmax.f32 %v6198_v55, %v8224_v49  ;;  %v5594_v48 = vadd.f32 %v16728_v32, %v11851_v3  ;;  %v7620_v7 = vadd.f32 %v16728_v32, %v12153_v46  ;;  %v5588_v14 = vpop.f32.mrb[33].mxu0  ;;  %v7614_v23 = vpop.f32.mrb[33].mxu1  ;;  %v17956_v46 = vld [vmem:[#allocation54_spill] sm:$0xff] }
 0x321   :  { %8810 = vst.msk [vmem:[%s17749_s3 + $0x2c0] sm:$0xff] %vm8721_vm4, %v8613_v15  ;;  %v8419_v28 = vmax.f32 %v6197_v21, %v8223_v8  ;;  %v5589_v24 = vadd.f32 %v16728_v32, %v5588_v14  ;;  %v7615_v22 = vadd.f32 %v16728_v32, %v7614_v23  ;;  %v17957_v14 = vld [vmem:[#allocation55_spill] sm:$0xff] }
 0x322   :  { %v8616_v41 = vmax.f32 %v17950_v20, %v8420_v50  ;;  %v6200_v12 = vmax.f32 %v5594_v48, 0.0  ;;  %v8226_v36 = vmax.f32 %v7620_v7, 0.0 }
 0x323   :  { %v8615_v38 = vmax.f32 %v17951_v58, %v8419_v28  ;;  %v6199_v19 = vmax.f32 %v5589_v24, 0.0  ;;  %v8225_v6 = vmax.f32 %v7615_v22, 0.0  ;;  %v11854_v18 = vpop.f32.mrb[34].mxu0  ;;  %v12156_v30 = vpop.f32.mrb[34].mxu1 }
 0x324   :  { %8813 = vst.msk [vmem:[%s17749_s3 + $0x2d8] sm:$0xff] %vm8721_vm4, %v8616_v41  ;;  %v8422_v29 = vmax.f32 %v6200_v12, %v8226_v36  ;;  %v5604_v26 = vadd.f32 %v16728_v32, %v11854_v18  ;;  %v7630_v52 = vadd.f32 %v16728_v32, %v12156_v30  ;;  %v5598_v25 = vpop.f32.mrb[35].mxu0  ;;  %v7624_v10 = vpop.f32.mrb[35].mxu1  ;;  %v17958_v30 = vld [vmem:[#allocation56_spill] sm:$0xff] }
 0x325   :  { %8812 = vst.msk [vmem:[%s17749_s3 + $0x2d0] sm:$0xff] %vm8721_vm4, %v8615_v38  ;;  %v8421_v62 = vmax.f32 %v6199_v19, %v8225_v6  ;;  %v5599_v35 = vadd.f32 %v16728_v32, %v5598_v25  ;;  %v7625_v54 = vadd.f32 %v16728_v32, %v7624_v10  ;;  %v17959_v25 = vld [vmem:[#allocation57_spill] sm:$0xff] }
 0x326   :  { %v8618_v11 = vmax.f32 %v17952_v34, %v8422_v29  ;;  %v6202_v59 = vmax.f32 %v5604_v26, 0.0  ;;  %v8228_v45 = vmax.f32 %v7630_v52, 0.0 }
 0x327   :  { %v8617_v51 = vmax.f32 %v17953_v16, %v8421_v62  ;;  %v6201_v31 = vmax.f32 %v5599_v35, 0.0  ;;  %v8227_v39 = vmax.f32 %v7625_v54, 0.0  ;;  %v11857_v13 = vpop.f32.mrb[36].mxu0  ;;  %v12159_v9 = vpop.f32.mrb[36].mxu1 }
 0x328   :  { %8815 = vst.msk [vmem:[%s17749_s3 + $0x2e8] sm:$0xff] %vm8721_vm4, %v8618_v11  ;;  %v8424_v61 = vmax.f32 %v6202_v59, %v8228_v45  ;;  %v5614_v0 = vadd.f32 %v16728_v32, %v11857_v13  ;;  %v7640_v5 = vadd.f32 %v16728_v32, %v12159_v9  ;;  %v5608_v63 = vpop.f32.mrb[37].mxu0  ;;  %v7634_v53 = vpop.f32.mrb[37].mxu1  ;;  %v17960_v9 = vld [vmem:[#allocation58_spill] sm:$0xff] }
 0x329   :  { %8814 = vst.msk [vmem:[%s17749_s3 + $0x2e0] sm:$0xff] %vm8721_vm4, %v8617_v51  ;;  %v8423_v57 = vmax.f32 %v6201_v31, %v8227_v39  ;;  %v5609_v42 = vadd.f32 %v16728_v32, %v5608_v63  ;;  %v7635_v56 = vadd.f32 %v16728_v32, %v7634_v53  ;;  %v17961_v63 = vld [vmem:[#allocation59_spill] sm:$0xff] }
 0x32a   :  { %v8620_v27 = vmax.f32 %v17954_v4, %v8424_v61  ;;  %v6204_v1 = vmax.f32 %v5614_v0, 0.0  ;;  %v8230_v47 = vmax.f32 %v7640_v5, 0.0 }
 0x32b   :  { %v8619_v40 = vmax.f32 %v17955_v17, %v8423_v57  ;;  %v6203_v33 = vmax.f32 %v5609_v42, 0.0  ;;  %v8229_v37 = vmax.f32 %v7635_v56, 0.0  ;;  %v11860_v43 = vpop.f32.mrb[38].mxu0  ;;  %v12162_v2 = vpop.f32.mrb[38].mxu1 }
 0x32c   :  { %8817 = vst.msk [vmem:[%s17749_s3 + $0x2f8] sm:$0xff] %vm8721_vm4, %v8620_v27  ;;  %v8426_v60 = vmax.f32 %v6204_v1, %v8230_v47  ;;  %v5624_v55 = vadd.f32 %v16728_v32, %v11860_v43  ;;  %v7650_v49 = vadd.f32 %v16728_v32, %v12162_v2  ;;  %v5618_v44 = vpop.f32.mrb[39].mxu0  ;;  %v7644_v15 = vpop.f32.mrb[39].mxu1  ;;  %v17962_v2 = vld [vmem:[#allocation60_spill] sm:$0xff] }
 0x32d   :  { %8816 = vst.msk [vmem:[%s17749_s3 + $0x2f0] sm:$0xff] %vm8721_vm4, %v8619_v40  ;;  %v8425_v21 = vmax.f32 %v6203_v33, %v8229_v37  ;;  %v5619_v8 = vadd.f32 %v16728_v32, %v5618_v44  ;;  %v7645_v3 = vadd.f32 %v16728_v32, %v7644_v15  ;;  %v17963_v44 = vld [vmem:[#allocation61_spill] sm:$0xff] }
 0x32e   :  { %v8622_v50 = vmax.f32 %v17956_v46, %v8426_v60  ;;  %v6206_v48 = vmax.f32 %v5624_v55, 0.0  ;;  %v8232_v7 = vmax.f32 %v7650_v49, 0.0 }
 0x32f   :  { %v8621_v23 = vmax.f32 %v17957_v14, %v8425_v21  ;;  %v6205_v28 = vmax.f32 %v5619_v8, 0.0  ;;  %v8231_v24 = vmax.f32 %v7645_v3, 0.0  ;;  %v11863_v22 = vpop.f32.mrb[40].mxu0  ;;  %v12165_v20 = vpop.f32.mrb[40].mxu1 }
 0x330   :  { %8819 = vst.msk [vmem:[%s17749_s3 + $0x308] sm:$0xff] %vm8721_vm4, %v8622_v50  ;;  %v8428_v41 = vmax.f32 %v6206_v48, %v8232_v7  ;;  %v5634_v12 = vadd.f32 %v16728_v32, %v11863_v22  ;;  %v7660_v36 = vadd.f32 %v16728_v32, %v12165_v20  ;;  %v5628_v58 = vpop.f32.mrb[41].mxu0  ;;  %v7654_v38 = vpop.f32.mrb[41].mxu1  ;;  %v17964_v20 = vld [vmem:[#allocation62_spill] sm:$0xff] }
 0x331   :  { %8818 = vst.msk [vmem:[%s17749_s3 + $0x300] sm:$0xff] %vm8721_vm4, %v8621_v23  ;;  %v8427_v19 = vmax.f32 %v6205_v28, %v8231_v24  ;;  %v5629_v6 = vadd.f32 %v16728_v32, %v5628_v58  ;;  %v7655_v18 = vadd.f32 %v16728_v32, %v7654_v38  ;;  %v17965_v58 = vld [vmem:[#allocation63_spill] sm:$0xff] }
 0x332   :  { %v8624_v29 = vmax.f32 %v17958_v30, %v8428_v41  ;;  %v6208_v26 = vmax.f32 %v5634_v12, 0.0  ;;  %v8234_v52 = vmax.f32 %v7660_v36, 0.0 }
 0x333   :  { %v8623_v10 = vmax.f32 %v17959_v25, %v8427_v19  ;;  %v6207_v62 = vmax.f32 %v5629_v6, 0.0  ;;  %v8233_v35 = vmax.f32 %v7655_v18, 0.0  ;;  %v11866_v54 = vpop.f32.mrb[42].mxu0  ;;  %v12168_v34 = vpop.f32.mrb[42].mxu1 }
 0x334   :  { %8821 = vst.msk [vmem:[%s17749_s3 + $0x318] sm:$0xff] %vm8721_vm4, %v8624_v29  ;;  %v8430_v11 = vmax.f32 %v6208_v26, %v8234_v52  ;;  %v5644_v59 = vadd.f32 %v16728_v32, %v11866_v54  ;;  %v7670_v45 = vadd.f32 %v16728_v32, %v12168_v34  ;;  %v5638_v16 = vpop.f32.mrb[43].mxu0  ;;  %v7664_v51 = vpop.f32.mrb[43].mxu1  ;;  %v17966_v34 = vld [vmem:[#allocation64_spill] sm:$0xff] }
 0x335   :  { %8820 = vst.msk [vmem:[%s17749_s3 + $0x310] sm:$0xff] %vm8721_vm4, %v8623_v10  ;;  %v8429_v31 = vmax.f32 %v6207_v62, %v8233_v35  ;;  %v5639_v39 = vadd.f32 %v16728_v32, %v5638_v16  ;;  %v7665_v13 = vadd.f32 %v16728_v32, %v7664_v51  ;;  %v17967_v16 = vld [vmem:[#allocation65_spill] sm:$0xff] }
 0x336   :  { %v8626_v61 = vmax.f32 %v17960_v9, %v8430_v11  ;;  %v6210_v0 = vmax.f32 %v5644_v59, 0.0  ;;  %v8236_v5 = vmax.f32 %v7670_v45, 0.0 }
 0x337   :  { %v8625_v53 = vmax.f32 %v17961_v63, %v8429_v31  ;;  %v6209_v57 = vmax.f32 %v5639_v39, 0.0  ;;  %v8235_v42 = vmax.f32 %v7665_v13, 0.0  ;;  %v11869_v56 = vpop.f32.mrb[44].mxu0  ;;  %v12171_v4 = vpop.f32.mrb[44].mxu1 }
 0x338   :  { %8823 = vst.msk [vmem:[%s17749_s3 + $0x328] sm:$0xff] %vm8721_vm4, %v8626_v61  ;;  %v8432_v27 = vmax.f32 %v6210_v0, %v8236_v5  ;;  %v5654_v1 = vadd.f32 %v16728_v32, %v11869_v56  ;;  %v7680_v47 = vadd.f32 %v16728_v32, %v12171_v4  ;;  %v5648_v17 = vpop.f32.mrb[45].mxu0  ;;  %v7674_v40 = vpop.f32.mrb[45].mxu1  ;;  %v17968_v4 = vld [vmem:[#allocation66_spill] sm:$0xff] }
 0x339   :  { %8822 = vst.msk [vmem:[%s17749_s3 + $0x320] sm:$0xff] %vm8721_vm4, %v8625_v53  ;;  %v8431_v33 = vmax.f32 %v6209_v57, %v8235_v42  ;;  %v5649_v37 = vadd.f32 %v16728_v32, %v5648_v17  ;;  %v7675_v43 = vadd.f32 %v16728_v32, %v7674_v40  ;;  %v17969_v17 = vld [vmem:[#allocation67_spill] sm:$0xff] }
 0x33a   :  { %v8628_v60 = vmax.f32 %v17962_v2, %v8432_v27  ;;  %v6212_v55 = vmax.f32 %v5654_v1, 0.0  ;;  %v8238_v49 = vmax.f32 %v7680_v47, 0.0 }
 0x33b   :  { %v8627_v15 = vmax.f32 %v17963_v44, %v8431_v33  ;;  %v6211_v21 = vmax.f32 %v5649_v37, 0.0  ;;  %v8237_v8 = vmax.f32 %v7675_v43, 0.0  ;;  %v11872_v3 = vpop.f32.mrb[46].mxu0  ;;  %v12174_v46 = vpop.f32.mrb[46].mxu1 }
 0x33c   :  { %8825 = vst.msk [vmem:[%s17749_s3 + $0x338] sm:$0xff] %vm8721_vm4, %v8628_v60  ;;  %v8434_v50 = vmax.f32 %v6212_v55, %v8238_v49  ;;  %v5664_v48 = vadd.f32 %v16728_v32, %v11872_v3  ;;  %v7690_v7 = vadd.f32 %v16728_v32, %v12174_v46  ;;  %v5658_v14 = vpop.f32.mrb[47].mxu0  ;;  %v7684_v23 = vpop.f32.mrb[47].mxu1  ;;  %v17970_v46 = vld [vmem:[#allocation68_spill] sm:$0xff] }
 0x33d   :  { %8824 = vst.msk [vmem:[%s17749_s3 + $0x330] sm:$0xff] %vm8721_vm4, %v8627_v15  ;;  %v8433_v28 = vmax.f32 %v6211_v21, %v8237_v8  ;;  %v5659_v24 = vadd.f32 %v16728_v32, %v5658_v14  ;;  %v7685_v22 = vadd.f32 %v16728_v32, %v7684_v23  ;;  %v17971_v14 = vld [vmem:[#allocation69_spill] sm:$0xff] }
 0x33e   :  { %v8630_v41 = vmax.f32 %v17964_v20, %v8434_v50  ;;  %v6214_v12 = vmax.f32 %v5664_v48, 0.0  ;;  %v8240_v36 = vmax.f32 %v7690_v7, 0.0 }
 0x33f   :  { %v8629_v38 = vmax.f32 %v17965_v58, %v8433_v28  ;;  %v6213_v19 = vmax.f32 %v5659_v24, 0.0  ;;  %v8239_v6 = vmax.f32 %v7685_v22, 0.0  ;;  %v11875_v18 = vpop.f32.mrb[48].mxu0  ;;  %v12177_v30 = vpop.f32.mrb[48].mxu1 }
 0x340   :  { %8827 = vst.msk [vmem:[%s17749_s3 + $0x348] sm:$0xff] %vm8721_vm4, %v8630_v41  ;;  %v8436_v29 = vmax.f32 %v6214_v12, %v8240_v36  ;;  %v5674_v26 = vadd.f32 %v16728_v32, %v11875_v18  ;;  %v7700_v52 = vadd.f32 %v16728_v32, %v12177_v30  ;;  %v5668_v25 = vpop.f32.mrb[49].mxu0  ;;  %v7694_v10 = vpop.f32.mrb[49].mxu1  ;;  %v17972_v30 = vld [vmem:[#allocation70_spill] sm:$0xff] }
 0x341   :  { %8826 = vst.msk [vmem:[%s17749_s3 + $0x340] sm:$0xff] %vm8721_vm4, %v8629_v38  ;;  %v8435_v62 = vmax.f32 %v6213_v19, %v8239_v6  ;;  %v5669_v35 = vadd.f32 %v16728_v32, %v5668_v25  ;;  %v7695_v54 = vadd.f32 %v16728_v32, %v7694_v10  ;;  %v17973_v25 = vld [vmem:[#allocation71_spill] sm:$0xff] }
 0x342   :  { %v8632_v11 = vmax.f32 %v17966_v34, %v8436_v29  ;;  %v6216_v59 = vmax.f32 %v5674_v26, 0.0  ;;  %v8242_v45 = vmax.f32 %v7700_v52, 0.0 }
 0x343   :  { %v8631_v51 = vmax.f32 %v17967_v16, %v8435_v62  ;;  %v6215_v31 = vmax.f32 %v5669_v35, 0.0  ;;  %v8241_v39 = vmax.f32 %v7695_v54, 0.0  ;;  %v11878_v13 = vpop.f32.mrb[50].mxu0 }
 0x344   :  { %v12180_v9 = vpop.f32.mrb[50].mxu1  ;;  %8829 = vst.msk [vmem:[%s17749_s3 + $0x358] sm:$0xff] %vm8721_vm4, %v8632_v11  ;;  %v8438_v61 = vmax.f32 %v6216_v59, %v8242_v45  ;;  %v5684_v0 = vadd.f32 %v16728_v32, %v11878_v13  ;;  %v5678_v63 = vpop.f32.mrb[51].mxu0 }
 0x345   :  { %v7710_v5 = vadd.f32 %v16728_v32, %v12180_v9  ;;  %v7704_v53 = vpop.f32.mrb[51].mxu1  ;;  %8828 = vst.msk [vmem:[%s17749_s3 + $0x350] sm:$0xff] %vm8721_vm4, %v8631_v51  ;;  %v8437_v57 = vmax.f32 %v6215_v31, %v8241_v39  ;;  %v5679_v42 = vadd.f32 %v16728_v32, %v5678_v63  ;;  %v17974_v9 = vld [vmem:[#allocation72_spill] sm:$0xff]  ;;  %v17975_v63 = vld [vmem:[#allocation73_spill] sm:$0xff] }
 0x346   :  { %v7705_v56 = vadd.f32 %v16728_v32, %v7704_v53  ;;  %v8634_v27 = vmax.f32 %v17968_v4, %v8438_v61  ;;  %v6218_v1 = vmax.f32 %v5684_v0, 0.0 }
 0x347   :  { %v8244_v47 = vmax.f32 %v7710_v5, 0.0  ;;  %v8633_v40 = vmax.f32 %v17969_v17, %v8437_v57  ;;  %v6217_v33 = vmax.f32 %v5679_v42, 0.0  ;;  %v11881_v43 = vpop.f32.mrb[52].mxu0 }
 0x348   :  { %v8243_v37 = vmax.f32 %v7705_v56, 0.0  ;;  %v12183_v2 = vpop.f32.mrb[52].mxu1  ;;  %8831 = vst.msk [vmem:[%s17749_s3 + $0x368] sm:$0xff] %vm8721_vm4, %v8634_v27  ;;  %v5694_v55 = vadd.f32 %v16728_v32, %v11881_v43  ;;  %v5688_v44 = vpop.f32.mrb[53].mxu0 }
 0x349   :  { %v8440_v60 = vmax.f32 %v6218_v1, %v8244_v47  ;;  %v7720_v49 = vadd.f32 %v16728_v32, %v12183_v2  ;;  %v7714_v15 = vpop.f32.mrb[53].mxu1  ;;  %8830 = vst.msk [vmem:[%s17749_s3 + $0x360] sm:$0xff] %vm8721_vm4, %v8633_v40  ;;  %v5689_v8 = vadd.f32 %v16728_v32, %v5688_v44  ;;  %v17976_v2 = vld [vmem:[#allocation74_spill] sm:$0xff]  ;;  %v17977_v44 = vld [vmem:[#allocation75_spill] sm:$0xff] }
 0x34a   :  { %v8439_v21 = vmax.f32 %v6217_v33, %v8243_v37  ;;  %v7715_v3 = vadd.f32 %v16728_v32, %v7714_v15  ;;  %v6220_v48 = vmax.f32 %v5694_v55, 0.0 }
 0x34b   :  { %v8636_v50 = vmax.f32 %v17970_v46, %v8440_v60  ;;  %v8246_v7 = vmax.f32 %v7720_v49, 0.0  ;;  %v6219_v28 = vmax.f32 %v5689_v8, 0.0  ;;  %v11884_v22 = vpop.f32.mrb[54].mxu0 }
 0x34c   :  { %v8635_v23 = vmax.f32 %v17971_v14, %v8439_v21  ;;  %v8245_v24 = vmax.f32 %v7715_v3, 0.0  ;;  %v12186_v20 = vpop.f32.mrb[54].mxu1  ;;  %v5704_v12 = vadd.f32 %v16728_v32, %v11884_v22  ;;  %v5698_v58 = vpop.f32.mrb[55].mxu0 }
 0x34d   :  { %8833 = vst.msk [vmem:[%s17749_s3 + $0x378] sm:$0xff] %vm8721_vm4, %v8636_v50  ;;  %v8442_v41 = vmax.f32 %v6220_v48, %v8246_v7  ;;  %v7730_v36 = vadd.f32 %v16728_v32, %v12186_v20  ;;  %v7724_v38 = vpop.f32.mrb[55].mxu1  ;;  %v5699_v6 = vadd.f32 %v16728_v32, %v5698_v58  ;;  %v17978_v20 = vld [vmem:[#allocation76_spill] sm:$0xff]  ;;  %v17979_v58 = vld [vmem:[#allocation77_spill] sm:$0xff] }
 0x34e   :  { %8832 = vst.msk [vmem:[%s17749_s3 + $0x370] sm:$0xff] %vm8721_vm4, %v8635_v23  ;;  %v8441_v19 = vmax.f32 %v6219_v28, %v8245_v24  ;;  %v7725_v18 = vadd.f32 %v16728_v32, %v7724_v38  ;;  %v6222_v26 = vmax.f32 %v5704_v12, 0.0 }
 0x34f   :  { %v8638_v29 = vmax.f32 %v17972_v30, %v8442_v41  ;;  %v8248_v52 = vmax.f32 %v7730_v36, 0.0  ;;  %v6221_v62 = vmax.f32 %v5699_v6, 0.0  ;;  %v11887_v54 = vpop.f32.mrb[56].mxu0 }
 0x350   :  { %v8637_v10 = vmax.f32 %v17973_v25, %v8441_v19  ;;  %v8247_v35 = vmax.f32 %v7725_v18, 0.0  ;;  %v12189_v34 = vpop.f32.mrb[56].mxu1  ;;  %v5714_v59 = vadd.f32 %v16728_v32, %v11887_v54  ;;  %v5708_v16 = vpop.f32.mrb[57].mxu0 }
 0x351   :  { %8835 = vst.msk [vmem:[%s17749_s3 + $0x388] sm:$0xff] %vm8721_vm4, %v8638_v29  ;;  %v8444_v11 = vmax.f32 %v6222_v26, %v8248_v52  ;;  %v7740_v45 = vadd.f32 %v16728_v32, %v12189_v34  ;;  %v7734_v51 = vpop.f32.mrb[57].mxu1  ;;  %v5709_v39 = vadd.f32 %v16728_v32, %v5708_v16  ;;  %v17980_v34 = vld [vmem:[#allocation78_spill] sm:$0xff]  ;;  %v17981_v16 = vld [vmem:[#allocation79_spill] sm:$0xff] }
 0x352   :  { %8834 = vst.msk [vmem:[%s17749_s3 + $0x380] sm:$0xff] %vm8721_vm4, %v8637_v10  ;;  %v8443_v31 = vmax.f32 %v6221_v62, %v8247_v35  ;;  %v7735_v13 = vadd.f32 %v16728_v32, %v7734_v51  ;;  %v6224_v0 = vmax.f32 %v5714_v59, 0.0 }
 0x353   :  { %v8640_v61 = vmax.f32 %v17974_v9, %v8444_v11  ;;  %v8250_v5 = vmax.f32 %v7740_v45, 0.0  ;;  %v6223_v57 = vmax.f32 %v5709_v39, 0.0  ;;  %v11890_v56 = vpop.f32.mrb[58].mxu0 }
 0x354   :  { %v8639_v53 = vmax.f32 %v17975_v63, %v8443_v31  ;;  %v8249_v42 = vmax.f32 %v7735_v13, 0.0  ;;  %v12192_v4 = vpop.f32.mrb[58].mxu1  ;;  %v5724_v1 = vadd.f32 %v16728_v32, %v11890_v56  ;;  %v5718_v17 = vpop.f32.mrb[59].mxu0 }
 0x355   :  { %8837 = vst.msk [vmem:[%s17749_s3 + $0x398] sm:$0xff] %vm8721_vm4, %v8640_v61  ;;  %v8446_v27 = vmax.f32 %v6224_v0, %v8250_v5  ;;  %v7750_v47 = vadd.f32 %v16728_v32, %v12192_v4  ;;  %v7744_v40 = vpop.f32.mrb[59].mxu1  ;;  %v5719_v37 = vadd.f32 %v16728_v32, %v5718_v17  ;;  %v17982_v4 = vld [vmem:[#allocation80_spill] sm:$0xff]  ;;  %v17983_v17 = vld [vmem:[#allocation81_spill] sm:$0xff] }
 0x356   :  { %8836 = vst.msk [vmem:[%s17749_s3 + $0x390] sm:$0xff] %vm8721_vm4, %v8639_v53  ;;  %v8445_v33 = vmax.f32 %v6223_v57, %v8249_v42  ;;  %v7745_v43 = vadd.f32 %v16728_v32, %v7744_v40  ;;  %v6226_v55 = vmax.f32 %v5724_v1, 0.0 }
 0x357   :  { %v8642_v60 = vmax.f32 %v17976_v2, %v8446_v27  ;;  %v8252_v49 = vmax.f32 %v7750_v47, 0.0  ;;  %v6225_v21 = vmax.f32 %v5719_v37, 0.0  ;;  %v11893_v3 = vpop.f32.mrb[60].mxu0 }
 0x358   :  { %v8641_v15 = vmax.f32 %v17977_v44, %v8445_v33  ;;  %v8251_v8 = vmax.f32 %v7745_v43, 0.0  ;;  %v12195_v46 = vpop.f32.mrb[60].mxu1  ;;  %v5734_v48 = vadd.f32 %v16728_v32, %v11893_v3  ;;  %v5728_v14 = vpop.f32.mrb[61].mxu0 }
 0x359   :  { %8839 = vst.msk [vmem:[%s17749_s3 + $0x3a8] sm:$0xff] %vm8721_vm4, %v8642_v60  ;;  %v8448_v50 = vmax.f32 %v6226_v55, %v8252_v49  ;;  %v7760_v7 = vadd.f32 %v16728_v32, %v12195_v46  ;;  %v7754_v23 = vpop.f32.mrb[61].mxu1  ;;  %v5729_v24 = vadd.f32 %v16728_v32, %v5728_v14  ;;  %v17984_v46 = vld [vmem:[#allocation82_spill] sm:$0xff]  ;;  %v17985_v14 = vld [vmem:[#allocation83_spill] sm:$0xff] }
 0x35a   :  { %8838 = vst.msk [vmem:[%s17749_s3 + $0x3a0] sm:$0xff] %vm8721_vm4, %v8641_v15  ;;  %v8447_v28 = vmax.f32 %v6225_v21, %v8251_v8  ;;  %v7755_v22 = vadd.f32 %v16728_v32, %v7754_v23  ;;  %v6228_v12 = vmax.f32 %v5734_v48, 0.0  ;;  %v17207_v32 = vld [vmem:[%s17748_s2] ss:$0 sm:$0xff] }
 0x35b   :  { %v8644_v41 = vmax.f32 %v17978_v20, %v8448_v50  ;;  %v8254_v36 = vmax.f32 %v7760_v7, 0.0  ;;  %v6227_v19 = vmax.f32 %v5729_v24, 0.0  ;;  %v11896_v18 = vpop.f32.mrb[62].mxu0 }
 0x35c   :  { %v8643_v38 = vmax.f32 %v17979_v58, %v8447_v28  ;;  %v8253_v6 = vmax.f32 %v7755_v22, 0.0  ;;  %v12198_v30 = vpop.f32.mrb[62].mxu1  ;;  %v5744_v26 = vadd.f32 %v17207_v32, %v11896_v18  ;;  %v5738_v25 = vpop.f32.mrb[63].mxu0 }
 0x35d   :  { %8841 = vst.msk [vmem:[%s17749_s3 + $0x3b8] sm:$0xff] %vm8721_vm4, %v8644_v41  ;;  %v8450_v29 = vmax.f32 %v6228_v12, %v8254_v36  ;;  %v7770_v52 = vadd.f32 %v17207_v32, %v12198_v30  ;;  %v7764_v10 = vpop.f32.mrb[63].mxu1  ;;  %v5739_v35 = vadd.f32 %v17207_v32, %v5738_v25  ;;  %v17986_v30 = vld [vmem:[#allocation84_spill] sm:$0xff]  ;;  %v17987_v25 = vld [vmem:[#allocation85_spill] sm:$0xff] }
 0x35e   :  { %8840 = vst.msk [vmem:[%s17749_s3 + $0x3b0] sm:$0xff] %vm8721_vm4, %v8643_v38  ;;  %v8449_v62 = vmax.f32 %v6227_v19, %v8253_v6  ;;  %v7765_v54 = vadd.f32 %v17207_v32, %v7764_v10  ;;  %v6230_v59 = vmax.f32 %v5744_v26, 0.0 }
 0x35f   :  { %v8646_v11 = vmax.f32 %v17980_v34, %v8450_v29  ;;  %v8256_v45 = vmax.f32 %v7770_v52, 0.0  ;;  %v6229_v31 = vmax.f32 %v5739_v35, 0.0  ;;  %v11899_v13 = vpop.f32.mrb[64].mxu0 }
 0x360   :  { %v8645_v51 = vmax.f32 %v17981_v16, %v8449_v62  ;;  %v8255_v39 = vmax.f32 %v7765_v54, 0.0  ;;  %v12201_v9 = vpop.f32.mrb[64].mxu1  ;;  %v5754_v0 = vadd.f32 %v17207_v32, %v11899_v13  ;;  %v5748_v63 = vpop.f32.mrb[65].mxu0 }
 0x361   :  { %8843 = vst.msk [vmem:[%s17749_s3 + $0x3c8] sm:$0xff] %vm8721_vm4, %v8646_v11  ;;  %v8452_v61 = vmax.f32 %v6230_v59, %v8256_v45  ;;  %v7780_v5 = vadd.f32 %v17207_v32, %v12201_v9  ;;  %v7774_v53 = vpop.f32.mrb[65].mxu1  ;;  %v5749_v42 = vadd.f32 %v17207_v32, %v5748_v63  ;;  %v17988_v9 = vld [vmem:[#allocation86_spill] sm:$0xff]  ;;  %v17989_v63 = vld [vmem:[#allocation87_spill] sm:$0xff] }
 0x362   :  { %8842 = vst.msk [vmem:[%s17749_s3 + $0x3c0] sm:$0xff] %vm8721_vm4, %v8645_v51  ;;  %v8451_v57 = vmax.f32 %v6229_v31, %v8255_v39  ;;  %v7775_v56 = vadd.f32 %v17207_v32, %v7774_v53  ;;  %v6232_v1 = vmax.f32 %v5754_v0, 0.0 }
 0x363   :  { %v8648_v27 = vmax.f32 %v17982_v4, %v8452_v61  ;;  %v8258_v47 = vmax.f32 %v7780_v5, 0.0  ;;  %v6231_v33 = vmax.f32 %v5749_v42, 0.0  ;;  %v11902_v43 = vpop.f32.mrb[66].mxu0 }
 0x364   :  { %v8647_v40 = vmax.f32 %v17983_v17, %v8451_v57  ;;  %v8257_v37 = vmax.f32 %v7775_v56, 0.0  ;;  %v12204_v2 = vpop.f32.mrb[66].mxu1  ;;  %v5764_v55 = vadd.f32 %v17207_v32, %v11902_v43  ;;  %v5758_v44 = vpop.f32.mrb[67].mxu0 }
 0x365   :  { %8845 = vst.msk [vmem:[%s17749_s3 + $0x3d8] sm:$0xff] %vm8721_vm4, %v8648_v27  ;;  %v8454_v60 = vmax.f32 %v6232_v1, %v8258_v47  ;;  %v7790_v49 = vadd.f32 %v17207_v32, %v12204_v2  ;;  %v7784_v15 = vpop.f32.mrb[67].mxu1  ;;  %v5759_v8 = vadd.f32 %v17207_v32, %v5758_v44  ;;  %v17990_v2 = vld [vmem:[#allocation88_spill] sm:$0xff]  ;;  %v17991_v44 = vld [vmem:[#allocation89_spill] sm:$0xff] }
 0x366   :  { %8844 = vst.msk [vmem:[%s17749_s3 + $0x3d0] sm:$0xff] %vm8721_vm4, %v8647_v40  ;;  %v8453_v21 = vmax.f32 %v6231_v33, %v8257_v37  ;;  %v7785_v3 = vadd.f32 %v17207_v32, %v7784_v15  ;;  %v6234_v48 = vmax.f32 %v5764_v55, 0.0 }
 0x367   :  { %v8650_v50 = vmax.f32 %v17984_v46, %v8454_v60  ;;  %v8260_v7 = vmax.f32 %v7790_v49, 0.0  ;;  %v6233_v28 = vmax.f32 %v5759_v8, 0.0  ;;  %v11905_v22 = vpop.f32.mrb[68].mxu0 }
 0x368   :  { %v8649_v23 = vmax.f32 %v17985_v14, %v8453_v21  ;;  %v8259_v24 = vmax.f32 %v7785_v3, 0.0  ;;  %v12207_v20 = vpop.f32.mrb[68].mxu1  ;;  %v5774_v12 = vadd.f32 %v17207_v32, %v11905_v22  ;;  %v5768_v58 = vpop.f32.mrb[69].mxu0 }
 0x369   :  { %8847 = vst.msk [vmem:[%s17749_s3 + $0x3e8] sm:$0xff] %vm8721_vm4, %v8650_v50  ;;  %v8456_v41 = vmax.f32 %v6234_v48, %v8260_v7  ;;  %v7800_v36 = vadd.f32 %v17207_v32, %v12207_v20  ;;  %v7794_v38 = vpop.f32.mrb[69].mxu1  ;;  %v5769_v6 = vadd.f32 %v17207_v32, %v5768_v58  ;;  %v17992_v20 = vld [vmem:[#allocation90_spill] sm:$0xff]  ;;  %v17993_v58 = vld [vmem:[#allocation91_spill] sm:$0xff] }
 0x36a   :  { %8846 = vst.msk [vmem:[%s17749_s3 + $0x3e0] sm:$0xff] %vm8721_vm4, %v8649_v23  ;;  %v8455_v19 = vmax.f32 %v6233_v28, %v8259_v24  ;;  %v7795_v18 = vadd.f32 %v17207_v32, %v7794_v38  ;;  %v6236_v26 = vmax.f32 %v5774_v12, 0.0 }
 0x36b   :  { %v8652_v29 = vmax.f32 %v17986_v30, %v8456_v41  ;;  %v8262_v52 = vmax.f32 %v7800_v36, 0.0  ;;  %v6235_v62 = vmax.f32 %v5769_v6, 0.0  ;;  %v11908_v54 = vpop.f32.mrb[70].mxu0 }
 0x36c   :  { %v8651_v10 = vmax.f32 %v17987_v25, %v8455_v19  ;;  %v8261_v35 = vmax.f32 %v7795_v18, 0.0  ;;  %v12210_v34 = vpop.f32.mrb[70].mxu1  ;;  %v5784_v59 = vadd.f32 %v17207_v32, %v11908_v54  ;;  %v5778_v16 = vpop.f32.mrb[71].mxu0 }
 0x36d   :  { %8849 = vst.msk [vmem:[%s17749_s3 + $0x3f8] sm:$0xff] %vm8721_vm4, %v8652_v29  ;;  %v8458_v11 = vmax.f32 %v6236_v26, %v8262_v52  ;;  %v7810_v45 = vadd.f32 %v17207_v32, %v12210_v34  ;;  %v7804_v51 = vpop.f32.mrb[71].mxu1  ;;  %v5779_v39 = vadd.f32 %v17207_v32, %v5778_v16  ;;  %v17994_v34 = vld [vmem:[#allocation92_spill] sm:$0xff]  ;;  %v17995_v16 = vld [vmem:[#allocation93_spill] sm:$0xff] }
 0x36e   :  { %8848 = vst.msk [vmem:[%s17749_s3 + $0x3f0] sm:$0xff] %vm8721_vm4, %v8651_v10  ;;  %v8457_v31 = vmax.f32 %v6235_v62, %v8261_v35  ;;  %v7805_v13 = vadd.f32 %v17207_v32, %v7804_v51  ;;  %v6238_v0 = vmax.f32 %v5784_v59, 0.0 }
 0x36f   :  { %v8654_v61 = vmax.f32 %v17988_v9, %v8458_v11  ;;  %v8264_v5 = vmax.f32 %v7810_v45, 0.0  ;;  %v6237_v57 = vmax.f32 %v5779_v39, 0.0  ;;  %v11911_v56 = vpop.f32.mrb[72].mxu0 }
 0x370   :  { %v8653_v53 = vmax.f32 %v17989_v63, %v8457_v31  ;;  %v8263_v42 = vmax.f32 %v7805_v13, 0.0  ;;  %v12213_v4 = vpop.f32.mrb[72].mxu1  ;;  %v5794_v1 = vadd.f32 %v17207_v32, %v11911_v56  ;;  %v5788_v17 = vpop.f32.mrb[73].mxu0 }
 0x371   :  { %8851 = vst.msk [vmem:[%s17749_s3 + $0x408] sm:$0xff] %vm8721_vm4, %v8654_v61  ;;  %v8460_v27 = vmax.f32 %v6238_v0, %v8264_v5  ;;  %v7820_v47 = vadd.f32 %v17207_v32, %v12213_v4  ;;  %v7814_v40 = vpop.f32.mrb[73].mxu1  ;;  %v5789_v37 = vadd.f32 %v17207_v32, %v5788_v17  ;;  %v17996_v4 = vld [vmem:[#allocation94_spill] sm:$0xff]  ;;  %v17997_v17 = vld [vmem:[#allocation95_spill] sm:$0xff] }
 0x372   :  { %8850 = vst.msk [vmem:[%s17749_s3 + $0x400] sm:$0xff] %vm8721_vm4, %v8653_v53  ;;  %v8459_v33 = vmax.f32 %v6237_v57, %v8263_v42  ;;  %v7815_v43 = vadd.f32 %v17207_v32, %v7814_v40  ;;  %v6240_v55 = vmax.f32 %v5794_v1, 0.0 }
 0x373   :  { %v8656_v60 = vmax.f32 %v17990_v2, %v8460_v27  ;;  %v8266_v49 = vmax.f32 %v7820_v47, 0.0  ;;  %v6239_v21 = vmax.f32 %v5789_v37, 0.0  ;;  %v11914_v3 = vpop.f32.mrb[74].mxu0 }
 0x374   :  { %v8655_v15 = vmax.f32 %v17991_v44, %v8459_v33  ;;  %v8265_v8 = vmax.f32 %v7815_v43, 0.0  ;;  %v12216_v46 = vpop.f32.mrb[74].mxu1  ;;  %v5804_v48 = vadd.f32 %v17207_v32, %v11914_v3  ;;  %v5798_v14 = vpop.f32.mrb[75].mxu0 }
 0x375   :  { %8853 = vst.msk [vmem:[%s17749_s3 + $0x418] sm:$0xff] %vm8721_vm4, %v8656_v60  ;;  %v8462_v50 = vmax.f32 %v6240_v55, %v8266_v49  ;;  %v7830_v7 = vadd.f32 %v17207_v32, %v12216_v46  ;;  %v7824_v23 = vpop.f32.mrb[75].mxu1  ;;  %v5799_v24 = vadd.f32 %v17207_v32, %v5798_v14  ;;  %v17998_v46 = vld [vmem:[#allocation96_spill] sm:$0xff]  ;;  %v17999_v14 = vld [vmem:[#allocation97_spill] sm:$0xff] }
 0x376   :  { %8852 = vst.msk [vmem:[%s17749_s3 + $0x410] sm:$0xff] %vm8721_vm4, %v8655_v15  ;;  %v8461_v28 = vmax.f32 %v6239_v21, %v8265_v8  ;;  %v7825_v22 = vadd.f32 %v17207_v32, %v7824_v23  ;;  %v6242_v12 = vmax.f32 %v5804_v48, 0.0 }
 0x377   :  { %v8658_v41 = vmax.f32 %v17992_v20, %v8462_v50  ;;  %v8268_v36 = vmax.f32 %v7830_v7, 0.0  ;;  %v6241_v19 = vmax.f32 %v5799_v24, 0.0  ;;  %v11917_v18 = vpop.f32.mrb[76].mxu0 }
 0x378   :  { %v8657_v38 = vmax.f32 %v17993_v58, %v8461_v28  ;;  %v8267_v6 = vmax.f32 %v7825_v22, 0.0  ;;  %v12219_v30 = vpop.f32.mrb[76].mxu1  ;;  %v5814_v26 = vadd.f32 %v17207_v32, %v11917_v18  ;;  %v5808_v25 = vpop.f32.mrb[77].mxu0 }
 0x379   :  { %8855 = vst.msk [vmem:[%s17749_s3 + $0x428] sm:$0xff] %vm8721_vm4, %v8658_v41  ;;  %v8464_v29 = vmax.f32 %v6242_v12, %v8268_v36  ;;  %v7840_v52 = vadd.f32 %v17207_v32, %v12219_v30  ;;  %v7834_v10 = vpop.f32.mrb[77].mxu1  ;;  %v5809_v35 = vadd.f32 %v17207_v32, %v5808_v25  ;;  %v18000_v30 = vld [vmem:[#allocation98_spill] sm:$0xff]  ;;  %v18001_v25 = vld [vmem:[#allocation99_spill] sm:$0xff] }
 0x37a   :  { %8854 = vst.msk [vmem:[%s17749_s3 + $0x420] sm:$0xff] %vm8721_vm4, %v8657_v38  ;;  %v8463_v62 = vmax.f32 %v6241_v19, %v8267_v6  ;;  %v7835_v54 = vadd.f32 %v17207_v32, %v7834_v10  ;;  %v6244_v59 = vmax.f32 %v5814_v26, 0.0 }
 0x37b   :  { %v8660_v11 = vmax.f32 %v17994_v34, %v8464_v29  ;;  %v8270_v45 = vmax.f32 %v7840_v52, 0.0  ;;  %v6243_v31 = vmax.f32 %v5809_v35, 0.0  ;;  %v11920_v13 = vpop.f32.mrb[78].mxu0 }
 0x37c   :  { %v8659_v51 = vmax.f32 %v17995_v16, %v8463_v62  ;;  %v8269_v39 = vmax.f32 %v7835_v54, 0.0  ;;  %v12222_v9 = vpop.f32.mrb[78].mxu1  ;;  %v5824_v0 = vadd.f32 %v17207_v32, %v11920_v13  ;;  %v5818_v63 = vpop.f32.mrb[79].mxu0 }
 0x37d   :  { %8857 = vst.msk [vmem:[%s17749_s3 + $0x438] sm:$0xff] %vm8721_vm4, %v8660_v11  ;;  %v8466_v61 = vmax.f32 %v6244_v59, %v8270_v45  ;;  %v7850_v5 = vadd.f32 %v17207_v32, %v12222_v9  ;;  %v7844_v53 = vpop.f32.mrb[79].mxu1  ;;  %v5819_v42 = vadd.f32 %v17207_v32, %v5818_v63  ;;  %v18002_v9 = vld [vmem:[#allocation100_spill] sm:$0xff]  ;;  %v18003_v63 = vld [vmem:[#allocation101_spill] sm:$0xff] }
 0x37e   :  { %8856 = vst.msk [vmem:[%s17749_s3 + $0x430] sm:$0xff] %vm8721_vm4, %v8659_v51  ;;  %v8465_v57 = vmax.f32 %v6243_v31, %v8269_v39  ;;  %v7845_v56 = vadd.f32 %v17207_v32, %v7844_v53  ;;  %v6246_v1 = vmax.f32 %v5824_v0, 0.0 }
 0x37f   :  { %v8662_v27 = vmax.f32 %v17996_v4, %v8466_v61  ;;  %v8272_v47 = vmax.f32 %v7850_v5, 0.0  ;;  %v6245_v33 = vmax.f32 %v5819_v42, 0.0  ;;  %v11923_v43 = vpop.f32.mrb[80].mxu0 }
 0x380   :  { %v8661_v40 = vmax.f32 %v17997_v17, %v8465_v57  ;;  %v8271_v37 = vmax.f32 %v7845_v56, 0.0  ;;  %v12225_v2 = vpop.f32.mrb[80].mxu1  ;;  %v5834_v55 = vadd.f32 %v17207_v32, %v11923_v43  ;;  %v5828_v44 = vpop.f32.mrb[81].mxu0 }
 0x381   :  { %8859 = vst.msk [vmem:[%s17749_s3 + $0x448] sm:$0xff] %vm8721_vm4, %v8662_v27  ;;  %v8468_v60 = vmax.f32 %v6246_v1, %v8272_v47  ;;  %v7860_v49 = vadd.f32 %v17207_v32, %v12225_v2  ;;  %v7854_v15 = vpop.f32.mrb[81].mxu1  ;;  %v5829_v8 = vadd.f32 %v17207_v32, %v5828_v44  ;;  %v18004_v2 = vld [vmem:[#allocation102_spill] sm:$0xff]  ;;  %v18005_v44 = vld [vmem:[#allocation103_spill] sm:$0xff] }
 0x382   :  { %8858 = vst.msk [vmem:[%s17749_s3 + $0x440] sm:$0xff] %vm8721_vm4, %v8661_v40  ;;  %v8467_v21 = vmax.f32 %v6245_v33, %v8271_v37  ;;  %v7855_v3 = vadd.f32 %v17207_v32, %v7854_v15  ;;  %v6248_v48 = vmax.f32 %v5834_v55, 0.0 }
 0x383   :  { %v8664_v50 = vmax.f32 %v17998_v46, %v8468_v60  ;;  %v8274_v7 = vmax.f32 %v7860_v49, 0.0  ;;  %v6247_v28 = vmax.f32 %v5829_v8, 0.0  ;;  %v11926_v22 = vpop.f32.mrb[82].mxu0 }
 0x384   :  { %v8663_v23 = vmax.f32 %v17999_v14, %v8467_v21  ;;  %v8273_v24 = vmax.f32 %v7855_v3, 0.0  ;;  %v12228_v20 = vpop.f32.mrb[82].mxu1  ;;  %v5844_v12 = vadd.f32 %v17207_v32, %v11926_v22  ;;  %v5838_v58 = vpop.f32.mrb[83].mxu0 }
 0x385   :  { %8861 = vst.msk [vmem:[%s17749_s3 + $0x458] sm:$0xff] %vm8721_vm4, %v8664_v50  ;;  %v8470_v41 = vmax.f32 %v6248_v48, %v8274_v7  ;;  %v7870_v36 = vadd.f32 %v17207_v32, %v12228_v20  ;;  %v7864_v38 = vpop.f32.mrb[83].mxu1  ;;  %v5839_v6 = vadd.f32 %v17207_v32, %v5838_v58  ;;  %v18006_v20 = vld [vmem:[#allocation104_spill] sm:$0xff]  ;;  %v18007_v58 = vld [vmem:[#allocation105_spill] sm:$0xff] }
 0x386   :  { %8860 = vst.msk [vmem:[%s17749_s3 + $0x450] sm:$0xff] %vm8721_vm4, %v8663_v23  ;;  %v8469_v19 = vmax.f32 %v6247_v28, %v8273_v24  ;;  %v7865_v18 = vadd.f32 %v17207_v32, %v7864_v38  ;;  %v6250_v26 = vmax.f32 %v5844_v12, 0.0 }
 0x387   :  { %v8666_v29 = vmax.f32 %v18000_v30, %v8470_v41  ;;  %v8276_v52 = vmax.f32 %v7870_v36, 0.0  ;;  %v6249_v62 = vmax.f32 %v5839_v6, 0.0  ;;  %v11929_v54 = vpop.f32.mrb[84].mxu0 }
 0x388   :  { %v8665_v10 = vmax.f32 %v18001_v25, %v8469_v19  ;;  %v8275_v35 = vmax.f32 %v7865_v18, 0.0  ;;  %v12231_v34 = vpop.f32.mrb[84].mxu1  ;;  %v5854_v59 = vadd.f32 %v17207_v32, %v11929_v54  ;;  %v5848_v16 = vpop.f32.mrb[85].mxu0 }
 0x389   :  { %8863 = vst.msk [vmem:[%s17749_s3 + $0x468] sm:$0xff] %vm8721_vm4, %v8666_v29  ;;  %v8472_v11 = vmax.f32 %v6250_v26, %v8276_v52  ;;  %v7880_v45 = vadd.f32 %v17207_v32, %v12231_v34  ;;  %v7874_v51 = vpop.f32.mrb[85].mxu1  ;;  %v5849_v39 = vadd.f32 %v17207_v32, %v5848_v16  ;;  %v18008_v34 = vld [vmem:[#allocation106_spill] sm:$0xff]  ;;  %v18009_v16 = vld [vmem:[#allocation107_spill] sm:$0xff] }
 0x38a   :  { %8862 = vst.msk [vmem:[%s17749_s3 + $0x460] sm:$0xff] %vm8721_vm4, %v8665_v10  ;;  %v8471_v31 = vmax.f32 %v6249_v62, %v8275_v35  ;;  %v7875_v13 = vadd.f32 %v17207_v32, %v7874_v51  ;;  %v6252_v0 = vmax.f32 %v5854_v59, 0.0 }
 0x38b   :  { %v8668_v61 = vmax.f32 %v18002_v9, %v8472_v11  ;;  %v8278_v5 = vmax.f32 %v7880_v45, 0.0  ;;  %v6251_v57 = vmax.f32 %v5849_v39, 0.0  ;;  %v11932_v56 = vpop.f32.mrb[86].mxu0 }
 0x38c   :  { %v8667_v53 = vmax.f32 %v18003_v63, %v8471_v31  ;;  %v8277_v42 = vmax.f32 %v7875_v13, 0.0  ;;  %v12234_v4 = vpop.f32.mrb[86].mxu1  ;;  %v5864_v1 = vadd.f32 %v17207_v32, %v11932_v56  ;;  %v5858_v17 = vpop.f32.mrb[87].mxu0 }
 0x38d   :  { %8865 = vst.msk [vmem:[%s17749_s3 + $0x478] sm:$0xff] %vm8721_vm4, %v8668_v61  ;;  %v8474_v27 = vmax.f32 %v6252_v0, %v8278_v5  ;;  %v7890_v47 = vadd.f32 %v17207_v32, %v12234_v4  ;;  %v7884_v40 = vpop.f32.mrb[87].mxu1  ;;  %v5859_v37 = vadd.f32 %v17207_v32, %v5858_v17  ;;  %v18010_v4 = vld [vmem:[#allocation108_spill] sm:$0xff]  ;;  %v18011_v17 = vld [vmem:[#allocation109_spill] sm:$0xff] }
 0x38e   :  { %8864 = vst.msk [vmem:[%s17749_s3 + $0x470] sm:$0xff] %vm8721_vm4, %v8667_v53  ;;  %v8473_v33 = vmax.f32 %v6251_v57, %v8277_v42  ;;  %v7885_v43 = vadd.f32 %v17207_v32, %v7884_v40  ;;  %v6254_v55 = vmax.f32 %v5864_v1, 0.0 }
 0x38f   :  { %v8670_v60 = vmax.f32 %v18004_v2, %v8474_v27  ;;  %v8280_v49 = vmax.f32 %v7890_v47, 0.0  ;;  %v6253_v21 = vmax.f32 %v5859_v37, 0.0  ;;  %v11935_v3 = vpop.f32.mrb[88].mxu0 }
 0x390   :  { %v8669_v15 = vmax.f32 %v18005_v44, %v8473_v33  ;;  %v8279_v8 = vmax.f32 %v7885_v43, 0.0  ;;  %v12237_v46 = vpop.f32.mrb[88].mxu1  ;;  %v5874_v48 = vadd.f32 %v17207_v32, %v11935_v3  ;;  %v5868_v14 = vpop.f32.mrb[89].mxu0 }
 0x391   :  { %8867 = vst.msk [vmem:[%s17749_s3 + $0x488] sm:$0xff] %vm8721_vm4, %v8670_v60  ;;  %v8476_v50 = vmax.f32 %v6254_v55, %v8280_v49  ;;  %v7900_v7 = vadd.f32 %v17207_v32, %v12237_v46  ;;  %v7894_v23 = vpop.f32.mrb[89].mxu1  ;;  %v5869_v24 = vadd.f32 %v17207_v32, %v5868_v14  ;;  %v18012_v46 = vld [vmem:[#allocation110_spill] sm:$0xff]  ;;  %v18013_v14 = vld [vmem:[#allocation111_spill] sm:$0xff] }
 0x392   :  { %8866 = vst.msk [vmem:[%s17749_s3 + $0x480] sm:$0xff] %vm8721_vm4, %v8669_v15  ;;  %v8475_v28 = vmax.f32 %v6253_v21, %v8279_v8  ;;  %v7895_v22 = vadd.f32 %v17207_v32, %v7894_v23  ;;  %v6256_v12 = vmax.f32 %v5874_v48, 0.0 }
 0x393   :  { %v8672_v41 = vmax.f32 %v18006_v20, %v8476_v50  ;;  %v8282_v36 = vmax.f32 %v7900_v7, 0.0  ;;  %v6255_v19 = vmax.f32 %v5869_v24, 0.0  ;;  %v11938_v18 = vpop.f32.mrb[90].mxu0 }
 0x394   :  { %v8671_v38 = vmax.f32 %v18007_v58, %v8475_v28  ;;  %v8281_v6 = vmax.f32 %v7895_v22, 0.0  ;;  %v12240_v30 = vpop.f32.mrb[90].mxu1  ;;  %v5884_v26 = vadd.f32 %v17207_v32, %v11938_v18  ;;  %v5878_v25 = vpop.f32.mrb[91].mxu0 }
 0x395   :  { %8869 = vst.msk [vmem:[%s17749_s3 + $0x498] sm:$0xff] %vm8721_vm4, %v8672_v41  ;;  %v8478_v29 = vmax.f32 %v6256_v12, %v8282_v36  ;;  %v7910_v52 = vadd.f32 %v17207_v32, %v12240_v30  ;;  %v7904_v10 = vpop.f32.mrb[91].mxu1  ;;  %v5879_v35 = vadd.f32 %v17207_v32, %v5878_v25  ;;  %v18014_v30 = vld [vmem:[#allocation112_spill] sm:$0xff]  ;;  %v18015_v25 = vld [vmem:[#allocation113_spill] sm:$0xff] }
 0x396   :  { %8868 = vst.msk [vmem:[%s17749_s3 + $0x490] sm:$0xff] %vm8721_vm4, %v8671_v38  ;;  %v8477_v62 = vmax.f32 %v6255_v19, %v8281_v6  ;;  %v7905_v54 = vadd.f32 %v17207_v32, %v7904_v10  ;;  %v6258_v59 = vmax.f32 %v5884_v26, 0.0 }
 0x397   :  { %v8674_v11 = vmax.f32 %v18008_v34, %v8478_v29  ;;  %v8284_v45 = vmax.f32 %v7910_v52, 0.0  ;;  %v6257_v31 = vmax.f32 %v5879_v35, 0.0  ;;  %v11941_v13 = vpop.f32.mrb[92].mxu0 }
 0x398   :  { %v8673_v51 = vmax.f32 %v18009_v16, %v8477_v62  ;;  %v8283_v39 = vmax.f32 %v7905_v54, 0.0  ;;  %v12243_v9 = vpop.f32.mrb[92].mxu1  ;;  %v5894_v0 = vadd.f32 %v17207_v32, %v11941_v13  ;;  %v5888_v63 = vpop.f32.mrb[93].mxu0 }
 0x399   :  { %8871 = vst.msk [vmem:[%s17749_s3 + $0x4a8] sm:$0xff] %vm8721_vm4, %v8674_v11  ;;  %v8480_v61 = vmax.f32 %v6258_v59, %v8284_v45  ;;  %v7920_v5 = vadd.f32 %v17207_v32, %v12243_v9  ;;  %v7914_v53 = vpop.f32.mrb[93].mxu1  ;;  %v5889_v42 = vadd.f32 %v17207_v32, %v5888_v63  ;;  %v18016_v9 = vld [vmem:[#allocation114_spill] sm:$0xff]  ;;  %v18017_v63 = vld [vmem:[#allocation115_spill] sm:$0xff] }
 0x39a   :  { %8870 = vst.msk [vmem:[%s17749_s3 + $0x4a0] sm:$0xff] %vm8721_vm4, %v8673_v51  ;;  %v8479_v57 = vmax.f32 %v6257_v31, %v8283_v39  ;;  %v7915_v56 = vadd.f32 %v17207_v32, %v7914_v53  ;;  %v6260_v1 = vmax.f32 %v5894_v0, 0.0 }
 0x39b   :  { %v8676_v27 = vmax.f32 %v18010_v4, %v8480_v61  ;;  %v8286_v47 = vmax.f32 %v7920_v5, 0.0  ;;  %v6259_v33 = vmax.f32 %v5889_v42, 0.0  ;;  %v11944_v43 = vpop.f32.mrb[94].mxu0 }
 0x39c   :  { %v8675_v40 = vmax.f32 %v18011_v17, %v8479_v57  ;;  %v8285_v37 = vmax.f32 %v7915_v56, 0.0  ;;  %v12246_v2 = vpop.f32.mrb[94].mxu1  ;;  %v5904_v55 = vadd.f32 %v17207_v32, %v11944_v43  ;;  %v5898_v44 = vpop.f32.mrb[95].mxu0 }
 0x39d   :  { %8873 = vst.msk [vmem:[%s17749_s3 + $0x4b8] sm:$0xff] %vm8721_vm4, %v8676_v27  ;;  %v8482_v60 = vmax.f32 %v6260_v1, %v8286_v47  ;;  %v7930_v49 = vadd.f32 %v17207_v32, %v12246_v2  ;;  %v7924_v15 = vpop.f32.mrb[95].mxu1  ;;  %v5899_v8 = vadd.f32 %v17207_v32, %v5898_v44  ;;  %v18018_v2 = vld [vmem:[#allocation116_spill] sm:$0xff]  ;;  %v18019_v44 = vld [vmem:[#allocation117_spill] sm:$0xff] }
 0x39e   :  { %8872 = vst.msk [vmem:[%s17749_s3 + $0x4b0] sm:$0xff] %vm8721_vm4, %v8675_v40  ;;  %v8481_v21 = vmax.f32 %v6259_v33, %v8285_v37  ;;  %v7925_v3 = vadd.f32 %v17207_v32, %v7924_v15  ;;  %v6262_v48 = vmax.f32 %v5904_v55, 0.0 }
 0x39f   :  { %v8678_v50 = vmax.f32 %v18012_v46, %v8482_v60  ;;  %v8288_v7 = vmax.f32 %v7930_v49, 0.0  ;;  %v6261_v28 = vmax.f32 %v5899_v8, 0.0  ;;  %v11947_v22 = vpop.f32.mrb[96].mxu0 }
 0x3a0   :  { %v8677_v23 = vmax.f32 %v18013_v14, %v8481_v21  ;;  %v8287_v24 = vmax.f32 %v7925_v3, 0.0  ;;  %v12249_v20 = vpop.f32.mrb[96].mxu1  ;;  %v5914_v12 = vadd.f32 %v17207_v32, %v11947_v22  ;;  %v5908_v58 = vpop.f32.mrb[97].mxu0 }
 0x3a1   :  { %8875 = vst.msk [vmem:[%s17749_s3 + $0x4c8] sm:$0xff] %vm8721_vm4, %v8678_v50  ;;  %v8484_v41 = vmax.f32 %v6262_v48, %v8288_v7  ;;  %v7940_v36 = vadd.f32 %v17207_v32, %v12249_v20  ;;  %v7934_v38 = vpop.f32.mrb[97].mxu1  ;;  %v5909_v6 = vadd.f32 %v17207_v32, %v5908_v58  ;;  %v18020_v20 = vld [vmem:[#allocation118_spill] sm:$0xff]  ;;  %v18021_v58 = vld [vmem:[#allocation119_spill] sm:$0xff] }
 0x3a2   :  { %8874 = vst.msk [vmem:[%s17749_s3 + $0x4c0] sm:$0xff] %vm8721_vm4, %v8677_v23  ;;  %v8483_v19 = vmax.f32 %v6261_v28, %v8287_v24  ;;  %v7935_v18 = vadd.f32 %v17207_v32, %v7934_v38  ;;  %v6264_v26 = vmax.f32 %v5914_v12, 0.0 }
 0x3a3   :  { %v8680_v29 = vmax.f32 %v18014_v30, %v8484_v41  ;;  %v8290_v52 = vmax.f32 %v7940_v36, 0.0  ;;  %v6263_v62 = vmax.f32 %v5909_v6, 0.0  ;;  %v11950_v54 = vpop.f32.mrb[98].mxu0 }
 0x3a4   :  { %v8679_v10 = vmax.f32 %v18015_v25, %v8483_v19  ;;  %v8289_v35 = vmax.f32 %v7935_v18, 0.0  ;;  %v12252_v34 = vpop.f32.mrb[98].mxu1  ;;  %v5924_v59 = vadd.f32 %v17207_v32, %v11950_v54  ;;  %v5918_v16 = vpop.f32.mrb[99].mxu0 }
 0x3a5   :  { %8877 = vst.msk [vmem:[%s17749_s3 + $0x4d8] sm:$0xff] %vm8721_vm4, %v8680_v29  ;;  %v8486_v11 = vmax.f32 %v6264_v26, %v8290_v52  ;;  %v7950_v45 = vadd.f32 %v17207_v32, %v12252_v34  ;;  %v7944_v51 = vpop.f32.mrb[99].mxu1  ;;  %v5919_v39 = vadd.f32 %v17207_v32, %v5918_v16  ;;  %v18022_v34 = vld [vmem:[#allocation120_spill] sm:$0xff]  ;;  %v18023_v16 = vld [vmem:[#allocation121_spill] sm:$0xff] }
 0x3a6   :  { %8876 = vst.msk [vmem:[%s17749_s3 + $0x4d0] sm:$0xff] %vm8721_vm4, %v8679_v10  ;;  %v8485_v31 = vmax.f32 %v6263_v62, %v8289_v35  ;;  %v7945_v13 = vadd.f32 %v17207_v32, %v7944_v51  ;;  %v6266_v0 = vmax.f32 %v5924_v59, 0.0 }
 0x3a7   :  { %v8682_v61 = vmax.f32 %v18016_v9, %v8486_v11  ;;  %v8292_v5 = vmax.f32 %v7950_v45, 0.0  ;;  %v6265_v57 = vmax.f32 %v5919_v39, 0.0  ;;  %v11953_v56 = vpop.f32.mrb[100].mxu0 }
 0x3a8   :  { %v8681_v53 = vmax.f32 %v18017_v63, %v8485_v31  ;;  %v8291_v42 = vmax.f32 %v7945_v13, 0.0  ;;  %v12255_v4 = vpop.f32.mrb[100].mxu1  ;;  %v5934_v1 = vadd.f32 %v17207_v32, %v11953_v56  ;;  %v5928_v17 = vpop.f32.mrb[101].mxu0 }
 0x3a9   :  { %8879 = vst.msk [vmem:[%s17749_s3 + $0x4e8] sm:$0xff] %vm8721_vm4, %v8682_v61  ;;  %v8488_v27 = vmax.f32 %v6266_v0, %v8292_v5  ;;  %v7960_v47 = vadd.f32 %v17207_v32, %v12255_v4  ;;  %v7954_v40 = vpop.f32.mrb[101].mxu1  ;;  %v5929_v37 = vadd.f32 %v17207_v32, %v5928_v17  ;;  %v18024_v4 = vld [vmem:[#allocation122_spill] sm:$0xff]  ;;  %v18025_v17 = vld [vmem:[#allocation123_spill] sm:$0xff] }
 0x3aa   :  { %8878 = vst.msk [vmem:[%s17749_s3 + $0x4e0] sm:$0xff] %vm8721_vm4, %v8681_v53  ;;  %v8487_v33 = vmax.f32 %v6265_v57, %v8291_v42  ;;  %v7955_v43 = vadd.f32 %v17207_v32, %v7954_v40  ;;  %v6268_v55 = vmax.f32 %v5934_v1, 0.0 }
 0x3ab   :  { %v8684_v60 = vmax.f32 %v18018_v2, %v8488_v27  ;;  %v8294_v49 = vmax.f32 %v7960_v47, 0.0  ;;  %v6267_v21 = vmax.f32 %v5929_v37, 0.0  ;;  %v11956_v3 = vpop.f32.mrb[102].mxu0 }
 0x3ac   :  { %v8683_v15 = vmax.f32 %v18019_v44, %v8487_v33  ;;  %v8293_v8 = vmax.f32 %v7955_v43, 0.0  ;;  %v12258_v46 = vpop.f32.mrb[102].mxu1  ;;  %v5944_v48 = vadd.f32 %v17207_v32, %v11956_v3  ;;  %v5938_v14 = vpop.f32.mrb[103].mxu0 }
 0x3ad   :  { %8881 = vst.msk [vmem:[%s17749_s3 + $0x4f8] sm:$0xff] %vm8721_vm4, %v8684_v60  ;;  %v8490_v50 = vmax.f32 %v6268_v55, %v8294_v49  ;;  %v7970_v7 = vadd.f32 %v17207_v32, %v12258_v46  ;;  %v7964_v23 = vpop.f32.mrb[103].mxu1  ;;  %v5939_v24 = vadd.f32 %v17207_v32, %v5938_v14  ;;  %v18026_v46 = vld [vmem:[#allocation124_spill] sm:$0xff]  ;;  %v18027_v14 = vld [vmem:[#allocation125_spill] sm:$0xff] }
 0x3ae   :  { %8880 = vst.msk [vmem:[%s17749_s3 + $0x4f0] sm:$0xff] %vm8721_vm4, %v8683_v15  ;;  %v8489_v28 = vmax.f32 %v6267_v21, %v8293_v8  ;;  %v7965_v22 = vadd.f32 %v17207_v32, %v7964_v23  ;;  %v6270_v12 = vmax.f32 %v5944_v48, 0.0 }
 0x3af   :  { %v8686_v41 = vmax.f32 %v18020_v20, %v8490_v50  ;;  %v8296_v36 = vmax.f32 %v7970_v7, 0.0  ;;  %v6269_v19 = vmax.f32 %v5939_v24, 0.0  ;;  %v11959_v18 = vpop.f32.mrb[104].mxu0 }
 0x3b0   :  { %v8685_v38 = vmax.f32 %v18021_v58, %v8489_v28  ;;  %v8295_v6 = vmax.f32 %v7965_v22, 0.0  ;;  %v12261_v30 = vpop.f32.mrb[104].mxu1  ;;  %v5954_v26 = vadd.f32 %v17207_v32, %v11959_v18  ;;  %v5948_v25 = vpop.f32.mrb[105].mxu0 }
 0x3b1   :  { %8883 = vst.msk [vmem:[%s17749_s3 + $0x508] sm:$0xff] %vm8721_vm4, %v8686_v41  ;;  %v8492_v29 = vmax.f32 %v6270_v12, %v8296_v36  ;;  %v7980_v52 = vadd.f32 %v17207_v32, %v12261_v30  ;;  %v7974_v10 = vpop.f32.mrb[105].mxu1  ;;  %v5949_v35 = vadd.f32 %v17207_v32, %v5948_v25  ;;  %v18028_v30 = vld [vmem:[#allocation126_spill] sm:$0xff]  ;;  %v18029_v25 = vld [vmem:[#allocation127_spill] sm:$0xff] }
 0x3b2   :  { %8882 = vst.msk [vmem:[%s17749_s3 + $0x500] sm:$0xff] %vm8721_vm4, %v8685_v38  ;;  %v8491_v62 = vmax.f32 %v6269_v19, %v8295_v6  ;;  %v7975_v54 = vadd.f32 %v17207_v32, %v7974_v10  ;;  %v6272_v59 = vmax.f32 %v5954_v26, 0.0 }
 0x3b3   :  { %v8688_v11 = vmax.f32 %v18022_v34, %v8492_v29  ;;  %v8298_v45 = vmax.f32 %v7980_v52, 0.0  ;;  %v6271_v31 = vmax.f32 %v5949_v35, 0.0  ;;  %v11962_v13 = vpop.f32.mrb[106].mxu0 }
 0x3b4   :  { %v8687_v51 = vmax.f32 %v18023_v16, %v8491_v62  ;;  %v8297_v39 = vmax.f32 %v7975_v54, 0.0  ;;  %v12264_v9 = vpop.f32.mrb[106].mxu1  ;;  %v5964_v0 = vadd.f32 %v17207_v32, %v11962_v13  ;;  %v5958_v63 = vpop.f32.mrb[107].mxu0 }
 0x3b5   :  { %8885 = vst.msk [vmem:[%s17749_s3 + $0x518] sm:$0xff] %vm8721_vm4, %v8688_v11  ;;  %v8494_v61 = vmax.f32 %v6272_v59, %v8298_v45  ;;  %v7990_v5 = vadd.f32 %v17207_v32, %v12264_v9  ;;  %v7984_v53 = vpop.f32.mrb[107].mxu1  ;;  %v5959_v42 = vadd.f32 %v17207_v32, %v5958_v63  ;;  %v18030_v9 = vld [vmem:[#allocation128_spill] sm:$0xff]  ;;  %v18031_v63 = vld [vmem:[#allocation129_spill] sm:$0xff] }
 0x3b6   :  { %8884 = vst.msk [vmem:[%s17749_s3 + $0x510] sm:$0xff] %vm8721_vm4, %v8687_v51  ;;  %v8493_v57 = vmax.f32 %v6271_v31, %v8297_v39  ;;  %v7985_v56 = vadd.f32 %v17207_v32, %v7984_v53  ;;  %v6274_v1 = vmax.f32 %v5964_v0, 0.0 }
 0x3b7   :  { %v8690_v27 = vmax.f32 %v18024_v4, %v8494_v61  ;;  %v8300_v47 = vmax.f32 %v7990_v5, 0.0  ;;  %v6273_v33 = vmax.f32 %v5959_v42, 0.0  ;;  %v11965_v43 = vpop.f32.mrb[108].mxu0 }
 0x3b8   :  { %v8689_v40 = vmax.f32 %v18025_v17, %v8493_v57  ;;  %v8299_v37 = vmax.f32 %v7985_v56, 0.0  ;;  %v12267_v2 = vpop.f32.mrb[108].mxu1  ;;  %v5974_v55 = vadd.f32 %v17207_v32, %v11965_v43  ;;  %v5968_v44 = vpop.f32.mrb[109].mxu0 }
 0x3b9   :  { %8887 = vst.msk [vmem:[%s17749_s3 + $0x528] sm:$0xff] %vm8721_vm4, %v8690_v27  ;;  %v8496_v60 = vmax.f32 %v6274_v1, %v8300_v47  ;;  %v8000_v49 = vadd.f32 %v17207_v32, %v12267_v2  ;;  %v7994_v15 = vpop.f32.mrb[109].mxu1  ;;  %v5969_v8 = vadd.f32 %v17207_v32, %v5968_v44  ;;  %v18032_v2 = vld [vmem:[#allocation130_spill] sm:$0xff]  ;;  %v18033_v44 = vld [vmem:[#allocation131_spill] sm:$0xff] }
 0x3ba   :  { %8886 = vst.msk [vmem:[%s17749_s3 + $0x520] sm:$0xff] %vm8721_vm4, %v8689_v40  ;;  %v8495_v21 = vmax.f32 %v6273_v33, %v8299_v37  ;;  %v7995_v3 = vadd.f32 %v17207_v32, %v7994_v15  ;;  %v6276_v48 = vmax.f32 %v5974_v55, 0.0 }
 0x3bb   :  { %v8692_v50 = vmax.f32 %v18026_v46, %v8496_v60  ;;  %v8302_v7 = vmax.f32 %v8000_v49, 0.0  ;;  %v6275_v28 = vmax.f32 %v5969_v8, 0.0  ;;  %v11968_v22 = vpop.f32.mrb[110].mxu0 }
 0x3bc   :  { %v8691_v23 = vmax.f32 %v18027_v14, %v8495_v21  ;;  %v8301_v24 = vmax.f32 %v7995_v3, 0.0  ;;  %v12270_v20 = vpop.f32.mrb[110].mxu1  ;;  %v5984_v12 = vadd.f32 %v17207_v32, %v11968_v22  ;;  %v5978_v58 = vpop.f32.mrb[111].mxu0 }
 0x3bd   :  { %8889 = vst.msk [vmem:[%s17749_s3 + $0x538] sm:$0xff] %vm8721_vm4, %v8692_v50  ;;  %v8498_v41 = vmax.f32 %v6276_v48, %v8302_v7  ;;  %v8010_v36 = vadd.f32 %v17207_v32, %v12270_v20  ;;  %v8004_v38 = vpop.f32.mrb[111].mxu1  ;;  %v5979_v6 = vadd.f32 %v17207_v32, %v5978_v58  ;;  %v18034_v20 = vld [vmem:[#allocation132_spill] sm:$0xff]  ;;  %v18035_v58 = vld [vmem:[#allocation133_spill] sm:$0xff] }
 0x3be   :  { %8888 = vst.msk [vmem:[%s17749_s3 + $0x530] sm:$0xff] %vm8721_vm4, %v8691_v23  ;;  %v8497_v19 = vmax.f32 %v6275_v28, %v8301_v24  ;;  %v8005_v18 = vadd.f32 %v17207_v32, %v8004_v38  ;;  %v6278_v26 = vmax.f32 %v5984_v12, 0.0 }
 0x3bf   :  { %v8694_v29 = vmax.f32 %v18028_v30, %v8498_v41  ;;  %v8304_v52 = vmax.f32 %v8010_v36, 0.0  ;;  %v6277_v62 = vmax.f32 %v5979_v6, 0.0  ;;  %v11971_v54 = vpop.f32.mrb[112].mxu0 }
 0x3c0   :  { %v8693_v10 = vmax.f32 %v18029_v25, %v8497_v19  ;;  %v8303_v35 = vmax.f32 %v8005_v18, 0.0  ;;  %v12273_v34 = vpop.f32.mrb[112].mxu1  ;;  %v5994_v59 = vadd.f32 %v17207_v32, %v11971_v54  ;;  %v5988_v16 = vpop.f32.mrb[113].mxu0 }
 0x3c1   :  { %8891 = vst.msk [vmem:[%s17749_s3 + $0x548] sm:$0xff] %vm8721_vm4, %v8694_v29  ;;  %v8500_v11 = vmax.f32 %v6278_v26, %v8304_v52  ;;  %v8020_v45 = vadd.f32 %v17207_v32, %v12273_v34  ;;  %v8014_v51 = vpop.f32.mrb[113].mxu1  ;;  %v5989_v39 = vadd.f32 %v17207_v32, %v5988_v16  ;;  %v18036_v34 = vld [vmem:[#allocation134_spill] sm:$0xff]  ;;  %v18037_v16 = vld [vmem:[#allocation135_spill] sm:$0xff] }
 0x3c2   :  { %8890 = vst.msk [vmem:[%s17749_s3 + $0x540] sm:$0xff] %vm8721_vm4, %v8693_v10  ;;  %v8499_v31 = vmax.f32 %v6277_v62, %v8303_v35  ;;  %v8015_v13 = vadd.f32 %v17207_v32, %v8014_v51  ;;  %v6280_v0 = vmax.f32 %v5994_v59, 0.0 }
 0x3c3   :  { %v8696_v61 = vmax.f32 %v18030_v9, %v8500_v11  ;;  %v8306_v5 = vmax.f32 %v8020_v45, 0.0  ;;  %v6279_v57 = vmax.f32 %v5989_v39, 0.0  ;;  %v11974_v56 = vpop.f32.mrb[114].mxu0 }
 0x3c4   :  { %v8695_v53 = vmax.f32 %v18031_v63, %v8499_v31  ;;  %v8305_v42 = vmax.f32 %v8015_v13, 0.0  ;;  %v12276_v4 = vpop.f32.mrb[114].mxu1  ;;  %v6004_v1 = vadd.f32 %v17207_v32, %v11974_v56  ;;  %v5998_v17 = vpop.f32.mrb[115].mxu0 }
 0x3c5   :  { %8893 = vst.msk [vmem:[%s17749_s3 + $0x558] sm:$0xff] %vm8721_vm4, %v8696_v61  ;;  %v8502_v27 = vmax.f32 %v6280_v0, %v8306_v5  ;;  %v8030_v47 = vadd.f32 %v17207_v32, %v12276_v4  ;;  %v8024_v40 = vpop.f32.mrb[115].mxu1  ;;  %v5999_v37 = vadd.f32 %v17207_v32, %v5998_v17  ;;  %v18038_v4 = vld [vmem:[#allocation136_spill] sm:$0xff]  ;;  %v18039_v17 = vld [vmem:[#allocation137_spill] sm:$0xff] }
 0x3c6   :  { %8892 = vst.msk [vmem:[%s17749_s3 + $0x550] sm:$0xff] %vm8721_vm4, %v8695_v53  ;;  %v8501_v33 = vmax.f32 %v6279_v57, %v8305_v42  ;;  %v8025_v43 = vadd.f32 %v17207_v32, %v8024_v40  ;;  %v6282_v55 = vmax.f32 %v6004_v1, 0.0 }
 0x3c7   :  { %v8698_v60 = vmax.f32 %v18032_v2, %v8502_v27  ;;  %v8308_v49 = vmax.f32 %v8030_v47, 0.0  ;;  %v6281_v21 = vmax.f32 %v5999_v37, 0.0  ;;  %v11977_v3 = vpop.f32.mrb[116].mxu0 }
 0x3c8   :  { %v8697_v15 = vmax.f32 %v18033_v44, %v8501_v33  ;;  %v8307_v8 = vmax.f32 %v8025_v43, 0.0  ;;  %v12279_v46 = vpop.f32.mrb[116].mxu1  ;;  %v6014_v48 = vadd.f32 %v17207_v32, %v11977_v3  ;;  %v6008_v14 = vpop.f32.mrb[117].mxu0 }
 0x3c9   :  { %8895 = vst.msk [vmem:[%s17749_s3 + $0x568] sm:$0xff] %vm8721_vm4, %v8698_v60  ;;  %v8504_v50 = vmax.f32 %v6282_v55, %v8308_v49  ;;  %v8040_v7 = vadd.f32 %v17207_v32, %v12279_v46  ;;  %v8034_v23 = vpop.f32.mrb[117].mxu1  ;;  %v6009_v24 = vadd.f32 %v17207_v32, %v6008_v14  ;;  %v18040_v46 = vld [vmem:[#allocation138_spill] sm:$0xff]  ;;  %v18041_v14 = vld [vmem:[#allocation139_spill] sm:$0xff] }
 0x3ca   :  { %8894 = vst.msk [vmem:[%s17749_s3 + $0x560] sm:$0xff] %vm8721_vm4, %v8697_v15  ;;  %v8503_v28 = vmax.f32 %v6281_v21, %v8307_v8  ;;  %v8035_v22 = vadd.f32 %v17207_v32, %v8034_v23  ;;  %v6284_v12 = vmax.f32 %v6014_v48, 0.0 }
 0x3cb   :  { %v8700_v41 = vmax.f32 %v18034_v20, %v8504_v50  ;;  %v8310_v36 = vmax.f32 %v8040_v7, 0.0  ;;  %v6283_v19 = vmax.f32 %v6009_v24, 0.0  ;;  %v11980_v18 = vpop.f32.mrb[118].mxu0 }
 0x3cc   :  { %v8699_v38 = vmax.f32 %v18035_v58, %v8503_v28  ;;  %v8309_v6 = vmax.f32 %v8035_v22, 0.0  ;;  %v12282_v30 = vpop.f32.mrb[118].mxu1  ;;  %v6024_v26 = vadd.f32 %v17207_v32, %v11980_v18  ;;  %v6018_v25 = vpop.f32.mrb[119].mxu0 }
 0x3cd   :  { %8897 = vst.msk [vmem:[%s17749_s3 + $0x578] sm:$0xff] %vm8721_vm4, %v8700_v41  ;;  %v8506_v29 = vmax.f32 %v6284_v12, %v8310_v36  ;;  %v8050_v52 = vadd.f32 %v17207_v32, %v12282_v30  ;;  %v8044_v10 = vpop.f32.mrb[119].mxu1  ;;  %v6019_v35 = vadd.f32 %v17207_v32, %v6018_v25  ;;  %v18042_v30 = vld [vmem:[#allocation140_spill] sm:$0xff]  ;;  %v18043_v25 = vld [vmem:[#allocation141_spill] sm:$0xff] }
 0x3ce   :  { %8896 = vst.msk [vmem:[%s17749_s3 + $0x570] sm:$0xff] %vm8721_vm4, %v8699_v38  ;;  %v8505_v62 = vmax.f32 %v6283_v19, %v8309_v6  ;;  %v8045_v54 = vadd.f32 %v17207_v32, %v8044_v10  ;;  %v6286_v59 = vmax.f32 %v6024_v26, 0.0  ;;  %v17618_v32 = vld [vmem:[%s17748_s2] ss:$0 sm:$0xff] }
 0x3cf   :  { %v8702_v11 = vmax.f32 %v18036_v34, %v8506_v29  ;;  %v8312_v45 = vmax.f32 %v8050_v52, 0.0  ;;  %v6285_v31 = vmax.f32 %v6019_v35, 0.0  ;;  %v11983_v13 = vpop.f32.mrb[120].mxu0 }
 0x3d0   :  { %v8701_v51 = vmax.f32 %v18037_v16, %v8505_v62  ;;  %v8311_v39 = vmax.f32 %v8045_v54, 0.0  ;;  %v12285_v9 = vpop.f32.mrb[120].mxu1  ;;  %v6034_v0 = vadd.f32 %v17618_v32, %v11983_v13  ;;  %v6028_v63 = vpop.f32.mrb[121].mxu0 }
 0x3d1   :  { %8899 = vst.msk [vmem:[%s17749_s3 + $0x588] sm:$0xff] %vm8721_vm4, %v8702_v11  ;;  %v8508_v61 = vmax.f32 %v6286_v59, %v8312_v45  ;;  %v8060_v5 = vadd.f32 %v17618_v32, %v12285_v9  ;;  %v8054_v53 = vpop.f32.mrb[121].mxu1  ;;  %v6029_v42 = vadd.f32 %v17618_v32, %v6028_v63  ;;  %v18044_v9 = vld [vmem:[#allocation142_spill] sm:$0xff]  ;;  %v18045_v63 = vld [vmem:[#allocation143_spill] sm:$0xff] }
 0x3d2   :  { %8898 = vst.msk [vmem:[%s17749_s3 + $0x580] sm:$0xff] %vm8721_vm4, %v8701_v51  ;;  %v8507_v57 = vmax.f32 %v6285_v31, %v8311_v39  ;;  %v8055_v56 = vadd.f32 %v17618_v32, %v8054_v53  ;;  %v6288_v1 = vmax.f32 %v6034_v0, 0.0 }
 0x3d3   :  { %v8704_v27 = vmax.f32 %v18038_v4, %v8508_v61  ;;  %v8314_v47 = vmax.f32 %v8060_v5, 0.0  ;;  %v6287_v33 = vmax.f32 %v6029_v42, 0.0  ;;  %v11986_v43 = vpop.f32.mrb[122].mxu0 }
 0x3d4   :  { %v8703_v40 = vmax.f32 %v18039_v17, %v8507_v57  ;;  %v8313_v37 = vmax.f32 %v8055_v56, 0.0  ;;  %v12288_v2 = vpop.f32.mrb[122].mxu1  ;;  %v6044_v55 = vadd.f32 %v17618_v32, %v11986_v43  ;;  %v6038_v44 = vpop.f32.mrb[123].mxu0 }
 0x3d5   :  { %8901 = vst.msk [vmem:[%s17749_s3 + $0x598] sm:$0xff] %vm8721_vm4, %v8704_v27  ;;  %v8510_v60 = vmax.f32 %v6288_v1, %v8314_v47  ;;  %v8070_v49 = vadd.f32 %v17618_v32, %v12288_v2  ;;  %v8064_v15 = vpop.f32.mrb[123].mxu1  ;;  %v6039_v8 = vadd.f32 %v17618_v32, %v6038_v44  ;;  %v18046_v2 = vld [vmem:[#allocation144_spill] sm:$0xff]  ;;  %v18047_v44 = vld [vmem:[#allocation145_spill] sm:$0xff] }
 0x3d6   :  { %8900 = vst.msk [vmem:[%s17749_s3 + $0x590] sm:$0xff] %vm8721_vm4, %v8703_v40  ;;  %v8509_v21 = vmax.f32 %v6287_v33, %v8313_v37  ;;  %v8065_v3 = vadd.f32 %v17618_v32, %v8064_v15  ;;  %v6290_v48 = vmax.f32 %v6044_v55, 0.0 }
 0x3d7   :  { %v8706_v50 = vmax.f32 %v18040_v46, %v8510_v60  ;;  %v8316_v7 = vmax.f32 %v8070_v49, 0.0  ;;  %v6289_v28 = vmax.f32 %v6039_v8, 0.0  ;;  %v11989_v22 = vpop.f32.mrb[124].mxu0 }
 0x3d8   :  { %v8705_v23 = vmax.f32 %v18041_v14, %v8509_v21  ;;  %v8315_v24 = vmax.f32 %v8065_v3, 0.0  ;;  %v12291_v20 = vpop.f32.mrb[124].mxu1  ;;  %v6054_v12 = vadd.f32 %v17618_v32, %v11989_v22  ;;  %v6048_v58 = vpop.f32.mrb[125].mxu0 }
 0x3d9   :  { %8903 = vst.msk [vmem:[%s17749_s3 + $0x5a8] sm:$0xff] %vm8721_vm4, %v8706_v50  ;;  %v8512_v41 = vmax.f32 %v6290_v48, %v8316_v7  ;;  %v8080_v36 = vadd.f32 %v17618_v32, %v12291_v20  ;;  %v8074_v38 = vpop.f32.mrb[125].mxu1  ;;  %v6049_v6 = vadd.f32 %v17618_v32, %v6048_v58  ;;  %v18048_v20 = vld [vmem:[#allocation146_spill] sm:$0xff]  ;;  %v18049_v58 = vld [vmem:[#allocation147_spill] sm:$0xff] }
 0x3da   :  { %8902 = vst.msk [vmem:[%s17749_s3 + $0x5a0] sm:$0xff] %vm8721_vm4, %v8705_v23  ;;  %v8511_v19 = vmax.f32 %v6289_v28, %v8315_v24  ;;  %v8075_v18 = vadd.f32 %v17618_v32, %v8074_v38  ;;  %v6292_v26 = vmax.f32 %v6054_v12, 0.0 }
 0x3db   :  { %v8708_v29 = vmax.f32 %v18042_v30, %v8512_v41  ;;  %v8318_v52 = vmax.f32 %v8080_v36, 0.0  ;;  %v6291_v62 = vmax.f32 %v6049_v6, 0.0  ;;  %v11992_v54 = vpop.f32.mrb[126].mxu0 }
 0x3dc   :  { %v8707_v10 = vmax.f32 %v18043_v25, %v8511_v19  ;;  %v8317_v35 = vmax.f32 %v8075_v18, 0.0  ;;  %v12294_v34 = vpop.f32.mrb[126].mxu1  ;;  %v6064_v59 = vadd.f32 %v17618_v32, %v11992_v54  ;;  %v6058_v16 = vpop.f32.mrb[127].mxu0 }
 0x3dd   :  { %8905 = vst.msk [vmem:[%s17749_s3 + $0x5b8] sm:$0xff] %vm8721_vm4, %v8708_v29  ;;  %v8514_v11 = vmax.f32 %v6292_v26, %v8318_v52  ;;  %v8090_v45 = vadd.f32 %v17618_v32, %v12294_v34  ;;  %v8084_v51 = vpop.f32.mrb[127].mxu1  ;;  %v6059_v39 = vadd.f32 %v17618_v32, %v6058_v16  ;;  %v18050_v34 = vld [vmem:[#allocation148_spill] sm:$0xff]  ;;  %v18051_v16 = vld [vmem:[#allocation149_spill] sm:$0xff] }
 0x3de   :  { %8904 = vst.msk [vmem:[%s17749_s3 + $0x5b0] sm:$0xff] %vm8721_vm4, %v8707_v10  ;;  %v8513_v31 = vmax.f32 %v6291_v62, %v8317_v35  ;;  %v8085_v13 = vadd.f32 %v17618_v32, %v8084_v51  ;;  %v6294_v0 = vmax.f32 %v6064_v59, 0.0 }
 0x3df   :  { %v8710_v61 = vmax.f32 %v18044_v9, %v8514_v11  ;;  %v8320_v5 = vmax.f32 %v8090_v45, 0.0  ;;  %v6293_v57 = vmax.f32 %v6059_v39, 0.0  ;;  %v11995_v56 = vpop.f32.mrb[128].mxu0 }
 0x3e0   :  { %v8709_v53 = vmax.f32 %v18045_v63, %v8513_v31  ;;  %v8319_v42 = vmax.f32 %v8085_v13, 0.0  ;;  %v12297_v4 = vpop.f32.mrb[128].mxu1  ;;  %v6074_v1 = vadd.f32 %v17618_v32, %v11995_v56  ;;  %v6068_v17 = vpop.f32.mrb[129].mxu0 }
 0x3e1   :  { %8907 = vst.msk [vmem:[%s17749_s3 + $0x5c8] sm:$0xff] %vm8721_vm4, %v8710_v61  ;;  %v8516_v27 = vmax.f32 %v6294_v0, %v8320_v5  ;;  %v8100_v47 = vadd.f32 %v17618_v32, %v12297_v4  ;;  %v8094_v40 = vpop.f32.mrb[129].mxu1  ;;  %v6069_v37 = vadd.f32 %v17618_v32, %v6068_v17  ;;  %v18052_v4 = vld [vmem:[#allocation150_spill] sm:$0xff]  ;;  %v18053_v17 = vld [vmem:[#allocation151_spill] sm:$0xff] }
 0x3e2   :  { %8906 = vst.msk [vmem:[%s17749_s3 + $0x5c0] sm:$0xff] %vm8721_vm4, %v8709_v53  ;;  %v8515_v33 = vmax.f32 %v6293_v57, %v8319_v42  ;;  %v8095_v43 = vadd.f32 %v17618_v32, %v8094_v40  ;;  %v6296_v55 = vmax.f32 %v6074_v1, 0.0 }
 0x3e3   :  { %v8712_v60 = vmax.f32 %v18046_v2, %v8516_v27  ;;  %v8322_v49 = vmax.f32 %v8100_v47, 0.0  ;;  %v6295_v21 = vmax.f32 %v6069_v37, 0.0  ;;  %v11998_v3 = vpop.f32.mrb[130].mxu0  ;;  %v18054_v2 = vld [vmem:[#allocation152_spill] sm:$0xff] }
 0x3e4   :  { %v8711_v15 = vmax.f32 %v18047_v44, %v8515_v33  ;;  %v8321_v8 = vmax.f32 %v8095_v43, 0.0  ;;  %v12300_v46 = vpop.f32.mrb[130].mxu1  ;;  %v6084_v48 = vadd.f32 %v17618_v32, %v11998_v3  ;;  %v6078_v14 = vpop.f32.mrb[131].mxu0 }
 0x3e5   :  { %8909 = vst.msk [vmem:[%s17749_s3 + $0x5d8] sm:$0xff] %vm8721_vm4, %v8712_v60  ;;  %v8518_v50 = vmax.f32 %v6296_v55, %v8322_v49  ;;  %v8110_v7 = vadd.f32 %v17618_v32, %v12300_v46  ;;  %v8104_v23 = vpop.f32.mrb[131].mxu1  ;;  %v6079_v24 = vadd.f32 %v17618_v32, %v6078_v14  ;;  %v18055_v55 = vld [vmem:[#allocation153_spill] sm:$0xff] }
 0x3e6   :  { %8908 = vst.msk [vmem:[%s17749_s3 + $0x5d0] sm:$0xff] %vm8721_vm4, %v8711_v15  ;;  %v8517_v28 = vmax.f32 %v6295_v21, %v8321_v8  ;;  %v8105_v22 = vadd.f32 %v17618_v32, %v8104_v23  ;;  %v6298_v12 = vmax.f32 %v6084_v48, 0.0 }
 0x3e7   :  { %v8714_v41 = vmax.f32 %v18048_v20, %v8518_v50  ;;  %v8324_v36 = vmax.f32 %v8110_v7, 0.0  ;;  %v6297_v19 = vmax.f32 %v6079_v24, 0.0  ;;  %v12001_v18 = vpop.f32.mrb[132].mxu0 }
 0x3e8   :  { %v8713_v38 = vmax.f32 %v18049_v58, %v8517_v28  ;;  %v8323_v6 = vmax.f32 %v8105_v22, 0.0  ;;  %v12303_v30 = vpop.f32.mrb[132].mxu1  ;;  %v6094_v26 = vadd.f32 %v17618_v32, %v12001_v18  ;;  %v6088_v25 = vpop.f32.mrb[133].mxu0 }
 0x3e9   :  { %8911 = vst.msk [vmem:[%s17749_s3 + $0x5e8] sm:$0xff] %vm8721_vm4, %v8714_v41  ;;  %v8520_v29 = vmax.f32 %v6298_v12, %v8324_v36  ;;  %v8120_v52 = vadd.f32 %v17618_v32, %v12303_v30  ;;  %v8114_v10 = vpop.f32.mrb[133].mxu1  ;;  %v6089_v35 = vadd.f32 %v17618_v32, %v6088_v25 }
 0x3ea   :  { %8910 = vst.msk [vmem:[%s17749_s3 + $0x5e0] sm:$0xff] %vm8721_vm4, %v8713_v38  ;;  %v8519_v62 = vmax.f32 %v6297_v19, %v8323_v6  ;;  %v8115_v54 = vadd.f32 %v17618_v32, %v8114_v10  ;;  %v6300_v59 = vmax.f32 %v6094_v26, 0.0 }
 0x3eb   :  { %v8716_v11 = vmax.f32 %v18050_v34, %v8520_v29  ;;  %v8326_v45 = vmax.f32 %v8120_v52, 0.0  ;;  %v6299_v31 = vmax.f32 %v6089_v35, 0.0  ;;  %v12004_v13 = vpop.f32.mrb[134].mxu0 }
 0x3ec   :  { %v8715_v51 = vmax.f32 %v18051_v16, %v8519_v62  ;;  %v8325_v39 = vmax.f32 %v8115_v54, 0.0  ;;  %v12306_v9 = vpop.f32.mrb[134].mxu1  ;;  %v6104_v0 = vadd.f32 %v17618_v32, %v12004_v13  ;;  %v6098_v63 = vpop.f32.mrb[135].mxu0 }
 0x3ed   :  { %8913 = vst.msk [vmem:[%s17749_s3 + $0x5f8] sm:$0xff] %vm8721_vm4, %v8716_v11  ;;  %v8522_v61 = vmax.f32 %v6300_v59, %v8326_v45  ;;  %v8130_v5 = vadd.f32 %v17618_v32, %v12306_v9  ;;  %v8124_v53 = vpop.f32.mrb[135].mxu1  ;;  %v6099_v42 = vadd.f32 %v17618_v32, %v6098_v63 }
 0x3ee   :  { %8912 = vst.msk [vmem:[%s17749_s3 + $0x5f0] sm:$0xff] %vm8721_vm4, %v8715_v51  ;;  %v8521_v57 = vmax.f32 %v6299_v31, %v8325_v39  ;;  %v8125_v56 = vadd.f32 %v17618_v32, %v8124_v53  ;;  %v6302_v1 = vmax.f32 %v6104_v0, 0.0 }
 0x3ef   :  { %v8718_v27 = vmax.f32 %v18052_v4, %v8522_v61  ;;  %v8328_v47 = vmax.f32 %v8130_v5, 0.0  ;;  %v6301_v33 = vmax.f32 %v6099_v42, 0.0 }
 0x3f0   :  { %v8717_v40 = vmax.f32 %v18053_v17, %v8521_v57  ;;  %v8327_v37 = vmax.f32 %v8125_v56, 0.0 }
 0x3f1   :  { %8915 = vst.msk [vmem:[%s17749_s3 + $0x608] sm:$0xff] %vm8721_vm4, %v8718_v27  ;;  %v8524_v43 = vmax.f32 %v6302_v1, %v8328_v47 }
 0x3f2   :  { %8914 = vst.msk [vmem:[%s17749_s3 + $0x600] sm:$0xff] %vm8721_vm4, %v8717_v40  ;;  %v8523_v32 = vmax.f32 %v6301_v33, %v8327_v37 }
 0x3f3   :  { %v8720_v60 = vmax.f32 %v18054_v2, %v8524_v43 }
 0x3f4   :  { %v8719_v49 = vmax.f32 %v18055_v55, %v8523_v32 }
 0x3f5   :  { %8917 = vst.msk [vmem:[%s17749_s3 + $0x618] sm:$0xff] %vm8721_vm4, %v8720_v60 }
 0x3f6   :  { %8916 = vst.msk [vmem:[%s17749_s3 + $0x610] sm:$0xff] %vm8721_vm4, %v8719_v49 }

// kernel: lenet_forward.4
= control target key start
LH: loop header
LB: loop body
LE: loop exit
PB: predicated region body
PF: predicated region fallthrough
CT: control target
= control target key end

     0   :  { %v1878_v0 = vmov 0.0|0.0   ;;  %vm90_vm0 = vcmask 179200   ;;  %v1879_v30 = vmov 0.0   ;;  %vm166_vm1 = vcmask 1045504   ;;  %s3041_s1 = inlined_call_operand.vmem [shape: f32[150,16], index: 1, kind: input, shape index: {}]   ;;  %s3042_s0 = inlined_call_operand.vmem [shape: f32[4,200,150], index: 0, kind: input, shape index: {}]   ;;  %s3043_s2 = inlined_call_operand.vmem [shape: f32[1,16], index: 2, kind: input, shape index: {}]   ;;  %s3044_s3 = inlined_call_operand.vmem [shape: f32[200,16], index: 3, kind: output, shape index: {}]  }
   0x1   :  { %1768 = vmatprep.subr.bf16.mxu0 %v1878_v0  ;;  %1795 = vmatprep.subr.bf16.mxu1 %v1878_v0  ;;  %v14_v1 = vld [vmem:[%s3041_s1] sm:$0xff]  ;;  %v15_v2 = vld [vmem:[%s3041_s1 + $0x8] sm:$0xff]  ;;  %v16_v3 = vld [vmem:[%s3041_s1 + $0x10] sm:$0xff]  ;;  %vm1483_vm2 = vcmask 130048  }
   0x2   :  { %v1911_v4 = vpack.c.bf16 %v15_v2, %v14_v1  ;;  %v17_v5 = vld [vmem:[%s3041_s1 + $0x18] sm:$0xff]  ;;  %v18_v7 = vld [vmem:[%s3041_s1 + $0x20] sm:$0xff]  ;;  %v19_v8 = vld [vmem:[%s3041_s1 + $0x28] sm:$0xff] }
   0x3   :  { %v1918_v6 = vpack.c.bf16 %v17_v5, %v16_v3  ;;  %v35_v9 = vld [vmem:[%s3042_s0 + $0x8] sm:$0xff]  ;;  %v1541_v10 = vld [vmem:[%s3042_s0 + $0x198] sm:$0xff]  ;;  %v1936_v11 = vpack.c.bf16 %v19_v8, %v18_v7  ;;  %v20_v12 = vld [vmem:[%s3041_s1 + $0x30] sm:$0xff] }
   0x4   :  { %1770 = vmatpush1.bf16.msra.mxu0 %v1911_v4  ;;  %1797 = vmatpush1.bf16.msra.mxu1 %v1911_v4  ;;  %v21_v13 = vld [vmem:[%s3041_s1 + $0x38] sm:$0xff]  ;;  %v22_v15 = vld [vmem:[%s3041_s1 + $0x40] sm:$0xff]  ;;  %v23_v16 = vld [vmem:[%s3041_s1 + $0x48] sm:$0xff] }
   0x5   :  { %1771 = vmatprep.subr.bf16.mxu0 %v1878_v0  ;;  %1798 = vmatprep.subr.bf16.mxu1 %v1878_v0  ;;  %v1950_v14 = vpack.c.bf16 %v21_v13, %v20_v12  ;;  %v1962_v17 = vpack.c.bf16 %v23_v16, %v22_v15  ;;  %v24_v18 = vld [vmem:[%s3041_s1 + $0x50] sm:$0xff]  ;;  %v25_v19 = vld [vmem:[%s3041_s1 + $0x58] sm:$0xff]  ;;  %v26_v21 = vld [vmem:[%s3041_s1 + $0x60] sm:$0xff] }
   0x6   :  { %1515 = vmatprep.mubr.msk.f32.mxu0 %vm90_vm0, %v35_v9  ;;  %1591 = vmatprep.mubr.msk.f32.mxu1 %vm90_vm0, %v1541_v10  ;;  %v1974_v20 = vpack.c.bf16 %v25_v19, %v24_v18  ;;  %v27_v22 = vld [vmem:[%s3041_s1 + $0x68] sm:$0xff]  ;;  %v28_v24 = vld [vmem:[%s3041_s1 + $0x70] sm:$0xff]  ;;  %v29_v25 = vld [vmem:[%s3041_s1 + $0x78] sm:$0xff] }
   0x7   :  { %v1986_v23 = vpack.c.bf16 %v27_v22, %v26_v21  ;;  %v1998_v26 = vpack.c.bf16 %v29_v25, %v28_v24  ;;  %v30_v27 = vld [vmem:[%s3041_s1 + $0x80] sm:$0xff]  ;;  %v31_v28 = vld [vmem:[%s3041_s1 + $0x88] sm:$0xff]  ;;  %v2021_v31 = vld [vmem:[%s3041_s1 + $0x90] sm:$0x3f] }
   0x8   :  { %1773 = vmatpush1.bf16.msra.mxu0 %v1918_v6  ;;  %1800 = vmatpush1.bf16.msra.mxu1 %v1918_v6  ;;  %v2010_v29 = vpack.c.bf16 %v31_v28, %v30_v27  ;;  %v34_v32 = vld [vmem:[%s3042_s0] sm:$0xff]  ;;  %v1540_v33 = vld [vmem:[%s3042_s0 + $0x190] sm:$0xff]  ;;  %v37_v34 = vld [vmem:[%s3042_s0 + $0x18] sm:$0xff] }
   0x9   :  { %1774 = vmatprep.subr.bf16.mxu0 %v1878_v0  ;;  %1801 = vmatprep.subr.bf16.mxu1 %v1878_v0  ;;  %v1543_v35 = vld [vmem:[%s3042_s0 + $0x1a8] sm:$0xff]  ;;  %v36_v36 = vld [vmem:[%s3042_s0 + $0x10] sm:$0xff]  ;;  %v1542_v37 = vld [vmem:[%s3042_s0 + $0x1a0] sm:$0xff] }
   0xa   :  { %v39_v38 = vld [vmem:[%s3042_s0 + $0x28] sm:$0xff]  ;;  %v1545_v39 = vld [vmem:[%s3042_s0 + $0x1b8] sm:$0xff]  ;;  %v38_v40 = vld [vmem:[%s3042_s0 + $0x20] sm:$0xff] }
   0xb   :  { %v1544_v41 = vld [vmem:[%s3042_s0 + $0x1b0] sm:$0xff]  ;;  %v41_v42 = vld [vmem:[%s3042_s0 + $0x38] sm:$0xff]  ;;  %v1547_v43 = vld [vmem:[%s3042_s0 + $0x1c8] sm:$0xff] }
   0xc   :  { %1776 = vmatpush1.bf16.msra.mxu0 %v1936_v11  ;;  %1803 = vmatpush1.bf16.msra.mxu1 %v1936_v11  ;;  %v40_v44 = vld [vmem:[%s3042_s0 + $0x30] sm:$0xff]  ;;  %v1546_v45 = vld [vmem:[%s3042_s0 + $0x1c0] sm:$0xff]  ;;  %v43_v46 = vld [vmem:[%s3042_s0 + $0x48] sm:$0xff] }
   0xd   :  { %1777 = vmatprep.subr.bf16.mxu0 %v1878_v0  ;;  %1804 = vmatprep.subr.bf16.mxu1 %v1878_v0  ;;  %v1549_v47 = vld [vmem:[%s3042_s0 + $0x1d8] sm:$0xff]  ;;  %v42_v48 = vld [vmem:[%s3042_s0 + $0x40] sm:$0xff]  ;;  %v1548_v49 = vld [vmem:[%s3042_s0 + $0x1d0] sm:$0xff] }
   0xe   :  { %v45_v50 = vld [vmem:[%s3042_s0 + $0x58] sm:$0xff]  ;;  %v1551_v51 = vld [vmem:[%s3042_s0 + $0x1e8] sm:$0xff]  ;;  %v44_v52 = vld [vmem:[%s3042_s0 + $0x50] sm:$0xff] }
   0xf   :  { %v1550_v53 = vld [vmem:[%s3042_s0 + $0x1e0] sm:$0xff]  ;;  %v47_v54 = vld [vmem:[%s3042_s0 + $0x68] sm:$0xff]  ;;  %v1553_v55 = vld [vmem:[%s3042_s0 + $0x1f8] sm:$0xff] }
  0x10   :  { %1779 = vmatpush1.bf16.msra.mxu0 %v1950_v14  ;;  %1806 = vmatpush1.bf16.msra.mxu1 %v1950_v14  ;;  %v46_v56 = vld [vmem:[%s3042_s0 + $0x60] sm:$0xff]  ;;  %v1552_v57 = vld [vmem:[%s3042_s0 + $0x1f0] sm:$0xff]  ;;  %v49_v58 = vld [vmem:[%s3042_s0 + $0x78] sm:$0xff] }
  0x11   :  { %1780 = vmatprep.subr.bf16.mxu0 %v1878_v0  ;;  %1807 = vmatprep.subr.bf16.mxu1 %v1878_v0  ;;  %v1555_v59 = vld [vmem:[%s3042_s0 + $0x208] sm:$0xff]  ;;  %v48_v60 = vld [vmem:[%s3042_s0 + $0x70] sm:$0xff]  ;;  %v1554_v61 = vld [vmem:[%s3042_s0 + $0x200] sm:$0xff] }
  0x12   :  { %v51_v62 = vld [vmem:[%s3042_s0 + $0x88] sm:$0xff]  ;;  %v1557_v63 = vld [vmem:[%s3042_s0 + $0x218] sm:$0xff]  ;;  %v50_v1 = vld [vmem:[%s3042_s0 + $0x80] sm:$0xff] }
  0x13   :  { %v1556_v2 = vld [vmem:[%s3042_s0 + $0x210] sm:$0xff]  ;;  %v53_v3 = vld [vmem:[%s3042_s0 + $0x98] sm:$0xff]  ;;  %v55_v7 = vld [vmem:[%s3042_s0 + $0xa8] sm:$0xff] }
  0x14   :  { %1782 = vmatpush1.bf16.msra.mxu0 %v1962_v17  ;;  %1809 = vmatpush1.bf16.msra.mxu1 %v1962_v17  ;;  %v52_v5 = vld [vmem:[%s3042_s0 + $0x90] sm:$0xff]  ;;  %v1561_v8 = vld [vmem:[%s3042_s0 + $0x238] sm:$0xff]  ;;  %v54_v9 = vld [vmem:[%s3042_s0 + $0xa0] sm:$0xff] }
  0x15   :  { %1783 = vmatprep.subr.bf16.mxu0 %v1878_v0  ;;  %1810 = vmatprep.subr.bf16.mxu1 %v1878_v0  ;;  %v1560_v10 = vld [vmem:[%s3042_s0 + $0x230] sm:$0xff]  ;;  %v1562_v13 = vld [vmem:[%s3042_s0 + $0x240] sm:$0xff]  ;;  %v1565_v15 = vld [vmem:[%s3042_s0 + $0x258] sm:$0xff] }
  0x16   :  { %v56_v12 = vld [vmem:[%s3042_s0 + $0xb0] sm:$0xff]  ;;  %v58_v16 = vld [vmem:[%s3042_s0 + $0xc0] sm:$0xff]  ;;  %v61_v18 = vld [vmem:[%s3042_s0 + $0xd8] sm:$0xff] }
  0x17   :  { %v1567_v19 = vld [vmem:[%s3042_s0 + $0x268] sm:$0xff]  ;;  %v1566_v21 = vld [vmem:[%s3042_s0 + $0x260] sm:$0xff]  ;;  %v1568_v25 = vld [vmem:[%s3042_s0 + $0x270] sm:$0xff] }
  0x18   :  { %1785 = vmatpush1.bf16.msra.mxu0 %v1974_v20  ;;  %1812 = vmatpush1.bf16.msra.mxu1 %v1974_v20  ;;  %v63_v22 = vld [vmem:[%s3042_s0 + $0xe8] sm:$0xff]  ;;  %v62_v24 = vld [vmem:[%s3042_s0 + $0xe0] sm:$0xff]  ;;  %v64_v28 = vld [vmem:[%s3042_s0 + $0xf0] sm:$0xff] }
  0x19   :  { %1786 = vmatprep.subr.bf16.mxu0 %v1878_v0  ;;  %1813 = vmatprep.subr.bf16.mxu1 %v1878_v0  ;;  %v1571_v27 = vld [vmem:[%s3042_s0 + $0x288] sm:$0xff] }
  0x1c   :  { %1788 = vmatpush1.bf16.msra.mxu0 %v1986_v23  ;;  %1815 = vmatpush1.bf16.msra.mxu1 %v1986_v23 }
  0x1d   :  { %1789 = vmatprep.subr.bf16.mxu0 %v1878_v0  ;;  %1816 = vmatprep.subr.bf16.mxu1 %v1878_v0 }
  0x20   :  { %1791 = vmatpush1.bf16.msra.mxu0 %v1998_v26  ;;  %1818 = vmatpush1.bf16.msra.mxu1 %v1998_v26 }
  0x21   :  { %1792 = vmatprep.subr.bf16.mxu0 %v1878_v0  ;;  %1819 = vmatprep.subr.bf16.mxu1 %v1878_v0 }
  0x24   :  { %1794 = vmatpush1.bf16.msra.mxu0 %v2010_v29  ;;  %1821 = vmatpush1.bf16.msra.mxu1 %v2010_v29 }
  0x25   :  { %206 = vmatprep.subr.mxu0 %v1879_v30  ;;  %547 = vmatprep.subr.mxu1 %v1879_v30 }
  0x28   :  { %1514 = vmatpush1.msk.msra.mxu0 %vm166_vm1, %v2021_v31  ;;  %1590 = vmatpush1.msk.msra.mxu1 %vm166_vm1, %v2021_v31 }
  0x29   :  { %235 = vmatmul.mubr.f32.vlgmr.msra.gmra.mrb[0].mxu0 %v34_v32  ;;  %576 = vmatmul.mubr.f32.vlgmr.msra.gmra.mrb[0].mxu1 %v1540_v33  ;;  %v66_v32 = vld [vmem:[%s3042_s0 + $0x100] sm:$0xff]  ;;  %v1572_v33 = vld [vmem:[%s3042_s0 + $0x290] sm:$0xff] }
  0x2a   :  { %1822 = vmatprep.subr.bf16.mxu0 %v1878_v0  ;;  %1849 = vmatprep.subr.bf16.mxu1 %v1878_v0 }
  0x2b   :  { %1824 = vmatpush1.bf16.msra.mxu0 %v1911_v4  ;;  %1851 = vmatpush1.bf16.msra.mxu1 %v1911_v4  ;;  %v1559_v4 = vld [vmem:[%s3042_s0 + $0x228] sm:$0xff] }
  0x2c   :  { %1516 = vmatprep.mubr.msk.f32.mxu0 %vm90_vm0, %v37_v34  ;;  %1592 = vmatprep.mubr.msk.f32.mxu1 %vm90_vm0, %v1543_v35  ;;  %v69_v34 = vld [vmem:[%s3042_s0 + $0x118] sm:$0xff]  ;;  %v1575_v35 = vld [vmem:[%s3042_s0 + $0x2a8] sm:$0xff] }
  0x2d   :  { %240 = vmatmul.mubr.f32.gmra.mrb[2].mxu0 %v36_v36  ;;  %581 = vmatmul.mubr.f32.gmra.mrb[2].mxu1 %v1542_v37  ;;  %v68_v36 = vld [vmem:[%s3042_s0 + $0x110] sm:$0xff]  ;;  %v1574_v37 = vld [vmem:[%s3042_s0 + $0x2a0] sm:$0xff] }
  0x2e   :  { %1517 = vmatprep.mubr.msk.f32.mxu0 %vm90_vm0, %v39_v38  ;;  %1593 = vmatprep.mubr.msk.f32.mxu1 %vm90_vm0, %v1545_v39  ;;  %v71_v38 = vld [vmem:[%s3042_s0 + $0x128] sm:$0xff]  ;;  %v1577_v39 = vld [vmem:[%s3042_s0 + $0x2b8] sm:$0xff] }
  0x2f   :  { %1825 = vmatprep.subr.bf16.mxu0 %v1878_v0  ;;  %1852 = vmatprep.subr.bf16.mxu1 %v1878_v0 }
  0x30   :  { %1827 = vmatpush1.bf16.msra.mxu0 %v1918_v6  ;;  %1854 = vmatpush1.bf16.msra.mxu1 %v1918_v6  ;;  %v1558_v6 = vld [vmem:[%s3042_s0 + $0x220] sm:$0xff] }
  0x31   :  { %245 = vmatmul.mubr.f32.gmra.mrb[4].mxu0 %v38_v40  ;;  %586 = vmatmul.mubr.f32.gmra.mrb[4].mxu1 %v1544_v41  ;;  %v70_v40 = vld [vmem:[%s3042_s0 + $0x120] sm:$0xff]  ;;  %v1576_v41 = vld [vmem:[%s3042_s0 + $0x2b0] sm:$0xff] }
  0x32   :  { %1518 = vmatprep.mubr.msk.f32.mxu0 %vm90_vm0, %v41_v42  ;;  %1594 = vmatprep.mubr.msk.f32.mxu1 %vm90_vm0, %v1547_v43  ;;  %v73_v42 = vld [vmem:[%s3042_s0 + $0x138] sm:$0xff]  ;;  %v1579_v43 = vld [vmem:[%s3042_s0 + $0x2c8] sm:$0xff] }
  0x33   :  { %1828 = vmatprep.subr.bf16.mxu0 %v1878_v0  ;;  %1855 = vmatprep.subr.bf16.mxu1 %v1878_v0 }
  0x34   :  { %1830 = vmatpush1.bf16.msra.mxu0 %v1936_v11  ;;  %1857 = vmatpush1.bf16.msra.mxu1 %v1936_v11  ;;  %v1563_v11 = vld [vmem:[%s3042_s0 + $0x248] sm:$0xff] }
  0x35   :  { %250 = vmatmul.mubr.f32.gmra.mrb[6].mxu0 %v40_v44  ;;  %591 = vmatmul.mubr.f32.gmra.mrb[6].mxu1 %v1546_v45  ;;  %v72_v44 = vld [vmem:[%s3042_s0 + $0x130] sm:$0xff]  ;;  %v1578_v45 = vld [vmem:[%s3042_s0 + $0x2c0] sm:$0xff] }
  0x36   :  { %1519 = vmatprep.mubr.msk.f32.mxu0 %vm90_vm0, %v43_v46  ;;  %1595 = vmatprep.mubr.msk.f32.mxu1 %vm90_vm0, %v1549_v47  ;;  %v75_v46 = vld [vmem:[%s3042_s0 + $0x148] sm:$0xff]  ;;  %v1581_v47 = vld [vmem:[%s3042_s0 + $0x2d8] sm:$0xff] }
  0x37   :  { %1831 = vmatprep.subr.bf16.mxu0 %v1878_v0  ;;  %1858 = vmatprep.subr.bf16.mxu1 %v1878_v0 }
  0x38   :  { %1833 = vmatpush1.bf16.msra.mxu0 %v1950_v14  ;;  %1860 = vmatpush1.bf16.msra.mxu1 %v1950_v14  ;;  %v59_v14 = vld [vmem:[%s3042_s0 + $0xc8] sm:$0xff] }
  0x39   :  { %255 = vmatmul.mubr.f32.gmra.mrb[8].mxu0 %v42_v48  ;;  %596 = vmatmul.mubr.f32.gmra.mrb[8].mxu1 %v1548_v49  ;;  %v74_v48 = vld [vmem:[%s3042_s0 + $0x140] sm:$0xff]  ;;  %v1580_v49 = vld [vmem:[%s3042_s0 + $0x2d0] sm:$0xff] }
  0x3a   :  { %1520 = vmatprep.mubr.msk.f32.mxu0 %vm90_vm0, %v45_v50  ;;  %1596 = vmatprep.mubr.msk.f32.mxu1 %vm90_vm0, %v1551_v51  ;;  %v77_v50 = vld [vmem:[%s3042_s0 + $0x158] sm:$0xff]  ;;  %v1583_v51 = vld [vmem:[%s3042_s0 + $0x2e8] sm:$0xff] }
  0x3b   :  { %1834 = vmatprep.subr.bf16.mxu0 %v1878_v0  ;;  %1861 = vmatprep.subr.bf16.mxu1 %v1878_v0 }
  0x3c   :  { %1836 = vmatpush1.bf16.msra.mxu0 %v1962_v17  ;;  %1863 = vmatpush1.bf16.msra.mxu1 %v1962_v17  ;;  %v1564_v17 = vld [vmem:[%s3042_s0 + $0x250] sm:$0xff] }
  0x3d   :  { %260 = vmatmul.mubr.f32.gmra.mrb[10].mxu0 %v44_v52  ;;  %601 = vmatmul.mubr.f32.gmra.mrb[10].mxu1 %v1550_v53  ;;  %v76_v52 = vld [vmem:[%s3042_s0 + $0x150] sm:$0xff]  ;;  %v1582_v53 = vld [vmem:[%s3042_s0 + $0x2e0] sm:$0xff] }
  0x3e   :  { %1521 = vmatprep.mubr.msk.f32.mxu0 %vm90_vm0, %v47_v54  ;;  %1597 = vmatprep.mubr.msk.f32.mxu1 %vm90_vm0, %v1553_v55  ;;  %v79_v54 = vld [vmem:[%s3042_s0 + $0x168] sm:$0xff]  ;;  %v1585_v55 = vld [vmem:[%s3042_s0 + $0x2f8] sm:$0xff] }
  0x3f   :  { %1837 = vmatprep.subr.bf16.mxu0 %v1878_v0  ;;  %1864 = vmatprep.subr.bf16.mxu1 %v1878_v0 }
  0x40   :  { %1839 = vmatpush1.bf16.msra.mxu0 %v1974_v20  ;;  %1866 = vmatpush1.bf16.msra.mxu1 %v1974_v20  ;;  %v60_v20 = vld [vmem:[%s3042_s0 + $0xd0] sm:$0xff] }
  0x41   :  { %265 = vmatmul.mubr.f32.gmra.mrb[12].mxu0 %v46_v56  ;;  %606 = vmatmul.mubr.f32.gmra.mrb[12].mxu1 %v1552_v57  ;;  %v78_v56 = vld [vmem:[%s3042_s0 + $0x160] sm:$0xff]  ;;  %v1584_v57 = vld [vmem:[%s3042_s0 + $0x2f0] sm:$0xff] }
  0x42   :  { %1522 = vmatprep.mubr.msk.f32.mxu0 %vm90_vm0, %v49_v58  ;;  %1598 = vmatprep.mubr.msk.f32.mxu1 %vm90_vm0, %v1555_v59  ;;  %v81_v58 = vld [vmem:[%s3042_s0 + $0x178] sm:$0xff]  ;;  %v1587_v59 = vld [vmem:[%s3042_s0 + $0x308] sm:$0xff] }
  0x43   :  { %1840 = vmatprep.subr.bf16.mxu0 %v1878_v0  ;;  %1867 = vmatprep.subr.bf16.mxu1 %v1878_v0 }
  0x44   :  { %1842 = vmatpush1.bf16.msra.mxu0 %v1986_v23  ;;  %1869 = vmatpush1.bf16.msra.mxu1 %v1986_v23  ;;  %v1569_v23 = vld [vmem:[%s3042_s0 + $0x278] sm:$0xff] }
  0x45   :  { %270 = vmatmul.mubr.f32.gmra.mrb[14].mxu0 %v48_v60  ;;  %611 = vmatmul.mubr.f32.gmra.mrb[14].mxu1 %v1554_v61  ;;  %v80_v60 = vld [vmem:[%s3042_s0 + $0x170] sm:$0xff]  ;;  %v1586_v61 = vld [vmem:[%s3042_s0 + $0x300] sm:$0xff] }
  0x46   :  { %1523 = vmatprep.mubr.msk.f32.mxu0 %vm90_vm0, %v51_v62  ;;  %1599 = vmatprep.mubr.msk.f32.mxu1 %vm90_vm0, %v1557_v63  ;;  %v83_v62 = vld [vmem:[%s3042_s0 + $0x188] sm:$0xff]  ;;  %v1589_v63 = vld [vmem:[%s3042_s0 + $0x318] sm:$0xff] }
  0x47   :  { %1843 = vmatprep.subr.bf16.mxu0 %v1878_v0  ;;  %1870 = vmatprep.subr.bf16.mxu1 %v1878_v0 }
  0x48   :  { %1845 = vmatpush1.bf16.msra.mxu0 %v1998_v26  ;;  %1872 = vmatpush1.bf16.msra.mxu1 %v1998_v26  ;;  %v65_v26 = vld [vmem:[%s3042_s0 + $0xf8] sm:$0xff] }
  0x49   :  { %275 = vmatmul.mubr.f32.gmra.mrb[16].mxu0 %v50_v1  ;;  %616 = vmatmul.mubr.f32.gmra.mrb[16].mxu1 %v1556_v2  ;;  %v82_v1 = vld [vmem:[%s3042_s0 + $0x180] sm:$0xff]  ;;  %v1588_v2 = vld [vmem:[%s3042_s0 + $0x310] sm:$0xff] }
  0x4a   :  { %1524 = vmatprep.mubr.msk.f32.mxu0 %vm90_vm0, %v53_v3  ;;  %1600 = vmatprep.mubr.msk.f32.mxu1 %vm90_vm0, %v1559_v4  ;;  %v1617_v3 = vld [vmem:[%s3042_s0 + $0x328] sm:$0xff]  ;;  %v1693_v4 = vld [vmem:[%s3042_s0 + $0x4b8] sm:$0xff] }
  0x4b   :  { %1846 = vmatprep.subr.bf16.mxu0 %v1878_v0  ;;  %1873 = vmatprep.subr.bf16.mxu1 %v1878_v0  ;;  %v57_v0 = vld [vmem:[%s3042_s0 + $0xb8] sm:$0xff] }
  0x4c   :  { %1848 = vmatpush1.bf16.msra.mxu0 %v2010_v29  ;;  %1875 = vmatpush1.bf16.msra.mxu1 %v2010_v29  ;;  %v1570_v29 = vld [vmem:[%s3042_s0 + $0x280] sm:$0xff] }
  0x4d   :  { %280 = vmatmul.mubr.f32.gmra.mrb[18].mxu0 %v52_v5  ;;  %621 = vmatmul.mubr.f32.gmra.mrb[18].mxu1 %v1558_v6  ;;  %v1616_v5 = vld [vmem:[%s3042_s0 + $0x320] sm:$0xff]  ;;  %v1692_v6 = vld [vmem:[%s3042_s0 + $0x4b0] sm:$0xff] }
  0x4e   :  { %1525 = vmatprep.mubr.msk.f32.mxu0 %vm90_vm0, %v55_v7  ;;  %1601 = vmatprep.mubr.msk.f32.mxu1 %vm90_vm0, %v1561_v8  ;;  %v1619_v7 = vld [vmem:[%s3042_s0 + $0x338] sm:$0xff]  ;;  %v1695_v8 = vld [vmem:[%s3042_s0 + $0x4c8] sm:$0xff] }
  0x4f   :  { %913 = vmatprep.subr.mxu0 %v1879_v30  ;;  %1254 = vmatprep.subr.mxu1 %v1879_v30  ;;  %v67_v30 = vld [vmem:[%s3042_s0 + $0x108] sm:$0xff] }
  0x50   :  { %1666 = vmatpush1.msk.msra.mxu0 %vm166_vm1, %v2021_v31  ;;  %1742 = vmatpush1.msk.msra.mxu1 %vm166_vm1, %v2021_v31  ;;  %v1573_v31 = vld [vmem:[%s3042_s0 + $0x298] sm:$0xff] }
  0x51   :  { %285 = vmatmul.mubr.f32.gmra.mrb[20].mxu0 %v54_v9  ;;  %626 = vmatmul.mubr.f32.gmra.mrb[20].mxu1 %v1560_v10  ;;  %v1618_v9 = vld [vmem:[%s3042_s0 + $0x330] sm:$0xff]  ;;  %v1694_v10 = vld [vmem:[%s3042_s0 + $0x4c0] sm:$0xff] }
  0x52   :  { %1526 = vmatprep.mubr.msk.f32.mxu0 %vm90_vm0, %v57_v0  ;;  %1602 = vmatprep.mubr.msk.f32.mxu1 %vm90_vm0, %v1563_v11  ;;  %v1621_v0 = vld [vmem:[%s3042_s0 + $0x348] sm:$0xff]  ;;  %v1697_v11 = vld [vmem:[%s3042_s0 + $0x4d8] sm:$0xff] }
  0x55   :  { %290 = vmatmul.mubr.f32.gmra.mrb[22].mxu0 %v56_v12  ;;  %631 = vmatmul.mubr.f32.gmra.mrb[22].mxu1 %v1562_v13  ;;  %v1620_v12 = vld [vmem:[%s3042_s0 + $0x340] sm:$0xff]  ;;  %v1696_v13 = vld [vmem:[%s3042_s0 + $0x4d0] sm:$0xff] }
  0x56   :  { %1527 = vmatprep.mubr.msk.f32.mxu0 %vm90_vm0, %v59_v14  ;;  %1603 = vmatprep.mubr.msk.f32.mxu1 %vm90_vm0, %v1565_v15  ;;  %v1623_v14 = vld [vmem:[%s3042_s0 + $0x358] sm:$0xff]  ;;  %v1699_v15 = vld [vmem:[%s3042_s0 + $0x4e8] sm:$0xff] }
  0x59   :  { %295 = vmatmul.mubr.f32.gmra.mrb[24].mxu0 %v58_v16  ;;  %636 = vmatmul.mubr.f32.gmra.mrb[24].mxu1 %v1564_v17  ;;  %v1622_v16 = vld [vmem:[%s3042_s0 + $0x350] sm:$0xff]  ;;  %v1698_v17 = vld [vmem:[%s3042_s0 + $0x4e0] sm:$0xff] }
  0x5a   :  { %1528 = vmatprep.mubr.msk.f32.mxu0 %vm90_vm0, %v61_v18  ;;  %1604 = vmatprep.mubr.msk.f32.mxu1 %vm90_vm0, %v1567_v19  ;;  %v1625_v18 = vld [vmem:[%s3042_s0 + $0x368] sm:$0xff]  ;;  %v1701_v19 = vld [vmem:[%s3042_s0 + $0x4f8] sm:$0xff] }
  0x5d   :  { %300 = vmatmul.mubr.f32.gmra.mrb[26].mxu0 %v60_v20  ;;  %641 = vmatmul.mubr.f32.gmra.mrb[26].mxu1 %v1566_v21  ;;  %v1624_v20 = vld [vmem:[%s3042_s0 + $0x360] sm:$0xff]  ;;  %v1700_v21 = vld [vmem:[%s3042_s0 + $0x4f0] sm:$0xff] }
  0x5e   :  { %1529 = vmatprep.mubr.msk.f32.mxu0 %vm90_vm0, %v63_v22  ;;  %1605 = vmatprep.mubr.msk.f32.mxu1 %vm90_vm0, %v1569_v23  ;;  %v1627_v22 = vld [vmem:[%s3042_s0 + $0x378] sm:$0xff]  ;;  %v1703_v23 = vld [vmem:[%s3042_s0 + $0x508] sm:$0xff] }
  0x61   :  { %305 = vmatmul.mubr.f32.gmra.mrb[28].mxu0 %v62_v24  ;;  %646 = vmatmul.mubr.f32.gmra.mrb[28].mxu1 %v1568_v25  ;;  %v1626_v24 = vld [vmem:[%s3042_s0 + $0x370] sm:$0xff]  ;;  %v1702_v25 = vld [vmem:[%s3042_s0 + $0x500] sm:$0xff] }
  0x62   :  { %1530 = vmatprep.mubr.msk.f32.mxu0 %vm90_vm0, %v65_v26  ;;  %1606 = vmatprep.mubr.msk.f32.mxu1 %vm90_vm0, %v1571_v27  ;;  %v1629_v26 = vld [vmem:[%s3042_s0 + $0x388] sm:$0xff]  ;;  %v1705_v27 = vld [vmem:[%s3042_s0 + $0x518] sm:$0xff] }
  0x65   :  { %310 = vmatmul.mubr.f32.gmra.mrb[30].mxu0 %v64_v28  ;;  %651 = vmatmul.mubr.f32.gmra.mrb[30].mxu1 %v1570_v29  ;;  %v1628_v28 = vld [vmem:[%s3042_s0 + $0x380] sm:$0xff]  ;;  %v1704_v29 = vld [vmem:[%s3042_s0 + $0x510] sm:$0xff] }
  0x66   :  { %1531 = vmatprep.mubr.msk.f32.mxu0 %vm90_vm0, %v67_v30  ;;  %1607 = vmatprep.mubr.msk.f32.mxu1 %vm90_vm0, %v1573_v31  ;;  %v1631_v30 = vld [vmem:[%s3042_s0 + $0x398] sm:$0xff]  ;;  %v1707_v31 = vld [vmem:[%s3042_s0 + $0x528] sm:$0xff] }
  0x69   :  { %315 = vmatmul.mubr.f32.gmra.mrb[32].mxu0 %v66_v32  ;;  %656 = vmatmul.mubr.f32.gmra.mrb[32].mxu1 %v1572_v33  ;;  %v1630_v32 = vld [vmem:[%s3042_s0 + $0x390] sm:$0xff]  ;;  %v1706_v33 = vld [vmem:[%s3042_s0 + $0x520] sm:$0xff] }
  0x6a   :  { %1532 = vmatprep.mubr.msk.f32.mxu0 %vm90_vm0, %v69_v34  ;;  %1608 = vmatprep.mubr.msk.f32.mxu1 %vm90_vm0, %v1575_v35  ;;  %v1633_v34 = vld [vmem:[%s3042_s0 + $0x3a8] sm:$0xff]  ;;  %v1709_v35 = vld [vmem:[%s3042_s0 + $0x538] sm:$0xff] }
  0x6d   :  { %320 = vmatmul.mubr.f32.gmra.mrb[34].mxu0 %v68_v36  ;;  %661 = vmatmul.mubr.f32.gmra.mrb[34].mxu1 %v1574_v37  ;;  %v1632_v36 = vld [vmem:[%s3042_s0 + $0x3a0] sm:$0xff]  ;;  %v1708_v37 = vld [vmem:[%s3042_s0 + $0x530] sm:$0xff] }
  0x6e   :  { %1533 = vmatprep.mubr.msk.f32.mxu0 %vm90_vm0, %v71_v38  ;;  %1609 = vmatprep.mubr.msk.f32.mxu1 %vm90_vm0, %v1577_v39  ;;  %v1635_v38 = vld [vmem:[%s3042_s0 + $0x3b8] sm:$0xff]  ;;  %v1711_v39 = vld [vmem:[%s3042_s0 + $0x548] sm:$0xff] }
  0x71   :  { %325 = vmatmul.mubr.f32.gmra.mrb[36].mxu0 %v70_v40  ;;  %666 = vmatmul.mubr.f32.gmra.mrb[36].mxu1 %v1576_v41  ;;  %v1634_v40 = vld [vmem:[%s3042_s0 + $0x3b0] sm:$0xff]  ;;  %v1710_v41 = vld [vmem:[%s3042_s0 + $0x540] sm:$0xff] }
  0x72   :  { %1534 = vmatprep.mubr.msk.f32.mxu0 %vm90_vm0, %v73_v42  ;;  %1610 = vmatprep.mubr.msk.f32.mxu1 %vm90_vm0, %v1579_v43  ;;  %v1637_v42 = vld [vmem:[%s3042_s0 + $0x3c8] sm:$0xff]  ;;  %v1713_v43 = vld [vmem:[%s3042_s0 + $0x558] sm:$0xff] }
  0x75   :  { %330 = vmatmul.mubr.f32.gmra.mrb[38].mxu0 %v72_v44  ;;  %671 = vmatmul.mubr.f32.gmra.mrb[38].mxu1 %v1578_v45  ;;  %v1636_v44 = vld [vmem:[%s3042_s0 + $0x3c0] sm:$0xff]  ;;  %v1712_v45 = vld [vmem:[%s3042_s0 + $0x550] sm:$0xff] }
  0x76   :  { %1535 = vmatprep.mubr.msk.f32.mxu0 %vm90_vm0, %v75_v46  ;;  %1611 = vmatprep.mubr.msk.f32.mxu1 %vm90_vm0, %v1581_v47  ;;  %v1639_v46 = vld [vmem:[%s3042_s0 + $0x3d8] sm:$0xff]  ;;  %v1715_v47 = vld [vmem:[%s3042_s0 + $0x568] sm:$0xff] }
  0x79   :  { %335 = vmatmul.mubr.f32.gmra.mrb[40].mxu0 %v74_v48  ;;  %676 = vmatmul.mubr.f32.gmra.mrb[40].mxu1 %v1580_v49  ;;  %v1638_v48 = vld [vmem:[%s3042_s0 + $0x3d0] sm:$0xff]  ;;  %v1714_v49 = vld [vmem:[%s3042_s0 + $0x560] sm:$0xff] }
  0x7a   :  { %1536 = vmatprep.mubr.msk.f32.mxu0 %vm90_vm0, %v77_v50  ;;  %1612 = vmatprep.mubr.msk.f32.mxu1 %vm90_vm0, %v1583_v51  ;;  %v1641_v50 = vld [vmem:[%s3042_s0 + $0x3e8] sm:$0xff]  ;;  %v1717_v51 = vld [vmem:[%s3042_s0 + $0x578] sm:$0xff] }
  0x7d   :  { %340 = vmatmul.mubr.f32.gmra.mrb[42].mxu0 %v76_v52  ;;  %681 = vmatmul.mubr.f32.gmra.mrb[42].mxu1 %v1582_v53  ;;  %v1640_v52 = vld [vmem:[%s3042_s0 + $0x3e0] sm:$0xff]  ;;  %v1716_v53 = vld [vmem:[%s3042_s0 + $0x570] sm:$0xff] }
  0x7e   :  { %1537 = vmatprep.mubr.msk.f32.mxu0 %vm90_vm0, %v79_v54  ;;  %1613 = vmatprep.mubr.msk.f32.mxu1 %vm90_vm0, %v1585_v55  ;;  %v1643_v54 = vld [vmem:[%s3042_s0 + $0x3f8] sm:$0xff]  ;;  %v1719_v55 = vld [vmem:[%s3042_s0 + $0x588] sm:$0xff] }
  0x81   :  { %345 = vmatmul.mubr.f32.gmra.mrb[44].mxu0 %v78_v56  ;;  %686 = vmatmul.mubr.f32.gmra.mrb[44].mxu1 %v1584_v57  ;;  %v1642_v56 = vld [vmem:[%s3042_s0 + $0x3f0] sm:$0xff]  ;;  %v1718_v57 = vld [vmem:[%s3042_s0 + $0x580] sm:$0xff] }
  0x82   :  { %1538 = vmatprep.mubr.msk.f32.mxu0 %vm90_vm0, %v81_v58  ;;  %1614 = vmatprep.mubr.msk.f32.mxu1 %vm90_vm0, %v1587_v59  ;;  %v1645_v58 = vld [vmem:[%s3042_s0 + $0x408] sm:$0xff]  ;;  %v1721_v59 = vld [vmem:[%s3042_s0 + $0x598] sm:$0xff] }
  0x85   :  { %350 = vmatmul.mubr.f32.gmra.mrb[46].mxu0 %v80_v60  ;;  %691 = vmatmul.mubr.f32.gmra.mrb[46].mxu1 %v1586_v61  ;;  %v1644_v60 = vld [vmem:[%s3042_s0 + $0x400] sm:$0xff]  ;;  %v1720_v61 = vld [vmem:[%s3042_s0 + $0x590] sm:$0xff] }
  0x86   :  { %1539 = vmatprep.mubr.msk.f32.mxu0 %vm90_vm0, %v83_v62  ;;  %1615 = vmatprep.mubr.msk.f32.mxu1 %vm90_vm0, %v1589_v63  ;;  %v1647_v62 = vld [vmem:[%s3042_s0 + $0x418] sm:$0xff]  ;;  %v1723_v63 = vld [vmem:[%s3042_s0 + $0x5a8] sm:$0xff] }
  0x89   :  { %355 = vmatmul.mubr.f32.gmra.mrb[48].mxu0 %v82_v1  ;;  %696 = vmatmul.mubr.f32.gmra.mrb[48].mxu1 %v1588_v2  ;;  %v1646_v1 = vld [vmem:[%s3042_s0 + $0x410] sm:$0xff]  ;;  %v1722_v2 = vld [vmem:[%s3042_s0 + $0x5a0] sm:$0xff] }
  0x8a   :  { %1667 = vmatprep.mubr.msk.f32.mxu0 %vm90_vm0, %v1617_v3  ;;  %1743 = vmatprep.mubr.msk.f32.mxu1 %vm90_vm0, %v1693_v4  ;;  %v1649_v3 = vld [vmem:[%s3042_s0 + $0x428] sm:$0xff]  ;;  %v1725_v4 = vld [vmem:[%s3042_s0 + $0x5b8] sm:$0xff] }
  0x8d   :  { %942 = vmatmul.mubr.f32.vlgmr.msra.gmra.mrb[50].mxu0 %v1616_v5  ;;  %1283 = vmatmul.mubr.f32.vlgmr.msra.gmra.mrb[50].mxu1 %v1692_v6  ;;  %v1648_v5 = vld [vmem:[%s3042_s0 + $0x420] sm:$0xff]  ;;  %v1724_v6 = vld [vmem:[%s3042_s0 + $0x5b0] sm:$0xff] }
  0x8e   :  { %1668 = vmatprep.mubr.msk.f32.mxu0 %vm90_vm0, %v1619_v7  ;;  %1744 = vmatprep.mubr.msk.f32.mxu1 %vm90_vm0, %v1695_v8  ;;  %v1651_v7 = vld [vmem:[%s3042_s0 + $0x438] sm:$0xff]  ;;  %v1727_v8 = vld [vmem:[%s3042_s0 + $0x5c8] sm:$0xff] }
  0x91   :  { %947 = vmatmul.mubr.f32.gmra.mrb[52].mxu0 %v1618_v9  ;;  %1288 = vmatmul.mubr.f32.gmra.mrb[52].mxu1 %v1694_v10  ;;  %v1650_v9 = vld [vmem:[%s3042_s0 + $0x430] sm:$0xff]  ;;  %v1726_v10 = vld [vmem:[%s3042_s0 + $0x5c0] sm:$0xff] }
  0x92   :  { %1669 = vmatprep.mubr.msk.f32.mxu0 %vm90_vm0, %v1621_v0  ;;  %1745 = vmatprep.mubr.msk.f32.mxu1 %vm90_vm0, %v1697_v11  ;;  %v1653_v0 = vld [vmem:[%s3042_s0 + $0x448] sm:$0xff]  ;;  %v1729_v11 = vld [vmem:[%s3042_s0 + $0x5d8] sm:$0xff] }
  0x95   :  { %952 = vmatmul.mubr.f32.gmra.mrb[54].mxu0 %v1620_v12  ;;  %1293 = vmatmul.mubr.f32.gmra.mrb[54].mxu1 %v1696_v13  ;;  %v1652_v12 = vld [vmem:[%s3042_s0 + $0x440] sm:$0xff]  ;;  %v1728_v13 = vld [vmem:[%s3042_s0 + $0x5d0] sm:$0xff] }
  0x96   :  { %1670 = vmatprep.mubr.msk.f32.mxu0 %vm90_vm0, %v1623_v14  ;;  %1746 = vmatprep.mubr.msk.f32.mxu1 %vm90_vm0, %v1699_v15  ;;  %v1655_v14 = vld [vmem:[%s3042_s0 + $0x458] sm:$0xff]  ;;  %v1731_v15 = vld [vmem:[%s3042_s0 + $0x5e8] sm:$0xff] }
  0x99   :  { %957 = vmatmul.mubr.f32.gmra.mrb[56].mxu0 %v1622_v16  ;;  %1298 = vmatmul.mubr.f32.gmra.mrb[56].mxu1 %v1698_v17  ;;  %v1654_v16 = vld [vmem:[%s3042_s0 + $0x450] sm:$0xff]  ;;  %v1730_v17 = vld [vmem:[%s3042_s0 + $0x5e0] sm:$0xff] }
  0x9a   :  { %1671 = vmatprep.mubr.msk.f32.mxu0 %vm90_vm0, %v1625_v18  ;;  %1747 = vmatprep.mubr.msk.f32.mxu1 %vm90_vm0, %v1701_v19  ;;  %v1657_v18 = vld [vmem:[%s3042_s0 + $0x468] sm:$0xff]  ;;  %v1733_v19 = vld [vmem:[%s3042_s0 + $0x5f8] sm:$0xff] }
  0x9d   :  { %962 = vmatmul.mubr.f32.gmra.mrb[58].mxu0 %v1624_v20  ;;  %1303 = vmatmul.mubr.f32.gmra.mrb[58].mxu1 %v1700_v21  ;;  %v1656_v20 = vld [vmem:[%s3042_s0 + $0x460] sm:$0xff]  ;;  %v1732_v21 = vld [vmem:[%s3042_s0 + $0x5f0] sm:$0xff] }
  0x9e   :  { %1672 = vmatprep.mubr.msk.f32.mxu0 %vm90_vm0, %v1627_v22  ;;  %1748 = vmatprep.mubr.msk.f32.mxu1 %vm90_vm0, %v1703_v23  ;;  %v1659_v22 = vld [vmem:[%s3042_s0 + $0x478] sm:$0xff]  ;;  %v1735_v23 = vld [vmem:[%s3042_s0 + $0x608] sm:$0xff] }
  0xa1   :  { %967 = vmatmul.mubr.f32.gmra.mrb[60].mxu0 %v1626_v24  ;;  %1308 = vmatmul.mubr.f32.gmra.mrb[60].mxu1 %v1702_v25  ;;  %v1658_v24 = vld [vmem:[%s3042_s0 + $0x470] sm:$0xff]  ;;  %v1734_v25 = vld [vmem:[%s3042_s0 + $0x600] sm:$0xff] }
  0xa2   :  { %1673 = vmatprep.mubr.msk.f32.mxu0 %vm90_vm0, %v1629_v26  ;;  %1749 = vmatprep.mubr.msk.f32.mxu1 %vm90_vm0, %v1705_v27  ;;  %v1661_v26 = vld [vmem:[%s3042_s0 + $0x488] sm:$0xff]  ;;  %v1737_v27 = vld [vmem:[%s3042_s0 + $0x618] sm:$0xff] }
  0xa5   :  { %972 = vmatmul.mubr.f32.gmra.mrb[62].mxu0 %v1628_v28  ;;  %1313 = vmatmul.mubr.f32.gmra.mrb[62].mxu1 %v1704_v29  ;;  %v1660_v28 = vld [vmem:[%s3042_s0 + $0x480] sm:$0xff]  ;;  %v1736_v29 = vld [vmem:[%s3042_s0 + $0x610] sm:$0xff] }
  0xa6   :  { %1674 = vmatprep.mubr.msk.f32.mxu0 %vm90_vm0, %v1631_v30  ;;  %1750 = vmatprep.mubr.msk.f32.mxu1 %vm90_vm0, %v1707_v31  ;;  %v1663_v30 = vld [vmem:[%s3042_s0 + $0x498] sm:$0xff]  ;;  %v1739_v31 = vld [vmem:[%s3042_s0 + $0x628] sm:$0xff] }
  0xa9   :  { %977 = vmatmul.mubr.f32.gmra.mrb[64].mxu0 %v1630_v32  ;;  %1318 = vmatmul.mubr.f32.gmra.mrb[64].mxu1 %v1706_v33  ;;  %v1662_v32 = vld [vmem:[%s3042_s0 + $0x490] sm:$0xff]  ;;  %v1738_v33 = vld [vmem:[%s3042_s0 + $0x620] sm:$0xff] }
  0xaa   :  { %1675 = vmatprep.mubr.msk.f32.mxu0 %vm90_vm0, %v1633_v34  ;;  %1751 = vmatprep.mubr.msk.f32.mxu1 %vm90_vm0, %v1709_v35  ;;  %v1665_v34 = vld [vmem:[%s3042_s0 + $0x4a8] sm:$0xff]  ;;  %v1741_v35 = vld [vmem:[%s3042_s0 + $0x638] sm:$0xff] }
  0xad   :  { %982 = vmatmul.mubr.f32.gmra.mrb[66].mxu0 %v1632_v36  ;;  %1323 = vmatmul.mubr.f32.gmra.mrb[66].mxu1 %v1708_v37  ;;  %v1664_v36 = vld [vmem:[%s3042_s0 + $0x4a0] sm:$0xff]  ;;  %v1740_v37 = vld [vmem:[%s3042_s0 + $0x630] sm:$0xff] }
  0xae   :  { %1676 = vmatprep.mubr.msk.f32.mxu0 %vm90_vm0, %v1635_v38  ;;  %1752 = vmatprep.mubr.msk.f32.mxu1 %vm90_vm0, %v1711_v39  ;;  %v2764_v38 = vld [vmem:[%s3043_s2] ss:$0 sm:$0xff] }
  0xb1   :  { %987 = vmatmul.mubr.f32.gmra.mrb[68].mxu0 %v1634_v40  ;;  %1328 = vmatmul.mubr.f32.gmra.mrb[68].mxu1 %v1710_v41 }
  0xb2   :  { %1677 = vmatprep.mubr.msk.f32.mxu0 %vm90_vm0, %v1637_v42  ;;  %1753 = vmatprep.mubr.msk.f32.mxu1 %vm90_vm0, %v1713_v43 }
  0xb5   :  { %992 = vmatmul.mubr.f32.gmra.mrb[70].mxu0 %v1636_v44  ;;  %1333 = vmatmul.mubr.f32.gmra.mrb[70].mxu1 %v1712_v45 }
  0xb6   :  { %1678 = vmatprep.mubr.msk.f32.mxu0 %vm90_vm0, %v1639_v46  ;;  %1754 = vmatprep.mubr.msk.f32.mxu1 %vm90_vm0, %v1715_v47 }
  0xb9   :  { %997 = vmatmul.mubr.f32.gmra.mrb[72].mxu0 %v1638_v48  ;;  %1338 = vmatmul.mubr.f32.gmra.mrb[72].mxu1 %v1714_v49 }
  0xba   :  { %1679 = vmatprep.mubr.msk.f32.mxu0 %vm90_vm0, %v1641_v50  ;;  %1755 = vmatprep.mubr.msk.f32.mxu1 %vm90_vm0, %v1717_v51 }
  0xbd   :  { %1002 = vmatmul.mubr.f32.gmra.mrb[74].mxu0 %v1640_v52  ;;  %1343 = vmatmul.mubr.f32.gmra.mrb[74].mxu1 %v1716_v53 }
  0xbe   :  { %1680 = vmatprep.mubr.msk.f32.mxu0 %vm90_vm0, %v1643_v54  ;;  %1756 = vmatprep.mubr.msk.f32.mxu1 %vm90_vm0, %v1719_v55 }
  0xc1   :  { %1007 = vmatmul.mubr.f32.gmra.mrb[76].mxu0 %v1642_v56  ;;  %1348 = vmatmul.mubr.f32.gmra.mrb[76].mxu1 %v1718_v57 }
  0xc2   :  { %1681 = vmatprep.mubr.msk.f32.mxu0 %vm90_vm0, %v1645_v58  ;;  %1757 = vmatprep.mubr.msk.f32.mxu1 %vm90_vm0, %v1721_v59 }
  0xc5   :  { %1012 = vmatmul.mubr.f32.gmra.mrb[78].mxu0 %v1644_v60  ;;  %1353 = vmatmul.mubr.f32.gmra.mrb[78].mxu1 %v1720_v61 }
  0xc6   :  { %1682 = vmatprep.mubr.msk.f32.mxu0 %vm90_vm0, %v1647_v62  ;;  %1758 = vmatprep.mubr.msk.f32.mxu1 %vm90_vm0, %v1723_v63 }
  0xc9   :  { %1017 = vmatmul.mubr.f32.gmra.mrb[80].mxu0 %v1646_v1  ;;  %1358 = vmatmul.mubr.f32.gmra.mrb[80].mxu1 %v1722_v2 }
  0xca   :  { %1683 = vmatprep.mubr.msk.f32.mxu0 %vm90_vm0, %v1649_v3  ;;  %1759 = vmatprep.mubr.msk.f32.mxu1 %vm90_vm0, %v1725_v4 }
  0xcd   :  { %1022 = vmatmul.mubr.f32.gmra.mrb[82].mxu0 %v1648_v5  ;;  %1363 = vmatmul.mubr.f32.gmra.mrb[82].mxu1 %v1724_v6 }
  0xce   :  { %1684 = vmatprep.mubr.msk.f32.mxu0 %vm90_vm0, %v1651_v7  ;;  %1760 = vmatprep.mubr.msk.f32.mxu1 %vm90_vm0, %v1727_v8 }
  0xd1   :  { %1027 = vmatmul.mubr.f32.gmra.mrb[84].mxu0 %v1650_v9  ;;  %1368 = vmatmul.mubr.f32.gmra.mrb[84].mxu1 %v1726_v10 }
  0xd2   :  { %1685 = vmatprep.mubr.msk.f32.mxu0 %vm90_vm0, %v1653_v0  ;;  %1761 = vmatprep.mubr.msk.f32.mxu1 %vm90_vm0, %v1729_v11 }
  0xd5   :  { %1032 = vmatmul.mubr.f32.gmra.mrb[86].mxu0 %v1652_v12  ;;  %1373 = vmatmul.mubr.f32.gmra.mrb[86].mxu1 %v1728_v13 }
  0xd6   :  { %1686 = vmatprep.mubr.msk.f32.mxu0 %vm90_vm0, %v1655_v14  ;;  %1762 = vmatprep.mubr.msk.f32.mxu1 %vm90_vm0, %v1731_v15 }
  0xd9   :  { %1037 = vmatmul.mubr.f32.gmra.mrb[88].mxu0 %v1654_v16  ;;  %1378 = vmatmul.mubr.f32.gmra.mrb[88].mxu1 %v1730_v17 }
  0xda   :  { %1687 = vmatprep.mubr.msk.f32.mxu0 %vm90_vm0, %v1657_v18  ;;  %1763 = vmatprep.mubr.msk.f32.mxu1 %vm90_vm0, %v1733_v19 }
  0xdd   :  { %1042 = vmatmul.mubr.f32.gmra.mrb[90].mxu0 %v1656_v20  ;;  %1383 = vmatmul.mubr.f32.gmra.mrb[90].mxu1 %v1732_v21 }
  0xde   :  { %1688 = vmatprep.mubr.msk.f32.mxu0 %vm90_vm0, %v1659_v22  ;;  %1764 = vmatprep.mubr.msk.f32.mxu1 %vm90_vm0, %v1735_v23 }
  0xe1   :  { %1047 = vmatmul.mubr.f32.gmra.mrb[92].mxu0 %v1658_v24  ;;  %1388 = vmatmul.mubr.f32.gmra.mrb[92].mxu1 %v1734_v25 }
  0xe2   :  { %1689 = vmatprep.mubr.msk.f32.mxu0 %vm90_vm0, %v1661_v26  ;;  %1765 = vmatprep.mubr.msk.f32.mxu1 %vm90_vm0, %v1737_v27 }
  0xe5   :  { %1052 = vmatmul.mubr.f32.gmra.mrb[94].mxu0 %v1660_v28  ;;  %1393 = vmatmul.mubr.f32.gmra.mrb[94].mxu1 %v1736_v29 }
  0xe6   :  { %1690 = vmatprep.mubr.msk.f32.mxu0 %vm90_vm0, %v1663_v30  ;;  %1766 = vmatprep.mubr.msk.f32.mxu1 %vm90_vm0, %v1739_v31 }
  0xe9   :  { %1057 = vmatmul.mubr.f32.gmra.mrb[96].mxu0 %v1662_v32  ;;  %1398 = vmatmul.mubr.f32.gmra.mrb[96].mxu1 %v1738_v33 }
  0xea   :  { %1691 = vmatprep.mubr.msk.f32.mxu0 %vm90_vm0, %v1665_v34  ;;  %1767 = vmatprep.mubr.msk.f32.mxu1 %vm90_vm0, %v1741_v35 }
  0xed   :  { %1062 = vmatmul.mubr.f32.gmra.mrb[98].mxu0 %v1664_v36  ;;  %1403 = vmatmul.mubr.f32.gmra.mrb[98].mxu1 %v1740_v37 }
  0xfc   :  { %v236_v39 = vpop.f32.mrb[0].mxu0  ;;  %v577_v40 = vpop.f32.mrb[0].mxu1 }
  0xfd   :  { %v237_v41 = vadd.f32 %v2764_v38, %v236_v39  ;;  %v578_v42 = vadd.f32 %v2764_v38, %v577_v40  ;;  %v238_v43 = vpop.f32.mrb[1].mxu0  ;;  %v579_v44 = vpop.f32.mrb[1].mxu1 }
  0xff   :  { %v360_v45 = vmax.f32 %v237_v41, 0.0  ;;  %v701_v46 = vmax.f32 %v578_v42, 0.0 }
 0x100   :  { %v241_v47 = vpop.f32.mrb[2].mxu0  ;;  %v582_v48 = vpop.f32.mrb[2].mxu1 }
 0x101   :  { %v2768_v49 = vmax.f32 %v360_v45, %v701_v46  ;;  %v242_v50 = vadd.f32 %v2764_v38, %v241_v47  ;;  %v583_v51 = vadd.f32 %v2764_v38, %v582_v48  ;;  %v243_v52 = vpop.f32.mrb[3].mxu0  ;;  %v584_v53 = vpop.f32.mrb[3].mxu1 }
 0x103   :  { %v361_v54 = vmax.f32 %v242_v50, 0.0  ;;  %v702_v55 = vmax.f32 %v583_v51, 0.0 }
 0x104   :  { %v246_v56 = vpop.f32.mrb[4].mxu0  ;;  %v587_v57 = vpop.f32.mrb[4].mxu1 }
 0x105   :  { %v2772_v58 = vmax.f32 %v361_v54, %v702_v55  ;;  %v247_v59 = vadd.f32 %v2764_v38, %v246_v56  ;;  %v588_v60 = vadd.f32 %v2764_v38, %v587_v57  ;;  %v248_v61 = vpop.f32.mrb[5].mxu0  ;;  %v589_v62 = vpop.f32.mrb[5].mxu1 }
 0x107   :  { %v362_v63 = vmax.f32 %v247_v59, 0.0  ;;  %v703_v1 = vmax.f32 %v588_v60, 0.0 }
 0x108   :  { %v251_v2 = vpop.f32.mrb[6].mxu0  ;;  %v592_v3 = vpop.f32.mrb[6].mxu1 }
 0x109   :  { %v2776_v4 = vmax.f32 %v362_v63, %v703_v1  ;;  %v252_v5 = vadd.f32 %v2764_v38, %v251_v2  ;;  %v593_v6 = vadd.f32 %v2764_v38, %v592_v3  ;;  %v253_v7 = vpop.f32.mrb[7].mxu0  ;;  %v594_v8 = vpop.f32.mrb[7].mxu1 }
 0x10b   :  { %v363_v9 = vmax.f32 %v252_v5, 0.0  ;;  %v704_v10 = vmax.f32 %v593_v6, 0.0 }
 0x10c   :  { %v256_v0 = vpop.f32.mrb[8].mxu0  ;;  %v597_v11 = vpop.f32.mrb[8].mxu1 }
 0x10d   :  { %v2780_v12 = vmax.f32 %v363_v9, %v704_v10  ;;  %v257_v13 = vadd.f32 %v2764_v38, %v256_v0  ;;  %v598_v14 = vadd.f32 %v2764_v38, %v597_v11  ;;  %v258_v15 = vpop.f32.mrb[9].mxu0  ;;  %v599_v16 = vpop.f32.mrb[9].mxu1 }
 0x10f   :  { %v364_v17 = vmax.f32 %v257_v13, 0.0  ;;  %v705_v18 = vmax.f32 %v598_v14, 0.0 }
 0x110   :  { %v261_v19 = vpop.f32.mrb[10].mxu0  ;;  %v602_v20 = vpop.f32.mrb[10].mxu1 }
 0x111   :  { %v2784_v21 = vmax.f32 %v364_v17, %v705_v18  ;;  %v262_v22 = vadd.f32 %v2764_v38, %v261_v19  ;;  %v603_v23 = vadd.f32 %v2764_v38, %v602_v20  ;;  %v263_v24 = vpop.f32.mrb[11].mxu0  ;;  %v604_v25 = vpop.f32.mrb[11].mxu1 }
 0x113   :  { %v365_v26 = vmax.f32 %v262_v22, 0.0  ;;  %v706_v27 = vmax.f32 %v603_v23, 0.0 }
 0x114   :  { %v266_v28 = vpop.f32.mrb[12].mxu0  ;;  %v607_v29 = vpop.f32.mrb[12].mxu1 }
 0x115   :  { %v2788_v30 = vmax.f32 %v365_v26, %v706_v27  ;;  %v267_v31 = vadd.f32 %v2764_v38, %v266_v28  ;;  %v608_v32 = vadd.f32 %v2764_v38, %v607_v29  ;;  %v268_v33 = vpop.f32.mrb[13].mxu0  ;;  %v609_v34 = vpop.f32.mrb[13].mxu1 }
 0x117   :  { %v366_v35 = vmax.f32 %v267_v31, 0.0  ;;  %v707_v36 = vmax.f32 %v608_v32, 0.0 }
 0x118   :  { %v271_v37 = vpop.f32.mrb[14].mxu0  ;;  %v612_v39 = vpop.f32.mrb[14].mxu1 }
 0x119   :  { %v2792_v40 = vmax.f32 %v366_v35, %v707_v36  ;;  %v272_v41 = vadd.f32 %v2764_v38, %v271_v37  ;;  %v613_v42 = vadd.f32 %v2764_v38, %v612_v39  ;;  %v273_v43 = vpop.f32.mrb[15].mxu0  ;;  %v614_v44 = vpop.f32.mrb[15].mxu1 }
 0x11b   :  { %v367_v45 = vmax.f32 %v272_v41, 0.0  ;;  %v708_v46 = vmax.f32 %v613_v42, 0.0 }
 0x11c   :  { %v276_v47 = vpop.f32.mrb[16].mxu0  ;;  %v617_v48 = vpop.f32.mrb[16].mxu1 }
 0x11d   :  { %v2796_v50 = vmax.f32 %v367_v45, %v708_v46  ;;  %v277_v51 = vadd.f32 %v2764_v38, %v276_v47  ;;  %v618_v52 = vadd.f32 %v2764_v38, %v617_v48  ;;  %v278_v53 = vpop.f32.mrb[17].mxu0  ;;  %v619_v54 = vpop.f32.mrb[17].mxu1 }
 0x11f   :  { %v368_v55 = vmax.f32 %v277_v51, 0.0  ;;  %v709_v56 = vmax.f32 %v618_v52, 0.0 }
 0x120   :  { %v281_v57 = vpop.f32.mrb[18].mxu0  ;;  %v622_v59 = vpop.f32.mrb[18].mxu1 }
 0x121   :  { %v2800_v60 = vmax.f32 %v368_v55, %v709_v56  ;;  %v282_v61 = vadd.f32 %v2764_v38, %v281_v57  ;;  %v623_v62 = vadd.f32 %v2764_v38, %v622_v59  ;;  %v283_v63 = vpop.f32.mrb[19].mxu0  ;;  %v624_v1 = vpop.f32.mrb[19].mxu1 }
 0x123   :  { %v369_v2 = vmax.f32 %v282_v61, 0.0  ;;  %v710_v3 = vmax.f32 %v623_v62, 0.0 }
 0x124   :  { %v286_v5 = vpop.f32.mrb[20].mxu0  ;;  %v627_v6 = vpop.f32.mrb[20].mxu1 }
 0x125   :  { %v2804_v7 = vmax.f32 %v369_v2, %v710_v3  ;;  %v287_v8 = vadd.f32 %v2764_v38, %v286_v5  ;;  %v628_v9 = vadd.f32 %v2764_v38, %v627_v6  ;;  %v288_v10 = vpop.f32.mrb[21].mxu0  ;;  %v629_v0 = vpop.f32.mrb[21].mxu1 }
 0x127   :  { %v370_v11 = vmax.f32 %v287_v8, 0.0  ;;  %v711_v13 = vmax.f32 %v628_v9, 0.0 }
 0x128   :  { %v291_v14 = vpop.f32.mrb[22].mxu0  ;;  %v632_v15 = vpop.f32.mrb[22].mxu1 }
 0x129   :  { %v2808_v16 = vmax.f32 %v370_v11, %v711_v13  ;;  %v292_v17 = vadd.f32 %v2764_v38, %v291_v14  ;;  %v633_v18 = vadd.f32 %v2764_v38, %v632_v15  ;;  %v293_v19 = vpop.f32.mrb[23].mxu0  ;;  %v634_v20 = vpop.f32.mrb[23].mxu1 }
 0x12b   :  { %v371_v22 = vmax.f32 %v292_v17, 0.0  ;;  %v712_v23 = vmax.f32 %v633_v18, 0.0 }
 0x12c   :  { %v296_v24 = vpop.f32.mrb[24].mxu0  ;;  %v637_v25 = vpop.f32.mrb[24].mxu1 }
 0x12d   :  { %v2812_v26 = vmax.f32 %v371_v22, %v712_v23  ;;  %v297_v27 = vadd.f32 %v2764_v38, %v296_v24  ;;  %v638_v28 = vadd.f32 %v2764_v38, %v637_v25  ;;  %v298_v29 = vpop.f32.mrb[25].mxu0  ;;  %v639_v31 = vpop.f32.mrb[25].mxu1 }
 0x12f   :  { %v372_v32 = vmax.f32 %v297_v27, 0.0  ;;  %v713_v33 = vmax.f32 %v638_v28, 0.0 }
 0x130   :  { %v301_v34 = vpop.f32.mrb[26].mxu0  ;;  %v642_v35 = vpop.f32.mrb[26].mxu1 }
 0x131   :  { %v2816_v36 = vmax.f32 %v372_v32, %v713_v33  ;;  %v302_v37 = vadd.f32 %v2764_v38, %v301_v34  ;;  %v643_v39 = vadd.f32 %v2764_v38, %v642_v35  ;;  %v303_v41 = vpop.f32.mrb[27].mxu0  ;;  %v644_v42 = vpop.f32.mrb[27].mxu1 }
 0x133   :  { %v373_v43 = vmax.f32 %v302_v37, 0.0  ;;  %v714_v44 = vmax.f32 %v643_v39, 0.0 }
 0x134   :  { %v306_v45 = vpop.f32.mrb[28].mxu0  ;;  %v647_v46 = vpop.f32.mrb[28].mxu1 }
 0x135   :  { %v2820_v47 = vmax.f32 %v373_v43, %v714_v44  ;;  %v307_v48 = vadd.f32 %v2764_v38, %v306_v45  ;;  %v648_v51 = vadd.f32 %v2764_v38, %v647_v46  ;;  %v308_v52 = vpop.f32.mrb[29].mxu0  ;;  %v649_v53 = vpop.f32.mrb[29].mxu1 }
 0x137   :  { %v374_v54 = vmax.f32 %v307_v48, 0.0  ;;  %v715_v55 = vmax.f32 %v648_v51, 0.0 }
 0x138   :  { %v311_v56 = vpop.f32.mrb[30].mxu0  ;;  %v652_v57 = vpop.f32.mrb[30].mxu1 }
 0x139   :  { %v2824_v59 = vmax.f32 %v374_v54, %v715_v55  ;;  %v312_v61 = vadd.f32 %v2764_v38, %v311_v56  ;;  %v653_v62 = vadd.f32 %v2764_v38, %v652_v57  ;;  %v313_v63 = vpop.f32.mrb[31].mxu0  ;;  %v654_v1 = vpop.f32.mrb[31].mxu1 }
 0x13b   :  { %v375_v2 = vmax.f32 %v312_v61, 0.0  ;;  %v716_v3 = vmax.f32 %v653_v62, 0.0 }
 0x13c   :  { %v316_v5 = vpop.f32.mrb[32].mxu0  ;;  %v657_v6 = vpop.f32.mrb[32].mxu1 }
 0x13d   :  { %v2828_v8 = vmax.f32 %v375_v2, %v716_v3  ;;  %v317_v9 = vadd.f32 %v2764_v38, %v316_v5  ;;  %v658_v10 = vadd.f32 %v2764_v38, %v657_v6  ;;  %v318_v0 = vpop.f32.mrb[33].mxu0  ;;  %v659_v11 = vpop.f32.mrb[33].mxu1 }
 0x13f   :  { %v376_v13 = vmax.f32 %v317_v9, 0.0  ;;  %v717_v14 = vmax.f32 %v658_v10, 0.0 }
 0x140   :  { %v321_v15 = vpop.f32.mrb[34].mxu0  ;;  %v662_v17 = vpop.f32.mrb[34].mxu1 }
 0x141   :  { %v2832_v18 = vmax.f32 %v376_v13, %v717_v14  ;;  %v322_v19 = vadd.f32 %v2764_v38, %v321_v15  ;;  %v663_v20 = vadd.f32 %v2764_v38, %v662_v17  ;;  %v323_v22 = vpop.f32.mrb[35].mxu0  ;;  %v664_v23 = vpop.f32.mrb[35].mxu1 }
 0x143   :  { %v377_v24 = vmax.f32 %v322_v19, 0.0  ;;  %v718_v25 = vmax.f32 %v663_v20, 0.0 }
 0x144   :  { %v326_v27 = vpop.f32.mrb[36].mxu0  ;;  %v667_v28 = vpop.f32.mrb[36].mxu1 }
 0x145   :  { %v2836_v29 = vmax.f32 %v377_v24, %v718_v25  ;;  %v327_v31 = vadd.f32 %v2764_v38, %v326_v27  ;;  %v668_v32 = vadd.f32 %v2764_v38, %v667_v28  ;;  %v328_v33 = vpop.f32.mrb[37].mxu0  ;;  %v669_v34 = vpop.f32.mrb[37].mxu1 }
 0x147   :  { %v378_v35 = vmax.f32 %v327_v31, 0.0  ;;  %v719_v37 = vmax.f32 %v668_v32, 0.0 }
 0x148   :  { %v331_v39 = vpop.f32.mrb[38].mxu0  ;;  %v672_v41 = vpop.f32.mrb[38].mxu1 }
 0x149   :  { %v2840_v42 = vmax.f32 %v378_v35, %v719_v37  ;;  %v332_v43 = vadd.f32 %v2764_v38, %v331_v39  ;;  %v673_v44 = vadd.f32 %v2764_v38, %v672_v41  ;;  %v333_v45 = vpop.f32.mrb[39].mxu0  ;;  %v674_v46 = vpop.f32.mrb[39].mxu1 }
 0x14b   :  { %v379_v48 = vmax.f32 %v332_v43, 0.0  ;;  %v720_v51 = vmax.f32 %v673_v44, 0.0 }
 0x14c   :  { %v336_v52 = vpop.f32.mrb[40].mxu0  ;;  %v677_v53 = vpop.f32.mrb[40].mxu1 }
 0x14d   :  { %v2844_v54 = vmax.f32 %v379_v48, %v720_v51  ;;  %v337_v55 = vadd.f32 %v2764_v38, %v336_v52  ;;  %v678_v56 = vadd.f32 %v2764_v38, %v677_v53  ;;  %v338_v57 = vpop.f32.mrb[41].mxu0  ;;  %v679_v61 = vpop.f32.mrb[41].mxu1 }
 0x14f   :  { %v380_v62 = vmax.f32 %v337_v55, 0.0  ;;  %v721_v63 = vmax.f32 %v678_v56, 0.0 }
 0x150   :  { %v341_v1 = vpop.f32.mrb[42].mxu0  ;;  %v682_v2 = vpop.f32.mrb[42].mxu1 }
 0x151   :  { %v2848_v3 = vmax.f32 %v380_v62, %v721_v63  ;;  %v342_v5 = vadd.f32 %v2764_v38, %v341_v1  ;;  %v683_v6 = vadd.f32 %v2764_v38, %v682_v2  ;;  %v343_v9 = vpop.f32.mrb[43].mxu0  ;;  %v684_v10 = vpop.f32.mrb[43].mxu1 }
 0x153   :  { %v381_v0 = vmax.f32 %v342_v5, 0.0  ;;  %v722_v11 = vmax.f32 %v683_v6, 0.0 }
 0x154   :  { %v346_v13 = vpop.f32.mrb[44].mxu0  ;;  %v687_v14 = vpop.f32.mrb[44].mxu1 }
 0x155   :  { %v2852_v15 = vmax.f32 %v381_v0, %v722_v11  ;;  %v347_v17 = vadd.f32 %v2764_v38, %v346_v13  ;;  %v688_v19 = vadd.f32 %v2764_v38, %v687_v14  ;;  %v348_v20 = vpop.f32.mrb[45].mxu0  ;;  %v689_v22 = vpop.f32.mrb[45].mxu1 }
 0x157   :  { %v382_v23 = vmax.f32 %v347_v17, 0.0  ;;  %v723_v24 = vmax.f32 %v688_v19, 0.0 }
 0x158   :  { %v351_v25 = vpop.f32.mrb[46].mxu0  ;;  %v692_v27 = vpop.f32.mrb[46].mxu1 }
 0x159   :  { %v2856_v28 = vmax.f32 %v382_v23, %v723_v24  ;;  %v352_v31 = vadd.f32 %v2764_v38, %v351_v25  ;;  %v693_v32 = vadd.f32 %v2764_v38, %v692_v27  ;;  %v353_v33 = vpop.f32.mrb[47].mxu0  ;;  %v694_v34 = vpop.f32.mrb[47].mxu1 }
 0x15b   :  { %v383_v35 = vmax.f32 %v352_v31, 0.0  ;;  %v724_v37 = vmax.f32 %v693_v32, 0.0 }
 0x15c   :  { %v356_v39 = vpop.f32.mrb[48].mxu0  ;;  %v697_v41 = vpop.f32.mrb[48].mxu1 }
 0x15d   :  { %v2860_v43 = vmax.f32 %v383_v35, %v724_v37  ;;  %v357_v44 = vadd.f32 %v2764_v38, %v356_v39  ;;  %v698_v45 = vadd.f32 %v2764_v38, %v697_v41  ;;  %v358_v46 = vpop.f32.mrb[49].mxu0  ;;  %v699_v48 = vpop.f32.mrb[49].mxu1 }
 0x15f   :  { %v384_v51 = vmax.f32 %v357_v44, 0.0  ;;  %v725_v52 = vmax.f32 %v698_v45, 0.0 }
 0x160   :  { %v943_v53 = vpop.f32.mrb[50].mxu0  ;;  %v1284_v55 = vpop.f32.mrb[50].mxu1 }
 0x161   :  { %v2864_v56 = vmax.f32 %v384_v51, %v725_v52  ;;  %v944_v57 = vadd.f32 %v2764_v38, %v943_v53  ;;  %v1285_v61 = vadd.f32 %v2764_v38, %v1284_v55  ;;  %v945_v62 = vpop.f32.mrb[51].mxu0  ;;  %v1286_v63 = vpop.f32.mrb[51].mxu1 }
 0x163   :  { %v1067_v1 = vmax.f32 %v944_v57, 0.0  ;;  %v1408_v2 = vmax.f32 %v1285_v61, 0.0 }
 0x164   :  { %v948_v5 = vpop.f32.mrb[52].mxu0  ;;  %v1289_v6 = vpop.f32.mrb[52].mxu1 }
 0x165   :  { %v1433_v9 = vmax.f32 %v1067_v1, %v1408_v2  ;;  %v949_v10 = vadd.f32 %v2764_v38, %v948_v5  ;;  %v1290_v0 = vadd.f32 %v2764_v38, %v1289_v6  ;;  %v950_v11 = vpop.f32.mrb[53].mxu0  ;;  %v1291_v13 = vpop.f32.mrb[53].mxu1 }
 0x167   :  { %v1458_v14 = vmax.f32 %v2768_v49, %v1433_v9  ;;  %v1068_v17 = vmax.f32 %v949_v10, 0.0  ;;  %v1409_v19 = vmax.f32 %v1290_v0, 0.0 }
 0x168   :  { %v953_v20 = vpop.f32.mrb[54].mxu0  ;;  %v1294_v22 = vpop.f32.mrb[54].mxu1 }
 0x169   :  { %1484 = vst.msk [vmem:[%s3044_s3] sm:$0xff] %vm1483_vm2, %v1458_v14  ;;  %v1434_v23 = vmax.f32 %v1068_v17, %v1409_v19  ;;  %v954_v24 = vadd.f32 %v2764_v38, %v953_v20  ;;  %v1295_v25 = vadd.f32 %v2764_v38, %v1294_v22  ;;  %v955_v27 = vpop.f32.mrb[55].mxu0  ;;  %v1296_v31 = vpop.f32.mrb[55].mxu1 }
 0x16b   :  { %v1459_v32 = vmax.f32 %v2772_v58, %v1434_v23  ;;  %v1069_v33 = vmax.f32 %v954_v24, 0.0  ;;  %v1410_v49 = vmax.f32 %v1295_v25, 0.0 }
 0x16c   :  { %v958_v34 = vpop.f32.mrb[56].mxu0  ;;  %v1299_v35 = vpop.f32.mrb[56].mxu1 }
 0x16d   :  { %1485 = vst.msk [vmem:[%s3044_s3 + $0x8] sm:$0xff] %vm1483_vm2, %v1459_v32  ;;  %v1435_v37 = vmax.f32 %v1069_v33, %v1410_v49  ;;  %v959_v39 = vadd.f32 %v2764_v38, %v958_v34  ;;  %v1300_v41 = vadd.f32 %v2764_v38, %v1299_v35  ;;  %v960_v44 = vpop.f32.mrb[57].mxu0  ;;  %v1301_v45 = vpop.f32.mrb[57].mxu1 }
 0x16f   :  { %v1460_v46 = vmax.f32 %v2776_v4, %v1435_v37  ;;  %v1070_v48 = vmax.f32 %v959_v39, 0.0  ;;  %v1411_v58 = vmax.f32 %v1300_v41, 0.0 }
 0x170   :  { %v963_v51 = vpop.f32.mrb[58].mxu0  ;;  %v1304_v52 = vpop.f32.mrb[58].mxu1 }
 0x171   :  { %1486 = vst.msk [vmem:[%s3044_s3 + $0x10] sm:$0xff] %vm1483_vm2, %v1460_v46  ;;  %v1436_v53 = vmax.f32 %v1070_v48, %v1411_v58  ;;  %v964_v55 = vadd.f32 %v2764_v38, %v963_v51  ;;  %v1305_v57 = vadd.f32 %v2764_v38, %v1304_v52  ;;  %v965_v61 = vpop.f32.mrb[59].mxu0  ;;  %v1306_v62 = vpop.f32.mrb[59].mxu1 }
 0x173   :  { %v1461_v63 = vmax.f32 %v2780_v12, %v1436_v53  ;;  %v1071_v1 = vmax.f32 %v964_v55, 0.0  ;;  %v1412_v4 = vmax.f32 %v1305_v57, 0.0 }
 0x174   :  { %v968_v2 = vpop.f32.mrb[60].mxu0  ;;  %v1309_v5 = vpop.f32.mrb[60].mxu1 }
 0x175   :  { %1487 = vst.msk [vmem:[%s3044_s3 + $0x18] sm:$0xff] %vm1483_vm2, %v1461_v63  ;;  %v1437_v6 = vmax.f32 %v1071_v1, %v1412_v4  ;;  %v969_v9 = vadd.f32 %v2764_v38, %v968_v2  ;;  %v1310_v10 = vadd.f32 %v2764_v38, %v1309_v5  ;;  %v970_v0 = vpop.f32.mrb[61].mxu0  ;;  %v1311_v11 = vpop.f32.mrb[61].mxu1 }
 0x177   :  { %v1462_v13 = vmax.f32 %v2784_v21, %v1437_v6  ;;  %v1072_v14 = vmax.f32 %v969_v9, 0.0  ;;  %v1413_v12 = vmax.f32 %v1310_v10, 0.0 }
 0x178   :  { %v973_v17 = vpop.f32.mrb[62].mxu0  ;;  %v1314_v19 = vpop.f32.mrb[62].mxu1 }
 0x179   :  { %1488 = vst.msk [vmem:[%s3044_s3 + $0x20] sm:$0xff] %vm1483_vm2, %v1462_v13  ;;  %v1438_v20 = vmax.f32 %v1072_v14, %v1413_v12  ;;  %v974_v22 = vadd.f32 %v2764_v38, %v973_v17  ;;  %v1315_v23 = vadd.f32 %v2764_v38, %v1314_v19  ;;  %v975_v24 = vpop.f32.mrb[63].mxu0  ;;  %v1316_v25 = vpop.f32.mrb[63].mxu1 }
 0x17b   :  { %v1463_v27 = vmax.f32 %v2788_v30, %v1438_v20  ;;  %v1073_v31 = vmax.f32 %v974_v22, 0.0  ;;  %v1414_v21 = vmax.f32 %v1315_v23, 0.0 }
 0x17c   :  { %v978_v32 = vpop.f32.mrb[64].mxu0  ;;  %v1319_v33 = vpop.f32.mrb[64].mxu1 }
 0x17d   :  { %1489 = vst.msk [vmem:[%s3044_s3 + $0x28] sm:$0xff] %vm1483_vm2, %v1463_v27  ;;  %v1439_v49 = vmax.f32 %v1073_v31, %v1414_v21  ;;  %v979_v34 = vadd.f32 %v2764_v38, %v978_v32  ;;  %v1320_v35 = vadd.f32 %v2764_v38, %v1319_v33  ;;  %v980_v37 = vpop.f32.mrb[65].mxu0  ;;  %v1321_v39 = vpop.f32.mrb[65].mxu1 }
 0x17f   :  { %v1464_v41 = vmax.f32 %v2792_v40, %v1439_v49  ;;  %v1074_v44 = vmax.f32 %v979_v34, 0.0  ;;  %v1415_v30 = vmax.f32 %v1320_v35, 0.0 }
 0x180   :  { %v983_v45 = vpop.f32.mrb[66].mxu0  ;;  %v1324_v46 = vpop.f32.mrb[66].mxu1 }
 0x181   :  { %1490 = vst.msk [vmem:[%s3044_s3 + $0x30] sm:$0xff] %vm1483_vm2, %v1464_v41  ;;  %v1440_v48 = vmax.f32 %v1074_v44, %v1415_v30  ;;  %v984_v58 = vadd.f32 %v2764_v38, %v983_v45  ;;  %v1325_v51 = vadd.f32 %v2764_v38, %v1324_v46  ;;  %v985_v52 = vpop.f32.mrb[67].mxu0  ;;  %v1326_v53 = vpop.f32.mrb[67].mxu1 }
 0x183   :  { %v1465_v55 = vmax.f32 %v2796_v50, %v1440_v48  ;;  %v1075_v57 = vmax.f32 %v984_v58, 0.0  ;;  %v1416_v40 = vmax.f32 %v1325_v51, 0.0 }
 0x184   :  { %v988_v61 = vpop.f32.mrb[68].mxu0  ;;  %v1329_v62 = vpop.f32.mrb[68].mxu1 }
 0x185   :  { %1491 = vst.msk [vmem:[%s3044_s3 + $0x38] sm:$0xff] %vm1483_vm2, %v1465_v55  ;;  %v1441_v63 = vmax.f32 %v1075_v57, %v1416_v40  ;;  %v989_v1 = vadd.f32 %v2764_v38, %v988_v61  ;;  %v1330_v4 = vadd.f32 %v2764_v38, %v1329_v62  ;;  %v990_v2 = vpop.f32.mrb[69].mxu0  ;;  %v1331_v5 = vpop.f32.mrb[69].mxu1 }
 0x187   :  { %v1466_v6 = vmax.f32 %v2800_v60, %v1441_v63  ;;  %v1076_v9 = vmax.f32 %v989_v1, 0.0  ;;  %v1417_v50 = vmax.f32 %v1330_v4, 0.0 }
 0x188   :  { %v993_v10 = vpop.f32.mrb[70].mxu0  ;;  %v1334_v0 = vpop.f32.mrb[70].mxu1 }
 0x189   :  { %1492 = vst.msk [vmem:[%s3044_s3 + $0x40] sm:$0xff] %vm1483_vm2, %v1466_v6  ;;  %v1442_v11 = vmax.f32 %v1076_v9, %v1417_v50  ;;  %v994_v13 = vadd.f32 %v2764_v38, %v993_v10  ;;  %v1335_v14 = vadd.f32 %v2764_v38, %v1334_v0  ;;  %v995_v12 = vpop.f32.mrb[71].mxu0  ;;  %v1336_v17 = vpop.f32.mrb[71].mxu1 }
 0x18b   :  { %v1467_v19 = vmax.f32 %v2804_v7, %v1442_v11  ;;  %v1077_v20 = vmax.f32 %v994_v13, 0.0  ;;  %v1418_v60 = vmax.f32 %v1335_v14, 0.0 }
 0x18c   :  { %v998_v22 = vpop.f32.mrb[72].mxu0  ;;  %v1339_v23 = vpop.f32.mrb[72].mxu1 }
 0x18d   :  { %1493 = vst.msk [vmem:[%s3044_s3 + $0x48] sm:$0xff] %vm1483_vm2, %v1467_v19  ;;  %v1443_v24 = vmax.f32 %v1077_v20, %v1418_v60  ;;  %v999_v25 = vadd.f32 %v2764_v38, %v998_v22  ;;  %v1340_v27 = vadd.f32 %v2764_v38, %v1339_v23  ;;  %v1000_v31 = vpop.f32.mrb[73].mxu0  ;;  %v1341_v21 = vpop.f32.mrb[73].mxu1 }
 0x18f   :  { %v1468_v32 = vmax.f32 %v2808_v16, %v1443_v24  ;;  %v1078_v33 = vmax.f32 %v999_v25, 0.0  ;;  %v1419_v7 = vmax.f32 %v1340_v27, 0.0 }
 0x190   :  { %v1003_v49 = vpop.f32.mrb[74].mxu0  ;;  %v1344_v34 = vpop.f32.mrb[74].mxu1 }
 0x191   :  { %1494 = vst.msk [vmem:[%s3044_s3 + $0x50] sm:$0xff] %vm1483_vm2, %v1468_v32  ;;  %v1444_v35 = vmax.f32 %v1078_v33, %v1419_v7  ;;  %v1004_v37 = vadd.f32 %v2764_v38, %v1003_v49  ;;  %v1345_v39 = vadd.f32 %v2764_v38, %v1344_v34  ;;  %v1005_v41 = vpop.f32.mrb[75].mxu0  ;;  %v1346_v44 = vpop.f32.mrb[75].mxu1 }
 0x193   :  { %v1469_v30 = vmax.f32 %v2812_v26, %v1444_v35  ;;  %v1079_v45 = vmax.f32 %v1004_v37, 0.0  ;;  %v1420_v16 = vmax.f32 %v1345_v39, 0.0 }
 0x194   :  { %v1008_v46 = vpop.f32.mrb[76].mxu0  ;;  %v1349_v48 = vpop.f32.mrb[76].mxu1 }
 0x195   :  { %1495 = vst.msk [vmem:[%s3044_s3 + $0x58] sm:$0xff] %vm1483_vm2, %v1469_v30  ;;  %v1445_v58 = vmax.f32 %v1079_v45, %v1420_v16  ;;  %v1009_v51 = vadd.f32 %v2764_v38, %v1008_v46  ;;  %v1350_v52 = vadd.f32 %v2764_v38, %v1349_v48  ;;  %v1010_v53 = vpop.f32.mrb[77].mxu0  ;;  %v1351_v55 = vpop.f32.mrb[77].mxu1 }
 0x197   :  { %v1470_v57 = vmax.f32 %v2816_v36, %v1445_v58  ;;  %v1080_v40 = vmax.f32 %v1009_v51, 0.0  ;;  %v1421_v26 = vmax.f32 %v1350_v52, 0.0 }
 0x198   :  { %v1013_v61 = vpop.f32.mrb[78].mxu0  ;;  %v1354_v62 = vpop.f32.mrb[78].mxu1 }
 0x199   :  { %1496 = vst.msk [vmem:[%s3044_s3 + $0x60] sm:$0xff] %vm1483_vm2, %v1470_v57  ;;  %v1446_v63 = vmax.f32 %v1080_v40, %v1421_v26  ;;  %v1014_v1 = vadd.f32 %v2764_v38, %v1013_v61  ;;  %v1355_v4 = vadd.f32 %v2764_v38, %v1354_v62  ;;  %v1015_v2 = vpop.f32.mrb[79].mxu0  ;;  %v1356_v5 = vpop.f32.mrb[79].mxu1 }
 0x19b   :  { %v1471_v6 = vmax.f32 %v2820_v47, %v1446_v63  ;;  %v1081_v9 = vmax.f32 %v1014_v1, 0.0  ;;  %v1422_v36 = vmax.f32 %v1355_v4, 0.0 }
 0x19c   :  { %v1018_v50 = vpop.f32.mrb[80].mxu0  ;;  %v1359_v10 = vpop.f32.mrb[80].mxu1 }
 0x19d   :  { %1497 = vst.msk [vmem:[%s3044_s3 + $0x68] sm:$0xff] %vm1483_vm2, %v1471_v6  ;;  %v1447_v0 = vmax.f32 %v1081_v9, %v1422_v36  ;;  %v1019_v11 = vadd.f32 %v2764_v38, %v1018_v50  ;;  %v1360_v13 = vadd.f32 %v2764_v38, %v1359_v10  ;;  %v1020_v14 = vpop.f32.mrb[81].mxu0  ;;  %v1361_v12 = vpop.f32.mrb[81].mxu1 }
 0x19f   :  { %v1472_v17 = vmax.f32 %v2824_v59, %v1447_v0  ;;  %v1082_v19 = vmax.f32 %v1019_v11, 0.0  ;;  %v1423_v47 = vmax.f32 %v1360_v13, 0.0 }
 0x1a0   :  { %v1023_v20 = vpop.f32.mrb[82].mxu0  ;;  %v1364_v60 = vpop.f32.mrb[82].mxu1 }
 0x1a1   :  { %1498 = vst.msk [vmem:[%s3044_s3 + $0x70] sm:$0xff] %vm1483_vm2, %v1472_v17  ;;  %v1448_v22 = vmax.f32 %v1082_v19, %v1423_v47  ;;  %v1024_v23 = vadd.f32 %v2764_v38, %v1023_v20  ;;  %v1365_v24 = vadd.f32 %v2764_v38, %v1364_v60  ;;  %v1025_v25 = vpop.f32.mrb[83].mxu0  ;;  %v1366_v27 = vpop.f32.mrb[83].mxu1 }
 0x1a3   :  { %v1473_v31 = vmax.f32 %v2828_v8, %v1448_v22  ;;  %v1083_v21 = vmax.f32 %v1024_v23, 0.0  ;;  %v1424_v59 = vmax.f32 %v1365_v24, 0.0 }
 0x1a4   :  { %v1028_v32 = vpop.f32.mrb[84].mxu0  ;;  %v1369_v33 = vpop.f32.mrb[84].mxu1 }
 0x1a5   :  { %1499 = vst.msk [vmem:[%s3044_s3 + $0x78] sm:$0xff] %vm1483_vm2, %v1473_v31  ;;  %v1449_v7 = vmax.f32 %v1083_v21, %v1424_v59  ;;  %v1029_v49 = vadd.f32 %v2764_v38, %v1028_v32  ;;  %v1370_v34 = vadd.f32 %v2764_v38, %v1369_v33  ;;  %v1030_v35 = vpop.f32.mrb[85].mxu0  ;;  %v1371_v37 = vpop.f32.mrb[85].mxu1 }
 0x1a7   :  { %v1474_v39 = vmax.f32 %v2832_v18, %v1449_v7  ;;  %v1084_v41 = vmax.f32 %v1029_v49, 0.0  ;;  %v1425_v8 = vmax.f32 %v1370_v34, 0.0 }
 0x1a8   :  { %v1033_v44 = vpop.f32.mrb[86].mxu0  ;;  %v1374_v30 = vpop.f32.mrb[86].mxu1 }
 0x1a9   :  { %1500 = vst.msk [vmem:[%s3044_s3 + $0x80] sm:$0xff] %vm1483_vm2, %v1474_v39  ;;  %v1450_v45 = vmax.f32 %v1084_v41, %v1425_v8  ;;  %v1034_v16 = vadd.f32 %v2764_v38, %v1033_v44  ;;  %v1375_v46 = vadd.f32 %v2764_v38, %v1374_v30  ;;  %v1035_v48 = vpop.f32.mrb[87].mxu0  ;;  %v1376_v58 = vpop.f32.mrb[87].mxu1 }
 0x1ab   :  { %v1475_v51 = vmax.f32 %v2836_v29, %v1450_v45  ;;  %v1085_v52 = vmax.f32 %v1034_v16, 0.0  ;;  %v1426_v18 = vmax.f32 %v1375_v46, 0.0 }
 0x1ac   :  { %v1038_v53 = vpop.f32.mrb[88].mxu0  ;;  %v1379_v55 = vpop.f32.mrb[88].mxu1 }
 0x1ad   :  { %1501 = vst.msk [vmem:[%s3044_s3 + $0x88] sm:$0xff] %vm1483_vm2, %v1475_v51  ;;  %v1451_v57 = vmax.f32 %v1085_v52, %v1426_v18  ;;  %v1039_v40 = vadd.f32 %v2764_v38, %v1038_v53  ;;  %v1380_v26 = vadd.f32 %v2764_v38, %v1379_v55  ;;  %v1040_v61 = vpop.f32.mrb[89].mxu0  ;;  %v1381_v62 = vpop.f32.mrb[89].mxu1 }
 0x1af   :  { %v1476_v63 = vmax.f32 %v2840_v42, %v1451_v57  ;;  %v1086_v1 = vmax.f32 %v1039_v40, 0.0  ;;  %v1427_v29 = vmax.f32 %v1380_v26, 0.0 }
 0x1b0   :  { %v1043_v4 = vpop.f32.mrb[90].mxu0  ;;  %v1384_v2 = vpop.f32.mrb[90].mxu1 }
 0x1b1   :  { %1502 = vst.msk [vmem:[%s3044_s3 + $0x90] sm:$0xff] %vm1483_vm2, %v1476_v63  ;;  %v1452_v5 = vmax.f32 %v1086_v1, %v1427_v29  ;;  %v1044_v6 = vadd.f32 %v2764_v38, %v1043_v4  ;;  %v1385_v9 = vadd.f32 %v2764_v38, %v1384_v2  ;;  %v1045_v36 = vpop.f32.mrb[91].mxu0  ;;  %v1386_v50 = vpop.f32.mrb[91].mxu1 }
 0x1b3   :  { %v1477_v10 = vmax.f32 %v2844_v54, %v1452_v5  ;;  %v1087_v0 = vmax.f32 %v1044_v6, 0.0  ;;  %v1428_v42 = vmax.f32 %v1385_v9, 0.0 }
 0x1b4   :  { %v1048_v11 = vpop.f32.mrb[92].mxu0  ;;  %v1389_v13 = vpop.f32.mrb[92].mxu1 }
 0x1b5   :  { %1503 = vst.msk [vmem:[%s3044_s3 + $0x98] sm:$0xff] %vm1483_vm2, %v1477_v10  ;;  %v1453_v14 = vmax.f32 %v1087_v0, %v1428_v42  ;;  %v1049_v12 = vadd.f32 %v2764_v38, %v1048_v11  ;;  %v1390_v17 = vadd.f32 %v2764_v38, %v1389_v13  ;;  %v1050_v19 = vpop.f32.mrb[93].mxu0  ;;  %v1391_v47 = vpop.f32.mrb[93].mxu1 }
 0x1b7   :  { %v1478_v20 = vmax.f32 %v2848_v3, %v1453_v14  ;;  %v1088_v60 = vmax.f32 %v1049_v12, 0.0  ;;  %v1429_v54 = vmax.f32 %v1390_v17, 0.0 }
 0x1b8   :  { %v1053_v22 = vpop.f32.mrb[94].mxu0  ;;  %v1394_v23 = vpop.f32.mrb[94].mxu1 }
 0x1b9   :  { %1504 = vst.msk [vmem:[%s3044_s3 + $0xa0] sm:$0xff] %vm1483_vm2, %v1478_v20  ;;  %v1454_v24 = vmax.f32 %v1088_v60, %v1429_v54  ;;  %v1054_v25 = vadd.f32 %v2764_v38, %v1053_v22  ;;  %v1395_v27 = vadd.f32 %v2764_v38, %v1394_v23  ;;  %v1055_v31 = vpop.f32.mrb[95].mxu0  ;;  %v1396_v21 = vpop.f32.mrb[95].mxu1 }
 0x1bb   :  { %v1479_v59 = vmax.f32 %v2852_v15, %v1454_v24  ;;  %v1089_v32 = vmax.f32 %v1054_v25, 0.0  ;;  %v1430_v3 = vmax.f32 %v1395_v27, 0.0 }
 0x1bc   :  { %v1058_v33 = vpop.f32.mrb[96].mxu0  ;;  %v1399_v7 = vpop.f32.mrb[96].mxu1 }
 0x1bd   :  { %1505 = vst.msk [vmem:[%s3044_s3 + $0xa8] sm:$0xff] %vm1483_vm2, %v1479_v59  ;;  %v1455_v49 = vmax.f32 %v1089_v32, %v1430_v3  ;;  %v1059_v34 = vadd.f32 %v2764_v38, %v1058_v33  ;;  %v1400_v35 = vadd.f32 %v2764_v38, %v1399_v7  ;;  %v1060_v37 = vpop.f32.mrb[97].mxu0  ;;  %v1401_v39 = vpop.f32.mrb[97].mxu1 }
 0x1bf   :  { %v1480_v41 = vmax.f32 %v2856_v28, %v1455_v49  ;;  %v1090_v8 = vmax.f32 %v1059_v34, 0.0  ;;  %v1431_v15 = vmax.f32 %v1400_v35, 0.0 }
 0x1c0   :  { %v1063_v44 = vpop.f32.mrb[98].mxu0  ;;  %v1404_v30 = vpop.f32.mrb[98].mxu1 }
 0x1c1   :  { %1506 = vst.msk [vmem:[%s3044_s3 + $0xb0] sm:$0xff] %vm1483_vm2, %v1480_v41  ;;  %v1456_v45 = vmax.f32 %v1090_v8, %v1431_v15  ;;  %v1064_v16 = vadd.f32 %v2764_v38, %v1063_v44  ;;  %v1405_v46 = vadd.f32 %v2764_v38, %v1404_v30  ;;  %v1065_v48 = vpop.f32.mrb[99].mxu0  ;;  %v1406_v58 = vpop.f32.mrb[99].mxu1 }
 0x1c3   :  { %v1481_v51 = vmax.f32 %v2860_v43, %v1456_v45  ;;  %v1091_v52 = vmax.f32 %v1064_v16, 0.0  ;;  %v1432_v28 = vmax.f32 %v1405_v46, 0.0 }
 0x1c5   :  { %1507 = vst.msk [vmem:[%s3044_s3 + $0xb8] sm:$0xff] %vm1483_vm2, %v1481_v51  ;;  %v1457_v18 = vmax.f32 %v1091_v52, %v1432_v28 }
 0x1c7   :  { %v1482_v53 = vmax.f32 %v2864_v56, %v1457_v18 }
 0x1c9   :  { %1508 = vst.msk [vmem:[%s3044_s3 + $0xc0] sm:$0xff] %vm1483_vm2, %v1482_v53 }

// kernel: lenet_forward.5
= control target key start
LH: loop header
LB: loop body
LE: loop exit
PB: predicated region body
PF: predicated region fallthrough
CT: control target
= control target key end

     0   :  { %v656_v2 = vmov 0.0|0.0   ;;  %vm87_vm0 = vcmask 130048   ;;  %vm658_vm1 = vmmov 0   ;;  %vm254_vm2 = vcmask 982016   ;;  %s973_s1 = inlined_call_operand.vmem [shape: f32[400,120], index: 1, kind: input, shape index: {}]   ;;  %s974_s0 = inlined_call_operand.vmem [shape: f32[8,400], index: 0, kind: input, shape index: {}]   ;;  %s975_s3 = inlined_call_operand.vmem [shape: f32[120,84], index: 3, kind: input, shape index: {}]   ;;  %s976_s5 = inlined_call_operand.vmem [shape: f32[84,128], index: 5, kind: input, shape index: {}]   ;;  %s977_s2 = inlined_call_operand.vmem [shape: f32[1,120], index: 2, kind: input, shape index: {}]   ;;  %s978_s4 = inlined_call_operand.vmem [shape: f32[1,84], index: 4, kind: input, shape index: {}]   ;;  %s979_s6 = inlined_call_operand.vmem [shape: f32[1,128], index: 6, kind: input, shape index: {}]   ;;  %s980_s7 = inlined_call_operand.vmem [shape: f32[8,128], index: 7, kind: output, shape index: {}]  }
   0x1   :  { %v46_v0 = vld [vmem:[%s973_s1 + $0x80] sm:$0xff]  ;;  %v47_v1 = vld [vmem:[%s973_s1 + $0x88] sm:$0xff]  ;;  %590 = vmatprep.subr.bf16.mxu1 %v656_v2  ;;  %v48_v10 = vld [vmem:[%s973_s1 + $0x90] sm:$0xff]  ;;  %vm351_vm3 = vcmask 1043456   ;;  %vm347_vm4 = vcmask 687104  }
   0x2   :  { %v30_v3 = vld [vmem:[%s973_s1] sm:$0xff]  ;;  %v558_v4 = vpack.c.bf16 %v47_v1, %v46_v0  ;;  %v31_v5 = vld [vmem:[%s973_s1 + $0x8] sm:$0xff]  ;;  %v49_v11 = vld [vmem:[%s973_s1 + $0x98] sm:$0xff] }
   0x3   :  { %v62_v6 = vld [vmem:[%s973_s1 + $0x100] sm:$0xff]  ;;  %v63_v7 = vld [vmem:[%s973_s1 + $0x108] sm:$0xff]  ;;  %v560_v8 = vpack.c.bf16 %v31_v5, %v30_v3  ;;  %v32_v12 = vld [vmem:[%s973_s1 + $0x10] sm:$0xff]  ;;  %v562_v13 = vpack.c.bf16 %v49_v11, %v48_v10 }
   0x4   :  { %v591_v9 = vpack.c.bf16 %v63_v7, %v62_v6  ;;  %559 = vmatprep.subr.bf16.mxu0 %v558_v4  ;;  %v33_v14 = vld [vmem:[%s973_s1 + $0x18] sm:$0xff]  ;;  %v64_v15 = vld [vmem:[%s973_s1 + $0x110] sm:$0xff]  ;;  %v50_v19 = vld [vmem:[%s973_s1 + $0xa0] sm:$0xff] }
   0x5   :  { %v65_v16 = vld [vmem:[%s973_s1 + $0x118] sm:$0xff]  ;;  %561 = vmatpush3.bf16.msra.mxu0 %v560_v8  ;;  %v564_v17 = vpack.c.bf16 %v33_v14, %v32_v12  ;;  %v51_v20 = vld [vmem:[%s973_s1 + $0xa8] sm:$0xff]  ;;  %v34_v21 = vld [vmem:[%s973_s1 + $0x20] sm:$0xff] }
   0x6   :  { %592 = vmatpush1.bf16.msra.mxu1 %v591_v9  ;;  %v594_v18 = vpack.c.bf16 %v65_v16, %v64_v15  ;;  %563 = vmatprep.subr.bf16.mxu0 %v562_v13  ;;  %v566_v22 = vpack.c.bf16 %v51_v20, %v50_v19  ;;  %v35_v23 = vld [vmem:[%s973_s1 + $0x28] sm:$0xff]  ;;  %v66_v24 = vld [vmem:[%s973_s1 + $0x120] sm:$0xff]  ;;  %v52_v26 = vld [vmem:[%s973_s1 + $0xb0] sm:$0xff] }
   0x7   :  { %593 = vmatprep.subr.bf16.mxu1 %v656_v2  ;;  %v67_v25 = vld [vmem:[%s973_s1 + $0x128] sm:$0xff]  ;;  %v53_v27 = vld [vmem:[%s973_s1 + $0xb8] sm:$0xff]  ;;  %v568_v28 = vpack.c.bf16 %v35_v23, %v34_v21  ;;  %v36_v30 = vld [vmem:[%s973_s1 + $0x30] sm:$0xff] }
   0x8   :  { %v597_v29 = vpack.c.bf16 %v67_v25, %v66_v24  ;;  %v570_v31 = vpack.c.bf16 %v53_v27, %v52_v26  ;;  %v37_v32 = vld [vmem:[%s973_s1 + $0x38] sm:$0xff]  ;;  %v68_v33 = vld [vmem:[%s973_s1 + $0x130] sm:$0xff]  ;;  %v54_v35 = vld [vmem:[%s973_s1 + $0xc0] sm:$0xff] }
   0x9   :  { %565 = vmatpush3.bf16.msra.mxu0 %v564_v17  ;;  %v69_v34 = vld [vmem:[%s973_s1 + $0x138] sm:$0xff]  ;;  %v55_v36 = vld [vmem:[%s973_s1 + $0xc8] sm:$0xff]  ;;  %v572_v37 = vpack.c.bf16 %v37_v32, %v36_v30  ;;  %v38_v39 = vld [vmem:[%s973_s1 + $0x40] sm:$0xff] }
   0xa   :  { %595 = vmatpush1.bf16.msra.mxu1 %v594_v18  ;;  %567 = vmatprep.subr.bf16.mxu0 %v566_v22  ;;  %v600_v38 = vpack.c.bf16 %v69_v34, %v68_v33  ;;  %v574_v40 = vpack.c.bf16 %v55_v36, %v54_v35  ;;  %v39_v41 = vld [vmem:[%s973_s1 + $0x48] sm:$0xff]  ;;  %v70_v42 = vld [vmem:[%s973_s1 + $0x140] sm:$0xff]  ;;  %v56_v44 = vld [vmem:[%s973_s1 + $0xd0] sm:$0xff] }
   0xb   :  { %596 = vmatprep.subr.bf16.mxu1 %v656_v2  ;;  %v71_v43 = vld [vmem:[%s973_s1 + $0x148] sm:$0xff]  ;;  %v57_v45 = vld [vmem:[%s973_s1 + $0xd8] sm:$0xff]  ;;  %v576_v46 = vpack.c.bf16 %v39_v41, %v38_v39  ;;  %v40_v48 = vld [vmem:[%s973_s1 + $0x50] sm:$0xff] }
   0xc   :  { %v603_v47 = vpack.c.bf16 %v71_v43, %v70_v42  ;;  %v41_v49 = vld [vmem:[%s973_s1 + $0x58] sm:$0xff]  ;;  %v27_v50 = vld [vmem:[%s974_s0 + $0x8] sm:$0xff]  ;;  %v578_v51 = vpack.c.bf16 %v57_v45, %v56_v44  ;;  %v72_v52 = vld [vmem:[%s973_s1 + $0x150] sm:$0xff] }
   0xd   :  { %569 = vmatpush3.bf16.msra.mxu0 %v568_v28  ;;  %v73_v53 = vld [vmem:[%s973_s1 + $0x158] sm:$0xff]  ;;  %v58_v55 = vld [vmem:[%s973_s1 + $0xe0] sm:$0xff]  ;;  %v59_v56 = vld [vmem:[%s973_s1 + $0xe8] sm:$0xff]  ;;  %155 = vmatprep.mubr.f32.mxu0 %v27_v50  ;;  %v580_v57 = vpack.c.bf16 %v41_v49, %v40_v48 }
   0xe   :  { %598 = vmatpush1.bf16.msra.mxu1 %v597_v29  ;;  %571 = vmatprep.subr.bf16.mxu0 %v570_v31  ;;  %v29_v54 = vld [vmem:[%s974_s0 + $0x18] sm:$0xff]  ;;  %v606_v58 = vpack.c.bf16 %v73_v53, %v72_v52  ;;  %v42_v59 = vld [vmem:[%s973_s1 + $0x60] sm:$0xff]  ;;  %v582_v60 = vpack.c.bf16 %v59_v56, %v58_v55  ;;  %v43_v61 = vld [vmem:[%s973_s1 + $0x68] sm:$0xff] }
   0xf   :  { %599 = vmatprep.subr.bf16.mxu1 %v656_v2  ;;  %431 = vmatprep.mubr.msk.f32.mxu1 %vm87_vm0, %v29_v54  ;;  %v74_v62 = vld [vmem:[%s973_s1 + $0x160] sm:$0xff]  ;;  %v75_v63 = vld [vmem:[%s973_s1 + $0x168] sm:$0xff]  ;;  %v60_v0 = vld [vmem:[%s973_s1 + $0xf0] sm:$0xff]  ;;  %v584_v3 = vpack.c.bf16 %v43_v61, %v42_v59 }
  0x10   :  { %v61_v1 = vld [vmem:[%s973_s1 + $0xf8] sm:$0xff]  ;;  %v609_v4 = vpack.c.bf16 %v75_v63, %v74_v62  ;;  %v44_v5 = vld [vmem:[%s973_s1 + $0x70] sm:$0xff]  ;;  %v78_v12 = vld [vmem:[%s973_s1 + $0x180] sm:$0xff] }
  0x11   :  { %573 = vmatpush3.bf16.msra.mxu0 %v572_v37  ;;  %v586_v6 = vpack.c.bf16 %v61_v1, %v60_v0  ;;  %v45_v7 = vld [vmem:[%s973_s1 + $0x78] sm:$0xff]  ;;  %v76_v8 = vld [vmem:[%s973_s1 + $0x170] sm:$0xff]  ;;  %v79_v13 = vld [vmem:[%s973_s1 + $0x188] sm:$0xff] }
  0x12   :  { %601 = vmatpush1.bf16.msra.mxu1 %v600_v38  ;;  %575 = vmatprep.subr.bf16.mxu0 %v574_v40  ;;  %v77_v9 = vld [vmem:[%s973_s1 + $0x178] sm:$0xff]  ;;  %v588_v10 = vpack.c.bf16 %v45_v7, %v44_v5  ;;  %v232_v14 = vld [vmem:[%s975_s3] sm:$0xff]  ;;  %v233_v15 = vld [vmem:[%s975_s3 + $0x8] sm:$0xff]  ;;  %v615_v17 = vpack.c.bf16 %v79_v13, %v78_v12  ;;  %v657_v38 = vmov 0.0  }
  0x13   :  { %602 = vmatprep.subr.bf16.mxu1 %v656_v2  ;;  %v612_v11 = vpack.c.bf16 %v77_v9, %v76_v8  ;;  %v26_v16 = vld [vmem:[%s974_s0] sm:$0xff]  ;;  %v618_v18 = vpack.c.bf16 %v233_v15, %v232_v14  ;;  %v234_v19 = vld [vmem:[%s975_s3 + $0x10] sm:$0xff]  ;;  %v235_v20 = vld [vmem:[%s975_s3 + $0x18] sm:$0xff] }
  0x14   :  { %v28_v21 = vld [vmem:[%s974_s0 + $0x10] sm:$0xff]  ;;  %v621_v22 = vpack.c.bf16 %v235_v20, %v234_v19  ;;  %v236_v23 = vld [vmem:[%s975_s3 + $0x20] sm:$0xff]  ;;  %v237_v24 = vld [vmem:[%s975_s3 + $0x28] sm:$0xff] }
  0x15   :  { %577 = vmatpush3.bf16.msra.mxu0 %v576_v46  ;;  %v624_v25 = vpack.c.bf16 %v237_v24, %v236_v23  ;;  %v238_v26 = vld [vmem:[%s975_s3 + $0x30] sm:$0xff]  ;;  %v239_v27 = vld [vmem:[%s975_s3 + $0x38] sm:$0xff]  ;;  %v240_v29 = vld [vmem:[%s975_s3 + $0x40] sm:$0xff] }
  0x16   :  { %604 = vmatpush1.bf16.msra.mxu1 %v603_v47  ;;  %579 = vmatprep.subr.bf16.mxu0 %v578_v51  ;;  %v627_v28 = vpack.c.bf16 %v239_v27, %v238_v26  ;;  %v241_v30 = vld [vmem:[%s975_s3 + $0x48] sm:$0xff]  ;;  %v242_v32 = vld [vmem:[%s975_s3 + $0x50] sm:$0xff]  ;;  %v243_v33 = vld [vmem:[%s975_s3 + $0x58] sm:$0xff] }
  0x17   :  { %605 = vmatprep.subr.bf16.mxu1 %v656_v2  ;;  %v630_v31 = vpack.c.bf16 %v241_v30, %v240_v29  ;;  %v633_v34 = vpack.c.bf16 %v243_v33, %v242_v32  ;;  %v244_v35 = vld [vmem:[%s975_s3 + $0x60] sm:$0xff]  ;;  %v245_v36 = vld [vmem:[%s975_s3 + $0x68] sm:$0xff]  ;;  %v246_v39 = vld [vmem:[%s975_s3 + $0x70] sm:$0xff] }
  0x18   :  { %v636_v37 = vpack.c.bf16 %v245_v36, %v244_v35  ;;  %v329_v40 = vld [vmem:[%s976_s5] sm:$0xff]  ;;  %v330_v41 = vld [vmem:[%s976_s5 + $0x8] sm:$0xff]  ;;  %v331_v42 = vld [vmem:[%s976_s5 + $0x10] sm:$0xff] }
  0x19   :  { %581 = vmatpush3.bf16.msra.mxu0 %v580_v57  ;;  %v639_v43 = vpack.c.bf16 %v330_v41, %v329_v40  ;;  %v332_v44 = vld [vmem:[%s976_s5 + $0x18] sm:$0xff]  ;;  %v333_v46 = vld [vmem:[%s976_s5 + $0x20] sm:$0xff]  ;;  %v334_v47 = vld [vmem:[%s976_s5 + $0x28] sm:$0xff] }
  0x1a   :  { %607 = vmatpush1.bf16.msra.mxu1 %v606_v58  ;;  %583 = vmatprep.subr.bf16.mxu0 %v582_v60  ;;  %v642_v45 = vpack.c.bf16 %v332_v44, %v331_v42  ;;  %v645_v48 = vpack.c.bf16 %v334_v47, %v333_v46  ;;  %v335_v49 = vld [vmem:[%s976_s5 + $0x30] sm:$0xff]  ;;  %v336_v50 = vld [vmem:[%s976_s5 + $0x38] sm:$0xff]  ;;  %v430_v54 = vld [vmem:[%s977_s2] ss:$0 sm:$0xff] }
  0x1b   :  { %608 = vmatprep.subr.bf16.mxu1 %v656_v2  ;;  %v648_v51 = vpack.c.bf16 %v336_v50, %v335_v49  ;;  %v337_v61 = vld [vmem:[%s976_s5 + $0x40] sm:$0xff]  ;;  %v339_v63 = vld [vmem:[%s976_s5 + $0x50] sm:$0xf] }
  0x1c   :  { %v432_v0 = vld [vmem:[%s978_s4] ss:$0 sm:$0xff] }
  0x1d   :  { %585 = vmatpush3.bf16.msra.mxu0 %v584_v3 }
  0x1e   :  { %610 = vmatpush1.bf16.msra.mxu1 %v609_v4  ;;  %587 = vmatprep.subr.bf16.mxu0 %v586_v6  ;;  %v434_v6 = vld [vmem:[%s979_s6] ss:$0 sm:$0xff] }
  0x1f   :  { %611 = vmatprep.subr.bf16.mxu1 %v656_v2 }
  0x21   :  { %589 = vmatpush3.bf16.msra.mxu0 %v588_v10 }
  0x22   :  { %613 = vmatpush1.bf16.msra.mxu1 %v612_v11  ;;  %617 = vmatprep.subr.bf16.mxu0 %v656_v2 }
  0x23   :  { %614 = vmatprep.subr.bf16.mxu1 %v656_v2 }
  0x24   :  { %156 = vmatmul.mubr.f32.vlgmr.msra.gmra.mrb[0].mxu0 %v26_v16 }
  0x25   :  { %619 = vmatpush3.bf16.msra.mxu0 %v618_v18  ;;  %530 = vmatprep.mubr.msk.f32.mxu0 %vm658_vm1, %v657_v38 }
  0x26   :  { %616 = vmatpush1.bf16.msra.mxu1 %v615_v17  ;;  %620 = vmatprep.subr.bf16.mxu0 %v656_v2 }
  0x27   :  { %638 = vmatprep.subr.bf16.mxu1 %v656_v2 }
  0x29   :  { %226 = vmatmul.mubr.f32.vlgmr.msra.gmra.mrb[0].mxu1 %v28_v21  ;;  %622 = vmatpush3.bf16.msra.mxu0 %v621_v22 }
  0x2a   :  { %623 = vmatprep.subr.bf16.mxu0 %v656_v2  ;;  %555 = vmatprep.mubr.msk.f32.mxu1 %vm658_vm1, %v657_v38 }
  0x2b   :  { %640 = vmatpush3.bf16.msra.mxu1 %v639_v43 }
  0x2c   :  { %641 = vmatprep.subr.bf16.mxu1 %v656_v2 }
  0x2d   :  { %625 = vmatpush3.bf16.msra.mxu0 %v624_v25 }
  0x2e   :  { %626 = vmatprep.subr.bf16.mxu0 %v656_v2 }
  0x2f   :  { %643 = vmatpush3.bf16.msra.mxu1 %v642_v45 }
  0x30   :  { %644 = vmatprep.subr.bf16.mxu1 %v656_v2 }
  0x31   :  { %628 = vmatpush3.bf16.msra.mxu0 %v627_v28 }
  0x32   :  { %629 = vmatprep.subr.bf16.mxu0 %v656_v2 }
  0x33   :  { %646 = vmatpush3.bf16.msra.mxu1 %v645_v48 }
  0x34   :  { %647 = vmatprep.subr.bf16.mxu1 %v656_v2 }
  0x35   :  { %631 = vmatpush3.bf16.msra.mxu0 %v630_v31 }
  0x36   :  { %632 = vmatprep.subr.bf16.mxu0 %v656_v2 }
  0x37   :  { %649 = vmatpush3.bf16.msra.mxu1 %v648_v51 }
  0x38   :  { %650 = vmatprep.subr.bf16.mxu1 %v656_v2 }
  0x39   :  { %634 = vmatpush3.bf16.msra.mxu0 %v633_v34 }
  0x3a   :  { %635 = vmatprep.subr.bf16.mxu0 %v656_v2  ;;  %v338_v2 = vld [vmem:[%s976_s5 + $0x48] sm:$0xff] }
  0x3b   :  { %v651_v62 = vpack.c.bf16 %v338_v2, %v337_v61 }
  0x3d   :  { %637 = vmatpush3.bf16.msra.mxu0 %v636_v37  ;;  %652 = vmatpush3.bf16.msra.mxu1 %v651_v62 }
  0x3e   :  { %528 = vmatprep.subr.mxu0 %v657_v38  ;;  %553 = vmatprep.subr.mxu1 %v657_v38 }
  0x41   :  { %529 = vmatpush3.msra.mxu0 %v246_v39  ;;  %554 = vmatpush3.msk.msra.mxu1 %vm351_vm3, %v339_v63 }
  0xf7   :  { %v469_v52 = vpop.f32.mrb[0].mxu0 }
  0xf8   :  { %v470_v53 = vpop.f32.mrb[1].mxu0 }
  0xf9   :  { %v471_v55 = vadd.f32 %v470_v53, %v469_v52 }
  0xfb   :  { %v158_v56 = vadd.f32 %v471_v55, %v430_v54 }
  0xfc   :  { %v227_v57 = vpop.f32.mrb[0].mxu1 }
  0xfd   :  { %v229_v58 = vpop.f32.mrb[1].mxu1  ;;  %v228_v59 = vadd.f32 %v227_v57, %v158_v56 }
  0xff   :  { %v231_v60 = vmax.f32 %v228_v59, 0.0 }
 0x101   :  { %531 = vmatmul.mubr.msk.f32.vlgmr.msra.gmra.mrb[2].mxu0 %vm254_vm2, %v231_v60 }
 0x1d4   :  { %v324_v1 = vpop.f32.mrb[2].mxu0 }
 0x1d5   :  { %v325_v3 = vadd.f32 %v432_v0, %v324_v1  ;;  %v532_v4 = vpop.f32.mrb[3].mxu0 }
 0x1d7   :  { %v328_v5 = vmax.f32 %v325_v3, 0.0 }
 0x1d9   :  { %556 = vmatmul.mubr.msk.f32.vlgmr.msra.gmra.mrb[2].mxu1 %vm347_vm4, %v328_v5 }
 0x2ac   :  { %v421_v7 = vpop.f32.mrb[2].mxu1 }
 0x2ad   :  { %v422_v8 = vadd.f32 %v434_v6, %v421_v7  ;;  %v557_v9 = vpop.f32.mrb[3].mxu1 }
 0x2af   :  { %425 = vst [vmem:[%s980_s7] sm:$0xff] %v422_v8 }

</bundles_post_ra>
